<compile_context>
chip_gen: v6e
topology: v6e:2x2x1
jax: 0.10.0
libtpu: 0.0.40
codegen_flags: <defaults>
</compile_context>

<pallas_src>
import numpy as np
import jax
import jax.numpy as jnp
from jax import image as jimage
from jax.experimental import pallas as pl
from jax.experimental.pallas import tpu as pltpu  # noqa: F401  (TPU backend)


# ---------------------------------------------------------------------------
# Deterministic pooling / interpolation matrices (match PyTorch semantics).
# ---------------------------------------------------------------------------
def adaptive_pool_matrix(out_size: int, in_size: int) -> np.ndarray:
    """Row i averages input rows [floor(i*in/out), ceil((i+1)*in/out))."""
    m = np.zeros((out_size, in_size), dtype=np.float32)
    for i in range(out_size):
        s = (i * in_size) // out_size
        e = -((-(i + 1) * in_size) // out_size)  # ceil division
        m[i, s:e] = 1.0 / float(e - s)
    return m


def bilinear_matrix(out_size: int, in_size: int) -> np.ndarray:
    """1-D bilinear interpolation matrix, align_corners=False (PyTorch)."""
    m = np.zeros((out_size, in_size), dtype=np.float32)
    if in_size == 1:
        m[:, 0] = 1.0
        return m
    scale = in_size / out_size
    for i in range(out_size):
        src = max((i + 0.5) * scale - 0.5, 0.0)
        i0 = min(int(np.floor(src)), in_size - 1)
        i1 = min(i0 + 1, in_size - 1)
        lam = src - i0
        m[i, i0] += 1.0 - lam
        m[i, i1] += lam
    return m


# ---------------------------------------------------------------------------
# Pallas kernel + wrapper
# ---------------------------------------------------------------------------
def _low_fam(x_l, x_m, x_s, x_n):
    B, C, H, W = x_s.shape
    _, _, Hl, Wl = x_l.shape
    _, _, Hm, Wm = x_m.shape
    _, _, Hn, Wn = x_n.shape
    CH = C * H
    out_dtype = x_s.dtype

    # Height transforms, expanded to block-diag kron(I_C, Mh) so one matmul
    # handles every channel and lands in (C*H, W) order.  Column-packed: no
    # zero padding.
    eye_c = np.eye(C, dtype=np.float32)
    mh_all = np.concatenate(
        [np.kron(eye_c, adaptive_pool_matrix(H, Hl)),   # cols [0, C*Hl)
         np.kron(eye_c, adaptive_pool_matrix(H, Hm)),   # cols [C*Hl, C*(Hl+Hm))
         np.kron(eye_c, bilinear_matrix(H, Hn))],       # cols [.., C*(Hl+Hm+Hn))
        axis=1)                                         # (CH, C*(Hl+Hm+Hn))
    # Width transforms, pre-transposed and stacked along rows.
    mw_all = np.concatenate(
        [adaptive_pool_matrix(W, Wl).T,                 # rows [0, Wl)
         adaptive_pool_matrix(W, Wm).T,                 # rows [Wl, Wl+Wm)
         bilinear_matrix(W, Wn).T],                     # rows [.., Wl+Wm+Wn)
        axis=0)                                         # (Wl+Wm+Wn, W)
    mh_all = jnp.asarray(mh_all)   # trace-time constants (uploaded once under jit)
    mw_all = jnp.asarray(mw_all)

    # Fold (C, Hin) so each source is one (C*Hin, Win) matmul operand.
    xl2 = x_l.reshape(B, C * Hl, Wl)
    xm2 = x_m.reshape(B, C * Hm, Wm)
    xn2 = x_n.reshape(B, C * Hn, Wn)
    xs2 = x_s.reshape(B, CH, W)

    kl, km, kn = C * Hl, C * Hm, C * Hn
    hi = jax.lax.Precision.HIGHEST

    def kernel(mw_ref, mh_ref, xl_ref, xm_ref, xn_ref, xs_ref, out_ref):
        def transform(x_ref, b, w_lo, w_hi, k_lo, k_hi, out_row):
            # Width transform, all channels batched: (C*Hin, Win) @ (Win, W)
            t = jnp.dot(x_ref[b], mw_ref[w_lo:w_hi, :],
                        preferred_element_type=jnp.float32, precision=hi)
            # Height transform for every channel in one MXU call via the
            # block-diagonal kron(I_C, Mh): (C*H, C*Hin) @ (C*Hin, W).
            y = jnp.dot(mh_ref[:, k_lo:k_hi], t,
                        preferred_element_type=jnp.float32, precision=hi)
            # One contiguous slab store per source.
            out_ref[b, out_row:out_row + CH, :] = y.astype(out_ref.dtype)

        # B is small & static -> unrolled loop, single kernel invocation.
        for b in range(B):
            transform(xl_ref, b, 0, Wl, 0, kl, 0 * CH)               # pooled x_l
            transform(xm_ref, b, Wl, Wl + Wm, kl, kl + km, 1 * CH)   # pooled x_m
            out_ref[b, 2 * CH:3 * CH, :] = xs_ref[b]                 # x_s passthrough
            transform(xn_ref, b, Wl + Wm, Wl + Wm + Wn,
                      kl + km, kl + km + kn, 3 * CH)                 # upsampled x_n

    # No grid: the whole (sub-MiB) problem fits in VMEM; every input/output
    # is a full-array VMEM block -> no per-step pipeline overhead.
    out_flat = pl.pallas_call(
        kernel,
        out_shape=jax.ShapeDtypeStruct((B, 4 * CH, W), out_dtype),
    )(mw_all, mh_all, xl2, xm2, xn2, xs2)

    return out_flat.reshape(B, 4 * C, H, W)


low_fam = jax.jit(_low_fam)


# ---------------------------------------------------------------------------
# Pure-JAX reference, independent of the kernel's matrix helpers.
# (Valid for the test shapes: pool ratios are exact integers; jax.image.resize
#  bilinear matches PyTorch align_corners=False for upsampling.)
# ---------------------------------------------------------------------------
def reference(x_l, x_m, x_s, x_n):
    B, C, H, W = x_s.shape

    def pool(x):
        b, c, hin, win = x.shape
        return x.reshape(b, c, H, hin // H, W, win // W).mean(axis=(3, 5))

    up = jimage.resize(x_n, (B, C, H, W), method="bilinear")
    return jnp.concatenate([pool(x_l), pool(x_m), x_s, up], axis=1)


if __name__ == "__main__":
    key = jax.random.PRNGKey(0)
    k1, k2, k3, k4 = jax.random.split(key, 4)

    B, C, H, W = 2, 4, 16, 16

    def rnd(k, shape):
        # Round to bf16-exact values so the correctness check is insensitive
        # to the MXU's f32->bf16 pass decomposition.
        x = jax.random.normal(k, shape, dtype=jnp.float32)
        return x.astype(jnp.bfloat16).astype(jnp.float32)

    x_l = rnd(k1, (B, C, 4 * H, 4 * W))
    x_m = rnd(k2, (B, C, 2 * H, 2 * W))
    x_s = rnd(k3, (B, C, H, W))
    x_n = rnd(k4, (B, C, H // 2, W // 2))

    out = jax.block_until_ready(low_fam(x_l, x_m, x_s, x_n))
    ref = jax.block_until_ready(reference(x_l, x_m, x_s, x_n))

    assert out.shape == (B, 4 * C, H, W), out.shape
    max_err = float(jnp.max(jnp.abs(out - ref)))
    assert jnp.allclose(out, ref, atol=1e-4, rtol=1e-4), f"mismatch: {max_err}"

    print("KERNEL_OK")
</pallas_src>

<mosaic_0001>
module attributes {stable_mosaic.version = 11 : i64} {
  func.func @kernel(%arg0: memref<104x16xf32, #tpu.memory_space<vmem>>, %arg1: memref<64x416xf32, #tpu.memory_space<vmem>>, %arg2: memref<2x256x64xf32, #tpu.memory_space<vmem>>, %arg3: memref<2x128x32xf32, #tpu.memory_space<vmem>>, %arg4: memref<2x32x8xf32, #tpu.memory_space<vmem>>, %arg5: memref<2x64x16xf32, #tpu.memory_space<vmem>>, %arg6: memref<2x256x16xf32, #tpu.memory_space<vmem>>) attributes {dimension_semantics = [], scalar_prefetch = 0 : i64, scratch_operands = 0 : i64, tpu.core_type = #tpu.core_type<tc>} {
    %c0 = arith.constant 0 : index
    %c0_0 = arith.constant 0 : index
    %c0_1 = arith.constant 0 : index
    %0 = vector.load %arg2[%c0, %c0_0, %c0_1] : memref<2x256x64xf32, #tpu.memory_space<vmem>>, vector<1x256x64xf32>
    %1 = vector.shape_cast %0 : vector<1x256x64xf32> to vector<256x64xf32>
    %c0_2 = arith.constant 0 : index
    %c0_3 = arith.constant 0 : index
    %2 = vector.load %arg0[%c0_2, %c0_3] : memref<104x16xf32, #tpu.memory_space<vmem>>, vector<64x16xf32>
    %cst = arith.constant dense<0.000000e+00> : vector<256x16xf32>
    %3 = tpu.matmul %1, %2, %cst {dimension_numbers = #tpu.dot_dimension_numbers<[1], [0], [0], [1], [0, 0, 1, 1], [], []>, precision = #tpu.contract_precision<fp32>} : vector<256x64xf32>, vector<64x16xf32>, vector<256x16xf32> -> vector<256x16xf32>
    %c0_4 = arith.constant 0 : index
    %c0_5 = arith.constant 0 : index
    %4 = vector.load %arg1[%c0_4, %c0_5] : memref<64x416xf32, #tpu.memory_space<vmem>>, vector<64x256xf32>
    %cst_6 = arith.constant dense<0.000000e+00> : vector<64x16xf32>
    %5 = tpu.matmul %4, %3, %cst_6 {dimension_numbers = #tpu.dot_dimension_numbers<[1], [0], [0], [1], [0, 0, 1, 1], [], []>, precision = #tpu.contract_precision<fp32>} : vector<64x256xf32>, vector<256x16xf32>, vector<64x16xf32> -> vector<64x16xf32>
    %c0_7 = arith.constant 0 : index
    %c0_8 = arith.constant 0 : index
    %c0_9 = arith.constant 0 : index
    %6 = vector.load %arg6[%c0_7, %c0_8, %c0_9] : memref<2x256x16xf32, #tpu.memory_space<vmem>>, vector<1x64x16xf32>
    %7 = vector.shape_cast %6 : vector<1x64x16xf32> to vector<64x16xf32>
    %8 = vector.shape_cast %5 : vector<64x16xf32> to vector<1x64x16xf32>
    tpu.vector_store %arg6[%c0_7, %c0_8, %c0_9], %8 {strides = array<i32>} : memref<2x256x16xf32, #tpu.memory_space<vmem>>, vector<1x64x16xf32>,
    %c0_10 = arith.constant 0 : index
    %c0_11 = arith.constant 0 : index
    %c0_12 = arith.constant 0 : index
    %9 = vector.load %arg3[%c0_10, %c0_11, %c0_12] : memref<2x128x32xf32, #tpu.memory_space<vmem>>, vector<1x128x32xf32>
    %10 = vector.shape_cast %9 : vector<1x128x32xf32> to vector<128x32xf32>
    %c64 = arith.constant 64 : index
    %c0_13 = arith.constant 0 : index
    %11 = vector.load %arg0[%c64, %c0_13] : memref<104x16xf32, #tpu.memory_space<vmem>>, vector<32x16xf32>
    %cst_14 = arith.constant dense<0.000000e+00> : vector<128x16xf32>
    %12 = tpu.matmul %10, %11, %cst_14 {dimension_numbers = #tpu.dot_dimension_numbers<[1], [0], [0], [1], [0, 0, 1, 1], [], []>, precision = #tpu.contract_precision<fp32>} : vector<128x32xf32>, vector<32x16xf32>, vector<128x16xf32> -> vector<128x16xf32>
    %c0_15 = arith.constant 0 : index
    %c256 = arith.constant 256 : index
    %13 = vector.load %arg1[%c0_15, %c256] : memref<64x416xf32, #tpu.memory_space<vmem>>, vector<64x128xf32>
    %cst_16 = arith.constant dense<0.000000e+00> : vector<64x16xf32>
    %14 = tpu.matmul %13, %12, %cst_16 {dimension_numbers = #tpu.dot_dimension_numbers<[1], [0], [0], [1], [0, 0, 1, 1], [], []>, precision = #tpu.contract_precision<fp32>} : vector<64x128xf32>, vector<128x16xf32>, vector<64x16xf32> -> vector<64x16xf32>
    %c0_17 = arith.constant 0 : index
    %c64_18 = arith.constant 64 : index
    %c0_19 = arith.constant 0 : index
    %15 = vector.load %arg6[%c0_17, %c64_18, %c0_19] : memref<2x256x16xf32, #tpu.memory_space<vmem>>, vector<1x64x16xf32>
    %16 = vector.shape_cast %15 : vector<1x64x16xf32> to vector<64x16xf32>
    %17 = vector.shape_cast %14 : vector<64x16xf32> to vector<1x64x16xf32>
    tpu.vector_store %arg6[%c0_17, %c64_18, %c0_19], %17 {strides = array<i32>} : memref<2x256x16xf32, #tpu.memory_space<vmem>>, vector<1x64x16xf32>,
    %c0_20 = arith.constant 0 : index
    %c0_21 = arith.constant 0 : index
    %c0_22 = arith.constant 0 : index
    %18 = vector.load %arg5[%c0_20, %c0_21, %c0_22] : memref<2x64x16xf32, #tpu.memory_space<vmem>>, vector<1x64x16xf32>
    %19 = vector.shape_cast %18 : vector<1x64x16xf32> to vector<64x16xf32>
    %c0_23 = arith.constant 0 : index
    %c128 = arith.constant 128 : index
    %c0_24 = arith.constant 0 : index
    %20 = vector.load %arg6[%c0_23, %c128, %c0_24] : memref<2x256x16xf32, #tpu.memory_space<vmem>>, vector<1x64x16xf32>
    %21 = vector.shape_cast %20 : vector<1x64x16xf32> to vector<64x16xf32>
    %22 = vector.shape_cast %19 : vector<64x16xf32> to vector<1x64x16xf32>
    tpu.vector_store %arg6[%c0_23, %c128, %c0_24], %22 {strides = array<i32>} : memref<2x256x16xf32, #tpu.memory_space<vmem>>, vector<1x64x16xf32>,
    %c0_25 = arith.constant 0 : index
    %c0_26 = arith.constant 0 : index
    %c0_27 = arith.constant 0 : index
    %23 = vector.load %arg4[%c0_25, %c0_26, %c0_27] : memref<2x32x8xf32, #tpu.memory_space<vmem>>, vector<1x32x8xf32>
    %24 = vector.shape_cast %23 : vector<1x32x8xf32> to vector<32x8xf32>
    %c96 = arith.constant 96 : index
    %c0_28 = arith.constant 0 : index
    %25 = vector.load %arg0[%c96, %c0_28] : memref<104x16xf32, #tpu.memory_space<vmem>>, vector<8x16xf32>
    %cst_29 = arith.constant dense<0.000000e+00> : vector<32x16xf32>
    %26 = tpu.matmul %24, %25, %cst_29 {dimension_numbers = #tpu.dot_dimension_numbers<[1], [0], [0], [1], [0, 0, 1, 1], [], []>, precision = #tpu.contract_precision<fp32>} : vector<32x8xf32>, vector<8x16xf32>, vector<32x16xf32> -> vector<32x16xf32>
    %c0_30 = arith.constant 0 : index
    %c384 = arith.constant 384 : index
    %27 = vector.load %arg1[%c0_30, %c384] : memref<64x416xf32, #tpu.memory_space<vmem>>, vector<64x32xf32>
    %cst_31 = arith.constant dense<0.000000e+00> : vector<64x16xf32>
    %28 = tpu.matmul %27, %26, %cst_31 {dimension_numbers = #tpu.dot_dimension_numbers<[1], [0], [0], [1], [0, 0, 1, 1], [], []>, precision = #tpu.contract_precision<fp32>} : vector<64x32xf32>, vector<32x16xf32>, vector<64x16xf32> -> vector<64x16xf32>
    %c0_32 = arith.constant 0 : index
    %c192 = arith.constant 192 : index
    %c0_33 = arith.constant 0 : index
    %29 = vector.load %arg6[%c0_32, %c192, %c0_33] : memref<2x256x16xf32, #tpu.memory_space<vmem>>, vector<1x64x16xf32>
    %30 = vector.shape_cast %29 : vector<1x64x16xf32> to vector<64x16xf32>
    %31 = vector.shape_cast %28 : vector<64x16xf32> to vector<1x64x16xf32>
    tpu.vector_store %arg6[%c0_32, %c192, %c0_33], %31 {strides = array<i32>} : memref<2x256x16xf32, #tpu.memory_space<vmem>>, vector<1x64x16xf32>,
    %c1 = arith.constant 1 : index
    %c0_34 = arith.constant 0 : index
    %c0_35 = arith.constant 0 : index
    %32 = vector.load %arg2[%c1, %c0_34, %c0_35] : memref<2x256x64xf32, #tpu.memory_space<vmem>>, vector<1x256x64xf32>
    %33 = vector.shape_cast %32 : vector<1x256x64xf32> to vector<256x64xf32>
    %c0_36 = arith.constant 0 : index
    %c0_37 = arith.constant 0 : index
    %34 = vector.load %arg0[%c0_36, %c0_37] : memref<104x16xf32, #tpu.memory_space<vmem>>, vector<64x16xf32>
    %cst_38 = arith.constant dense<0.000000e+00> : vector<256x16xf32>
    %35 = tpu.matmul %33, %34, %cst_38 {dimension_numbers = #tpu.dot_dimension_numbers<[1], [0], [0], [1], [0, 0, 1, 1], [], []>, precision = #tpu.contract_precision<fp32>} : vector<256x64xf32>, vector<64x16xf32>, vector<256x16xf32> -> vector<256x16xf32>
    %c0_39 = arith.constant 0 : index
    %c0_40 = arith.constant 0 : index
    %36 = vector.load %arg1[%c0_39, %c0_40] : memref<64x416xf32, #tpu.memory_space<vmem>>, vector<64x256xf32>
    %cst_41 = arith.constant dense<0.000000e+00> : vector<64x16xf32>
    %37 = tpu.matmul %36, %35, %cst_41 {dimension_numbers = #tpu.dot_dimension_numbers<[1], [0], [0], [1], [0, 0, 1, 1], [], []>, precision = #tpu.contract_precision<fp32>} : vector<64x256xf32>, vector<256x16xf32>, vector<64x16xf32> -> vector<64x16xf32>
    %c1_42 = arith.constant 1 : index
    %c0_43 = arith.constant 0 : index
    %c0_44 = arith.constant 0 : index
    %38 = vector.load %arg6[%c1_42, %c0_43, %c0_44] : memref<2x256x16xf32, #tpu.memory_space<vmem>>, vector<1x64x16xf32>
    %39 = vector.shape_cast %38 : vector<1x64x16xf32> to vector<64x16xf32>
    %40 = vector.shape_cast %37 : vector<64x16xf32> to vector<1x64x16xf32>
    tpu.vector_store %arg6[%c1_42, %c0_43, %c0_44], %40 {strides = array<i32>} : memref<2x256x16xf32, #tpu.memory_space<vmem>>, vector<1x64x16xf32>,
    %c1_45 = arith.constant 1 : index
    %c0_46 = arith.constant 0 : index
    %c0_47 = arith.constant 0 : index
    %41 = vector.load %arg3[%c1_45, %c0_46, %c0_47] : memref<2x128x32xf32, #tpu.memory_space<vmem>>, vector<1x128x32xf32>
    %42 = vector.shape_cast %41 : vector<1x128x32xf32> to vector<128x32xf32>
    %c64_48 = arith.constant 64 : index
    %c0_49 = arith.constant 0 : index
    %43 = vector.load %arg0[%c64_48, %c0_49] : memref<104x16xf32, #tpu.memory_space<vmem>>, vector<32x16xf32>
    %cst_50 = arith.constant dense<0.000000e+00> : vector<128x16xf32>
    %44 = tpu.matmul %42, %43, %cst_50 {dimension_numbers = #tpu.dot_dimension_numbers<[1], [0], [0], [1], [0, 0, 1, 1], [], []>, precision = #tpu.contract_precision<fp32>} : vector<128x32xf32>, vector<32x16xf32>, vector<128x16xf32> -> vector<128x16xf32>
    %c0_51 = arith.constant 0 : index
    %c256_52 = arith.constant 256 : index
    %45 = vector.load %arg1[%c0_51, %c256_52] : memref<64x416xf32, #tpu.memory_space<vmem>>, vector<64x128xf32>
    %cst_53 = arith.constant dense<0.000000e+00> : vector<64x16xf32>
    %46 = tpu.matmul %45, %44, %cst_53 {dimension_numbers = #tpu.dot_dimension_numbers<[1], [0], [0], [1], [0, 0, 1, 1], [], []>, precision = #tpu.contract_precision<fp32>} : vector<64x128xf32>, vector<128x16xf32>, vector<64x16xf32> -> vector<64x16xf32>
    %c1_54 = arith.constant 1 : index
    %c64_55 = arith.constant 64 : index
    %c0_56 = arith.constant 0 : index
    %47 = vector.load %arg6[%c1_54, %c64_55, %c0_56] : memref<2x256x16xf32, #tpu.memory_space<vmem>>, vector<1x64x16xf32>
    %48 = vector.shape_cast %47 : vector<1x64x16xf32> to vector<64x16xf32>
    %49 = vector.shape_cast %46 : vector<64x16xf32> to vector<1x64x16xf32>
    tpu.vector_store %arg6[%c1_54, %c64_55, %c0_56], %49 {strides = array<i32>} : memref<2x256x16xf32, #tpu.memory_space<vmem>>, vector<1x64x16xf32>,
    %c1_57 = arith.constant 1 : index
    %c0_58 = arith.constant 0 : index
    %c0_59 = arith.constant 0 : index
    %50 = vector.load %arg5[%c1_57, %c0_58, %c0_59] : memref<2x64x16xf32, #tpu.memory_space<vmem>>, vector<1x64x16xf32>
    %51 = vector.shape_cast %50 : vector<1x64x16xf32> to vector<64x16xf32>
    %c1_60 = arith.constant 1 : index
    %c128_61 = arith.constant 128 : index
    %c0_62 = arith.constant 0 : index
    %52 = vector.load %arg6[%c1_60, %c128_61, %c0_62] : memref<2x256x16xf32, #tpu.memory_space<vmem>>, vector<1x64x16xf32>
    %53 = vector.shape_cast %52 : vector<1x64x16xf32> to vector<64x16xf32>
    %54 = vector.shape_cast %51 : vector<64x16xf32> to vector<1x64x16xf32>
    tpu.vector_store %arg6[%c1_60, %c128_61, %c0_62], %54 {strides = array<i32>} : memref<2x256x16xf32, #tpu.memory_space<vmem>>, vector<1x64x16xf32>,
    %c1_63 = arith.constant 1 : index
    %c0_64 = arith.constant 0 : index
    %c0_65 = arith.constant 0 : index
    %55 = vector.load %arg4[%c1_63, %c0_64, %c0_65] : memref<2x32x8xf32, #tpu.memory_space<vmem>>, vector<1x32x8xf32>
    %56 = vector.shape_cast %55 : vector<1x32x8xf32> to vector<32x8xf32>
    %c96_66 = arith.constant 96 : index
    %c0_67 = arith.constant 0 : index
    %57 = vector.load %arg0[%c96_66, %c0_67] : memref<104x16xf32, #tpu.memory_space<vmem>>, vector<8x16xf32>
    %cst_68 = arith.constant dense<0.000000e+00> : vector<32x16xf32>
    %58 = tpu.matmul %56, %57, %cst_68 {dimension_numbers = #tpu.dot_dimension_numbers<[1], [0], [0], [1], [0, 0, 1, 1], [], []>, precision = #tpu.contract_precision<fp32>} : vector<32x8xf32>, vector<8x16xf32>, vector<32x16xf32> -> vector<32x16xf32>
    %c0_69 = arith.constant 0 : index
    %c384_70 = arith.constant 384 : index
    %59 = vector.load %arg1[%c0_69, %c384_70] : memref<64x416xf32, #tpu.memory_space<vmem>>, vector<64x32xf32>
    %cst_71 = arith.constant dense<0.000000e+00> : vector<64x16xf32>
    %60 = tpu.matmul %59, %58, %cst_71 {dimension_numbers = #tpu.dot_dimension_numbers<[1], [0], [0], [1], [0, 0, 1, 1], [], []>, precision = #tpu.contract_precision<fp32>} : vector<64x32xf32>, vector<32x16xf32>, vector<64x16xf32> -> vector<64x16xf32>
    %c1_72 = arith.constant 1 : index
    %c192_73 = arith.constant 192 : index
    %c0_74 = arith.constant 0 : index
    %61 = vector.load %arg6[%c1_72, %c192_73, %c0_74] : memref<2x256x16xf32, #tpu.memory_space<vmem>>, vector<1x64x16xf32>
    %62 = vector.shape_cast %61 : vector<1x64x16xf32> to vector<64x16xf32>
    %63 = vector.shape_cast %60 : vector<64x16xf32> to vector<1x64x16xf32>
    tpu.vector_store %arg6[%c1_72, %c192_73, %c0_74], %63 {strides = array<i32>} : memref<2x256x16xf32, #tpu.memory_space<vmem>>, vector<1x64x16xf32>,
    return
  }
}

</mosaic_0001>

<bundles_post_ra>
// kernel: _low_fam.1
= control target key start
LH: loop header
LB: loop body
LE: loop exit
PB: predicated region body
PF: predicated region fallthrough
CT: control target
= control target key end

     0   :  { %11 = vsyncpa [#allocation3], 0  ;;  %s24597_s0 = inlined_call_operand.hbm [shape: f32[104,16], index: 0, kind: input, shape index: {}]   ;;  %s24598_s1 = inlined_call_operand.hbm [shape: f32[64,416], index: 1, kind: input, shape index: {}]   ;;  %s24599_s2 = inlined_call_operand.hbm [shape: f32[2,256,64], index: 2, kind: input, shape index: {}]   ;;  %s24600_s3 = inlined_call_operand.hbm [shape: f32[2,128,32], index: 3, kind: input, shape index: {}]   ;;  %s24601_s4 = inlined_call_operand.hbm [shape: f32[2,32,8], index: 4, kind: input, shape index: {}]   ;;  %s24602_s5 = inlined_call_operand.hbm [shape: f32[2,64,16], index: 5, kind: input, shape index: {}]   ;;  %s24603_s6 = inlined_call_operand.hbm [shape: f32[2,256,16], index: 6, kind: output, shape index: {}]  }
   0x1   :  { %12 = vsyncpa [#allocation6], 0 }
   0x2   :  { %13 = vsyncpa [#allocation9], 0 }
   0x3   :  { %14 = vsyncpa [#allocation12], 0 }
   0x4   :  { %15 = vsyncpa [#allocation4], 0  ;;  %s17944_s21 = smov [#allocation5]  }
   0x5   :  { %s33_s22 = sshll.u32 %s17944_s21, 4  ;;  %s34_s22 = int_to_ptr.vmem [resolvable:$true] %s33_s22 }
   0x6   :  { %s17802_s23 = scalar_lea.vmem %s34_s22, 4096  ;;  %p17807_p1 = scmp.lt.s32.totalorder %s34_s22, %s34_s22 }
   0x7   :  { %p17803_p0 = scmp.ne.s32.totalorder %s34_s22, %s17802_s23  ;;  %p17808_p2 = scmp.lt.s32.totalorder %s17802_s23, %s17802_s23 }
   0x9   :  { %p17809_p3 = por %p17808_p2, %p17807_p1 }
   0xb   :  { %p17810_p4 = pnand %p17809_p3, %p17803_p0 }
   0xd   :  { %17813 = shalt.err (!%p17810_p4)
}
   0xe   :  { %s17945_s24 = smov 512   ;;  %s17946_s25 = smov 32  }
   0xf   :  { %39 = dma.hbm_to_vmem [thread:$0]  %s24598_s1, 4096, %s34_s22, [#allocation6], %s17945_s24, %s17945_s24, %s17946_s25  }
  0x10   :  { %s17947_s28 = smov [#allocation8]   ;;  %s17948_s30 = smov [#allocation2]  }
  0x11   :  { %s57_s29 = sshll.u32 %s17947_s28, 4  ;;  %s21_s7 = sshll.u32 %s17948_s30, 4  ;;  %s58_s29 = int_to_ptr.vmem [resolvable:$true] %s57_s29  ;;  %s22_s7 = int_to_ptr.vmem [resolvable:$true] %s21_s7 }
  0x12   :  { %s17822_s8 = scalar_lea.vmem %s58_s29, 4096  ;;  %p17827_p6 = scmp.lt.s32.totalorder %s58_s29, %s58_s29 }
  0x13   :  { %p17823_p5 = scmp.ne.s32.totalorder %s58_s29, %s17822_s8  ;;  %p17828_p7 = scmp.lt.s32.totalorder %s17822_s8, %s17822_s8 }
  0x15   :  { %p17829_p8 = por %p17828_p7, %p17827_p6 }
  0x17   :  { %p17830_p9 = pnand %p17829_p8, %p17823_p5 }
  0x19   :  { %17833 = shalt.err (!%p17830_p9)
}
  0x1a   :  { %s17949_s9 = smov 128   ;;  %s17950_s10 = smov 8  }
  0x1b   :  { %63 = dma.hbm_to_vmem [thread:$0]  %s24600_s3, 4096, %s58_s29, [#allocation9], %s17949_s9, %s17949_s9, %s17950_s10  }
  0x1c   :  { %s17842_s1 = scalar_lea.vmem %s22_s7, 1664  ;;  %p17847_p11 = scmp.lt.s32.totalorder %s22_s7, %s22_s7 }
  0x1d   :  { %p17843_p10 = scmp.ne.s32.totalorder %s22_s7, %s17842_s1  ;;  %p17848_p12 = scmp.lt.s32.totalorder %s17842_s1, %s17842_s1 }
  0x1f   :  { %p17849_p13 = por %p17848_p12, %p17847_p11 }
  0x21   :  { %p17850_p0 = pnand %p17849_p13, %p17843_p10 }
  0x23   :  { %17853 = shalt.err (!%p17850_p0)
}
  0x24   :  { %27 = dma.hbm_to_vmem [thread:$0]  %s24597_s0, 1664, %s22_s7, [#allocation3], %s17949_s9, %s17949_s9, %s17950_s10  }
  0x25   :  { %s17951_s15 = smov [#allocation7]   ;;  %s17952_s17 = smov [#allocation10]  }
  0x26   :  { %s45_s16 = sshll.u32 %s17951_s15, 4  ;;  %s69_s3 = sshll.u32 %s17952_s17, 4  ;;  %s46_s16 = int_to_ptr.vmem [resolvable:$true] %s45_s16  ;;  %s70_s3 = int_to_ptr.vmem [resolvable:$true] %s69_s3 }
  0x27   :  { %s17862_s18 = scalar_lea.vmem %s46_s16, 8192  ;;  %p17867_p2 = scmp.lt.s32.totalorder %s46_s16, %s46_s16 }
  0x28   :  { %p17863_p1 = scmp.ne.s32.totalorder %s46_s16, %s17862_s18  ;;  %p17868_p3 = scmp.lt.s32.totalorder %s17862_s18, %s17862_s18 }
  0x2a   :  { %p17869_p4 = por %p17868_p3, %p17867_p2 }
  0x2c   :  { %p17870_p5 = pnand %p17869_p4, %p17863_p1 }
  0x2e   :  { %17873 = shalt.err (!%p17870_p5)
}
  0x2f   :  { %51 = dma.hbm_to_vmem [thread:$0]  %s24599_s2, 8192, %s46_s16, [#allocation6], %s17949_s9, %s17949_s9, %s17950_s10  }
  0x30   :  { %s17882_s0 = scalar_lea.vmem %s70_s3, 1024  ;;  %p17887_p7 = scmp.lt.s32.totalorder %s70_s3, %s70_s3 }
  0x31   :  { %p17883_p6 = scmp.ne.s32.totalorder %s70_s3, %s17882_s0  ;;  %p17888_p8 = scmp.lt.s32.totalorder %s17882_s0, %s17882_s0 }
  0x33   :  { %p17889_p9 = por %p17888_p8, %p17887_p7 }
  0x35   :  { %p17890_p10 = pnand %p17889_p9, %p17883_p6 }
  0x37   :  { %17893 = shalt.err (!%p17890_p10)
}
  0x38   :  { %75 = dma.hbm_to_vmem [thread:$0]  %s24601_s4, 1024, %s70_s3, [#allocation9], %s17949_s9, %s17949_s9, %s17950_s10  }
  0x39   :  { %s17953_s23 = smov [#allocation11]  }
  0x3a   :  { %s81_s24 = sshll.u32 %s17953_s23, 4  ;;  %s82_s24 = int_to_ptr.vmem [resolvable:$true] %s81_s24 }
  0x3b   :  { %s17902_s25 = scalar_lea.vmem %s82_s24, 2048  ;;  %p17907_p12 = scmp.lt.s32.totalorder %s82_s24, %s82_s24 }
  0x3c   :  { %p17903_p11 = scmp.ne.s32.totalorder %s82_s24, %s17902_s25  ;;  %p17908_p13 = scmp.lt.s32.totalorder %s17902_s25, %s17902_s25 }
  0x3e   :  { %p17909_p0 = por %p17908_p13, %p17907_p12 }
  0x40   :  { %p17910_p1 = pnand %p17909_p0, %p17903_p11 }
  0x42   :  { %17913 = shalt.err (!%p17910_p1)
}
  0x43   :  { %87 = dma.hbm_to_vmem [thread:$0]  %s24602_s5, 2048, %s82_s24, [#allocation12], %s17949_s9, %s17949_s9, %s17950_s10  }
  0x44   :  { %17934 = dma.done.wait [#allocation3], 1664  }
  0x45   :  { %17935 = vsyncadd [#allocation3], 4294965632 }
  0x46   :  { %17936 = dma.done.wait [#allocation6], 12288  }
  0x47   :  { %17937 = vsyncadd [#allocation6], 4294955008 }
  0x48   :  { %17938 = dma.done.wait [#allocation9], 5120  }
  0x49   :  { %17939 = vsyncadd [#allocation9], 4294962176 }
  0x4a   :  { %17940 = dma.done.wait [#allocation12], 2048  }
  0x4b   :  { %17941 = vsyncadd [#allocation12], 4294965248  ;;  %v145_v0 = vld [vmem:[#allocation2 + $0x38] sm:$0xff]  ;;  %v144_v1 = vld [vmem:[#allocation2 + $0x30] sm:$0xff]  ;;  %vm146_vm0 = vcmask 523264   ;;  %vm3412_vm1 = vcmask 261120  }
  0x4c   :  { %v143_v2 = vld [vmem:[#allocation2 + $0x28] sm:$0xff]  ;;  %v18023_v3 = vand.u32 4294901760, %v145_v0  ;;  %v18025_v4 = vand.u32 4294901760, %v144_v1  ;;  %v142_v6 = vld [vmem:[#allocation2 + $0x20] sm:$0xff]  ;;  %v141_v7 = vld [vmem:[#allocation2 + $0x18] sm:$0xff]  ;;  %vm3383_vm2 = vcmask 130048  }
  0x4d   :  { %v18027_v5 = vand.u32 4294901760, %v143_v2  ;;  %v140_v8 = vld [vmem:[#allocation2 + $0x10] sm:$0xff]  ;;  %v18029_v9 = vand.u32 4294901760, %v142_v6  ;;  %v18031_v10 = vand.u32 4294901760, %v141_v7  ;;  %v139_v12 = vld [vmem:[#allocation2 + $0x8] sm:$0xff]  ;;  %v18035_v13 = vld [vmem:[#allocation2] sm:$0xff] }
  0x4e   :  { %v18033_v11 = vand.u32 4294901760, %v140_v8  ;;  %v106_v14 = vld [vmem:[#allocation7] sm:$0xff]  ;;  %15767 = vmatprep.subr.mxu0 %v18023_v3  ;;  %v18039_v15 = vsub.f32 %v145_v0, %v18023_v3  ;;  %v18042_v16 = vsub.f32 %v144_v1, %v18025_v4  ;;  %v18044_v17 = vand.u32 4294901760, %v139_v12  ;;  %v107_v19 = vld [vmem:[#allocation7 + $0x8] sm:$0xff]  ;;  %v108_v40 = vld [vmem:[#allocation7 + $0x10] sm:$0xff]  ;;  %s17954_s4 = smov [#allocation13]  }
  0x4f   :  { %25036 = vst [vmem:[#allocation19_spill] sm:$0xff] %v18029_v9  ;;  %v18047_v18 = vsub.f32 %v143_v2, %v18027_v5  ;;  %15768 = vmatpush3.msra.mxu0 %v18023_v3  ;;  %v18051_v20 = vand.u32 4294901760, %v18035_v13  ;;  %v18054_v21 = vsub.f32 %v142_v6, %v18029_v9  ;;  %v148_v22 = vsel %vm146_vm0, %v106_v14, 0  ;;  %v109_v41 = vld [vmem:[#allocation7 + $0x18] sm:$0xff]  ;;  %v110_v54 = vld [vmem:[#allocation7 + $0x20] sm:$0xff]  ;;  %v111_v55 = vld [vmem:[#allocation7 + $0x28] sm:$0xff] }
  0x50   :  { %v151_v23 = vsel %vm146_vm0, %v107_v19, 0  ;;  %15769 = vmatprep.subr.mxu0 %v18025_v4  ;;  %v18060_v24 = vand.u32 4294901760, %v18039_v15  ;;  %v18063_v25 = vand.u32 4294901760, %v18042_v16  ;;  %v18068_v27 = vand.u32 4294901760, %v148_v22  ;;  %v112_v0 = vld [vmem:[#allocation7 + $0x30] sm:$0xff]  ;;  %v113_v1 = vld [vmem:[#allocation7 + $0x38] sm:$0xff] }
  0x51   :  { %v18066_v26 = vand.u32 4294901760, %v18047_v18  ;;  %15770 = vmatpush3.msra.mxu0 %v18025_v4  ;;  %v18072_v28 = vand.u32 4294901760, %v18054_v21  ;;  %v18074_v29 = vand.u32 4294901760, %v151_v23  ;;  %v18077_v30 = vsub.f32 %v141_v7, %v18031_v10  ;;  %s13868_s5 = sshll.u32 %s17954_s4, 4  ;;  %s13869_s5 = int_to_ptr.vmem [resolvable:$true] %s13868_s5 }
  0x52   :  { %25037 = vst [vmem:[#allocation20_spill] sm:$0xff] %v18068_v27  ;;  %v18080_v31 = vsub.f32 %v140_v8, %v18033_v11  ;;  %15771 = vmatprep.subr.mxu0 %v18027_v5  ;;  %v656_v32 = vsub.f32 %v18039_v15, %v18060_v24  ;;  %v663_v33 = vsub.f32 %v18042_v16, %v18063_v25  ;;  %v154_v51 = vsel %vm146_vm0, %v108_v40, 0  ;;  %s17914_s27 = scalar_lea.vmem %s13869_s5, 8192  ;;  %p17919_p3 = scmp.lt.s32.totalorder %s13869_s5, %s13869_s5 }
  0x53   :  { %25038 = vst [vmem:[#allocation21_spill] sm:$0xff] %v18074_v29  ;;  %v670_v34 = vsub.f32 %v18047_v18, %v18066_v26  ;;  %v18090_v35 = vsub.f32 %v148_v22, %v18068_v27  ;;  %15772 = vmatpush3.msra.mxu0 %v18027_v5  ;;  %v677_v36 = vsub.f32 %v18054_v21, %v18072_v28  ;;  %v18099_v38 = vand.u32 4294901760, %v18077_v30  ;;  %p17915_p2 = scmp.ne.s32.totalorder %s13869_s5, %s17914_s27  ;;  %p17920_p4 = scmp.lt.s32.totalorder %s17914_s27, %s17914_s27 }
  0x54   :  { %v18096_v37 = vsub.f32 %v151_v23, %v18074_v29  ;;  %v18102_v39 = vand.u32 4294901760, %v18080_v31  ;;  %15847 = vmatprep.mubr.f32.mxu1 %v18068_v27  ;;  %15773 = vmatprep.subr.mxu0 %v18029_v9  ;;  %v657_v42 = vand.u32 4294901760, %v656_v32  ;;  %v664_v43 = vand.u32 4294901760, %v663_v33  ;;  %v124_v27 = vld [vmem:[#allocation7 + $0x90] sm:$0xff] }
  0x55   :  { %v671_v44 = vand.u32 4294901760, %v670_v34  ;;  %v24612_v45 = vand.u32 4294901760, %v18090_v35  ;;  %15774 = vmatpush3.msra.mxu0 %v18029_v9  ;;  %v678_v46 = vand.u32 4294901760, %v677_v36  ;;  %v684_v48 = vsub.f32 %v18077_v30, %v18099_v38  ;;  %v114_v34 = vld [vmem:[#allocation7 + $0x40] sm:$0xff]  ;;  %p17921_p5 = por %p17920_p4, %p17919_p3 }
  0x56   :  { %v24611_v47 = vand.u32 4294901760, %v18096_v37  ;;  %v691_v49 = vsub.f32 %v18080_v31, %v18102_v39  ;;  %15775 = vmatprep.subr.mxu0 %v18031_v10  ;;  %15831 = vmatprep.subr.mxu1 %v657_v42  ;;  %v157_v52 = vsel %vm146_vm0, %v109_v41, 0  ;;  %v18120_v53 = vsub.f32 %v139_v12, %v18044_v17 }
  0x57   :  { %v319_v50 = vsub.f32 %v18090_v35, %v24612_v45  ;;  %15776 = vmatpush3.msra.mxu0 %v18031_v10  ;;  %15832 = vmatpush3.msra.mxu1 %v657_v42  ;;  %v685_v57 = vand.u32 4294901760, %v684_v48  ;;  %v18128_v59 = vand.u32 4294901760, %v154_v51  ;;  %v18131_v61 = vand.u32 4294901760, %v157_v52  ;;  %v123_v45 = vld [vmem:[#allocation7 + $0x88] sm:$0xff]  ;;  %p17922_p6 = pnand %p17921_p5, %p17915_p2 }
  0x58   :  { %v329_v56 = vsub.f32 %v18096_v37, %v24611_v47  ;;  %v18126_v58 = vand.u32 4294901760, %v691_v49  ;;  %15777 = vmatprep.subr.mxu0 %v18033_v11  ;;  %15833 = vmatprep.subr.mxu1 %v664_v43  ;;  %v18134_v62 = vand.u32 4294901760, %v18120_v53  ;;  %v18138_v63 = vsub.f32 %v18035_v13, %v18051_v20 }
  0x59   :  { %25039 = vst [vmem:[#allocation22_spill] sm:$0xff] %v18128_v59  ;;  %v320_v60 = vand.u32 4294901760, %v319_v50  ;;  %25040 = vst [vmem:[#allocation23_spill] sm:$0xff] %v18131_v61  ;;  %15778 = vmatpush3.msra.mxu0 %v18033_v11  ;;  %15834 = vmatpush3.msra.mxu1 %v664_v43  ;;  %v18142_v6 = vsub.f32 %v154_v51, %v18128_v59  ;;  %v160_v7 = vsel %vm146_vm0, %v110_v54, 0  ;;  %v163_v8 = vsel %vm146_vm0, %v111_v55, 0  ;;  %v115_v50 = vld [vmem:[#allocation7 + $0x48] sm:$0xff] }
  0x5a   :  { %25041 = vst [vmem:[#allocation24_spill] sm:$0xff] %v18134_v62  ;;  %v330_v2 = vand.u32 4294901760, %v329_v56  ;;  %15779 = vmatprep.subr.mxu0 %v18044_v17  ;;  %15835 = vmatprep.subr.mxu1 %v671_v44  ;;  %v18148_v12 = vsub.f32 %v157_v52, %v18131_v61  ;;  %v698_v13 = vsub.f32 %v18120_v53, %v18134_v62  ;;  %v18153_v14 = vand.u32 4294901760, %v18138_v63 }
  0x5b   :  { %v18155_v19 = vand.u32 4294901760, %v160_v7  ;;  %15780 = vmatpush3.msra.mxu0 %v18044_v17  ;;  %15836 = vmatpush3.msra.mxu1 %v671_v44  ;;  %v24609_v22 = vand.u32 4294901760, %v18142_v6  ;;  %v18159_v23 = vand.u32 4294901760, %v163_v8  ;;  %v166_v32 = vsel %vm146_vm0, %v112_v0, 0 }
  0x5c   :  { %25042 = vst [vmem:[#allocation25_spill] sm:$0xff] %v18153_v14  ;;  %v169_v33 = vsel %vm146_vm0, %v113_v1, 0  ;;  %15781 = vmatprep.subr.mxu0 %v18051_v20  ;;  %15837 = vmatprep.subr.mxu1 %v678_v46  ;;  %v24606_v36 = vand.u32 4294901760, %v18148_v12  ;;  %v699_v40 = vand.u32 4294901760, %v698_v13  ;;  %v705_v41 = vsub.f32 %v18138_v63, %v18153_v14 }
  0x5d   :  { %25043 = vst [vmem:[#allocation26_spill] sm:$0xff] %v18155_v19  ;;  %25044 = vst [vmem:[#allocation27_spill] sm:$0xff] %v18159_v23  ;;  %v18168_v42 = vsub.f32 %v160_v7, %v18155_v19  ;;  %15782 = vmatpush3.msra.mxu0 %v18051_v20  ;;  %15783 = vmatprep.mubr.f32.mxu0 %v320_v60  ;;  %v339_v43 = vsub.f32 %v18142_v6, %v24609_v22  ;;  %v18177_v48 = vand.u32 4294901760, %v166_v32  ;;  %vm5570_vm3 = vcmask 64512  }
  0x5e   :  { %v18175_v44 = vsub.f32 %v163_v8, %v18159_v23  ;;  %v18179_v49 = vand.u32 4294901760, %v169_v33  ;;  %15838 = vmatpush3.msra.mxu1 %v678_v46  ;;  %15784 = vmatmul.mubr.f32.vlgmr.msra.gmra.mxu0 %v330_v2  ;;  %v349_v51 = vsub.f32 %v18148_v12, %v24606_v36  ;;  %v706_v52 = vand.u32 4294901760, %v705_v41  ;;  %v116_v46 = vld [vmem:[#allocation7 + $0x50] sm:$0xff]  ;;  %v117_v2 = vld [vmem:[#allocation7 + $0x58] sm:$0xff] }
  0x5f   :  { %25045 = vst [vmem:[#allocation28_spill] sm:$0xff] %v18177_v48  ;;  %v24605_v54 = vand.u32 4294901760, %v18168_v42  ;;  %v172_v55 = vsel %vm146_vm0, %v114_v34, 0  ;;  %15839 = vmatprep.subr.mxu1 %v685_v57  ;;  %v340_v56 = vand.u32 4294901760, %v339_v43  ;;  %v18188_v0 = vsub.f32 %v166_v32, %v18177_v48  ;;  %15895 = vmatprep.subr.mxu0 %v18039_v15  ;;  %v118_v43 = vld [vmem:[#allocation7 + $0x60] sm:$0xff] }
  0x60   :  { %25046 = vst [vmem:[#allocation29_spill] sm:$0xff] %v18179_v49  ;;  %v24604_v60 = vand.u32 4294901760, %v18175_v44  ;;  %v18191_v1 = vsub.f32 %v169_v33, %v18179_v49  ;;  %15840 = vmatpush3.msra.mxu1 %v685_v57  ;;  %v350_v7 = vand.u32 4294901760, %v349_v51  ;;  %v18197_v13 = vand.u32 4294901760, %v172_v55  ;;  %15896 = vmatpush3.msra.mxu0 %v18039_v15 }
  0x61   :  { %v359_v8 = vsub.f32 %v18168_v42, %v24605_v54  ;;  %v175_v34 = vsel %vm146_vm0, %v115_v50, 0  ;;  %15841 = vmatprep.subr.mxu1 %v18126_v58  ;;  %15786 = vmatprep.mubr.f32.mxu0 %v340_v56  ;;  %v24607_v57 = vand.u32 4294901760, %v18188_v0  ;;  %v178_v51 = vsel %vm146_vm0, %v116_v46, 0 }
  0x62   :  { %25047 = vst [vmem:[#allocation30_spill] sm:$0xff] %v18197_v13  ;;  %v369_v32 = vsub.f32 %v18175_v44, %v24604_v60  ;;  %v24608_v33 = vand.u32 4294901760, %v18191_v1  ;;  %v18207_v41 = vand.u32 4294901760, %v175_v34  ;;  %15842 = vmatpush3.msra.mxu1 %v18126_v58  ;;  %15787 = vmatmul.mubr.f32.gmra.mxu0 %v350_v7  ;;  %v18211_v15 = vsub.f32 %v172_v55, %v18197_v13  ;;  %v119_v7 = vld [vmem:[#allocation7 + $0x68] sm:$0xff] }
  0x63   :  { %v360_v50 = vand.u32 4294901760, %v359_v8  ;;  %v181_v56 = vsel %vm146_vm0, %v117_v2, 0  ;;  %15843 = vmatprep.subr.mxu1 %v699_v40  ;;  %v379_v54 = vsub.f32 %v18188_v0, %v24607_v57  ;;  %15897 = vmatprep.subr.mxu0 %v18042_v16  ;;  %v18226_v46 = vand.u32 4294901760, %v178_v51 }
  0x64   :  { %25048 = vst [vmem:[#allocation31_spill] sm:$0xff] %v18207_v41  ;;  %v370_v60 = vand.u32 4294901760, %v369_v32  ;;  %v389_v36 = vsub.f32 %v18191_v1, %v24608_v33  ;;  %v18222_v58 = vsub.f32 %v175_v34, %v18207_v41  ;;  %15844 = vmatpush3.msra.mxu1 %v699_v40  ;;  %v24610_v55 = vand.u32 4294901760, %v18211_v15  ;;  %v120_v32 = vld [vmem:[#allocation7 + $0x70] sm:$0xff]  ;;  %15898 = vmatpush3.msra.mxu0 %v18042_v16 }
  0x65   :  { %15789 = vmatprep.mubr.f32.mxu0 %v360_v50  ;;  %25049 = vst [vmem:[#allocation32_spill] sm:$0xff] %v18226_v46  ;;  %v18228_v2 = vand.u32 4294901760, %v181_v56  ;;  %v184_v8 = vsel %vm146_vm0, %v118_v43, 0  ;;  %15845 = vmatprep.subr.mxu1 %v706_v52  ;;  %v380_v57 = vand.u32 4294901760, %v379_v54  ;;  %v18239_v50 = vsub.f32 %v178_v51, %v18226_v46  ;;  %v121_v54 = vld [vmem:[#allocation7 + $0x78] sm:$0xff] }
  0x66   :  { %v390_v33 = vand.u32 4294901760, %v389_v36  ;;  %v24613_v34 = vand.u32 4294901760, %v18222_v58  ;;  %v18232_v22 = vand.u32 4294901760, %v184_v8  ;;  %15846 = vmatpush3.msra.mxu1 %v706_v52  ;;  %15790 = vmatmul.mubr.f32.gmra.mxu0 %v370_v60  ;;  %v399_v40 = vsub.f32 %v18211_v15, %v24610_v55 }
  0x67   :  { %25050 = vst [vmem:[#allocation33_spill] sm:$0xff] %v18228_v2  ;;  %v18242_v43 = vsub.f32 %v181_v56, %v18228_v2  ;;  %v187_v36 = vsel %vm146_vm0, %v119_v7, 0  ;;  %15848 = vmatmul.mubr.f32.vlgmr.msra.gmra.mxu1 %v18074_v29  ;;  %15792 = vmatprep.mubr.f32.mxu0 %v380_v57  ;;  %v190_v51 = vsel %vm146_vm0, %v120_v32, 0  ;;  %v24616_v7 = vand.u32 4294901760, %v18239_v50  ;;  %v122_v57 = vld [vmem:[#allocation7 + $0x80] sm:$0xff] }
  0x68   :  { %25051 = vst [vmem:[#allocation34_spill] sm:$0xff] %v18232_v22  ;;  %v409_v16 = vsub.f32 %v18222_v58, %v24613_v34  ;;  %v18250_v52 = vsub.f32 %v184_v8, %v18232_v22  ;;  %v18252_v60 = vand.u32 4294901760, %v187_v36  ;;  %15850 = vmatprep.mubr.f32.mxu1 %v18128_v59  ;;  %v400_v56 = vand.u32 4294901760, %v399_v40  ;;  %15959 = vmatprep.subr.mxu1 %v18023_v3 }
  0x69   :  { %v24619_v55 = vand.u32 4294901760, %v18242_v43  ;;  %v18258_v47 = vand.u32 4294901760, %v190_v51  ;;  %v193_v32 = vsel %vm146_vm0, %v121_v54, 0  ;;  %15960 = vmatpush3.msra.mxu1 %v18023_v3  ;;  %15899 = vmatprep.subr.mxu0 %v18047_v18  ;;  %v419_v40 = vsub.f32 %v18239_v50, %v24616_v7 }
  0x6a   :  { %25052 = vst [vmem:[#allocation35_spill] sm:$0xff] %v18250_v52  ;;  %v410_v34 = vand.u32 4294901760, %v409_v16  ;;  %v18263_v29 = vsub.f32 %v187_v36, %v18252_v60  ;;  %15793 = vmatmul.mubr.f32.gmra.mxu0 %v390_v33  ;;  %v18277_v36 = vand.u32 4294901760, %v193_v32  ;;  %15961 = vmatprep.subr.mxu1 %v18025_v4  ;;  %v25056_v33 = vand.u32 4294901760, %v18250_v52 }
  0x6b   :  { %v429_v16 = vsub.f32 %v18242_v43, %v24619_v55  ;;  %v18275_v8 = vsub.f32 %v190_v51, %v18258_v47  ;;  %15851 = vmatmul.mubr.f32.gmra.mxu1 %v18131_v61  ;;  %15795 = vmatprep.mubr.f32.mxu0 %v400_v56  ;;  %v196_v59 = vsel %vm146_vm0, %v122_v57, 0  ;;  %v199_v55 = vsel %vm146_vm0, %v123_v45, 0  ;;  %v125_v51 = vld [vmem:[#allocation7 + $0x98] sm:$0xff]  ;;  %v126_v57 = vld [vmem:[#allocation7 + $0xa0] sm:$0xff] }
  0x6c   :  { %25053 = vst [vmem:[#allocation36_spill] sm:$0xff] %v18263_v29  ;;  %25055 = vst [vmem:[#allocation38_spill] sm:$0xff] %v18277_v36  ;;  %v439_v54 = vsub.f32 %v18250_v52, %v25056_v33  ;;  %15853 = vmatprep.mubr.f32.mxu1 %v18155_v19  ;;  %v420_v14 = vand.u32 4294901760, %v419_v40  ;;  %v18290_v61 = vsub.f32 %v193_v32, %v18277_v36  ;;  %15962 = vmatpush3.msra.mxu1 %v18025_v4  ;;  %v128_v19 = vld [vmem:[#allocation7 + $0xb0] sm:$0xff] }
  0x6d   :  { %25054 = vst [vmem:[#allocation37_spill] sm:$0xff] %v18275_v8  ;;  %v430_v56 = vand.u32 4294901760, %v429_v16  ;;  %v18293_v52 = vand.u32 4294901760, %v196_v59  ;;  %v18295_v7 = vand.u32 4294901760, %v199_v55  ;;  %15900 = vmatpush3.msra.mxu0 %v18047_v18  ;;  %15963 = vmatprep.subr.mxu1 %v18027_v5  ;;  %v25059_v45 = vand.u32 4294901760, %v18263_v29 }
  0x6e   :  { %25057 = vst [vmem:[#allocation39_spill] sm:$0xff] %v18290_v61  ;;  %v440_v33 = vand.u32 4294901760, %v439_v54  ;;  %15796 = vmatmul.mubr.f32.gmra.mxu0 %v410_v34  ;;  %v202_v62 = vsel %vm146_vm0, %v124_v27, 0  ;;  %v205_v16 = vsel %vm146_vm0, %v125_v51, 0  ;;  %15901 = vmatprep.subr.mxu0 %v18054_v21  ;;  %v25060_v18 = vand.u32 4294901760, %v18275_v8  ;;  %v127_v27 = vld [vmem:[#allocation7 + $0xa8] sm:$0xff] }
  0x6f   :  { %25058 = vst [vmem:[#allocation40_spill] sm:$0xff] %v18293_v52  ;;  %v449_v40 = vsub.f32 %v18263_v29, %v25059_v45  ;;  %15854 = vmatmul.mubr.f32.gmra.mxu1 %v18159_v23  ;;  %15798 = vmatprep.mubr.f32.mxu0 %v420_v14  ;;  %v18311_v34 = vsub.f32 %v196_v59, %v18293_v52  ;;  %v18316_v32 = vand.u32 4294901760, %v202_v62  ;;  %v25063_v51 = vand.u32 4294901760, %v18290_v61 }
  0x70   :  { %v459_v54 = vsub.f32 %v18275_v8, %v25060_v18  ;;  %v18314_v45 = vsub.f32 %v199_v55, %v18295_v7  ;;  %15856 = vmatprep.mubr.f32.mxu1 %v18177_v48  ;;  %v18322_v23 = vand.u32 4294901760, %v205_v16  ;;  %v208_v18 = vsel %vm146_vm0, %v126_v57, 0  ;;  %15902 = vmatpush3.msra.mxu0 %v18054_v21  ;;  %v129_v48 = vld [vmem:[#allocation7 + $0xb8] sm:$0xff] }
  0x71   :  { %25061 = vst [vmem:[#allocation41_spill] sm:$0xff] %v18311_v34  ;;  %v469_v14 = vsub.f32 %v18290_v61, %v25063_v51  ;;  %v18329_v8 = vsub.f32 %v202_v62, %v18316_v32  ;;  %v18331_v29 = vand.u32 4294901760, %v208_v18  ;;  %15903 = vmatprep.subr.mxu0 %v18077_v30  ;;  %15964 = vmatpush3.msra.mxu1 %v18027_v5  ;;  %v450_v51 = vand.u32 4294901760, %v449_v40 }
  0x72   :  { %25062 = vst [vmem:[#allocation42_spill] sm:$0xff] %v18314_v45  ;;  %15799 = vmatmul.mubr.f32.gmra.mxu0 %v430_v56  ;;  %v18336_v57 = vsub.f32 %v205_v16, %v18322_v23  ;;  %v211_v21 = vsel %vm146_vm0, %v127_v27, 0  ;;  %v214_v59 = vsel %vm146_vm0, %v128_v19, 0  ;;  %15965 = vmatprep.subr.mxu1 %v18029_v9  ;;  %v460_v62 = vand.u32 4294901760, %v459_v54 }
  0x73   :  { %15857 = vmatmul.mubr.f32.gmra.mxu1 %v18179_v49  ;;  %15801 = vmatprep.mubr.f32.mxu0 %v440_v33  ;;  %v25065_v55 = vand.u32 4294901760, %v18311_v34  ;;  %v18347_v40 = vsub.f32 %v208_v18, %v18331_v29  ;;  %v18350_v16 = vand.u32 4294901760, %v211_v21  ;;  %v18352_v19 = vand.u32 4294901760, %v214_v59  ;;  %v130_v49 = vld [vmem:[#allocation7 + $0xc0] sm:$0xff]  ;;  %v131_v33 = vld [vmem:[#allocation7 + $0xc8] sm:$0xff] }
  0x74   :  { %25064 = vst [vmem:[#allocation43_spill] sm:$0xff] %v18336_v57  ;;  %15859 = vmatprep.mubr.f32.mxu1 %v18197_v13  ;;  %v217_v27 = vsel %vm146_vm0, %v129_v48, 0  ;;  %15904 = vmatpush3.msra.mxu0 %v18077_v30  ;;  %v470_v54 = vand.u32 4294901760, %v469_v14  ;;  %v132_v14 = vld [vmem:[#allocation7 + $0xd0] sm:$0xff] }
  0x75   :  { %v479_v61 = vsub.f32 %v18311_v34, %v25065_v55  ;;  %25066 = vst [vmem:[#allocation44_spill] sm:$0xff] %v18347_v40  ;;  %v25067_v55 = vand.u32 4294901760, %v18314_v45  ;;  %15905 = vmatprep.subr.mxu0 %v18080_v31  ;;  %15966 = vmatpush3.msra.mxu1 %v18029_v9  ;;  %v18363_v34 = vsub.f32 %v211_v21, %v18350_v16  ;;  %v18368_v30 = vand.u32 4294901760, %v217_v27 }
  0x76   :  { %15802 = vmatmul.mubr.f32.gmra.mxu0 %v450_v51  ;;  %v18366_v48 = vsub.f32 %v214_v59, %v18352_v19  ;;  %15967 = vmatprep.subr.mxu1 %v18031_v10  ;;  %v220_v51 = vsel %vm146_vm0, %v130_v49, 0  ;;  %v223_v21 = vsel %vm146_vm0, %v131_v33, 0  ;;  %v25071_v33 = vand.u32 4294901760, %v18336_v57 }
  0x77   :  { %v489_v56 = vsub.f32 %v18314_v45, %v25067_v55  ;;  %v480_v13 = vand.u32 4294901760, %v479_v61  ;;  %25068 = vst [vmem:[#allocation45_spill] sm:$0xff] %v18363_v34  ;;  %15860 = vmatmul.mubr.f32.gmra.mxu1 %v18207_v41  ;;  %15804 = vmatprep.mubr.f32.mxu0 %v460_v62  ;;  %v25070_v55 = vand.u32 4294901760, %v18329_v8  ;;  %v133_v45 = vld [vmem:[#allocation7 + $0xd8] sm:$0xff]  ;;  %v18383_v62 = vsub.f32 %v217_v27, %v18368_v30  ;;  %v134_v61 = vld [vmem:[#allocation7 + $0xe0] sm:$0xff] }
  0x78   :  { %25069 = vst [vmem:[#allocation46_spill] sm:$0xff] %v18366_v48  ;;  %15862 = vmatprep.mubr.f32.mxu1 %v18226_v46  ;;  %15906 = vmatpush3.msra.mxu0 %v18080_v31  ;;  %v18385_v9 = vand.u32 4294901760, %v220_v51  ;;  %v509_v31 = vsub.f32 %v18336_v57, %v25071_v33  ;;  %v18393_v59 = vand.u32 4294901760, %v223_v21  ;;  %v232_v33 = vsel %vm146_vm0, %v134_v61, 0  ;;  %v135_v57 = vld [vmem:[#allocation7 + $0xe8] sm:$0xff] }
  0x79   :  { %v499_v18 = vsub.f32 %v18329_v8, %v25070_v55  ;;  %v226_v55 = vsel %vm146_vm0, %v132_v14, 0  ;;  %15907 = vmatprep.subr.mxu0 %v18120_v53  ;;  %15968 = vmatpush3.msra.mxu1 %v18031_v10  ;;  %v490_v49 = vand.u32 4294901760, %v489_v56  ;;  %v25072_v14 = vand.u32 4294901760, %v18347_v40 }
  0x7a   :  { %15805 = vmatmul.mubr.f32.gmra.mxu0 %v470_v54  ;;  %v18395_v41 = vand.u32 4294901760, %v226_v55  ;;  %15969 = vmatprep.subr.mxu1 %v18033_v11  ;;  %v18403_v56 = vsub.f32 %v220_v51, %v18385_v9  ;;  %v229_v54 = vsel %vm146_vm0, %v133_v45, 0  ;;  %v510_v45 = vand.u32 4294901760, %v509_v31 }
  0x7b   :  { %15863 = vmatmul.mubr.f32.gmra.mxu1 %v18228_v2  ;;  %15807 = vmatprep.mubr.f32.mxu0 %v480_v13  ;;  %v500_v27 = vand.u32 4294901760, %v499_v18  ;;  %v519_v46 = vsub.f32 %v18347_v40, %v25072_v14  ;;  %v25073_v2 = vand.u32 4294901760, %v18363_v34  ;;  %v25074_v18 = vand.u32 4294901760, %v18366_v48  ;;  %v136_v40 = vld [vmem:[#allocation7 + $0xf0] sm:$0xff] }
  0x7c   :  { %15865 = vmatprep.mubr.f32.mxu1 %v18232_v22  ;;  %15908 = vmatpush3.msra.mxu0 %v18120_v53  ;;  %v18419_v61 = vsub.f32 %v223_v21, %v18393_v59  ;;  %v18422_v53 = vsub.f32 %v226_v55, %v18395_v41  ;;  %v18429_v22 = vand.u32 4294901760, %v232_v33  ;;  %v238_v21 = vsel %vm146_vm0, %v136_v40, 0  ;;  %v137_v55 = vld [vmem:[#allocation7 + $0xf8] sm:$0xff] }
  0x7d   :  { %v529_v13 = vsub.f32 %v18363_v34, %v25073_v2  ;;  %v539_v14 = vsub.f32 %v18366_v48, %v25074_v18  ;;  %15909 = vmatprep.subr.mxu0 %v18138_v63  ;;  %15970 = vmatpush3.msra.mxu1 %v18033_v11  ;;  %v18424_v2 = vand.u32 4294901760, %v229_v54  ;;  %v520_v18 = vand.u32 4294901760, %v519_v46 }
  0x7e   :  { %15808 = vmatmul.mubr.f32.gmra.mxu0 %v490_v49  ;;  %15971 = vmatprep.subr.mxu1 %v18044_v17  ;;  %v235_v49 = vsel %vm146_vm0, %v135_v57, 0  ;;  %v25075_v34 = vand.u32 4294901760, %v18383_v62  ;;  %v24672_v46 = vand.u32 4294901760, %v18419_v61 }
  0x7f   :  { %15866 = vmatmul.mubr.f32.gmra.mxu1 %v18252_v60  ;;  %15810 = vmatprep.mubr.f32.mxu0 %v500_v27  ;;  %v530_v31 = vand.u32 4294901760, %v529_v13  ;;  %v540_v48 = vand.u32 4294901760, %v539_v14  ;;  %v18443_v40 = vsub.f32 %v229_v54, %v18424_v2  ;;  %v18445_v51 = vand.u32 4294901760, %v235_v49 }
  0x80   :  { %15868 = vmatprep.mubr.f32.mxu1 %v18258_v47  ;;  %15910 = vmatpush3.msra.mxu0 %v18138_v63  ;;  %v549_v27 = vsub.f32 %v18383_v62, %v25075_v34  ;;  %v25076_v63 = vand.u32 4294901760, %v18403_v56  ;;  %v18453_v13 = vsub.f32 %v232_v33, %v18429_v22  ;;  %v18455_v14 = vand.u32 4294901760, %v238_v21 }
  0x81   :  { %15972 = vmatpush3.msra.mxu1 %v18044_v17  ;;  %16023 = vmatprep.subr.mxu0 %v18060_v24  ;;  %v18466_v33 = vsub.f32 %v235_v49, %v18445_v51 }
  0x82   :  { %15811 = vmatmul.mubr.f32.gmra.mxu0 %v510_v45  ;;  %15973 = vmatprep.subr.mxu1 %v18051_v20  ;;  %v559_v34 = vsub.f32 %v18403_v56, %v25076_v63  ;;  %v241_v45 = vsel %vm146_vm0, %v137_v55, 0  ;;  %v550_v54 = vand.u32 4294901760, %v549_v27  ;;  %v24673_v63 = vand.u32 4294901760, %v18443_v40 }
  0x83   :  { %15869 = vmatmul.mubr.f32.gmra.mxu1 %v18277_v36  ;;  %15813 = vmatprep.mubr.f32.mxu0 %v520_v18  ;;  %v569_v18 = vsub.f32 %v18419_v61, %v24672_v46  ;;  %v18468_v57 = vand.u32 4294901760, %v241_v45  ;;  %v25077_v27 = vand.u32 4294901760, %v18422_v53  ;;  %v18476_v36 = vsub.f32 %v238_v21, %v18455_v14 }
  0x84   :  { %15871 = vmatprep.mubr.f32.mxu1 %v18293_v52  ;;  %15974 = vmatpush3.msra.mxu1 %v18051_v20  ;;  %v560_v55 = vand.u32 4294901760, %v559_v34  ;;  %v589_v46 = vsub.f32 %v18443_v40, %v24673_v63 }
  0x85   :  { %16087 = vmatprep.subr.mxu1 %v18023_v3  ;;  %v579_v52 = vsub.f32 %v18422_v53, %v25077_v27  ;;  %v570_v49 = vand.u32 4294901760, %v569_v18  ;;  %v18484_v34 = vsub.f32 %v241_v45, %v18468_v57 }
  0x86   :  { %15814 = vmatmul.mubr.f32.gmra.mxu0 %v530_v31  ;;  %v24674_v31 = vand.u32 4294901760, %v18453_v13  ;;  %v590_v18 = vand.u32 4294901760, %v589_v46 }
  0x87   :  { %15872 = vmatmul.mubr.f32.gmra.mxu1 %v18295_v7  ;;  %15816 = vmatprep.mubr.f32.mxu0 %v540_v48  ;;  %v608_v48 = vand.u32 4294901760, %v18466_v33  ;;  %v580_v27 = vand.u32 4294901760, %v579_v52  ;;  %v628_v45 = vand.u32 4294901760, %v18484_v34 }
  0x88   :  { %15874 = vmatprep.mubr.f32.mxu1 %v18316_v32  ;;  %v599_v21 = vsub.f32 %v18453_v13, %v24674_v31 }
  0x89   :  { %v609_v63 = vsub.f32 %v18466_v33, %v608_v48  ;;  %v629_v46 = vsub.f32 %v18484_v34, %v628_v45 }
  0x8a   :  { %15817 = vmatmul.mubr.f32.gmra.mxu0 %v550_v54  ;;  %v618_v54 = vand.u32 4294901760, %v18476_v36  ;;  %v600_v52 = vand.u32 4294901760, %v599_v21  ;;  %v25102_v21 = vld [vmem:[#allocation43_spill] sm:$0xff] }
  0x8b   :  { %15875 = vmatmul.mubr.f32.gmra.mxu1 %v18322_v23  ;;  %15819 = vmatprep.mubr.f32.mxu0 %v560_v55  ;;  %v610_v31 = vand.u32 4294901760, %v609_v63  ;;  %v25078_v63 = vand.u32 4294901760, %v18090_v35 }
  0x8c   :  { %15877 = vmatprep.mubr.f32.mxu1 %v18331_v29  ;;  %v619_v55 = vsub.f32 %v18476_v36, %v618_v54 }
  0x8e   :  { %15820 = vmatmul.mubr.f32.gmra.mxu0 %v570_v49  ;;  %v620_v49 = vand.u32 4294901760, %v619_v55  ;;  %v25106_v55 = vld [vmem:[#allocation45_spill] sm:$0xff] }
  0x8f   :  { %15878 = vmatmul.mubr.f32.gmra.mxu1 %v18350_v16  ;;  %15822 = vmatprep.mubr.f32.mxu0 %v580_v27  ;;  %v630_v27 = vand.u32 4294901760, %v629_v46 }
  0x90   :  { %15880 = vmatprep.mubr.f32.mxu1 %v18352_v19 }
  0x92   :  { %15823 = vmatmul.mubr.f32.gmra.mxu0 %v590_v18  ;;  %v25104_v18 = vld [vmem:[#allocation44_spill] sm:$0xff] }
  0x93   :  { %15881 = vmatmul.mubr.f32.gmra.mxu1 %v18368_v30  ;;  %15825 = vmatprep.mubr.f32.mxu0 %v600_v52 }
  0x94   :  { %15883 = vmatprep.mubr.f32.mxu1 %v18385_v9 }
  0x96   :  { %15826 = vmatmul.mubr.f32.gmra.mxu0 %v610_v31  ;;  %v25079_v31 = vand.u32 4294901760, %v18096_v37 }
  0x97   :  { %15884 = vmatmul.mubr.f32.gmra.mxu1 %v18393_v59  ;;  %15828 = vmatprep.mubr.f32.mxu0 %v620_v49  ;;  %v25109_v49 = vand.u32 4294901760, %v18329_v8 }
  0x98   :  { %15886 = vmatprep.mubr.f32.mxu1 %v18395_v41 }
  0x9a   :  { %15829 = vmatmul.mubr.f32.gmra.mxu0 %v630_v27  ;;  %v25111_v27 = vand.u32 4294901760, %v25104_v18 }
  0x9b   :  { %15887 = vmatmul.mubr.f32.gmra.mxu1 %v18424_v2  ;;  %15911 = vmatprep.mubr.f32.mxu0 %v18090_v35  ;;  %v25082_v35 = vand.u32 4294901760, %v18168_v42 }
  0x9c   :  { %15889 = vmatprep.mubr.f32.mxu1 %v18429_v22 }
  0x9e   :  { %15912 = vmatmul.mubr.f32.vlgmr.msra.gmra.mxu0 %v18096_v37  ;;  %v25087_v37 = vld [vmem:[#allocation35_spill] sm:$0xff] }
  0x9f   :  { %15890 = vmatmul.mubr.f32.gmra.mxu1 %v18445_v51  ;;  %15914 = vmatprep.mubr.f32.mxu0 %v18142_v6 }
  0xa0   :  { %15892 = vmatprep.mubr.f32.mxu1 %v18455_v14  ;;  %16024 = vmatpush3.msra.mxu0 %v18060_v24  ;;  %v25080_v24 = vand.u32 4294901760, %v18142_v6  ;;  %v25088_v6 = vand.u32 4294901760, %v18211_v15 }
  0xa1   :  { %16025 = vmatprep.subr.mxu0 %v18063_v25 }
  0xa2   :  { %15915 = vmatmul.mubr.f32.gmra.mxu0 %v18148_v12 }
  0xa3   :  { %15893 = vmatmul.mubr.f32.gmra.mxu1 %v18468_v57  ;;  %15917 = vmatprep.mubr.f32.mxu0 %v18168_v42  ;;  %v25092_v42 = vld [vmem:[#allocation37_spill] sm:$0xff] }
  0xa4   :  { %15975 = vmatprep.mubr.f32.mxu1 %v25078_v63  ;;  %16026 = vmatpush3.msra.mxu0 %v18063_v25  ;;  %v25081_v25 = vand.u32 4294901760, %v18148_v12  ;;  %v25089_v12 = vld [vmem:[#allocation24_spill] sm:$0xff]  ;;  %v25112_v63 = vand.u32 4294901760, %v25106_v55 }
  0xa5   :  { %16027 = vmatprep.subr.mxu0 %v18066_v26 }
  0xa6   :  { %15918 = vmatmul.mubr.f32.gmra.mxu0 %v18175_v44 }
  0xa7   :  { %15976 = vmatmul.mubr.f32.vlgmr.msra.gmra.mxu1 %v25079_v31  ;;  %15920 = vmatprep.mubr.f32.mxu0 %v18188_v0  ;;  %v25114_v31 = vand.u32 4294901760, %v18383_v62 }
  0xa8   :  { %15978 = vmatprep.mubr.f32.mxu1 %v25080_v24  ;;  %16088 = vmatpush3.msra.mxu1 %v18023_v3  ;;  %v25083_v3 = vand.u32 4294901760, %v18175_v44  ;;  %v25093_v44 = vand.u32 4294901760, %v18239_v50  ;;  %v25115_v24 = vand.u32 4294901760, %v18403_v56 }
  0xa9   :  { %16089 = vmatprep.subr.mxu1 %v18025_v4  ;;  %16028 = vmatpush3.msra.mxu0 %v18066_v26  ;;  %v25085_v26 = vld [vmem:[#allocation19_spill] sm:$0xff] }
  0xaa   :  { %15921 = vmatmul.mubr.f32.gmra.mxu0 %v18191_v1  ;;  %16090 = vmatpush3.msra.mxu1 %v18025_v4  ;;  %v25084_v4 = vand.u32 4294901760, %v18188_v0  ;;  %v25094_v0 = vld [vmem:[#allocation25_spill] sm:$0xff] }
  0xab   :  { %15979 = vmatmul.mubr.f32.gmra.mxu1 %v25081_v25  ;;  %15923 = vmatprep.mubr.f32.mxu0 %v18211_v15  ;;  %v25097_v15 = vld [vmem:[#allocation41_spill] sm:$0xff]  ;;  %v25116_v25 = vand.u32 4294901760, %v18419_v61 }
  0xac   :  { %15981 = vmatprep.mubr.f32.mxu1 %v25082_v35  ;;  %16029 = vmatprep.subr.mxu0 %v18072_v28  ;;  %v25105_v52 = vand.u32 4294901760, %v25097_v15  ;;  %v25117_v35 = vand.u32 4294901760, %v18422_v53 }
  0xad   :  { %16030 = vmatpush3.msra.mxu0 %v18072_v28  ;;  %16091 = vmatprep.subr.mxu1 %v18027_v5  ;;  %v25086_v28 = vand.u32 4294901760, %v18191_v1  ;;  %v25096_v1 = vand.u32 4294901760, %v18242_v43 }
  0xae   :  { %15924 = vmatmul.mubr.f32.gmra.mxu0 %v18222_v58  ;;  %16031 = vmatprep.subr.mxu0 %v18099_v38 }
  0xaf   :  { %15982 = vmatmul.mubr.f32.gmra.mxu1 %v25083_v3  ;;  %15926 = vmatprep.mubr.f32.mxu0 %v18239_v50  ;;  %v25099_v50 = vld [vmem:[#allocation42_spill] sm:$0xff]  ;;  %v25119_v3 = vld [vmem:[#allocation20_spill] sm:$0xff] }
  0xb0   :  { %15984 = vmatprep.mubr.f32.mxu1 %v25084_v4  ;;  %16032 = vmatpush3.msra.mxu0 %v18099_v38  ;;  %v25091_v38 = vand.u32 4294901760, %v18222_v58  ;;  %v25098_v58 = vand.u32 4294901760, %v25087_v37  ;;  %v25107_v46 = vand.u32 4294901760, %v25099_v50  ;;  %v25121_v4 = vld [vmem:[#allocation21_spill] sm:$0xff] }
  0xb1   :  { %16092 = vmatpush3.msra.mxu1 %v18027_v5  ;;  %16033 = vmatprep.subr.mxu0 %v18102_v39  ;;  %v25090_v5 = vld [vmem:[#allocation36_spill] sm:$0xff] }
  0xb2   :  { %15927 = vmatmul.mubr.f32.gmra.mxu0 %v18242_v43  ;;  %16093 = vmatprep.subr.mxu1 %v25085_v26  ;;  %v25101_v43 = vand.u32 4294901760, %v25092_v42 }
  0xb3   :  { %15985 = vmatmul.mubr.f32.gmra.mxu1 %v25086_v28  ;;  %15929 = vmatprep.mubr.f32.mxu0 %v25087_v37  ;;  %v25133_v28 = vld [vmem:[#allocation38_spill] sm:$0xff]  ;;  %v25134_v37 = vld [vmem:[#allocation40_spill] sm:$0xff] }
  0xb4   :  { %15987 = vmatprep.mubr.f32.mxu1 %v25088_v6  ;;  %16034 = vmatpush3.msra.mxu0 %v18102_v39  ;;  %v25095_v39 = vld [vmem:[#allocation39_spill] sm:$0xff] }
  0xb5   :  { %16035 = vmatprep.subr.mxu0 %v25089_v12  ;;  %16094 = vmatpush3.msra.mxu1 %v25085_v26  ;;  %v25132_v26 = vld [vmem:[#allocation34_spill] sm:$0xff] }
  0xb6   :  { %15930 = vmatmul.mubr.f32.gmra.mxu0 %v25090_v5  ;;  %16095 = vmatprep.subr.mxu1 %v18031_v10 }
  0xb7   :  { %15988 = vmatmul.mubr.f32.gmra.mxu1 %v25091_v38  ;;  %15932 = vmatprep.mubr.f32.mxu0 %v25092_v42 }
  0xb8   :  { %15990 = vmatprep.mubr.f32.mxu1 %v25093_v44  ;;  %16036 = vmatpush3.msra.mxu0 %v25089_v12 }
  0xb9   :  { %16037 = vmatprep.subr.mxu0 %v25094_v0  ;;  %16096 = vmatpush3.msra.mxu1 %v18031_v10  ;;  %v25100_v10 = vand.u32 4294901760, %v25090_v5 }
  0xba   :  { %15933 = vmatmul.mubr.f32.gmra.mxu0 %v25095_v39  ;;  %16097 = vmatprep.subr.mxu1 %v18033_v11 }
  0xbb   :  { %15991 = vmatmul.mubr.f32.gmra.mxu1 %v25096_v1  ;;  %15935 = vmatprep.mubr.f32.mxu0 %v25097_v15 }
  0xbc   :  { %15993 = vmatprep.mubr.f32.mxu1 %v25098_v58  ;;  %16038 = vmatpush3.msra.mxu0 %v25094_v0 }
  0xbd   :  { %16098 = vmatpush3.msra.mxu1 %v18033_v11  ;;  %v25103_v11 = vand.u32 4294901760, %v25095_v39 }
  0xbe   :  { %15936 = vmatmul.mubr.f32.gmra.mxu0 %v25099_v50  ;;  %16099 = vmatprep.subr.mxu1 %v18044_v17 }
  0xbf   :  { %15994 = vmatmul.mubr.f32.gmra.mxu1 %v25100_v10  ;;  %15938 = vmatprep.mubr.f32.mxu0 %v18329_v8 }
  0xc0   :  { %15996 = vmatprep.mubr.f32.mxu1 %v25101_v43  ;;  %16100 = vmatpush3.msra.mxu1 %v18044_v17  ;;  %v25108_v17 = vld [vmem:[#allocation46_spill] sm:$0xff] }
  0xc1   :  { %16101 = vmatprep.subr.mxu1 %v18051_v20  ;;  %v25113_v8 = vand.u32 4294901760, %v25108_v17 }
  0xc2   :  { %15939 = vmatmul.mubr.f32.gmra.mxu0 %v25102_v21  ;;  %16102 = vmatpush3.msra.mxu1 %v18051_v20  ;;  %v25110_v20 = vand.u32 4294901760, %v25102_v21 }
  0xc3   :  { %15997 = vmatmul.mubr.f32.gmra.mxu1 %v25103_v11  ;;  %15941 = vmatprep.mubr.f32.mxu0 %v25104_v18 }
  0xc4   :  { %15999 = vmatprep.mubr.f32.mxu1 %v25105_v52 }
  0xc6   :  { %15942 = vmatmul.mubr.f32.gmra.mxu0 %v25106_v55 }
  0xc7   :  { %16000 = vmatmul.mubr.f32.gmra.mxu1 %v25107_v46  ;;  %15944 = vmatprep.mubr.f32.mxu0 %v25108_v17 }
  0xc8   :  { %16002 = vmatprep.mubr.f32.mxu1 %v25109_v49 }
  0xca   :  { %15945 = vmatmul.mubr.f32.gmra.mxu0 %v18383_v62  ;;  %v25118_v62 = vand.u32 4294901760, %v18443_v40 }
  0xcb   :  { %16003 = vmatmul.mubr.f32.gmra.mxu1 %v25110_v20  ;;  %15947 = vmatprep.mubr.f32.mxu0 %v18403_v56  ;;  %v25120_v56 = vand.u32 4294901760, %v18453_v13 }
  0xcc   :  { %16005 = vmatprep.mubr.f32.mxu1 %v25111_v27 }
  0xce   :  { %15948 = vmatmul.mubr.f32.gmra.mxu0 %v18419_v61  ;;  %v25122_v61 = vld [vmem:[#allocation22_spill] sm:$0xff] }
  0xcf   :  { %16006 = vmatmul.mubr.f32.gmra.mxu1 %v25112_v63  ;;  %15950 = vmatprep.mubr.f32.mxu0 %v18422_v53  ;;  %v25123_v53 = vld [vmem:[#allocation23_spill] sm:$0xff] }
  0xd0   :  { %16008 = vmatprep.mubr.f32.mxu1 %v25113_v8 }
  0xd2   :  { %15951 = vmatmul.mubr.f32.gmra.mxu0 %v18443_v40  ;;  %v25124_v40 = vld [vmem:[#allocation26_spill] sm:$0xff] }
  0xd3   :  { %16009 = vmatmul.mubr.f32.gmra.mxu1 %v25114_v31  ;;  %15953 = vmatprep.mubr.f32.mxu0 %v18453_v13  ;;  %v25125_v13 = vld [vmem:[#allocation27_spill] sm:$0xff] }
  0xd4   :  { %16011 = vmatprep.mubr.f32.mxu1 %v25115_v24 }
  0xd6   :  { %15954 = vmatmul.mubr.f32.gmra.mxu0 %v18466_v33  ;;  %v25126_v33 = vld [vmem:[#allocation28_spill] sm:$0xff] }
  0xd7   :  { %16012 = vmatmul.mubr.f32.gmra.mxu1 %v25116_v25  ;;  %15956 = vmatprep.mubr.f32.mxu0 %v18476_v36  ;;  %v25128_v36 = vld [vmem:[#allocation30_spill] sm:$0xff] }
  0xd8   :  { %16014 = vmatprep.mubr.f32.mxu1 %v25117_v35 }
  0xda   :  { %15957 = vmatmul.mubr.f32.gmra.mxu0 %v18484_v34  ;;  %v25129_v34 = vld [vmem:[#allocation31_spill] sm:$0xff] }
  0xdb   :  { %16015 = vmatmul.mubr.f32.gmra.mxu1 %v25118_v62  ;;  %16039 = vmatprep.mubr.f32.mxu0 %v25119_v3 }
  0xdc   :  { %16017 = vmatprep.mubr.f32.mxu1 %v25120_v56 }
  0xde   :  { %16040 = vmatmul.mubr.f32.vlgmr.msra.gmra.mxu0 %v25121_v4 }
  0xdf   :  { %16018 = vmatmul.mubr.f32.gmra.mxu1 %v608_v48  ;;  %16042 = vmatprep.mubr.f32.mxu0 %v25122_v61  ;;  %v25127_v48 = vld [vmem:[#allocation29_spill] sm:$0xff] }
  0xe0   :  { %16020 = vmatprep.mubr.f32.mxu1 %v618_v54  ;;  %v25130_v54 = vld [vmem:[#allocation32_spill] sm:$0xff] }
  0xe2   :  { %16043 = vmatmul.mubr.f32.gmra.mxu0 %v25123_v53 }
  0xe3   :  { %16021 = vmatmul.mubr.f32.gmra.mxu1 %v628_v45  ;;  %16045 = vmatprep.mubr.f32.mxu0 %v25124_v40  ;;  %v25131_v45 = vld [vmem:[#allocation33_spill] sm:$0xff] }
  0xe4   :  { %16103 = vmatprep.mubr.f32.mxu1 %v25119_v3 }
  0xe6   :  { %16046 = vmatmul.mubr.f32.gmra.mxu0 %v25125_v13 }
  0xe7   :  { %16104 = vmatmul.mubr.f32.vlgmr.msra.gmra.mxu1 %v25121_v4  ;;  %16048 = vmatprep.mubr.f32.mxu0 %v25126_v33 }
  0xe8   :  { %16106 = vmatprep.mubr.f32.mxu1 %v25122_v61 }
  0xea   :  { %16049 = vmatmul.mubr.f32.gmra.mxu0 %v25127_v48 }
  0xeb   :  { %16107 = vmatmul.mubr.f32.gmra.mxu1 %v25123_v53  ;;  %16051 = vmatprep.mubr.f32.mxu0 %v25128_v36 }
  0xec   :  { %16109 = vmatprep.mubr.f32.mxu1 %v25124_v40 }
  0xee   :  { %16052 = vmatmul.mubr.f32.gmra.mxu0 %v25129_v34 }
  0xef   :  { %16110 = vmatmul.mubr.f32.gmra.mxu1 %v25125_v13  ;;  %16054 = vmatprep.mubr.f32.mxu0 %v25130_v54 }
  0xf0   :  { %16112 = vmatprep.mubr.f32.mxu1 %v25126_v33 }
  0xf2   :  { %16055 = vmatmul.mubr.f32.gmra.mxu0 %v25131_v45 }
  0xf3   :  { %16113 = vmatmul.mubr.f32.gmra.mxu1 %v25127_v48  ;;  %16057 = vmatprep.mubr.f32.mxu0 %v25132_v26 }
  0xf4   :  { %16115 = vmatprep.mubr.f32.mxu1 %v25128_v36 }
  0xf6   :  { %16058 = vmatmul.mubr.f32.gmra.mxu0 %v18252_v60 }
  0xf7   :  { %16116 = vmatmul.mubr.f32.gmra.mxu1 %v25129_v34  ;;  %16060 = vmatprep.mubr.f32.mxu0 %v18258_v47 }
  0xf8   :  { %16118 = vmatprep.mubr.f32.mxu1 %v25130_v54 }
  0xfa   :  { %16061 = vmatmul.mubr.f32.gmra.mxu0 %v25133_v28 }
  0xfb   :  { %16119 = vmatmul.mubr.f32.gmra.mxu1 %v25131_v45  ;;  %16063 = vmatprep.mubr.f32.mxu0 %v25134_v37 }
  0xfc   :  { %16121 = vmatprep.mubr.f32.mxu1 %v25132_v26 }
  0xfe   :  { %16064 = vmatmul.mubr.f32.gmra.mxu0 %v18295_v7 }
  0xff   :  { %16122 = vmatmul.mubr.f32.gmra.mxu1 %v18252_v60  ;;  %16066 = vmatprep.mubr.f32.mxu0 %v18316_v32 }
 0x100   :  { %16124 = vmatprep.mubr.f32.mxu1 %v18258_v47 }
 0x102   :  { %16067 = vmatmul.mubr.f32.gmra.mxu0 %v18322_v23 }
 0x103   :  { %16125 = vmatmul.mubr.f32.gmra.mxu1 %v25133_v28  ;;  %16069 = vmatprep.mubr.f32.mxu0 %v18331_v29 }
 0x104   :  { %16127 = vmatprep.mubr.f32.mxu1 %v25134_v37 }
 0x106   :  { %16070 = vmatmul.mubr.f32.gmra.mxu0 %v18350_v16 }
 0x107   :  { %16128 = vmatmul.mubr.f32.gmra.mxu1 %v18295_v7  ;;  %16072 = vmatprep.mubr.f32.mxu0 %v18352_v19 }
 0x108   :  { %16130 = vmatprep.mubr.f32.mxu1 %v18316_v32 }
 0x10a   :  { %16073 = vmatmul.mubr.f32.gmra.mxu0 %v18368_v30 }
 0x10b   :  { %16131 = vmatmul.mubr.f32.gmra.mxu1 %v18322_v23  ;;  %16075 = vmatprep.mubr.f32.mxu0 %v18385_v9 }
 0x10c   :  { %16133 = vmatprep.mubr.f32.mxu1 %v18331_v29 }
 0x10e   :  { %16076 = vmatmul.mubr.f32.gmra.mxu0 %v18393_v59 }
 0x10f   :  { %16134 = vmatmul.mubr.f32.gmra.mxu1 %v18350_v16  ;;  %16078 = vmatprep.mubr.f32.mxu0 %v18395_v41 }
 0x110   :  { %16136 = vmatprep.mubr.f32.mxu1 %v18352_v19 }
 0x112   :  { %16079 = vmatmul.mubr.f32.gmra.mxu0 %v18424_v2 }
 0x113   :  { %16137 = vmatmul.mubr.f32.gmra.mxu1 %v18368_v30  ;;  %16081 = vmatprep.mubr.f32.mxu0 %v18429_v22 }
 0x114   :  { %16139 = vmatprep.mubr.f32.mxu1 %v18385_v9 }
 0x116   :  { %16082 = vmatmul.mubr.f32.gmra.mxu0 %v18445_v51 }
 0x117   :  { %16140 = vmatmul.mubr.f32.gmra.mxu1 %v18393_v59  ;;  %16084 = vmatprep.mubr.f32.mxu0 %v18455_v14 }
 0x118   :  { %16142 = vmatprep.mubr.f32.mxu1 %v18395_v41 }
 0x11a   :  { %16085 = vmatmul.mubr.f32.gmra.mxu0 %v18468_v57 }
 0x11b   :  { %16143 = vmatmul.mubr.f32.gmra.mxu1 %v18424_v2 }
 0x11c   :  { %16145 = vmatprep.mubr.f32.mxu1 %v18429_v22 }
 0x11e   :  { %v15785_v29 = vpop.f32.mrf.mxu0 }
 0x11f   :  { %16146 = vmatmul.mubr.f32.gmra.mxu1 %v18445_v51 }
 0x120   :  { %v18701_v47 = vpop.f32.mrf.mxu0  ;;  %16148 = vmatprep.mubr.f32.mxu1 %v18455_v14 }
 0x122   :  { %v15788_v9 = vpop.f32.mrf.mxu0 }
 0x123   :  { %16149 = vmatmul.mubr.f32.gmra.mxu1 %v18468_v57 }
 0x124   :  { %v18705_v23 = vpop.f32.mrf.mxu0 }
 0x126   :  { %v15791_v60 = vpop.f32.mrf.mxu0 }
 0x127   :  { %v15849_v41 = vpop.f32.mrf.mxu1 }
 0x128   :  { %v18707_v7 = vadd.f32 %v15849_v41, %v15785_v29  ;;  %v18709_v32 = vpop.f32.mrf.mxu0 }
 0x129   :  { %v18711_v16 = vpop.f32.mrf.mxu1 }
 0x12a   :  { %v15794_v22 = vpop.f32.mrf.mxu0 }
 0x12b   :  { %v15852_v19 = vpop.f32.mrf.mxu1 }
 0x12c   :  { %v18713_v30 = vadd.f32 %v15852_v19, %v15788_v9  ;;  %v18715_v59 = vpop.f32.mrf.mxu0 }
 0x12d   :  { %v18717_v51 = vpop.f32.mrf.mxu1 }
 0x12e   :  { %v15797_v2 = vpop.f32.mrf.mxu0 }
 0x12f   :  { %v15855_v57 = vpop.f32.mrf.mxu1 }
 0x130   :  { %v18719_v14 = vadd.f32 %v15855_v57, %v15791_v60  ;;  %v18721_v6 = vpop.f32.mrf.mxu0 }
 0x131   :  { %v18723_v12 = vpop.f32.mrf.mxu1 }
 0x132   :  { %v15800_v5 = vpop.f32.mrf.mxu0 }
 0x133   :  { %v15858_v38 = vpop.f32.mrf.mxu1 }
 0x134   :  { %v18725_v42 = vadd.f32 %v15858_v38, %v15794_v22  ;;  %v18727_v44 = vpop.f32.mrf.mxu0 }
 0x135   :  { %v18729_v0 = vpop.f32.mrf.mxu1 }
 0x136   :  { %v15803_v39 = vpop.f32.mrf.mxu0 }
 0x137   :  { %v15861_v1 = vpop.f32.mrf.mxu1 }
 0x138   :  { %v18731_v15 = vadd.f32 %v15861_v1, %v15797_v2  ;;  %v18733_v58 = vpop.f32.mrf.mxu0 }
 0x139   :  { %v18735_v50 = vpop.f32.mrf.mxu1 }
 0x13a   :  { %v15806_v10 = vpop.f32.mrf.mxu0 }
 0x13b   :  { %v15864_v43 = vpop.f32.mrf.mxu1 }
 0x13c   :  { %v18737_v21 = vadd.f32 %v15864_v43, %v15800_v5  ;;  %v18739_v11 = vpop.f32.mrf.mxu0 }
 0x13d   :  { %v18741_v18 = vpop.f32.mrf.mxu1 }
 0x13e   :  { %v15809_v52 = vpop.f32.mrf.mxu0 }
 0x13f   :  { %v15867_v55 = vpop.f32.mrf.mxu1 }
 0x140   :  { %v18743_v46 = vadd.f32 %v15867_v55, %v15803_v39  ;;  %v18745_v17 = vpop.f32.mrf.mxu0 }
 0x141   :  { %v18747_v49 = vpop.f32.mrf.mxu1 }
 0x142   :  { %v15812_v20 = vpop.f32.mrf.mxu0 }
 0x143   :  { %v15870_v27 = vpop.f32.mrf.mxu1 }
 0x144   :  { %v18749_v63 = vadd.f32 %v15870_v27, %v15806_v10  ;;  %v18751_v8 = vpop.f32.mrf.mxu0 }
 0x145   :  { %v18753_v31 = vpop.f32.mrf.mxu1 }
 0x146   :  { %v15815_v24 = vpop.f32.mrf.mxu0 }
 0x147   :  { %v15873_v25 = vpop.f32.mrf.mxu1 }
 0x148   :  { %v18755_v35 = vadd.f32 %v15873_v25, %v15809_v52  ;;  %v18757_v62 = vpop.f32.mrf.mxu0 }
 0x149   :  { %v18759_v3 = vpop.f32.mrf.mxu1 }
 0x14a   :  { %v15818_v56 = vpop.f32.mrf.mxu0 }
 0x14b   :  { %v15876_v4 = vpop.f32.mrf.mxu1 }
 0x14c   :  { %v18761_v61 = vadd.f32 %v15876_v4, %v15812_v20  ;;  %v18763_v53 = vpop.f32.mrf.mxu0 }
 0x14d   :  { %v18765_v40 = vpop.f32.mrf.mxu1 }
 0x14e   :  { %v15821_v13 = vpop.f32.mrf.mxu0 }
 0x14f   :  { %v15879_v33 = vpop.f32.mrf.mxu1 }
 0x150   :  { %v18767_v48 = vadd.f32 %v15879_v33, %v15815_v24  ;;  %v18769_v36 = vpop.f32.mrf.mxu0 }
 0x151   :  { %v18771_v34 = vpop.f32.mrf.mxu1 }
 0x152   :  { %v15824_v54 = vpop.f32.mrf.mxu0 }
 0x153   :  { %v15882_v45 = vpop.f32.mrf.mxu1 }
 0x154   :  { %v18773_v26 = vadd.f32 %v15882_v45, %v15818_v56  ;;  %v18775_v28 = vpop.f32.mrf.mxu0 }
 0x155   :  { %v18777_v37 = vpop.f32.mrf.mxu1 }
 0x156   :  { %v15827_v29 = vpop.f32.mrf.mxu0 }
 0x157   :  { %v15885_v9 = vpop.f32.mrf.mxu1 }
 0x158   :  { %v18779_v60 = vadd.f32 %v15885_v9, %v15821_v13  ;;  %v18781_v41 = vpop.f32.mrf.mxu0 }
 0x159   :  { %v18783_v22 = vpop.f32.mrf.mxu1 }
 0x15a   :  { %v15830_v19 = vpop.f32.mrf.mxu0 }
 0x15b   :  { %v15888_v2 = vpop.f32.mrf.mxu1 }
 0x15c   :  { %v18785_v57 = vadd.f32 %v15888_v2, %v15824_v54  ;;  %v18787_v5 = vpop.f32.mrf.mxu0 }
 0x15d   :  { %v18789_v38 = vpop.f32.mrf.mxu1 }
 0x15e   :  { %v15913_v39 = vpop.f32.mrf.mxu0 }
 0x15f   :  { %v15891_v1 = vpop.f32.mrf.mxu1  ;;  %v1025_v10 = vadd.f32 %v15913_v39, %v18707_v7 }
 0x160   :  { %v18792_v43 = vadd.f32 %v15891_v1, %v15827_v29  ;;  %v18794_v52 = vpop.f32.mrf.mxu0 }
 0x161   :  { %v18796_v55 = vpop.f32.mrf.mxu1 }
 0x162   :  { %v15916_v20 = vpop.f32.mrf.mxu0 }
 0x163   :  { %v15894_v27 = vpop.f32.mrf.mxu1  ;;  %v1039_v24 = vadd.f32 %v15916_v20, %v18713_v30 }
 0x164   :  { %v18799_v25 = vadd.f32 %v15894_v27, %v15830_v19  ;;  %v18801_v56 = vpop.f32.mrf.mxu0 }
 0x165   :  { %v18803_v4 = vpop.f32.mrf.mxu1 }
 0x166   :  { %25135 = vst [vmem:[#allocation19_spill] sm:$0xff] %v18799_v25  ;;  %v15919_v13 = vpop.f32.mrf.mxu0 }
 0x167   :  { %v1053_v33 = vadd.f32 %v15919_v13, %v18719_v14  ;;  %v15977_v7 = vpop.f32.mrf.mxu1 }
 0x168   :  { %v18806_v54 = vadd.f32 %v15977_v7, %v1025_v10  ;;  %v18808_v45 = vpop.f32.mrf.mxu0 }
 0x169   :  { %v18810_v29 = vpop.f32.mrf.mxu1 }
 0x16a   :  { %25136 = vst [vmem:[#allocation35_spill] sm:$0xff] %v18810_v29  ;;  %v15922_v9 = vpop.f32.mrf.mxu0 }
 0x16b   :  { %v1067_v2 = vadd.f32 %v15922_v9, %v18725_v42  ;;  %v15980_v30 = vpop.f32.mrf.mxu1 }
 0x16c   :  { %v18813_v19 = vadd.f32 %v15980_v30, %v1039_v24  ;;  %v18815_v39 = vpop.f32.mrf.mxu0 }
 0x16d   :  { %25137 = vst [vmem:[#allocation24_spill] sm:$0xff] %v18815_v39  ;;  %v18817_v1 = vpop.f32.mrf.mxu1 }
 0x16e   :  { %25138 = vst [vmem:[#allocation36_spill] sm:$0xff] %v18817_v1  ;;  %v15925_v20 = vpop.f32.mrf.mxu0 }
 0x16f   :  { %v1081_v14 = vadd.f32 %v15925_v20, %v18731_v15  ;;  %v15983_v27 = vpop.f32.mrf.mxu1 }
 0x170   :  { %v18820_v10 = vadd.f32 %v15983_v27, %v1053_v33  ;;  %v18822_v13 = vpop.f32.mrf.mxu0 }
 0x171   :  { %25139 = vst [vmem:[#allocation37_spill] sm:$0xff] %v18822_v13  ;;  %v18824_v7 = vpop.f32.mrf.mxu1 }
 0x172   :  { %25140 = vst [vmem:[#allocation25_spill] sm:$0xff] %v18824_v7  ;;  %v15928_v25 = vpop.f32.mrf.mxu0 }
 0x173   :  { %v1095_v42 = vadd.f32 %v15928_v25, %v18737_v21  ;;  %v15986_v9 = vpop.f32.mrf.mxu1 }
 0x174   :  { %v18827_v24 = vadd.f32 %v15986_v9, %v1067_v2  ;;  %v18829_v30 = vpop.f32.mrf.mxu0 }
 0x175   :  { %25141 = vst [vmem:[#allocation39_spill] sm:$0xff] %v18829_v30  ;;  %v18831_v39 = vpop.f32.mrf.mxu1 }
 0x176   :  { %25142 = vst [vmem:[#allocation41_spill] sm:$0xff] %v18831_v39  ;;  %v15931_v1 = vpop.f32.mrf.mxu0  ;;  %v2114_v39 = vld [vmem:[#allocation5 + $0x8] sm:$0xff] }
 0x177   :  { %v1109_v15 = vadd.f32 %v15931_v1, %v18743_v46  ;;  %v15989_v20 = vpop.f32.mrf.mxu1  ;;  %v18847_v46 = vand.u32 4294901760, %v2114_v39 }
 0x178   :  { %v18834_v33 = vadd.f32 %v15989_v20, %v1081_v14  ;;  %v18836_v27 = vpop.f32.mrf.mxu0 }
 0x179   :  { %v18838_v13 = vpop.f32.mrf.mxu1  ;;  %25147 = vst [vmem:[#allocation46_spill] sm:$0xff] %v18847_v46  ;;  %2571 = vmatprep.mubr.f32.mxu1 %v18847_v46 }
 0x17a   :  { %25143 = vst [vmem:[#allocation42_spill] sm:$0xff] %v18834_v33  ;;  %v15934_v7 = vpop.f32.mrf.mxu0 }
 0x17b   :  { %v1123_v21 = vadd.f32 %v15934_v7, %v18749_v63  ;;  %v15992_v25 = vpop.f32.mrf.mxu1  ;;  %v18855_v63 = vsub.f32 %v2114_v39, %v18847_v46 }
 0x17c   :  { %v18841_v2 = vadd.f32 %v15992_v25, %v1095_v42  ;;  %v18843_v9 = vpop.f32.mrf.mxu0 }
 0x17d   :  { %25145 = vst [vmem:[#allocation44_spill] sm:$0xff] %v18843_v9  ;;  %v18845_v30 = vpop.f32.mrf.mxu1  ;;  %25150 = vst [vmem:[#allocation22_spill] sm:$0xff] %v18855_v63  ;;  %v24677_v25 = vand.u32 4294901760, %v18855_v63 }
 0x17e   :  { %25144 = vst [vmem:[#allocation43_spill] sm:$0xff] %v18841_v2  ;;  %25146 = vst [vmem:[#allocation45_spill] sm:$0xff] %v18845_v30  ;;  %v15937_v29 = vpop.f32.mrf.mxu0 }
 0x17f   :  { %v1137_v1 = vadd.f32 %v15937_v29, %v18755_v35  ;;  %v15995_v14 = vpop.f32.mrf.mxu1  ;;  %v2228_v29 = vsub.f32 %v18855_v63, %v24677_v25 }
 0x180   :  { %v18850_v20 = vadd.f32 %v15995_v14, %v1109_v15  ;;  %v18852_v33 = vpop.f32.mrf.mxu0 }
 0x181   :  { %25149 = vst [vmem:[#allocation21_spill] sm:$0xff] %v18852_v33  ;;  %v18858_v7 = vpop.f32.mrf.mxu1  ;;  %v2229_v14 = vand.u32 4294901760, %v2228_v29 }
 0x182   :  { %25148 = vst [vmem:[#allocation20_spill] sm:$0xff] %v18850_v20  ;;  %25151 = vst [vmem:[#allocation23_spill] sm:$0xff] %v18858_v7  ;;  %v15940_v42 = vpop.f32.mrf.mxu0 }
 0x183   :  { %v1151_v2 = vadd.f32 %v15940_v42, %v18761_v61  ;;  %v15998_v30 = vpop.f32.mrf.mxu1  ;;  %2230 = vmatprep.mubr.f32.mxu0 %v2229_v14 }
 0x184   :  { %v18862_v9 = vadd.f32 %v15998_v30, %v1123_v21  ;;  %v18864_v35 = vpop.f32.mrf.mxu0 }
 0x185   :  { %v18869_v39 = vpop.f32.mrf.mxu1 }
 0x186   :  { %25152 = vst [vmem:[#allocation26_spill] sm:$0xff] %v18862_v9  ;;  %v15943_v15 = vpop.f32.mrf.mxu0 }
 0x187   :  { %v1165_v46 = vadd.f32 %v15943_v15, %v18767_v48  ;;  %v16001_v20 = vpop.f32.mrf.mxu1 }
 0x188   :  { %v18872_v7 = vadd.f32 %v16001_v20, %v1137_v1  ;;  %v18874_v33 = vpop.f32.mrf.mxu0 }
 0x189   :  { %v18876_v61 = vpop.f32.mrf.mxu1 }
 0x18a   :  { %25153 = vst [vmem:[#allocation27_spill] sm:$0xff] %v18872_v7  ;;  %v15946_v30 = vpop.f32.mrf.mxu0 }
 0x18b   :  { %v1179_v21 = vadd.f32 %v15946_v30, %v18773_v26  ;;  %v16004_v42 = vpop.f32.mrf.mxu1 }
 0x18c   :  { %v18879_v9 = vadd.f32 %v16004_v42, %v1151_v2  ;;  %v18881_v25 = vpop.f32.mrf.mxu0 }
 0x18d   :  { %v18883_v63 = vpop.f32.mrf.mxu1 }
 0x18e   :  { %25154 = vst [vmem:[#allocation28_spill] sm:$0xff] %v18879_v9  ;;  %25155 = vst [vmem:[#allocation29_spill] sm:$0xff] %v18883_v63  ;;  %v15949_v29 = vpop.f32.mrf.mxu0 }
 0x18f   :  { %v1193_v48 = vadd.f32 %v15949_v29, %v18779_v60  ;;  %v16007_v1 = vpop.f32.mrf.mxu1 }
 0x190   :  { %v18886_v20 = vadd.f32 %v16007_v1, %v1165_v46  ;;  %v18888_v15 = vpop.f32.mrf.mxu0 }
 0x191   :  { %v18890_v14 = vpop.f32.mrf.mxu1 }
 0x192   :  { %25156 = vst [vmem:[#allocation30_spill] sm:$0xff] %v18886_v20  ;;  %25157 = vst [vmem:[#allocation31_spill] sm:$0xff] %v18890_v14  ;;  %v15952_v7 = vpop.f32.mrf.mxu0 }
 0x193   :  { %v1207_v26 = vadd.f32 %v15952_v7, %v18785_v57  ;;  %v16010_v30 = vpop.f32.mrf.mxu1 }
 0x194   :  { %v18893_v2 = vadd.f32 %v16010_v30, %v1179_v21  ;;  %v18895_v42 = vpop.f32.mrf.mxu0 }
 0x195   :  { %v18897_v9 = vpop.f32.mrf.mxu1 }
 0x196   :  { %25158 = vst [vmem:[#allocation32_spill] sm:$0xff] %v18893_v2  ;;  %25159 = vst [vmem:[#allocation33_spill] sm:$0xff] %v18897_v9  ;;  %v15955_v63 = vpop.f32.mrf.mxu0 }
 0x197   :  { %v1221_v60 = vadd.f32 %v15955_v63, %v18792_v43  ;;  %v16013_v29 = vpop.f32.mrf.mxu1 }
 0x198   :  { %v18900_v46 = vadd.f32 %v16013_v29, %v1193_v48  ;;  %v18902_v1 = vpop.f32.mrf.mxu0 }
 0x199   :  { %v18904_v20 = vpop.f32.mrf.mxu1 }
 0x19a   :  { %25160 = vst [vmem:[#allocation34_spill] sm:$0xff] %v18900_v46  ;;  %25161 = vst [vmem:[#allocation38_spill] sm:$0xff] %v18904_v20  ;;  %v18906_v14 = vpop.f32.mrf.mxu0 }
 0x19b   :  { %25162 = vst [vmem:[#allocation40_spill] sm:$0xff] %v18906_v14  ;;  %v16016_v57 = vpop.f32.mrf.mxu1 }
 0x19c   :  { %v18908_v7 = vadd.f32 %v16016_v57, %v1207_v26  ;;  %v18910_v21 = vpop.f32.mrf.mxu0 }
 0x19d   :  { %25164 = vst [vmem:[#allocation48_spill] sm:$0xff] %v18910_v21  ;;  %v18912_v30 = vpop.f32.mrf.mxu1 }
 0x19e   :  { %25163 = vst [vmem:[#allocation47_spill] sm:$0xff] %v18908_v7  ;;  %25165 = vst [vmem:[#allocation49_spill] sm:$0xff] %v18912_v30  ;;  %v16041_v2 = vpop.f32.mrf.mxu0 }
 0x19f   :  { %v16019_v9 = vpop.f32.mrf.mxu1  ;;  %v1665_v43 = vadd.f32 %v16041_v2, %v18806_v54 }
 0x1a0   :  { %v18915_v63 = vadd.f32 %v16019_v9, %v1221_v60  ;;  %v18917_v48 = vpop.f32.mrf.mxu0 }
 0x1a1   :  { %v18919_v29 = vpop.f32.mrf.mxu1 }
 0x1a2   :  { %25166 = vst [vmem:[#allocation50_spill] sm:$0xff] %v18915_v63  ;;  %25167 = vst [vmem:[#allocation51_spill] sm:$0xff] %v18919_v29  ;;  %v16044_v46 = vpop.f32.mrf.mxu0 }
 0x1a3   :  { %v18921_v20 = vpop.f32.mrf.mxu1  ;;  %v1677_v26 = vadd.f32 %v16044_v46, %v18813_v19 }
 0x1a4   :  { %25168 = vst [vmem:[#allocation52_spill] sm:$0xff] %v18921_v20  ;;  %v18924_v57 = vpop.f32.mrf.mxu0 }
 0x1a5   :  { %25169 = vst [vmem:[#allocation53_spill] sm:$0xff] %v18924_v57  ;;  %v18926_v7 = vpop.f32.mrf.mxu1 }
 0x1a6   :  { %25170 = vst [vmem:[#allocation54_spill] sm:$0xff] %v18926_v7  ;;  %v16047_v30 = vpop.f32.mrf.mxu0 }
 0x1a7   :  { %v1689_v21 = vadd.f32 %v16047_v30, %v18820_v10  ;;  %v16105_v14 = vpop.f32.mrf.mxu1 }
 0x1a8   :  { %v18929_v54 = vadd.f32 %v16105_v14, %v1665_v43  ;;  %v18931_v9 = vpop.f32.mrf.mxu0 }
 0x1a9   :  { %v18933_v2 = vpop.f32.mrf.mxu1 }
 0x1aa   :  { %25171 = vst [vmem:[#allocation55_spill] sm:$0xff] %v18929_v54  ;;  %25172 = vst [vmem:[#allocation56_spill] sm:$0xff] %v18933_v2  ;;  %v16050_v60 = vpop.f32.mrf.mxu0 }
 0x1ab   :  { %v1701_v63 = vadd.f32 %v16050_v60, %v18827_v24  ;;  %v16108_v20 = vpop.f32.mrf.mxu1 }
 0x1ac   :  { %v18936_v29 = vadd.f32 %v16108_v20, %v1677_v26  ;;  %v18938_v19 = vpop.f32.mrf.mxu0 }
 0x1ad   :  { %v18940_v46 = vpop.f32.mrf.mxu1 }
 0x1ae   :  { %25173 = vst [vmem:[#allocation57_spill] sm:$0xff] %v18936_v29  ;;  %25174 = vst [vmem:[#allocation58_spill] sm:$0xff] %v18940_v46  ;;  %v18942_v7 = vpop.f32.mrf.mxu0 }
 0x1af   :  { %v16111_v10 = vpop.f32.mrf.mxu1 }
 0x1b0   :  { %v18944_v30 = vpop.f32.mrf.mxu0  ;;  %v18946_v14 = vadd.f32 %v16111_v10, %v1689_v21  ;;  %v2113_v10 = vld [vmem:[#allocation5] sm:$0xff] }
 0x1b1   :  { %25175 = vst [vmem:[#allocation59_spill] sm:$0xff] %v18944_v30  ;;  %v18948_v43 = vpop.f32.mrf.mxu1 }
 0x1b2   :  { %25176 = vst [vmem:[#allocation60_spill] sm:$0xff] %v18946_v14  ;;  %25177 = vst [vmem:[#allocation61_spill] sm:$0xff] %v18948_v43  ;;  %v18950_v54 = vpop.f32.mrf.mxu0 }
 0x1b3   :  { %v16114_v2 = vpop.f32.mrf.mxu1 }
 0x1b4   :  { %v18952_v24 = vadd.f32 %v16114_v2, %v1701_v63  ;;  %v18954_v20 = vpop.f32.mrf.mxu0  ;;  %v18974_v2 = vand.u32 4294901760, %v2113_v10 }
 0x1b5   :  { %v18956_v26 = vpop.f32.mrf.mxu1 }
 0x1b6   :  { %25178 = vst [vmem:[#allocation62_spill] sm:$0xff] %v18952_v24  ;;  %25179 = vst [vmem:[#allocation63_spill] sm:$0xff] %v18956_v26  ;;  %v18958_v60 = vpop.f32.mrf.mxu0 }
 0x1b7   :  { %25180 = vst [vmem:[#allocation64_spill] sm:$0xff] %v18958_v60  ;;  %v18960_v46 = vpop.f32.mrf.mxu1  ;;  %25187 = vst [vmem:[#allocation71_spill] sm:$0xff] %v18974_v2  ;;  %v2116_v60 = vld [vmem:[#allocation5 + $0x28] sm:$0xff] }
 0x1b8   :  { %v18962_v29 = vpop.f32.mrf.mxu0 }
 0x1b9   :  { %25181 = vst [vmem:[#allocation65_spill] sm:$0xff] %v18962_v29  ;;  %v18964_v57 = vpop.f32.mrf.mxu1 }
 0x1ba   :  { %25182 = vst [vmem:[#allocation66_spill] sm:$0xff] %v18964_v57  ;;  %v18966_v21 = vpop.f32.mrf.mxu0  ;;  %v18987_v57 = vand.u32 4294901760, %v2116_v60 }
 0x1bb   :  { %25183 = vst [vmem:[#allocation67_spill] sm:$0xff] %v18966_v21  ;;  %v18968_v14 = vpop.f32.mrf.mxu1  ;;  %v18985_v21 = vsub.f32 %v2113_v10, %v18974_v2  ;;  %v792_v10 = vadd.f32 %v18735_v50, %v18721_v6  ;;  %v804_v2 = vadd.f32 %v18741_v18, %v18727_v44  ;;  %v888_v50 = vadd.f32 %v18783_v22, %v18769_v36  ;;  %v25199_v22 = vld [vmem:[#allocation36_spill] sm:$0xff] }
 0x1bc   :  { %25184 = vst [vmem:[#allocation68_spill] sm:$0xff] %v18968_v14  ;;  %v18970_v43 = vpop.f32.mrf.mxu0  ;;  %25193 = vst [vmem:[#allocation77_spill] sm:$0xff] %v18987_v57  ;;  %v19021_v44 = vsub.f32 %v2116_v60, %v18987_v57 }
 0x1bd   :  { %25185 = vst [vmem:[#allocation69_spill] sm:$0xff] %v18970_v43  ;;  %v18972_v63 = vpop.f32.mrf.mxu1  ;;  %25192 = vst [vmem:[#allocation76_spill] sm:$0xff] %v18985_v21  ;;  %v744_v43 = vadd.f32 %v18711_v16, %v18701_v47  ;;  %v816_v47 = vadd.f32 %v18747_v49, %v18733_v58  ;;  %v852_v16 = vadd.f32 %v18765_v40, %v18751_v8  ;;  %v25197_v40 = vld [vmem:[#allocation35_spill] sm:$0xff] }
 0x1be   :  { %25186 = vst [vmem:[#allocation70_spill] sm:$0xff] %v18972_v63  ;;  %v18976_v26 = vpop.f32.mrf.mxu0  ;;  %v756_v63 = vadd.f32 %v18717_v51, %v18705_v23  ;;  %v828_v23 = vadd.f32 %v18753_v31, %v18739_v11  ;;  %v864_v51 = vadd.f32 %v18771_v34, %v18757_v62  ;;  %25194 = vst [vmem:[#allocation78_spill] sm:$0xff] %v19021_v44  ;;  %v25198_v34 = vld [vmem:[#allocation24_spill] sm:$0xff] }
 0x1bf   :  { %25188 = vst [vmem:[#allocation72_spill] sm:$0xff] %v18976_v26  ;;  %v18978_v24 = vpop.f32.mrf.mxu1  ;;  %v2115_v26 = vld [vmem:[#allocation5 + $0x20] sm:$0xff]  ;;  %v876_v58 = vadd.f32 %v18777_v37, %v18763_v53  ;;  %v1018_v11 = vadd.f32 %v18794_v52, %v744_v43  ;;  %v900_v49 = vadd.f32 %v18789_v38, %v18775_v28  ;;  %v912_v8 = vadd.f32 %v18796_v55, %v18781_v41  ;;  %v2118_v53 = vld [vmem:[#allocation5 + $0x48] sm:$0xff] }
 0x1c0   :  { %25189 = vst [vmem:[#allocation73_spill] sm:$0xff] %v18978_v24  ;;  %v18980_v30 = vpop.f32.mrf.mxu0  ;;  %v768_v24 = vadd.f32 %v18723_v12, %v18709_v32  ;;  %v840_v32 = vadd.f32 %v18759_v3, %v18745_v17  ;;  %v24686_v12 = vand.u32 4294901760, %v18985_v21  ;;  %v1032_v18 = vadd.f32 %v18801_v56, %v756_v63  ;;  %v25200_v56 = vld [vmem:[#allocation37_spill] sm:$0xff]  ;;  %v2117_v41 = vld [vmem:[#allocation5 + $0x40] sm:$0xff] }
 0x1c1   :  { %25190 = vst [vmem:[#allocation74_spill] sm:$0xff] %v18980_v30  ;;  %v18982_v29 = vpop.f32.mrf.mxu1  ;;  %v780_v30 = vadd.f32 %v18729_v0, %v18715_v59  ;;  %v19023_v0 = vand.u32 4294901760, %v2115_v26  ;;  %v924_v31 = vadd.f32 %v18803_v4, %v18787_v5  ;;  %v1316_v36 = vadd.f32 %v25197_v40, %v1018_v11  ;;  %v25201_v55 = vld [vmem:[#allocation39_spill] sm:$0xff]  ;;  %v25206_v63 = vld [vmem:[#allocation41_spill] sm:$0xff] }
 0x1c2   :  { %25191 = vst [vmem:[#allocation75_spill] sm:$0xff] %v18982_v29  ;;  %v18993_v14 = vpop.f32.mrf.mxu0  ;;  %v1046_v62 = vadd.f32 %v18808_v45, %v768_v24  ;;  %v19045_v52 = vadd.f32 %v25199_v22, %v1032_v18  ;;  %v1074_v28 = vadd.f32 %v25200_v56, %v792_v10  ;;  %v1088_v43 = vadd.f32 %v25201_v55, %v804_v2  ;;  %v25205_v24 = vld [vmem:[#allocation25_spill] sm:$0xff] }
 0x1c3   :  { %v19003_v29 = vpop.f32.mrf.mxu1  ;;  %25195 = vst [vmem:[#allocation79_spill] sm:$0xff] %v19023_v0  ;;  %v1060_v37 = vadd.f32 %v25198_v34, %v780_v30  ;;  %v19056_v4 = vsub.f32 %v18985_v21, %v24686_v12  ;;  %v19060_v30 = vsub.f32 %v2115_v26, %v19023_v0  ;;  %v1102_v11 = vadd.f32 %v18836_v27, %v816_v47  ;;  %v25208_v34 = vld [vmem:[#allocation44_spill] sm:$0xff]  ;;  %v25209_v56 = vld [vmem:[#allocation45_spill] sm:$0xff]  ;;  %v25213_v47 = vld [vmem:[#allocation42_spill] sm:$0xff] }
 0x1c4   :  { %v19013_v59 = vpop.f32.mrf.mxu0  ;;  %v1348_v60 = vadd.f32 %v25205_v24, %v1046_v62  ;;  %v19067_v2 = vand.u32 4294901760, %v2118_v53  ;;  %v1380_v40 = vadd.f32 %v18838_v13, %v1074_v28  ;;  %v1116_v22 = vadd.f32 %v25208_v34, %v828_v23  ;;  %v25211_v45 = vld [vmem:[#allocation21_spill] sm:$0xff]  ;;  %v25212_v24 = vld [vmem:[#allocation23_spill] sm:$0xff] }
 0x1c5   :  { %v19017_v6 = vpop.f32.mrf.mxu1  ;;  %25203 = vst [vmem:[#allocation24_spill] sm:$0xff] %v19056_v4  ;;  %25204 = vst [vmem:[#allocation36_spill] sm:$0xff] %v19060_v30  ;;  %v1364_v10 = vadd.f32 %v25206_v63, %v1060_v37  ;;  %v1396_v55 = vadd.f32 %v25209_v56, %v1088_v43  ;;  %v19074_v26 = vand.u32 4294901760, %v2117_v41  ;;  %v1130_v62 = vadd.f32 %v25211_v45, %v840_v32  ;;  %v25225_v28 = vld [vmem:[#allocation43_spill] sm:$0xff]  ;;  %v25256_v4 = vld [vmem:[#allocation65_spill] sm:$0xff] }
 0x1c6   :  { %v19031_v17 = vpop.f32.mrf.mxu0  ;;  %25207 = vst [vmem:[#allocation37_spill] sm:$0xff] %v19067_v2  ;;  %v19078_v37 = vadd.f32 %v25212_v24, %v1102_v11  ;;  %v1144_v27 = vadd.f32 %v18864_v35, %v852_v16  ;;  %v1713_v63 = vadd.f32 %v18942_v7, %v25213_v47  ;;  %v19086_v13 = vadd.f32 %v18869_v39, %v1116_v22  ;;  %v25217_v22 = vld [vmem:[#allocation29_spill] sm:$0xff] }
 0x1c7   :  { %v19040_v3 = vpop.f32.mrf.mxu1  ;;  %25210 = vst [vmem:[#allocation39_spill] sm:$0xff] %v19074_v26  ;;  %v25214_v43 = vand.u32 4294901760, %v19021_v44  ;;  %v1158_v35 = vadd.f32 %v18874_v33, %v864_v51  ;;  %v1172_v7 = vadd.f32 %v18881_v25, %v876_v58  ;;  %v19103_v39 = vsub.f32 %v2118_v53, %v19067_v2  ;;  %v25219_v25 = vld [vmem:[#allocation31_spill] sm:$0xff]  ;;  %v25220_v58 = vld [vmem:[#allocation33_spill] sm:$0xff]  ;;  %v25244_v2 = vld [vmem:[#allocation66_spill] sm:$0xff] }
 0x1c8   :  { %25196 = vst [vmem:[#allocation80_spill] sm:$0xff] %v19040_v3  ;;  %v19048_v38 = vpop.f32.mrf.mxu0  ;;  %v1978_v16 = vadd.f32 %v18960_v46, %v1713_v63  ;;  %v19106_v34 = vadd.f32 %v18876_v61, %v1130_v62  ;;  %v19109_v56 = vadd.f32 %v25217_v22, %v1144_v27  ;;  %v1186_v24 = vadd.f32 %v18888_v15, %v888_v50  ;;  %v25221_v27 = vld [vmem:[#allocation38_spill] sm:$0xff]  ;;  %v25222_v15 = vld [vmem:[#allocation19_spill] sm:$0xff]  ;;  %v25223_v50 = vld [vmem:[#allocation40_spill] sm:$0xff] }
 0x1c9   :  { %v19051_v5 = vpop.f32.mrf.mxu1  ;;  %v19094_v32 = vsub.f32 %v19021_v44, %v25214_v43  ;;  %25216 = vst [vmem:[#allocation41_spill] sm:$0xff] %v19103_v39  ;;  %v19115_v33 = vsub.f32 %v2117_v41, %v19074_v26  ;;  %v19118_v46 = vadd.f32 %v25219_v25, %v1158_v35  ;;  %v1200_v51 = vadd.f32 %v18895_v42, %v900_v49  ;;  %v25224_v41 = vld [vmem:[#allocation48_spill] sm:$0xff]  ;;  %v25226_v42 = vld [vmem:[#allocation49_spill] sm:$0xff]  ;;  %v25239_v44 = vld [vmem:[#allocation70_spill] sm:$0xff] }
 0x1ca   :  { %25202 = vst [vmem:[#allocation35_spill] sm:$0xff] %v19051_v5  ;;  %v19065_v18 = vpop.f32.mrf.mxu0  ;;  %v19122_v53 = vadd.f32 %v25220_v58, %v1172_v7  ;;  %v1214_v61 = vadd.f32 %v18902_v1, %v912_v8  ;;  %v19128_v63 = vadd.f32 %v25221_v27, %v1186_v24  ;;  %v1235_v43 = vadd.f32 %v25223_v50, %v25222_v15  ;;  %v25228_v58 = vld [vmem:[#allocation51_spill] sm:$0xff] }
 0x1cb   :  { %v19072_v12 = vpop.f32.mrf.mxu1  ;;  %25215 = vst [vmem:[#allocation25_spill] sm:$0xff] %v19094_v32  ;;  %25218 = vst [vmem:[#allocation44_spill] sm:$0xff] %v19115_v33  ;;  %v1228_v22 = vadd.f32 %v25224_v41, %v924_v31  ;;  %v1725_v35 = vadd.f32 %v18950_v54, %v25225_v28  ;;  %v19138_v49 = vadd.f32 %v25226_v42, %v1200_v51  ;;  %v19142_v7 = vand.u32 4294901760, %v1978_v16  ;;  %v25229_v28 = vld [vmem:[#allocation68_spill] sm:$0xff]  ;;  %v25233_v42 = vld [vmem:[#allocation62_spill] sm:$0xff] }
 0x1cc   :  { %v19083_v21 = vpop.f32.mrf.mxu0  ;;  %v1659_v1 = vadd.f32 %v18917_v48, %v1316_v36  ;;  %v1683_v8 = vadd.f32 %v18931_v9, %v1348_v60  ;;  %v19147_v27 = vadd.f32 %v25228_v58, %v1214_v61  ;;  %v1695_v31 = vadd.f32 %v18938_v19, %v1364_v10  ;;  %v25230_v51 = vld [vmem:[#allocation52_spill] sm:$0xff]  ;;  %v25231_v48 = vld [vmem:[#allocation59_spill] sm:$0xff]  ;;  %v25232_v36 = vld [vmem:[#allocation61_spill] sm:$0xff] }
 0x1cd   :  { %v19088_v23 = vpop.f32.mrf.mxu1  ;;  %25227 = vst [vmem:[#allocation45_spill] sm:$0xff] %v19142_v7  ;;  %v1719_v54 = vadd.f32 %v18954_v20, %v1396_v55  ;;  %v1990_v15 = vadd.f32 %v25229_v28, %v1725_v35  ;;  %v19155_v41 = vadd.f32 %v25230_v51, %v1235_v43  ;;  %v1707_v9 = vadd.f32 %v25231_v48, %v1380_v40  ;;  %v25235_v58 = vld [vmem:[#allocation53_spill] sm:$0xff]  ;;  %v25236_v10 = vld [vmem:[#allocation63_spill] sm:$0xff]  ;;  %v25237_v55 = vld [vmem:[#allocation20_spill] sm:$0xff] }
 0x1ce   :  { %v19100_v11 = vpop.f32.mrf.mxu0  ;;  %v1948_v60 = vadd.f32 %v25232_v36, %v1683_v8  ;;  %v19160_v45 = vand.u32 4294901760, %v25233_v42  ;;  %v1671_v19 = vadd.f32 %v25235_v58, %v19045_v52  ;;  %v1960_v20 = vadd.f32 %v25236_v10, %v1695_v31  ;;  %v25238_v35 = vld [vmem:[#allocation64_spill] sm:$0xff]  ;;  %v25240_v51 = vld [vmem:[#allocation54_spill] sm:$0xff]  ;;  %v25245_v31 = vld [vmem:[#allocation55_spill] sm:$0xff] }
 0x1cf   :  { %v19112_v47 = vpop.f32.mrf.mxu1  ;;  %v1737_v28 = vadd.f32 %v25238_v35, %v25237_v55  ;;  %v1984_v26 = vadd.f32 %v25239_v44, %v1719_v54  ;;  %v19171_v40 = vadd.f32 %v25240_v51, %v1228_v22  ;;  %v25241_v8 = vld [vmem:[#allocation56_spill] sm:$0xff]  ;;  %v19177_v36 = vsub.f32 %v1978_v16, %v19142_v7  ;;  %v25247_v55 = vld [vmem:[#allocation57_spill] sm:$0xff] }
 0x1d0   :  { %v19125_v62 = vpop.f32.mrf.mxu0  ;;  %25234 = vst [vmem:[#allocation21_spill] sm:$0xff] %v19160_v45  ;;  %v19174_v48 = vadd.f32 %v25241_v8, %v1659_v1  ;;  %v1972_v52 = vadd.f32 %v25244_v2, %v1707_v9  ;;  %v19181_v10 = vand.u32 4294901760, %v25245_v31  ;;  %v19184_v35 = vand.u32 4294901760, %v25247_v55  ;;  %v25249_v54 = vld [vmem:[#allocation73_spill] sm:$0xff]  ;;  %v25250_v1 = vld [vmem:[#allocation58_spill] sm:$0xff]  ;;  %v25252_v16 = vld [vmem:[#allocation60_spill] sm:$0xff] }
 0x1d1   :  { %v19135_v25 = vpop.f32.mrf.mxu1  ;;  %25243 = vst [vmem:[#allocation42_spill] sm:$0xff] %v19177_v36  ;;  %v19186_v44 = vand.u32 4294901760, %v1990_v15  ;;  %v2002_v22 = vadd.f32 %v25249_v54, %v1737_v28  ;;  %v19192_v8 = vadd.f32 %v25250_v1, %v1671_v19  ;;  %v19195_v0 = vand.u32 4294901760, %v25252_v16  ;;  %v25257_v28 = vld [vmem:[#allocation26_spill] sm:$0xff]  ;;  %v25258_v54 = vld [vmem:[#allocation67_spill] sm:$0xff] }
 0x1d2   :  { %v19144_v24 = vpop.f32.mrf.mxu0  ;;  %25242 = vst [vmem:[#allocation23_spill] sm:$0xff] %v19174_v48  ;;  %25246 = vst [vmem:[#allocation29_spill] sm:$0xff] %v19181_v10  ;;  %v19197_v2 = vand.u32 4294901760, %v1948_v60  ;;  %v19201_v9 = vsub.f32 %v25233_v42, %v19160_v45  ;;  %v19203_v57 = vand.u32 4294901760, %v1960_v20  ;;  %v1731_v33 = vadd.f32 %v25256_v4, %v19078_v37  ;;  %v25261_v10 = vld [vmem:[#allocation69_spill] sm:$0xff] }
 0x1d3   :  { %v19152_v50 = vpop.f32.mrf.mxu1  ;;  %25248 = vst [vmem:[#allocation31_spill] sm:$0xff] %v19184_v35  ;;  %25251 = vst [vmem:[#allocation33_spill] sm:$0xff] %v19192_v8  ;;  %v1749_v30 = vadd.f32 %v25258_v54, %v25257_v28  ;;  %v19209_v32 = vand.u32 4294901760, %v1984_v26  ;;  %v19214_v39 = vand.u32 4294901760, %v19174_v48  ;;  %v19217_v42 = vand.u32 4294901760, %v1972_v52  ;;  %v25263_v28 = vld [vmem:[#allocation75_spill] sm:$0xff] }
 0x1d4   :  { %v1814_v61 = vpop.f32.mrf.mxu0  ;;  %25253 = vst [vmem:[#allocation38_spill] sm:$0xff] %v19195_v0  ;;  %25254 = vst [vmem:[#allocation19_spill] sm:$0xff] %v19197_v2  ;;  %v1743_v45 = vadd.f32 %v25261_v10, %v19086_v13  ;;  %v19222_v4 = vsub.f32 %v1990_v15, %v19186_v44  ;;  %v19224_v37 = vand.u32 4294901760, %v2002_v22  ;;  %v1996_v54 = vadd.f32 %v25263_v28, %v1731_v33  ;;  %v25271_v10 = vld [vmem:[#allocation72_spill] sm:$0xff] }
 0x1d5   :  { %v19168_v43 = vpop.f32.mrf.mxu1  ;;  %25255 = vst [vmem:[#allocation40_spill] sm:$0xff] %v19203_v57  ;;  %25259 = vst [vmem:[#allocation48_spill] sm:$0xff] %v19214_v39  ;;  %v2014_v5 = vadd.f32 %v19003_v29, %v1749_v30  ;;  %v19230_v48 = vsub.f32 %v25247_v55, %v19184_v35  ;;  %v19233_v31 = vand.u32 4294901760, %v19192_v8  ;;  %v19237_v13 = vsub.f32 %v25252_v16, %v19195_v0  ;;  %v25270_v35 = vld [vmem:[#allocation27_spill] sm:$0xff] }
 0x1d6   :  { %v16083_v58 = vpop.f32.mrf.mxu0  ;;  %25260 = vst [vmem:[#allocation43_spill] sm:$0xff] %v19217_v42  ;;  %25262 = vst [vmem:[#allocation49_spill] sm:$0xff] %v19224_v37  ;;  %v19240_v15 = vsub.f32 %v1948_v60, %v19197_v2  ;;  %v19244_v33 = vsub.f32 %v1960_v20, %v19203_v57  ;;  %v19247_v29 = vsub.f32 %v1984_v26, %v19209_v32  ;;  %v25268_v39 = vand.u32 4294901760, %v19177_v36  ;;  %v25272_v20 = vld [vmem:[#allocation50_spill] sm:$0xff] }
 0x1d7   :  { %v19189_v51 = vpop.f32.mrf.mxu1  ;;  %25264 = vst [vmem:[#allocation51_spill] sm:$0xff] %v19230_v48  ;;  %25265 = vst [vmem:[#allocation68_spill] sm:$0xff] %v19233_v31  ;;  %v2008_v30 = vadd.f32 %v19017_v6, %v1743_v45  ;;  %v19256_v60 = vsub.f32 %v1972_v52, %v19217_v42  ;;  %v19260_v2 = vadd.f32 %v25271_v10, %v25270_v35  ;;  %v19267_v45 = vand.u32 4294901760, %v1996_v54  ;;  %v25274_v31 = vld [vmem:[#allocation47_spill] sm:$0xff] }
 0x1d8   :  { %v1826_v19 = vpop.f32.mrf.mxu0  ;;  %25266 = vst [vmem:[#allocation52_spill] sm:$0xff] %v19237_v13  ;;  %25267 = vst [vmem:[#allocation59_spill] sm:$0xff] %v19240_v15  ;;  %v19253_v16 = vsub.f32 %v19177_v36, %v25268_v39  ;;  %v1833_v48 = vadd.f32 %v16083_v58, %v25272_v20  ;;  %v19265_v6 = vsub.f32 %v2002_v22, %v19224_v37  ;;  %v19269_v8 = vand.u32 4294901760, %v2014_v5  ;;  %v25273_v36 = vld [vmem:[#allocation28_spill] sm:$0xff] }
 0x1d9   :  { %v19211_v1 = vpop.f32.mrf.mxu1  ;;  %v19273_v52 = vadd.f32 %v18993_v14, %v25273_v36  ;;  %v1821_v35 = vadd.f32 %v19144_v24, %v25274_v31  ;;  %v1827_v10 = vadd.f32 %v1826_v19, %v19147_v27  ;;  %v24733_v20 = vand.u32 4294901760, %v19247_v29 }
 0x1da   :  { %v16086_v55 = vpop.f32.mrf.mxu0  ;;  %25269 = vst [vmem:[#allocation61_spill] sm:$0xff] %v19253_v16  ;;  %v19281_v22 = vadd.f32 %v19013_v59, %v19109_v56  ;;  %v19283_v26 = vand.u32 4294901760, %v2008_v30  ;;  %v1815_v0 = vadd.f32 %v1814_v61, %v19138_v49  ;;  %v24727_v27 = vand.u32 4294901760, %v19265_v6  ;;  %v25276_v56 = vld [vmem:[#allocation34_spill] sm:$0xff] }
 0x1db   :  { %v16144_v3 = vpop.f32.mrf.mxu1  ;;  %v1845_v14 = vadd.f32 %v16086_v55, %v19155_v41  ;;  %v19294_v59 = vsub.f32 %v2014_v5, %v19269_v8  ;;  %v1809_v31 = vadd.f32 %v19100_v11, %v25276_v56  ;;  %v1803_v5 = vadd.f32 %v19125_v62, %v19128_v63 }
 0x1dc   :  { %v1838_v15 = vpop.f32.mrf.mxu0  ;;  %v2086_v36 = vadd.f32 %v16144_v3, %v1821_v35  ;;  %v19302_v55 = vsub.f32 %v2008_v30, %v19283_v26 }
 0x1dd   :  { %v2079_v28 = vpop.f32.mrf.mxu1  ;;  %v1839_v61 = vadd.f32 %v1838_v15, %v19171_v40  ;;  %v2068_v62 = vadd.f32 %v19211_v1, %v1803_v5 }
 0x1de   :  { %v2080_v19 = vadd.f32 %v2079_v28, %v1815_v0  ;;  %v19309_v11 = vand.u32 4294901760, %v2086_v36  ;;  %v24724_v28 = vand.u32 4294901760, %v19294_v59  ;;  %v24723_v56 = vand.u32 4294901760, %v19302_v55 }
 0x1df   :  { %v16147_v39 = vpop.f32.mrf.mxu1 }
 0x1e0   :  { %v2098_v58 = vadd.f32 %v16147_v39, %v1833_v48  ;;  %v19291_v48 = vsub.f32 %v1996_v54, %v19267_v45  ;;  %v2074_v39 = vadd.f32 %v19189_v51, %v1809_v31  ;;  %v19321_v63 = vand.u32 4294901760, %v2080_v19 }
 0x1e1   :  { %v2091_v16 = vpop.f32.mrf.mxu1  ;;  %v1791_v31 = vadd.f32 %v19083_v21, %v19122_v53  ;;  %v2350_v21 = vsub.f32 %v19294_v59, %v24724_v28  ;;  %v1779_v53 = vadd.f32 %v19048_v38, %v19118_v46 }
 0x1e2   :  { %v19287_v57 = vand.u32 4294901760, %v2098_v58  ;;  %v2092_v24 = vadd.f32 %v2091_v16, %v1827_v10  ;;  %v25277_v16 = vld [vmem:[#allocation30_spill] sm:$0xff]  ;;  %v24728_v30 = vand.u32 4294901760, %v19291_v48  ;;  %v25278_v10 = vld [vmem:[#allocation32_spill] sm:$0xff]  ;;  %v19336_v1 = vand.u32 4294901760, %v2074_v39 }
 0x1e3   :  { %v16150_v49 = vpop.f32.mrf.mxu1  ;;  %v1785_v54 = vadd.f32 %v19031_v17, %v25277_v16  ;;  %v1797_v17 = vadd.f32 %v19065_v18, %v25278_v10  ;;  %v19358_v16 = vsub.f32 %v2080_v19, %v19321_v63  ;;  %v2357_v19 = vsub.f32 %v19302_v55, %v24723_v56 }
 0x1e4   :  { %25275 = vst [vmem:[#allocation62_spill] sm:$0xff] %v19287_v57  ;;  %v19299_v41 = vand.u32 4294901760, %v2092_v24  ;;  %v2110_v3 = vadd.f32 %v16150_v49, %v1845_v14  ;;  %v19312_v40 = vsub.f32 %v2098_v58, %v19287_v57  ;;  %25279 = vst [vmem:[#allocation53_spill] sm:$0xff] %v19336_v1 }
 0x1e5   :  { %v2103_v35 = vpop.f32.mrf.mxu1  ;;  %v2062_v18 = vadd.f32 %v19152_v50, %v1797_v17  ;;  %v2056_v50 = vadd.f32 %v19168_v43, %v1791_v31  ;;  %v2050_v38 = vadd.f32 %v19112_v47, %v1785_v54  ;;  %v19370_v43 = vsub.f32 %v2074_v39, %v19336_v1 }
 0x1e6   :  { %v19314_v0 = vand.u32 4294901760, %v2110_v3  ;;  %v2104_v15 = vadd.f32 %v2103_v35, %v1839_v61  ;;  %v19324_v51 = vsub.f32 %v2092_v24, %v19299_v41  ;;  %v19340_v24 = vsub.f32 %v2086_v36, %v19309_v11 }
 0x1e7   :  { %v19354_v36 = vand.u32 4294901760, %v2068_v62  ;;  %v19367_v46 = vand.u32 4294901760, %v2062_v18  ;;  %v2364_v39 = vsub.f32 %v19265_v6, %v24727_v27  ;;  %v2044_v31 = vadd.f32 %v19135_v25, %v1779_v53 }
 0x1e8   :  { %v19327_v58 = vsub.f32 %v2110_v3, %v19314_v0  ;;  %v19329_v14 = vand.u32 4294901760, %v2104_v15  ;;  %14123 = vmatprep.subr.mxu0 %v19314_v0  ;;  %v24725_v3 = vand.u32 4294901760, %v19312_v40  ;;  %v24730_v54 = vand.u32 4294901760, %v19340_v24 }
 0x1e9   :  { %14124 = vmatpush3.msra.mxu0 %v19269_v8  ;;  %25280 = vst [vmem:[#allocation63_spill] sm:$0xff] %v19354_v36  ;;  %25281 = vst [vmem:[#allocation20_spill] sm:$0xff] %v19367_v46  ;;  %v19388_v56 = vand.u32 4294901760, %v2056_v50  ;;  %v19392_v28 = vsub.f32 %v2068_v62, %v19354_v36  ;;  %v24731_v27 = vand.u32 4294901760, %v19358_v16  ;;  %v2038_v25 = vadd.f32 %v19072_v12, %v19273_v52 }
 0x1ea   :  { %v19343_v49 = vsub.f32 %v2104_v15, %v19329_v14  ;;  %14125 = vmatprep.subr.mxu0 %v19329_v14  ;;  %v24732_v61 = vand.u32 4294901760, %v19327_v58  ;;  %v24729_v15 = vand.u32 4294901760, %v19324_v51  ;;  %v2476_v47 = vsub.f32 %v19312_v40, %v24725_v3 }
 0x1eb   :  { %14126 = vmatpush3.msra.mxu0 %v19283_v26  ;;  %25282 = vst [vmem:[#allocation64_spill] sm:$0xff] %v19388_v56  ;;  %v19401_v53 = vand.u32 4294901760, %v2050_v38  ;;  %v2358_v62 = vand.u32 4294901760, %v2357_v19  ;;  %v2490_v12 = vsub.f32 %v19340_v24, %v24730_v54  ;;  %v24734_v52 = vand.u32 4294901760, %v19370_v43 }
 0x1ec   :  { %14127 = vmatprep.subr.mxu0 %v19287_v57  ;;  %v2462_v5 = vsub.f32 %v19327_v58, %v24732_v61  ;;  %v24726_v35 = vand.u32 4294901760, %v19343_v49  ;;  %v24735_v54 = vand.u32 4294901760, %v19392_v28  ;;  %v25288_v61 = vld [vmem:[#allocation80_spill] sm:$0xff] }
 0x1ed   :  { %14128 = vmatpush3.msra.mxu0 %v19224_v37  ;;  %25283 = vst [vmem:[#allocation70_spill] sm:$0xff] %v19401_v53 }
 0x1ee   :  { %14129 = vmatprep.subr.mxu0 %v19299_v41  ;;  %v2463_v10 = vand.u32 4294901760, %v2462_v5  ;;  %v2469_v17 = vsub.f32 %v19343_v49, %v24726_v35  ;;  %v2351_v5 = vand.u32 4294901760, %v2350_v21  ;;  %v2483_v35 = vsub.f32 %v19324_v51, %v24729_v15 }
 0x1ef   :  { %14130 = vmatpush3.msra.mxu0 %v19267_v45  ;;  %v2371_v21 = vsub.f32 %v19291_v48, %v24728_v30  ;;  %v2032_v30 = vadd.f32 %v19088_v23, %v19281_v22  ;;  %v19420_v15 = vand.u32 4294901760, %v2044_v31  ;;  %v19432_v22 = vand.u32 4294901760, %v2038_v25 }
 0x1f0   :  { %14131 = vmatprep.subr.mxu0 %v19309_v11  ;;  %14179 = vmatprep.subr.mxu1 %v2463_v10  ;;  %v2470_v3 = vand.u32 4294901760, %v2469_v17  ;;  %v19408_v10 = vsub.f32 %v2062_v18, %v19367_v46  ;;  %v2477_v17 = vand.u32 4294901760, %v2476_v47  ;;  %v2365_v18 = vand.u32 4294901760, %v2364_v39 }
 0x1f1   :  { %14132 = vmatpush3.msra.mxu0 %v19186_v44  ;;  %14180 = vmatpush3.msra.mxu1 %v2351_v5  ;;  %v25284_v5 = vand.u32 4294901760, %v19222_v4  ;;  %25285 = vst [vmem:[#allocation54_spill] sm:$0xff] %v19420_v15  ;;  %v2484_v47 = vand.u32 4294901760, %v2483_v35  ;;  %25286 = vst [vmem:[#allocation56_spill] sm:$0xff] %v19432_v22  ;;  %v2372_v39 = vand.u32 4294901760, %v2371_v21  ;;  %v19439_v35 = vsub.f32 %v2050_v38, %v19401_v53 }
 0x1f2   :  { %14133 = vmatprep.subr.mxu0 %v19321_v63  ;;  %14181 = vmatprep.subr.mxu1 %v2470_v3  ;;  %v19424_v3 = vsub.f32 %v2056_v50, %v19388_v56  ;;  %v2385_v50 = vsub.f32 %v19247_v29, %v24733_v20  ;;  %v2026_v23 = vadd.f32 %v25288_v61, %v19260_v2  ;;  %v19450_v20 = vand.u32 4294901760, %v2032_v30  ;;  %v25291_v61 = vld [vmem:[#allocation35_spill] sm:$0xff] }
 0x1f3   :  { %v2378_v19 = vsub.f32 %v19222_v4, %v25284_v5  ;;  %14134 = vmatpush3.msra.mxu0 %v19209_v32  ;;  %14182 = vmatpush3.msra.mxu1 %v2358_v62  ;;  %v2497_v5 = vsub.f32 %v19358_v16, %v24731_v27  ;;  %v2491_v62 = vand.u32 4294901760, %v2490_v12  ;;  %v19454_v12 = vsub.f32 %v2044_v31, %v19420_v15  ;;  %v25292_v27 = vld [vmem:[#allocation21_spill] sm:$0xff] }
 0x1f4   :  { %14135 = vmatprep.subr.mxu0 %v19336_v1  ;;  %14183 = vmatprep.subr.mxu1 %v2477_v17  ;;  %v2504_v17 = vsub.f32 %v19370_v43, %v24734_v52  ;;  %25289 = vst [vmem:[#allocation66_spill] sm:$0xff] %v19450_v20  ;;  %v25293_v31 = vand.u32 4294901760, %v19256_v60 }
 0x1f5   :  { %14136 = vmatpush3.msra.mxu0 %v19142_v7  ;;  %14184 = vmatpush3.msra.mxu1 %v2365_v18  ;;  %v25287_v18 = vld [vmem:[#allocation74_spill] sm:$0xff]  ;;  %v2379_v38 = vand.u32 4294901760, %v2378_v19  ;;  %25290 = vst [vmem:[#allocation57_spill] sm:$0xff] %v19454_v12  ;;  %v2386_v19 = vand.u32 4294901760, %v2385_v50  ;;  %v25296_v50 = vand.u32 4294901760, %v19201_v9  ;;  %v25314_v7 = vld [vmem:[#allocation55_spill] sm:$0xff] }
 0x1f6   :  { %14137 = vmatprep.subr.mxu0 %v19354_v36  ;;  %14185 = vmatprep.subr.mxu1 %v2484_v47  ;;  %v1755_v21 = vadd.f32 %v25287_v18, %v19106_v34  ;;  %v2498_v47 = vand.u32 4294901760, %v2497_v5  ;;  %v2511_v34 = vsub.f32 %v19392_v28, %v24735_v54  ;;  %v19468_v5 = vsub.f32 %v2038_v25, %v19432_v22  ;;  %v25298_v25 = vld [vmem:[#allocation40_spill] sm:$0xff]  ;;  %v25299_v18 = vld [vmem:[#allocation61_spill] sm:$0xff] }
 0x1f7   :  { %14138 = vmatpush3.msra.mxu0 %v19217_v42  ;;  %14186 = vmatpush3.msra.mxu1 %v2372_v39  ;;  %v2399_v39 = vsub.f32 %v19256_v60, %v25293_v31  ;;  %v25295_v54 = vand.u32 4294901760, %v19408_v10  ;;  %v19479_v31 = vand.u32 4294901760, %v2026_v23  ;;  %v25311_v42 = vand.u32 4294901760, %v19237_v13 }
 0x1f8   :  { %14139 = vmatprep.subr.mxu0 %v19367_v46  ;;  %14187 = vmatprep.subr.mxu1 %v2491_v62  ;;  %v2020_v52 = vadd.f32 %v25291_v61, %v1755_v21  ;;  %25294 = vst [vmem:[#allocation73_spill] sm:$0xff] %v19468_v5  ;;  %v2505_v62 = vand.u32 4294901760, %v2504_v17  ;;  %v2406_v61 = vsub.f32 %v19201_v9, %v25296_v50 }
 0x1f9   :  { %14140 = vmatpush3.msra.mxu0 %v25292_v27  ;;  %14188 = vmatpush3.msra.mxu1 %v2379_v38  ;;  %v2518_v2 = vsub.f32 %v19408_v10, %v25295_v54  ;;  %25297 = vst [vmem:[#allocation58_spill] sm:$0xff] %v19479_v31  ;;  %v19484_v17 = vsub.f32 %v2032_v30, %v19450_v20  ;;  %v2512_v54 = vand.u32 4294901760, %v2511_v34  ;;  %v25301_v38 = vand.u32 4294901760, %v19424_v3  ;;  %v25307_v34 = vld [vmem:[#allocation33_spill] sm:$0xff] }
 0x1fa   :  { %14141 = vmatprep.subr.mxu0 %v19388_v56  ;;  %14189 = vmatprep.subr.mxu1 %v2498_v47  ;;  %v2393_v47 = vand.u32 4294901760, %v25299_v18  ;;  %v25302_v56 = vld [vmem:[#allocation59_spill] sm:$0xff]  ;;  %v19492_v46 = vand.u32 4294901760, %v2020_v52  ;;  %v2400_v18 = vand.u32 4294901760, %v2399_v39  ;;  %v25305_v30 = vand.u32 4294901760, %v19244_v33 }
 0x1fb   :  { %14142 = vmatpush3.msra.mxu0 %v25298_v25  ;;  %14190 = vmatpush3.msra.mxu1 %v2386_v19  ;;  %25300 = vst [vmem:[#allocation60_spill] sm:$0xff] %v19484_v17  ;;  %v2525_v21 = vsub.f32 %v19424_v3, %v25301_v38  ;;  %v25304_v19 = vld [vmem:[#allocation38_spill] sm:$0xff]  ;;  %v2519_v38 = vand.u32 4294901760, %v2518_v2  ;;  %v25309_v27 = vand.u32 4294901760, %v19439_v35  ;;  %v19512_v36 = vsub.f32 %v2026_v23, %v19479_v31  ;;  %v2120_v2 = vld [vmem:[#allocation5 + $0x68] sm:$0xff] }
 0x1fc   :  { %14143 = vmatprep.subr.mxu0 %v19401_v53  ;;  %14191 = vmatprep.subr.mxu1 %v2505_v62  ;;  %25303 = vst [vmem:[#allocation65_spill] sm:$0xff] %v19492_v46  ;;  %v2413_v53 = vsub.f32 %v19244_v33, %v25305_v30  ;;  %v25306_v62 = vld [vmem:[#allocation68_spill] sm:$0xff]  ;;  %v2420_v30 = vsub.f32 %v19237_v13, %v25311_v42  ;;  %v25315_v39 = vand.u32 4294901760, %v19454_v12 }
 0x1fd   :  { %14144 = vmatpush3.msra.mxu0 %v25304_v19  ;;  %14192 = vmatpush3.msra.mxu1 %v2393_v47  ;;  %v19500_v25 = vsub.f32 %v25307_v34, %v25306_v62  ;;  %v2532_v50 = vsub.f32 %v19439_v35, %v25309_v27  ;;  %v25310_v47 = vld [vmem:[#allocation51_spill] sm:$0xff]  ;;  %v2526_v27 = vand.u32 4294901760, %v2525_v21  ;;  %v19525_v19 = vsub.f32 %v2020_v52, %v19492_v46 }
 0x1fe   :  { %14145 = vmatprep.subr.mxu0 %v19420_v15  ;;  %14193 = vmatprep.subr.mxu1 %v2512_v54  ;;  %v25312_v34 = vld [vmem:[#allocation19_spill] sm:$0xff]  ;;  %v2407_v54 = vand.u32 4294901760, %v2406_v61  ;;  %v25313_v15 = vld [vmem:[#allocation29_spill] sm:$0xff]  ;;  %v2539_v42 = vsub.f32 %v19454_v12, %v25315_v39  ;;  %v2414_v61 = vand.u32 4294901760, %v2413_v53  ;;  %v25320_v52 = vand.u32 4294901760, %v19468_v5  ;;  %v25322_v53 = vld [vmem:[#allocation48_spill] sm:$0xff] }
 0x1ff   :  { %25308 = vst [vmem:[#allocation26_spill] sm:$0xff] %v19500_v25  ;;  %14146 = vmatpush3.msra.mxu0 %v25312_v34  ;;  %14194 = vmatpush3.msra.mxu1 %v2400_v18  ;;  %v19517_v1 = vsub.f32 %v25314_v7, %v25313_v15  ;;  %25316 = vst [vmem:[#allocation67_spill] sm:$0xff] %v19525_v19  ;;  %v25317_v18 = vld [vmem:[#allocation31_spill] sm:$0xff]  ;;  %v25318_v7 = vand.u32 4294901760, %v25302_v56  ;;  %v2533_v39 = vand.u32 4294901760, %v2532_v50  ;;  %v2421_v13 = vand.u32 4294901760, %v2420_v30 }
 0x200   :  { %14147 = vmatprep.subr.mxu0 %v19432_v22  ;;  %14195 = vmatprep.subr.mxu1 %v2519_v38  ;;  %v25319_v22 = vld [vmem:[#allocation41_spill] sm:$0xff]  ;;  %v2119_v21 = vld [vmem:[#allocation5 + $0x60] sm:$0xff]  ;;  %v2546_v23 = vsub.f32 %v19468_v5, %v25320_v52  ;;  %v2540_v52 = vand.u32 4294901760, %v2539_v42 }
 0x201   :  { %14148 = vmatpush3.msra.mxu0 %v25317_v18  ;;  %14196 = vmatpush3.msra.mxu1 %v2407_v54  ;;  %v2427_v34 = vsub.f32 %v25302_v56, %v25318_v7  ;;  %v19537_v18 = vand.u32 4294901760, %v2120_v2  ;;  %v25323_v54 = vld [vmem:[#allocation23_spill] sm:$0xff]  ;;  %v25325_v7 = vand.u32 4294901760, %v25310_v47  ;;  %v19553_v5 = vand.u32 4294901760, %v2119_v21 }
 0x202   :  { %14149 = vmatprep.subr.mxu0 %v19450_v20  ;;  %14197 = vmatprep.subr.mxu1 %v2526_v27  ;;  %v19541_v12 = vsub.f32 %v25323_v54, %v25322_v53  ;;  %v25326_v20 = vand.u32 4294901760, %v19484_v17  ;;  %v2547_v42 = vand.u32 4294901760, %v2546_v23  ;;  %v25334_v23 = vand.u32 4294901760, %v25319_v22 }
 0x203   :  { %25321 = vst [vmem:[#allocation69_spill] sm:$0xff] %v19537_v18  ;;  %v2434_v38 = vsub.f32 %v25310_v47, %v25325_v7  ;;  %14150 = vmatpush3.msra.mxu0 %v25306_v62  ;;  %14198 = vmatpush3.msra.mxu1 %v2414_v61  ;;  %25327 = vst [vmem:[#allocation27_spill] sm:$0xff] %v19553_v5  ;;  %v2428_v7 = vand.u32 4294901760, %v2427_v34  ;;  %v25328_v61 = vld [vmem:[#allocation25_spill] sm:$0xff]  ;;  %v25329_v62 = vld [vmem:[#allocation36_spill] sm:$0xff]  ;;  %v19567_v34 = vsub.f32 %v2120_v2, %v19537_v18 }
 0x204   :  { %25324 = vst [vmem:[#allocation75_spill] sm:$0xff] %v19541_v12  ;;  %14151 = vmatprep.subr.mxu0 %v19479_v31  ;;  %14199 = vmatprep.subr.mxu1 %v2533_v39  ;;  %v2553_v54 = vsub.f32 %v19484_v17, %v25326_v20  ;;  %v2244_v30 = vand.u32 4294901760, %v25328_v61  ;;  %v25330_v50 = vand.u32 4294901760, %v25329_v62  ;;  %v2122_v39 = vld [vmem:[#allocation5 + $0x88] sm:$0xff]  ;;  %v25331_v20 = vand.u32 4294901760, %v19500_v25 }
 0x205   :  { %14152 = vmatpush3.msra.mxu0 %v25313_v15  ;;  %14200 = vmatpush3.msra.mxu1 %v2421_v13  ;;  %v25332_v15 = vld [vmem:[#allocation44_spill] sm:$0xff]  ;;  %v25333_v31 = vand.u32 4294901760, %v19512_v36  ;;  %v25335_v13 = vand.u32 4294901760, %v19517_v1 }
 0x206   :  { %v2249_v27 = vsub.f32 %v25329_v62, %v25330_v50  ;;  %14153 = vmatprep.subr.mxu0 %v19492_v46  ;;  %14201 = vmatprep.subr.mxu1 %v2540_v52  ;;  %v2441_v17 = vsub.f32 %v19500_v25, %v25331_v20  ;;  %v2435_v50 = vand.u32 4294901760, %v2434_v38  ;;  %v2258_v46 = vsub.f32 %v25319_v22, %v25334_v23  ;;  %v2121_v20 = vld [vmem:[#allocation5 + $0x80] sm:$0xff]  ;;  %v25336_v62 = vld [vmem:[#allocation24_spill] sm:$0xff] }
 0x207   :  { %14154 = vmatpush3.msra.mxu0 %v25322_v53  ;;  %14202 = vmatpush3.msra.mxu1 %v2428_v7  ;;  %v2560_v52 = vsub.f32 %v19512_v36, %v25333_v31  ;;  %v2448_v2 = vsub.f32 %v19517_v1, %v25335_v13  ;;  %v25337_v25 = vand.u32 4294901760, %v25336_v62  ;;  %v2554_v61 = vand.u32 4294901760, %v2553_v54 }
 0x208   :  { %14203 = vmatprep.subr.mxu1 %v2547_v42  ;;  %v19583_v38 = vsub.f32 %v2119_v21, %v19553_v5  ;;  %v19585_v7 = vand.u32 4294901760, %v2122_v39  ;;  %14235 = vmatprep.subr.mxu0 %v19327_v58  ;;  %v2250_v31 = vand.u32 4294901760, %v2249_v27  ;;  %v25339_v23 = vand.u32 4294901760, %v19525_v19 }
 0x209   :  { %2236 = vmatmul.mubr.f32.vlgmr.msra.gmra.mxu0 %v25337_v25  ;;  %14204 = vmatpush3.msra.mxu1 %v2435_v50  ;;  %v2442_v62 = vand.u32 4294901760, %v2441_v17  ;;  %v25340_v25 = vand.u32 4294901760, %v25332_v15  ;;  %v19596_v42 = vand.u32 4294901760, %v2121_v20  ;;  %v2561_v27 = vand.u32 4294901760, %v2560_v52 }
 0x20a   :  { %25338 = vst [vmem:[#allocation72_spill] sm:$0xff] %v19585_v7  ;;  %v2567_v53 = vsub.f32 %v19525_v19, %v25339_v23  ;;  %14236 = vmatpush3.msra.mxu0 %v19294_v59  ;;  %14205 = vmatprep.subr.mxu1 %v2554_v61  ;;  %v25342_v13 = vand.u32 4294901760, %v19541_v12  ;;  %v2124_v23 = vld [vmem:[#allocation5 + $0xa8] sm:$0xff]  ;;  %v2449_v17 = vand.u32 4294901760, %v2448_v2  ;;  %v2259_v61 = vand.u32 4294901760, %v2258_v46 }
 0x20b   :  { %v2264_v54 = vsub.f32 %v25332_v15, %v25340_v25  ;;  %25341 = vst [vmem:[#allocation50_spill] sm:$0xff] %v19596_v42  ;;  %14237 = vmatprep.subr.mxu0 %v19343_v49  ;;  %2245 = vmatprep.mubr.f32.mxu0 %v2244_v30  ;;  %v24775_v25 = vand.u32 4294901760, %v19583_v38  ;;  %v19605_v21 = vsub.f32 %v2122_v39, %v19585_v7  ;;  %v2123_v30 = vld [vmem:[#allocation5 + $0xa0] sm:$0xff]  ;;  %v19614_v46 = vand.u32 4294901760, %v2124_v23 }
 0x20c   :  { %v2455_v50 = vsub.f32 %v19541_v12, %v25342_v13  ;;  %14206 = vmatpush3.msra.mxu1 %v2442_v62  ;;  %14238 = vmatpush3.msra.mxu0 %v19302_v55  ;;  %v2568_v15 = vand.u32 4294901760, %v2567_v53  ;;  %v25344_v13 = vand.u32 4294901760, %v19567_v34  ;;  %v19612_v2 = vsub.f32 %v2121_v20, %v19596_v42  ;;  %v2126_v20 = vld [vmem:[#allocation5 + $0xc8] sm:$0xff] }
 0x20d   :  { %25343 = vst [vmem:[#allocation28_spill] sm:$0xff] %v19605_v21  ;;  %2251 = vmatmul.mubr.f32.gmra.mxu0 %v2250_v31  ;;  %14207 = vmatprep.subr.mxu1 %v2561_v27  ;;  %v2265_v52 = vand.u32 4294901760, %v2264_v54  ;;  %25346 = vst [vmem:[#allocation34_spill] sm:$0xff] %v19614_v46  ;;  %v2279_v53 = vsub.f32 %v19583_v38, %v24775_v25  ;;  %v24776_v31 = vand.u32 4294901760, %v19605_v21  ;;  %v19622_v54 = vand.u32 4294901760, %v2123_v30  ;;  %v25348_v27 = vld [vmem:[#allocation71_spill] sm:$0xff] }
 0x20e   :  { %14239 = vmatprep.subr.mxu0 %v19312_v40  ;;  %14208 = vmatpush3.msra.mxu1 %v2449_v17  ;;  %v2273_v62 = vsub.f32 %v19567_v34, %v25344_v13  ;;  %25345 = vst [vmem:[#allocation47_spill] sm:$0xff] %v19612_v2  ;;  %v2456_v39 = vand.u32 4294901760, %v2455_v50  ;;  %v24779_v50 = vand.u32 4294901760, %v19612_v2  ;;  %v19628_v17 = vsub.f32 %v2124_v23, %v19614_v46  ;;  %v25350_v23 = vld [vmem:[#allocation77_spill] sm:$0xff]  ;;  %v25354_v25 = vld [vmem:[#allocation42_spill] sm:$0xff] }
 0x20f   :  { %14240 = vmatpush3.msra.mxu0 %v19265_v6  ;;  %14209 = vmatprep.subr.mxu1 %v2568_v15  ;;  %25347 = vst [vmem:[#allocation30_spill] sm:$0xff] %v19622_v54  ;;  %v2280_v13 = vand.u32 4294901760, %v2279_v53 }
 0x210   :  { %14241 = vmatprep.subr.mxu0 %v19324_v51  ;;  %2260 = vmatprep.mubr.f32.mxu0 %v2259_v61  ;;  %v2274_v15 = vand.u32 4294901760, %v2273_v62  ;;  %v2125_v61 = vld [vmem:[#allocation5 + $0xc0] sm:$0xff]  ;;  %v19638_v62 = vsub.f32 %v2123_v30, %v19622_v54  ;;  %v2294_v53 = vsub.f32 %v19612_v2, %v24779_v50  ;;  %v2128_v30 = vld [vmem:[#allocation5 + $0xe8] sm:$0xff] }
 0x211   :  { %14210 = vmatpush3.msra.mxu1 %v2456_v39  ;;  %14242 = vmatpush3.msra.mxu0 %v19291_v48  ;;  %v19640_v39 = vand.u32 4294901760, %v2126_v20  ;;  %v2127_v50 = vld [vmem:[#allocation5 + $0xe0] sm:$0xff] }
 0x212   :  { %2266 = vmatmul.mubr.f32.gmra.mxu0 %v2265_v52  ;;  %2573 = vmatmul.mubr.f32.vlgmr.msra.gmra.mxu1 %v25348_v27  ;;  %v2288_v52 = vsub.f32 %v19605_v21, %v24776_v31  ;;  %v19649_v27 = vand.u32 4294901760, %v2125_v61  ;;  %v25352_v31 = vld [vmem:[#allocation79_spill] sm:$0xff]  ;;  %v2295_v2 = vand.u32 4294901760, %v2294_v53 }
 0x213   :  { %14243 = vmatprep.subr.mxu0 %v19340_v24  ;;  %14291 = vmatprep.subr.mxu1 %v19314_v0  ;;  %25349 = vst [vmem:[#allocation32_spill] sm:$0xff] %v19640_v39 }
 0x214   :  { %14244 = vmatpush3.msra.mxu0 %v19222_v4  ;;  %14292 = vmatpush3.msra.mxu1 %v19269_v8  ;;  %25351 = vst [vmem:[#allocation74_spill] sm:$0xff] %v19649_v27  ;;  %v2289_v21 = vand.u32 4294901760, %v2288_v52  ;;  %v19666_v52 = vsub.f32 %v2125_v61, %v19649_v27  ;;  %v25360_v61 = vld [vmem:[#allocation39_spill] sm:$0xff] }
 0x215   :  { %14245 = vmatprep.subr.mxu0 %v19358_v16  ;;  %14293 = vmatprep.subr.mxu1 %v19329_v14 }
 0x216   :  { %2275 = vmatprep.mubr.f32.mxu0 %v2274_v15  ;;  %2578 = vmatprep.mubr.f32.mxu1 %v25350_v23  ;;  %v19656_v23 = vsub.f32 %v2126_v20, %v19640_v39  ;;  %25356 = vst [vmem:[#allocation35_spill] sm:$0xff] %v19666_v52  ;;  %v19668_v15 = vand.u32 4294901760, %v2128_v30  ;;  %v25358_v20 = vld [vmem:[#allocation37_spill] sm:$0xff] }
 0x217   :  { %14246 = vmatpush3.msra.mxu0 %v19247_v29  ;;  %14294 = vmatpush3.msra.mxu1 %v19283_v26 }
 0x218   :  { %2281 = vmatmul.mubr.f32.gmra.mxu0 %v2280_v13  ;;  %2580 = vmatmul.mubr.f32.gmra.mxu1 %v25352_v31  ;;  %25353 = vst [vmem:[#allocation80_spill] sm:$0xff] %v19656_v23  ;;  %v25355_v13 = vand.u32 4294901760, %v19628_v17  ;;  %25357 = vst [vmem:[#allocation61_spill] sm:$0xff] %v19668_v15 }
 0x219   :  { %14247 = vmatprep.subr.mxu0 %v19370_v43  ;;  %14295 = vmatprep.subr.mxu1 %v19287_v57  ;;  %v19677_v57 = vand.u32 4294901760, %v2127_v50 }
 0x21a   :  { %14248 = vmatpush3.msra.mxu0 %v25354_v25  ;;  %14296 = vmatpush3.msra.mxu1 %v19224_v37  ;;  %v2303_v31 = vsub.f32 %v19628_v17, %v25355_v13  ;;  %v25359_v25 = vand.u32 4294901760, %v19638_v62  ;;  %v24784_v37 = vand.u32 4294901760, %v19656_v23 }
 0x21b   :  { %14249 = vmatprep.subr.mxu0 %v19392_v28  ;;  %14297 = vmatprep.subr.mxu1 %v19299_v41 }
 0x21c   :  { %2290 = vmatprep.mubr.f32.mxu0 %v2289_v21  ;;  %2585 = vmatprep.mubr.f32.mxu1 %v25358_v20  ;;  %v2309_v53 = vsub.f32 %v19638_v62, %v25359_v25  ;;  %v2304_v13 = vand.u32 4294901760, %v2303_v31  ;;  %v24787_v21 = vand.u32 4294901760, %v19666_v52  ;;  %v19684_v20 = vsub.f32 %v2128_v30, %v19668_v15 }
 0x21d   :  { %14250 = vmatpush3.msra.mxu0 %v19256_v60  ;;  %14298 = vmatpush3.msra.mxu1 %v19267_v45  ;;  %v19694_v31 = vsub.f32 %v2127_v50, %v19677_v57 }
 0x21e   :  { %2296 = vmatmul.mubr.f32.gmra.mxu0 %v2295_v2  ;;  %2587 = vmatmul.mubr.f32.gmra.mxu1 %v25360_v61  ;;  %25361 = vst [vmem:[#allocation59_spill] sm:$0xff] %v19684_v20  ;;  %v2310_v25 = vand.u32 4294901760, %v2309_v53  ;;  %v2318_v2 = vsub.f32 %v19656_v23, %v24784_v37  ;;  %v2324_v30 = vsub.f32 %v19666_v52, %v24787_v21  ;;  %v24794_v53 = vand.u32 4294901760, %v19684_v20  ;;  %v25364_v61 = vld [vmem:[#allocation45_spill] sm:$0xff] }
 0x21f   :  { %14251 = vmatprep.subr.mxu0 %v19408_v10  ;;  %14299 = vmatprep.subr.mxu1 %v19309_v11  ;;  %v24799_v37 = vand.u32 4294901760, %v19694_v31  ;;  %v25365_v23 = vld [vmem:[#allocation57_spill] sm:$0xff] }
 0x220   :  { %14252 = vmatpush3.msra.mxu0 %v19201_v9  ;;  %14300 = vmatpush3.msra.mxu1 %v19186_v44  ;;  %v2319_v50 = vand.u32 4294901760, %v2318_v2  ;;  %v2325_v21 = vand.u32 4294901760, %v2324_v30  ;;  %v2333_v52 = vsub.f32 %v19684_v20, %v24794_v53  ;;  %v25368_v53 = vld [vmem:[#allocation73_spill] sm:$0xff]  ;;  %v25369_v20 = vld [vmem:[#allocation20_spill] sm:$0xff] }
 0x221   :  { %14253 = vmatprep.subr.mxu0 %v19424_v3  ;;  %14301 = vmatprep.subr.mxu1 %v19321_v63  ;;  %v2339_v2 = vsub.f32 %v19694_v31, %v24799_v37  ;;  %v25372_v37 = vld [vmem:[#allocation64_spill] sm:$0xff] }
 0x222   :  { %2305 = vmatprep.mubr.f32.mxu0 %v2304_v13  ;;  %2592 = vmatprep.mubr.f32.mxu1 %v19537_v18  ;;  %v25362_v13 = vld [vmem:[#allocation53_spill] sm:$0xff]  ;;  %v25363_v18 = vld [vmem:[#allocation52_spill] sm:$0xff]  ;;  %v2334_v30 = vand.u32 4294901760, %v2333_v52  ;;  %v25375_v52 = vld [vmem:[#allocation70_spill] sm:$0xff] }
 0x223   :  { %14254 = vmatpush3.msra.mxu0 %v19244_v33  ;;  %14302 = vmatpush3.msra.mxu1 %v19209_v32 }
 0x224   :  { %2311 = vmatmul.mubr.f32.gmra.mxu0 %v2310_v25  ;;  %2594 = vmatmul.mubr.f32.gmra.mxu1 %v19553_v5  ;;  %v25366_v25 = vld [vmem:[#allocation63_spill] sm:$0xff] }
 0x225   :  { %14255 = vmatprep.subr.mxu0 %v19439_v35  ;;  %14303 = vmatprep.subr.mxu1 %v25362_v13  ;;  %v25367_v5 = vld [vmem:[#allocation43_spill] sm:$0xff] }
 0x226   :  { %14256 = vmatpush3.msra.mxu0 %v25363_v18  ;;  %14304 = vmatpush3.msra.mxu1 %v25364_v61 }
 0x227   :  { %14257 = vmatprep.subr.mxu0 %v25365_v23  ;;  %14305 = vmatprep.subr.mxu1 %v25366_v25  ;;  %v25371_v25 = vld [vmem:[#allocation60_spill] sm:$0xff] }
 0x228   :  { %2320 = vmatprep.mubr.f32.mxu0 %v2319_v50  ;;  %2599 = vmatprep.mubr.f32.mxu1 %v19585_v7  ;;  %v25370_v50 = vld [vmem:[#allocation21_spill] sm:$0xff]  ;;  %v2340_v7 = vand.u32 4294901760, %v2339_v2  ;;  %v25376_v2 = vld [vmem:[#allocation38_spill] sm:$0xff] }
 0x229   :  { %14258 = vmatpush3.msra.mxu0 %v25302_v56  ;;  %14306 = vmatpush3.msra.mxu1 %v25367_v5 }
 0x22a   :  { %2326 = vmatmul.mubr.f32.gmra.mxu0 %v2325_v21  ;;  %2601 = vmatmul.mubr.f32.gmra.mxu1 %v19596_v42  ;;  %v25373_v21 = vld [vmem:[#allocation26_spill] sm:$0xff]  ;;  %v25374_v42 = vld [vmem:[#allocation40_spill] sm:$0xff] }
 0x22b   :  { %14259 = vmatprep.subr.mxu0 %v25368_v53  ;;  %14307 = vmatprep.subr.mxu1 %v25369_v20 }
 0x22c   :  { %14260 = vmatpush3.msra.mxu0 %v25310_v47  ;;  %14308 = vmatpush3.msra.mxu1 %v25370_v50 }
 0x22d   :  { %14261 = vmatprep.subr.mxu0 %v25371_v25  ;;  %14309 = vmatprep.subr.mxu1 %v25372_v37 }
 0x22e   :  { %2335 = vmatprep.mubr.f32.mxu0 %v2334_v30  ;;  %2606 = vmatprep.mubr.f32.mxu1 %v19614_v46  ;;  %v25377_v30 = vld [vmem:[#allocation54_spill] sm:$0xff] }
 0x22f   :  { %14262 = vmatpush3.msra.mxu0 %v25373_v21  ;;  %14310 = vmatpush3.msra.mxu1 %v25374_v42  ;;  %v25378_v46 = vld [vmem:[#allocation22_spill] sm:$0xff] }
 0x230   :  { %2341 = vmatmul.mubr.f32.gmra.mxu0 %v2340_v7  ;;  %2608 = vmatmul.mubr.f32.gmra.mxu1 %v19622_v54  ;;  %v25379_v7 = vld [vmem:[#allocation19_spill] sm:$0xff]  ;;  %v25380_v54 = vld [vmem:[#allocation76_spill] sm:$0xff] }
 0x231   :  { %14263 = vmatprep.subr.mxu0 %v19512_v36  ;;  %14311 = vmatprep.subr.mxu1 %v25375_v52  ;;  %v25381_v52 = vld [vmem:[#allocation56_spill] sm:$0xff] }
 0x232   :  { %14264 = vmatpush3.msra.mxu0 %v19517_v1  ;;  %14312 = vmatpush3.msra.mxu1 %v25376_v2  ;;  %v25382_v2 = vand.u32 4294901760, %v19327_v58  ;;  %v25390_v58 = vld [vmem:[#allocation36_spill] sm:$0xff] }
 0x233   :  { %14265 = vmatprep.subr.mxu0 %v19525_v19  ;;  %14313 = vmatprep.subr.mxu1 %v25377_v30  ;;  %v25383_v19 = vld [vmem:[#allocation31_spill] sm:$0xff]  ;;  %v25384_v30 = vand.u32 4294901760, %v19294_v59  ;;  %v25391_v59 = vld [vmem:[#allocation58_spill] sm:$0xff] }
 0x234   :  { %2613 = vmatprep.mubr.f32.mxu1 %v19640_v39  ;;  %14266 = vmatpush3.msra.mxu0 %v19541_v12  ;;  %v25385_v39 = vld [vmem:[#allocation66_spill] sm:$0xff]  ;;  %v25386_v12 = vand.u32 4294901760, %v19343_v49  ;;  %v25393_v49 = vld [vmem:[#allocation29_spill] sm:$0xff] }
 0x235   :  { %2757 = vmatprep.mubr.f32.mxu0 %v25378_v46  ;;  %14314 = vmatpush3.msra.mxu1 %v25379_v7  ;;  %v25388_v7 = vld [vmem:[#allocation68_spill] sm:$0xff] }
 0x236   :  { %2615 = vmatmul.mubr.f32.gmra.mxu1 %v19649_v27  ;;  %2760 = vmatmul.mubr.f32.vlgmr.msra.gmra.mxu0 %v25380_v54  ;;  %v25387_v27 = vld [vmem:[#allocation78_spill] sm:$0xff] }
 0x237   :  { %14315 = vmatprep.subr.mxu1 %v25381_v52  ;;  %14347 = vmatprep.subr.mxu0 %v25382_v2  ;;  %v25389_v52 = vand.u32 4294901760, %v19302_v55  ;;  %v25392_v2 = vand.u32 4294901760, %v19312_v40  ;;  %v25397_v55 = vld [vmem:[#allocation48_spill] sm:$0xff]  ;;  %v25399_v40 = vand.u32 4294901760, %v19291_v48  ;;  %v25405_v48 = vand.u32 4294901760, %v25387_v27 }
 0x238   :  { %14316 = vmatpush3.msra.mxu1 %v25383_v19  ;;  %14348 = vmatpush3.msra.mxu0 %v25384_v30  ;;  %v25395_v30 = vld [vmem:[#allocation65_spill] sm:$0xff] }
 0x239   :  { %14317 = vmatprep.subr.mxu1 %v25385_v39  ;;  %14349 = vmatprep.subr.mxu0 %v25386_v12  ;;  %v25394_v12 = vand.u32 4294901760, %v19265_v6  ;;  %v25401_v6 = vand.u32 4294901760, %v25380_v54  ;;  %v25412_v54 = vld [vmem:[#allocation49_spill] sm:$0xff] }
 0x23a   :  { %2620 = vmatprep.mubr.f32.mxu1 %v19668_v15  ;;  %2766 = vmatprep.mubr.f32.mxu0 %v25387_v27  ;;  %v25396_v15 = vand.u32 4294901760, %v19324_v51  ;;  %v25403_v51 = vand.u32 4294901760, %v19222_v4  ;;  %v25407_v4 = vand.u32 4294901760, %v25390_v58  ;;  %v25415_v27 = vand.u32 4294901760, %v25319_v22 }
 0x23b   :  { %14318 = vmatpush3.msra.mxu1 %v25388_v7  ;;  %14350 = vmatpush3.msra.mxu0 %v25389_v52  ;;  %v25398_v52 = vand.u32 4294901760, %v25378_v46  ;;  %v25404_v46 = vand.u32 4294901760, %v19358_v16 }
 0x23c   :  { %2622 = vmatmul.mubr.f32.gmra.mxu1 %v19677_v57  ;;  %2769 = vmatmul.mubr.f32.gmra.mxu0 %v25390_v58 }
 0x23d   :  { %14319 = vmatprep.subr.mxu1 %v25391_v59  ;;  %14351 = vmatprep.subr.mxu0 %v25392_v2  ;;  %v25400_v2 = vld [vmem:[#allocation44_spill] sm:$0xff] }
 0x23e   :  { %14320 = vmatpush3.msra.mxu1 %v25393_v49  ;;  %14352 = vmatpush3.msra.mxu0 %v25394_v12  ;;  %v25402_v12 = vand.u32 4294901760, %v19340_v24  ;;  %v25406_v24 = vand.u32 4294901760, %v19247_v29  ;;  %v25413_v29 = vand.u32 4294901760, %v19392_v28  ;;  %v25418_v58 = vand.u32 4294901760, %v25400_v2 }
 0x23f   :  { %14321 = vmatprep.subr.mxu1 %v25395_v30  ;;  %14353 = vmatprep.subr.mxu0 %v25396_v15  ;;  %v25417_v15 = vld [vmem:[#allocation47_spill] sm:$0xff]  ;;  %v25419_v28 = vand.u32 4294901760, %v19408_v10  ;;  %v25423_v10 = vand.u32 4294901760, %v19244_v33  ;;  %v25427_v33 = vand.u32 4294901760, %v25365_v23  ;;  %v25435_v23 = vand.u32 4294901760, %v25310_v47 }
 0x240   :  { %2775 = vmatprep.mubr.f32.mxu0 %v25319_v22  ;;  %14322 = vmatpush3.msra.mxu1 %v25397_v55  ;;  %v25431_v22 = vand.u32 4294901760, %v25302_v56  ;;  %v25436_v56 = vand.u32 4294901760, %v25371_v25  ;;  %v25440_v47 = vand.u32 4294901760, %v19638_v62  ;;  %v25442_v25 = vld [vmem:[#allocation70_spill] sm:$0xff] }
 0x241   :  { %2927 = vmatprep.mubr.f32.mxu1 %v25398_v52  ;;  %14354 = vmatpush3.msra.mxu0 %v25399_v40  ;;  %v25444_v52 = vld [vmem:[#allocation38_spill] sm:$0xff]  ;;  %v25445_v40 = vld [vmem:[#allocation67_spill] sm:$0xff] }
 0x242   :  { %2778 = vmatmul.mubr.f32.gmra.mxu0 %v25400_v2  ;;  %2931 = vmatmul.mubr.f32.vlgmr.msra.gmra.mxu1 %v25401_v6  ;;  %v25446_v2 = vand.u32 4294901760, %v25445_v40  ;;  %v25449_v6 = vld [vmem:[#allocation75_spill] sm:$0xff] }
 0x243   :  { %14355 = vmatprep.subr.mxu0 %v25402_v12  ;;  %14403 = vmatprep.subr.mxu1 %v19314_v0  ;;  %v25409_v0 = vld [vmem:[#allocation62_spill] sm:$0xff]  ;;  %v25450_v12 = vand.u32 4294901760, %v25449_v6 }
 0x244   :  { %14356 = vmatpush3.msra.mxu0 %v25403_v51  ;;  %14404 = vmatpush3.msra.mxu1 %v19269_v8  ;;  %v25408_v8 = vand.u32 4294901760, %v19370_v43  ;;  %v25416_v43 = vand.u32 4294901760, %v19256_v60  ;;  %v25421_v60 = vand.u32 4294901760, %v19424_v3  ;;  %v25451_v51 = vld [vmem:[#allocation46_spill] sm:$0xff] }
 0x245   :  { %14357 = vmatprep.subr.mxu0 %v25404_v46  ;;  %14405 = vmatprep.subr.mxu1 %v19329_v14  ;;  %v25410_v14 = vld [vmem:[#allocation42_spill] sm:$0xff]  ;;  %v25452_v46 = vld [vmem:[#allocation19_spill] sm:$0xff] }
 0x246   :  { %2784 = vmatprep.mubr.f32.mxu0 %v19567_v34  ;;  %2938 = vmatprep.mubr.f32.mxu1 %v25405_v48  ;;  %v25411_v16 = vand.u32 4294901760, %v25410_v14  ;;  %v25455_v14 = vld [vmem:[#allocation56_spill] sm:$0xff] }
 0x247   :  { %14358 = vmatpush3.msra.mxu0 %v25406_v24  ;;  %14406 = vmatpush3.msra.mxu1 %v19283_v26  ;;  %v25414_v26 = vld [vmem:[#allocation28_spill] sm:$0xff] }
 0x248   :  { %2787 = vmatmul.mubr.f32.gmra.mxu0 %v19583_v38  ;;  %2942 = vmatmul.mubr.f32.gmra.mxu1 %v25407_v4  ;;  %v25430_v3 = vand.u32 4294901760, %v25414_v26 }
 0x249   :  { %14359 = vmatprep.subr.mxu0 %v25408_v8  ;;  %14407 = vmatprep.subr.mxu1 %v25409_v0  ;;  %v25454_v8 = vld [vmem:[#allocation71_spill] sm:$0xff]  ;;  %v3408_v0 = vld [vmem:[#allocation2 + $0x40] sm:$0xff] }
 0x24a   :  { %14360 = vmatpush3.msra.mxu0 %v25411_v16  ;;  %14408 = vmatpush3.msra.mxu1 %v25412_v54  ;;  %v25457_v54 = vld [vmem:[#allocation77_spill] sm:$0xff] }
 0x24b   :  { %14361 = vmatprep.subr.mxu0 %v25413_v29  ;;  %14409 = vmatprep.subr.mxu1 %v19299_v41  ;;  %v25420_v41 = vand.u32 4294901760, %v19201_v9  ;;  %v25424_v9 = vand.u32 4294901760, %v19583_v38  ;;  %v25434_v38 = vand.u32 4294901760, %v25368_v53  ;;  %v3410_v53 = vld [vmem:[#allocation2 + $0x50] sm:$0xff]  ;;  %v19909_v29 = vand.u32 4294901760, %v3408_v0 }
 0x24c   :  { %2793 = vmatprep.mubr.f32.mxu0 %v25414_v26  ;;  %2949 = vmatprep.mubr.f32.mxu1 %v25415_v27  ;;  %v3392_v26 = vld [vmem:[#allocation8] sm:$0xff] }
 0x24d   :  { %14362 = vmatpush3.msra.mxu0 %v25416_v43  ;;  %14410 = vmatpush3.msra.mxu1 %v19267_v45  ;;  %v25422_v45 = vand.u32 4294901760, %v19567_v34  ;;  %v3411_v34 = vld [vmem:[#allocation2 + $0x58] sm:$0xff] }
 0x24e   :  { %2796 = vmatmul.mubr.f32.gmra.mxu0 %v25417_v15  ;;  %2953 = vmatmul.mubr.f32.gmra.mxu1 %v25418_v58  ;;  %v3393_v58 = vld [vmem:[#allocation8 + $0x8] sm:$0xff] }
 0x24f   :  { %14363 = vmatprep.subr.mxu0 %v25419_v28  ;;  %14411 = vmatprep.subr.mxu1 %v19309_v11  ;;  %v25426_v11 = vand.u32 4294901760, %v25363_v18  ;;  %v25433_v18 = vand.u32 4294901760, %v25417_v15  ;;  %v25460_v28 = vld [vmem:[#allocation37_spill] sm:$0xff] }
 0x250   :  { %14364 = vmatpush3.msra.mxu0 %v25420_v41  ;;  %14412 = vmatpush3.msra.mxu1 %v19186_v44  ;;  %v25425_v44 = vand.u32 4294901760, %v19439_v35  ;;  %v25432_v35 = vld [vmem:[#allocation35_spill] sm:$0xff]  ;;  %v3414_v41 = vsel %vm3412_vm1, %v3392_v26, 0 }
 0x251   :  { %14365 = vmatprep.subr.mxu0 %v25421_v60  ;;  %14413 = vmatprep.subr.mxu1 %v19321_v63  ;;  %v25428_v63 = vld [vmem:[#allocation63_spill] sm:$0xff]  ;;  %v25453_v4 = vand.u32 4294901760, %v25432_v35 }
 0x252   :  { %2802 = vmatprep.mubr.f32.mxu0 %v19628_v17  ;;  %2960 = vmatprep.mubr.f32.mxu1 %v25422_v45  ;;  %v3394_v45 = vld [vmem:[#allocation8 + $0x10] sm:$0xff] }
 0x253   :  { %14366 = vmatpush3.msra.mxu0 %v25423_v10  ;;  %14414 = vmatpush3.msra.mxu1 %v19209_v32  ;;  %v25429_v32 = vld [vmem:[#allocation80_spill] sm:$0xff]  ;;  %v3417_v10 = vsel %vm3412_vm1, %v3393_v58, 0 }
 0x254   :  { %2805 = vmatmul.mubr.f32.gmra.mxu0 %v19638_v62  ;;  %2964 = vmatmul.mubr.f32.gmra.mxu1 %v25424_v9  ;;  %v25447_v62 = vld [vmem:[#allocation54_spill] sm:$0xff]  ;;  %v19942_v9 = vand.u32 4294901760, %v3414_v41 }
 0x255   :  { %14367 = vmatprep.subr.mxu0 %v25425_v44  ;;  %14415 = vmatprep.subr.mxu1 %v25362_v13  ;;  %v25438_v13 = vand.u32 4294901760, %v19628_v17  ;;  %v3420_v44 = vsel %vm3412_vm1, %v3394_v45, 0 }
 0x256   :  { %14368 = vmatpush3.msra.mxu0 %v25426_v11  ;;  %14416 = vmatpush3.msra.mxu1 %v25364_v61  ;;  %v25437_v61 = vld [vmem:[#allocation59_spill] sm:$0xff]  ;;  %v3395_v11 = vld [vmem:[#allocation8 + $0x18] sm:$0xff] }
 0x257   :  { %14369 = vmatprep.subr.mxu0 %v25427_v33  ;;  %14417 = vmatprep.subr.mxu1 %v25428_v63  ;;  %v25456_v16 = vand.u32 4294901760, %v25437_v61 }
 0x258   :  { %2811 = vmatprep.mubr.f32.mxu0 %v25429_v32  ;;  %2971 = vmatprep.mubr.f32.mxu1 %v25430_v3  ;;  %v3396_v3 = vld [vmem:[#allocation8 + $0x20] sm:$0xff] }
 0x259   :  { %14370 = vmatpush3.msra.mxu0 %v25431_v22  ;;  %14418 = vmatpush3.msra.mxu1 %v25367_v5  ;;  %v19860_v5 = vand.u32 4294901760, %v3411_v34  ;;  %v25463_v22 = vld [vmem:[#allocation27_spill] sm:$0xff] }
 0x25a   :  { %2814 = vmatmul.mubr.f32.gmra.mxu0 %v25432_v35  ;;  %2975 = vmatmul.mubr.f32.gmra.mxu1 %v25433_v18  ;;  %v25464_v35 = vld [vmem:[#allocation72_spill] sm:$0xff]  ;;  %v19959_v18 = vsub.f32 %v3414_v41, %v19942_v9  ;;  %v3402_v41 = vld [vmem:[#allocation8 + $0x50] sm:$0xff] }
 0x25b   :  { %14371 = vmatprep.subr.mxu0 %v25434_v38  ;;  %14419 = vmatprep.subr.mxu1 %v25369_v20  ;;  %v25439_v20 = vand.u32 4294901760, %v25373_v21  ;;  %v19877_v17 = vsub.f32 %v3411_v34, %v19860_v5  ;;  %v25443_v21 = vand.u32 4294901760, %v19517_v1  ;;  %v19961_v34 = vand.u32 4294901760, %v3420_v44 }
 0x25c   :  { %14372 = vmatpush3.msra.mxu0 %v25435_v23  ;;  %14420 = vmatpush3.msra.mxu1 %v25370_v50  ;;  %v19874_v50 = vand.u32 4294901760, %v3410_v53  ;;  %v3423_v38 = vsel %vm3412_vm1, %v3395_v11, 0  ;;  %v3397_v23 = vld [vmem:[#allocation8 + $0x28] sm:$0xff] }
 0x25d   :  { %14373 = vmatprep.subr.mxu0 %v25436_v56  ;;  %14421 = vmatprep.subr.mxu1 %v25372_v37  ;;  %v25441_v37 = vand.u32 4294901760, %v19512_v36  ;;  %v25448_v36 = vand.u32 4294901760, %v25429_v32  ;;  %v19894_v48 = vand.u32 4294901760, %v19877_v17  ;;  %v3426_v56 = vsel %vm3412_vm1, %v3396_v3, 0  ;;  %v3403_v3 = vld [vmem:[#allocation8 + $0x58] sm:$0xff] }
 0x25e   :  { %2820 = vmatprep.mubr.f32.mxu0 %v25437_v61  ;;  %2982 = vmatprep.mubr.f32.mxu1 %v25438_v13  ;;  %v19897_v24 = vsub.f32 %v3410_v53, %v19874_v50  ;;  %v3398_v61 = vld [vmem:[#allocation8 + $0x30] sm:$0xff]  ;;  %v19983_v40 = vand.u32 4294901760, %v3426_v56 }
 0x25f   :  { %14374 = vmatpush3.msra.mxu0 %v25439_v20  ;;  %14422 = vmatpush3.msra.mxu1 %v25374_v42  ;;  %v3409_v42 = vld [vmem:[#allocation2 + $0x48] sm:$0xff]  ;;  %v3718_v27 = vsub.f32 %v19877_v17, %v19894_v48 }
 0x260   :  { %2823 = vmatmul.mubr.f32.gmra.mxu0 %v19694_v31  ;;  %2986 = vmatmul.mubr.f32.gmra.mxu1 %v25440_v47  ;;  %v19891_v1 = vand.u32 4294901760, %v3409_v42  ;;  %v19914_v43 = vand.u32 4294901760, %v19897_v24  ;;  %v25465_v47 = vld [vmem:[#allocation50_spill] sm:$0xff]  ;;  %v20006_v26 = vsub.f32 %v3426_v56, %v19983_v40 }
 0x261   :  { %14375 = vmatprep.subr.mxu0 %v25441_v37  ;;  %14423 = vmatprep.subr.mxu1 %v25442_v25  ;;  %v3719_v60 = vand.u32 4294901760, %v3718_v27  ;;  %v19974_v37 = vand.u32 4294901760, %v3423_v38  ;;  %v3429_v25 = vsel %vm3412_vm1, %v3397_v23, 0  ;;  %v3404_v23 = vld [vmem:[#allocation8 + $0x60] sm:$0xff] }
 0x262   :  { %14376 = vmatpush3.msra.mxu0 %v25443_v21  ;;  %14424 = vmatpush3.msra.mxu1 %v25444_v52  ;;  %v19917_v15 = vsub.f32 %v3409_v42, %v19891_v1  ;;  %v25466_v21 = vld [vmem:[#allocation34_spill] sm:$0xff]  ;;  %v3532_v52 = vand.u32 4294901760, %v19959_v18  ;;  %v19981_v42 = vsub.f32 %v3420_v44, %v19961_v34 }
 0x263   :  { %14377 = vmatprep.subr.mxu0 %v25446_v2  ;;  %14425 = vmatprep.subr.mxu1 %v25447_v62  ;;  %v3432_v2 = vsel %vm3412_vm1, %v3398_v61, 0  ;;  %v3399_v62 = vld [vmem:[#allocation8 + $0x38] sm:$0xff] }
 0x264   :  { %2993 = vmatprep.mubr.f32.mxu1 %v25448_v36  ;;  %14378 = vmatpush3.msra.mxu0 %v25450_v12  ;;  %v3400_v36 = vld [vmem:[#allocation8 + $0x40] sm:$0xff] }
 0x265   :  { %3174 = vmatprep.mubr.f32.mxu0 %v25451_v51  ;;  %14426 = vmatpush3.msra.mxu1 %v25452_v46  ;;  %v25467_v46 = vld [vmem:[#allocation30_spill] sm:$0xff]  ;;  %v3438_v27 = vsel %vm3412_vm1, %v3400_v36, 0  ;;  %v3405_v36 = vld [vmem:[#allocation8 + $0x68] sm:$0xff] }
 0x266   :  { %2997 = vmatmul.mubr.f32.gmra.mxu1 %v25453_v4  ;;  %3176 = vmatmul.mubr.f32.vlgmr.msra.gmra.mxu0 %v25454_v8  ;;  %v19994_v4 = vsub.f32 %v3423_v38, %v19974_v37 }
 0x267   :  { %14427 = vmatprep.subr.mxu1 %v25455_v14  ;;  %3004 = vmatprep.mubr.f32.mxu1 %v25456_v16  ;;  %v25468_v14 = vld [vmem:[#allocation32_spill] sm:$0xff]  ;;  %v3533_v16 = vsub.f32 %v19959_v18, %v3532_v52 }
 0x268   :  { %14428 = vmatpush3.msra.mxu1 %v25383_v19  ;;  %3181 = vmatprep.mubr.f32.mxu0 %v25457_v54  ;;  %v25458_v19 = vld [vmem:[#allocation79_spill] sm:$0xff] }
 0x269   :  { %14429 = vmatprep.subr.mxu1 %v25385_v39  ;;  %16151 = vmatprep.subr.mxu0 %v19860_v5  ;;  %v25459_v39 = vand.u32 4294901760, %v19694_v31  ;;  %v19932_v31 = vand.u32 4294901760, %v19917_v15  ;;  %v3534_v44 = vand.u32 4294901760, %v3533_v16  ;;  %v3406_v16 = vld [vmem:[#allocation8 + $0x70] sm:$0xff] }
 0x26a   :  { %14430 = vmatpush3.msra.mxu1 %v25388_v7  ;;  %3183 = vmatmul.mubr.f32.gmra.mxu0 %v25458_v19  ;;  %v3725_v7 = vsub.f32 %v19897_v24, %v19914_v43 }
 0x26b   :  { %3008 = vmatmul.mubr.f32.gmra.mxu1 %v25459_v39  ;;  %14431 = vmatprep.subr.mxu1 %v25391_v59  ;;  %v19935_v59 = vsub.f32 %v3408_v0, %v19909_v29  ;;  %v3732_v63 = vsub.f32 %v19917_v15, %v19932_v31  ;;  %v3435_v0 = vsel %vm3412_vm1, %v3399_v62, 0  ;;  %v3450_v62 = vsel %vm3412_vm1, %v3404_v23, 0  ;;  %v3407_v23 = vld [vmem:[#allocation8 + $0x78] sm:$0xff] }
 0x26c   :  { %14432 = vmatpush3.msra.mxu1 %v25393_v49  ;;  %3188 = vmatprep.mubr.f32.mxu0 %v25460_v28  ;;  %v25461_v49 = vld [vmem:[#allocation39_spill] sm:$0xff]  ;;  %v3726_v33 = vand.u32 4294901760, %v3725_v7  ;;  %v3562_v7 = vand.u32 4294901760, %v19994_v4 }
 0x26d   :  { %14433 = vmatprep.subr.mxu1 %v25395_v30  ;;  %3327 = vmatprep.mubr.f32.mxu1 %v25451_v51  ;;  %v25462_v30 = vld [vmem:[#allocation69_spill] sm:$0xff]  ;;  %v19953_v32 = vand.u32 4294901760, %v19935_v59  ;;  %v3733_v53 = vand.u32 4294901760, %v3732_v63  ;;  %v19990_v51 = vand.u32 4294901760, %v3429_v25  ;;  %v3444_v63 = vsel %vm3412_vm1, %v3402_v41, 0 }
 0x26e   :  { %14434 = vmatpush3.msra.mxu1 %v25397_v55  ;;  %3190 = vmatmul.mubr.f32.gmra.mxu0 %v25461_v49  ;;  %v19948_v55 = vand.u32 4294901760, %v3417_v10  ;;  %v3563_v61 = vsub.f32 %v19994_v4, %v3562_v7 }
 0x26f   :  { %3329 = vmatmul.mubr.f32.vlgmr.msra.gmra.mxu1 %v25454_v8  ;;  %3195 = vmatprep.mubr.f32.mxu0 %v25462_v30  ;;  %v3739_v20 = vsub.f32 %v19935_v59, %v19953_v32  ;;  %v19996_v8 = vand.u32 4294901760, %v3432_v2  ;;  %v20015_v58 = vsub.f32 %v3429_v25, %v19990_v51 }
 0x270   :  { %3334 = vmatprep.mubr.f32.mxu1 %v25457_v54  ;;  %16152 = vmatpush3.msra.mxu0 %v19860_v5  ;;  %v19969_v13 = vsub.f32 %v3417_v10, %v19948_v55  ;;  %v3552_v54 = vand.u32 4294901760, %v19981_v42 }
 0x271   :  { %16153 = vmatprep.subr.mxu0 %v19874_v50  ;;  %16183 = vmatprep.subr.mxu1 %v3719_v60  ;;  %v3740_v12 = vand.u32 4294901760, %v3739_v20  ;;  %v20023_v45 = vsub.f32 %v3432_v2, %v19996_v8  ;;  %v3447_v2 = vsel %vm3412_vm1, %v3403_v3, 0  ;;  %v3456_v3 = vsel %vm3412_vm1, %v3406_v16, 0 }
 0x272   :  { %3197 = vmatmul.mubr.f32.gmra.mxu0 %v25463_v22  ;;  %16184 = vmatpush3.msra.mxu1 %v3719_v60  ;;  %v3542_v6 = vand.u32 4294901760, %v19969_v13  ;;  %v25469_v60 = vld [vmem:[#allocation74_spill] sm:$0xff]  ;;  %v3553_v11 = vsub.f32 %v19981_v42, %v3552_v54  ;;  %v3459_v16 = vsel %vm3412_vm1, %v3407_v23, 0 }
 0x273   :  { %3336 = vmatmul.mubr.f32.gmra.mxu1 %v25458_v19  ;;  %3202 = vmatprep.mubr.f32.mxu0 %v25464_v35  ;;  %v3401_v19 = vld [vmem:[#allocation8 + $0x48] sm:$0xff] }
 0x274   :  { %3341 = vmatprep.mubr.f32.mxu1 %v25460_v28  ;;  %16154 = vmatpush3.msra.mxu0 %v19874_v50  ;;  %v3543_v39 = vsub.f32 %v19969_v13, %v3542_v6  ;;  %v20017_v28 = vand.u32 4294901760, %v3435_v0  ;;  %v3441_v10 = vsel %vm3412_vm1, %v3401_v19, 0 }
 0x275   :  { %16155 = vmatprep.subr.mxu0 %v19891_v1  ;;  %16185 = vmatprep.subr.mxu1 %v3726_v33  ;;  %v20041_v38 = vand.u32 4294901760, %v3441_v10 }
 0x276   :  { %3204 = vmatmul.mubr.f32.gmra.mxu0 %v25465_v47  ;;  %16186 = vmatpush3.msra.mxu1 %v3726_v33  ;;  %v3572_v33 = vand.u32 4294901760, %v20006_v26  ;;  %v3544_v56 = vand.u32 4294901760, %v3543_v39  ;;  %v20071_v39 = vand.u32 4294901760, %v3447_v2 }
 0x277   :  { %3343 = vmatmul.mubr.f32.gmra.mxu1 %v25461_v49  ;;  %3209 = vmatprep.mubr.f32.mxu0 %v25466_v21  ;;  %v20025_v49 = vand.u32 4294901760, %v3438_v27 }
 0x278   :  { %3348 = vmatprep.mubr.f32.mxu1 %v25462_v30  ;;  %16156 = vmatpush3.msra.mxu0 %v19891_v1  ;;  %v25470_v30 = vld [vmem:[#allocation61_spill] sm:$0xff]  ;;  %v3573_v25 = vsub.f32 %v20006_v26, %v3572_v33 }
 0x279   :  { %16157 = vmatprep.subr.mxu0 %v19909_v29  ;;  %16187 = vmatprep.subr.mxu1 %v3733_v53  ;;  %v20049_v20 = vsub.f32 %v3438_v27, %v20025_v49  ;;  %v3564_v27 = vand.u32 4294901760, %v3563_v61 }
 0x27a   :  { %3211 = vmatmul.mubr.f32.gmra.mxu0 %v25467_v46  ;;  %16188 = vmatpush3.msra.mxu1 %v3733_v53  ;;  %v3592_v53 = vand.u32 4294901760, %v20023_v45  ;;  %v3574_v41 = vand.u32 4294901760, %v3573_v25 }
 0x27b   :  { %3350 = vmatmul.mubr.f32.gmra.mxu1 %v25463_v22  ;;  %3216 = vmatprep.mubr.f32.mxu0 %v25468_v14  ;;  %v3582_v22 = vand.u32 4294901760, %v20015_v58 }
 0x27c   :  { %3355 = vmatprep.mubr.f32.mxu1 %v25464_v35  ;;  %16158 = vmatpush3.msra.mxu0 %v19909_v29  ;;  %v20039_v35 = vsub.f32 %v3435_v0, %v20017_v28  ;;  %v20065_v0 = vsub.f32 %v3441_v10, %v20041_v38  ;;  %v3593_v19 = vsub.f32 %v20023_v45, %v3592_v53  ;;  %v20077_v10 = vand.u32 4294901760, %v3450_v62 }
 0x27d   :  { %16189 = vmatprep.subr.mxu1 %v3740_v12  ;;  %16215 = vmatprep.subr.mxu0 %v19877_v17 }
 0x27e   :  { %3218 = vmatmul.mubr.f32.gmra.mxu0 %v25469_v60  ;;  %16190 = vmatpush3.msra.mxu1 %v3740_v12  ;;  %v3583_v12 = vsub.f32 %v20015_v58, %v3582_v22  ;;  %v3622_v61 = vand.u32 4294901760, %v20065_v0 }
 0x27f   :  { %3357 = vmatmul.mubr.f32.gmra.mxu1 %v25465_v47  ;;  %3223 = vmatprep.mubr.f32.mxu0 %v25470_v30  ;;  %v3554_v47 = vand.u32 4294901760, %v3553_v11  ;;  %v3453_v11 = vsel %vm3412_vm1, %v3405_v36, 0  ;;  %v20099_v36 = vsub.f32 %v3450_v62, %v20077_v10 }
 0x280   :  { %3362 = vmatprep.mubr.f32.mxu1 %v25466_v21  ;;  %16247 = vmatprep.subr.mxu1 %v19860_v5  ;;  %v20055_v21 = vand.u32 4294901760, %v3444_v63 }
 0x281   :  { %v3652_v23 = vand.u32 4294901760, %v20099_v36 }
 0x282   :  { %3225 = vmatmul.mubr.f32.gmra.mxu0 %v19677_v57 }
 0x283   :  { %3364 = vmatmul.mubr.f32.gmra.mxu1 %v25467_v46  ;;  %16159 = vmatprep.mubr.f32.mxu0 %v3534_v44  ;;  %v3602_v46 = vand.u32 4294901760, %v20039_v35  ;;  %v20075_v44 = vsub.f32 %v3444_v63, %v20055_v21  ;;  %v3594_v63 = vand.u32 4294901760, %v3593_v19  ;;  %v20114_v19 = vand.u32 4294901760, %v3459_v16 }
 0x284   :  { %3369 = vmatprep.mubr.f32.mxu1 %v25468_v14  ;;  %v3612_v14 = vand.u32 4294901760, %v20049_v20 }
 0x285   :  { %v3632_v25 = vand.u32 4294901760, %v20075_v44 }
 0x286   :  { %16160 = vmatmul.mubr.f32.vlgmr.msra.gmra.mxu0 %v3544_v56  ;;  %v3584_v56 = vand.u32 4294901760, %v3583_v12  ;;  %v20101_v12 = vand.u32 4294901760, %v3456_v3 }
 0x287   :  { %3371 = vmatmul.mubr.f32.gmra.mxu1 %v25469_v60  ;;  %16162 = vmatprep.mubr.f32.mxu0 %v3554_v47  ;;  %v3603_v60 = vsub.f32 %v20039_v35, %v3602_v46  ;;  %v20094_v47 = vand.u32 4294901760, %v3453_v11 }
 0x288   :  { %3376 = vmatprep.mubr.f32.mxu1 %v25470_v30  ;;  %16216 = vmatpush3.msra.mxu0 %v19877_v17  ;;  %v3613_v30 = vsub.f32 %v20049_v20, %v3612_v14  ;;  %v20092_v17 = vsub.f32 %v3447_v2, %v20071_v39 }
 0x289   :  { %16217 = vmatprep.subr.mxu0 %v19897_v24  ;;  %v3604_v2 = vand.u32 4294901760, %v3603_v60  ;;  %v20112_v62 = vsub.f32 %v3453_v11, %v20094_v47 }
 0x28a   :  { %16163 = vmatmul.mubr.f32.gmra.mxu0 %v3564_v27  ;;  %v3642_v27 = vand.u32 4294901760, %v20092_v17 }
 0x28b   :  { %3378 = vmatmul.mubr.f32.gmra.mxu1 %v19677_v57  ;;  %16165 = vmatprep.mubr.f32.mxu0 %v3574_v41  ;;  %v3623_v57 = vsub.f32 %v20065_v0, %v3622_v61  ;;  %v3614_v41 = vand.u32 4294901760, %v3613_v30  ;;  %v20133_v30 = vsub.f32 %v3459_v16, %v20114_v19 }
 0x28c   :  { %16191 = vmatprep.mubr.f32.mxu1 %v19942_v9  ;;  %16218 = vmatpush3.msra.mxu0 %v19897_v24  ;;  %v3633_v24 = vsub.f32 %v20075_v44, %v3632_v25  ;;  %v3643_v60 = vsub.f32 %v20092_v17, %v3642_v27 }
 0x28d   :  { %16219 = vmatprep.subr.mxu0 %v19917_v15  ;;  %v3624_v11 = vand.u32 4294901760, %v3623_v57 }
 0x28e   :  { %16166 = vmatmul.mubr.f32.gmra.mxu0 %v3584_v56  ;;  %v20122_v56 = vsub.f32 %v3456_v3, %v20101_v12  ;;  %v3653_v3 = vsub.f32 %v20099_v36, %v3652_v23  ;;  %v3644_v16 = vand.u32 4294901760, %v3643_v60 }
 0x28f   :  { %16192 = vmatmul.mubr.f32.vlgmr.msra.gmra.mxu1 %v19948_v55  ;;  %16168 = vmatprep.mubr.f32.mxu0 %v3594_v63  ;;  %v3662_v63 = vand.u32 4294901760, %v20112_v62 }
 0x290   :  { %16194 = vmatprep.mubr.f32.mxu1 %v19961_v34  ;;  %16220 = vmatpush3.msra.mxu0 %v19917_v15  ;;  %v3634_v15 = vand.u32 4294901760, %v3633_v24  ;;  %v3654_v24 = vand.u32 4294901760, %v3653_v3 }
 0x291   :  { %16221 = vmatprep.subr.mxu0 %v19935_v59  ;;  %16248 = vmatpush3.msra.mxu1 %v19860_v5  ;;  %v3663_v57 = vsub.f32 %v20112_v62, %v3662_v63 }
 0x292   :  { %16169 = vmatmul.mubr.f32.gmra.mxu0 %v3604_v2  ;;  %16249 = vmatprep.subr.mxu1 %v19874_v50  ;;  %v3672_v2 = vand.u32 4294901760, %v20122_v56 }
 0x293   :  { %16195 = vmatmul.mubr.f32.gmra.mxu1 %v19974_v37  ;;  %16171 = vmatprep.mubr.f32.mxu0 %v3614_v41  ;;  %v3682_v41 = vand.u32 4294901760, %v20133_v30 }
 0x294   :  { %16197 = vmatprep.mubr.f32.mxu1 %v19983_v40  ;;  %16222 = vmatpush3.msra.mxu0 %v19935_v59  ;;  %v3673_v59 = vsub.f32 %v20122_v56, %v3672_v2 }
 0x295   :  { %16250 = vmatpush3.msra.mxu1 %v19874_v50  ;;  %16279 = vmatprep.subr.mxu0 %v19894_v48  ;;  %v3683_v60 = vsub.f32 %v20133_v30, %v3682_v41 }
 0x296   :  { %16172 = vmatmul.mubr.f32.gmra.mxu0 %v3624_v11  ;;  %16251 = vmatprep.subr.mxu1 %v19891_v1  ;;  %v3664_v11 = vand.u32 4294901760, %v3663_v57 }
 0x297   :  { %16198 = vmatmul.mubr.f32.gmra.mxu1 %v19990_v51  ;;  %16174 = vmatprep.mubr.f32.mxu0 %v3634_v15  ;;  %v3674_v15 = vand.u32 4294901760, %v3673_v59  ;;  %v3684_v3 = vand.u32 4294901760, %v3683_v60 }
 0x298   :  { %16200 = vmatprep.mubr.f32.mxu1 %v19996_v8  ;;  %16252 = vmatpush3.msra.mxu1 %v19891_v1 }
 0x299   :  { %16253 = vmatprep.subr.mxu1 %v19909_v29 }
 0x29a   :  { %16175 = vmatmul.mubr.f32.gmra.mxu0 %v3644_v16  ;;  %16254 = vmatpush3.msra.mxu1 %v19909_v29 }
 0x29b   :  { %16201 = vmatmul.mubr.f32.gmra.mxu1 %v20017_v28  ;;  %16177 = vmatprep.mubr.f32.mxu0 %v3654_v24 }
 0x29c   :  { %16203 = vmatprep.mubr.f32.mxu1 %v20025_v49  ;;  %16311 = vmatprep.subr.mxu1 %v19860_v5 }
 0x29e   :  { %16178 = vmatmul.mubr.f32.gmra.mxu0 %v3664_v11 }
 0x29f   :  { %16204 = vmatmul.mubr.f32.gmra.mxu1 %v20041_v38  ;;  %16180 = vmatprep.mubr.f32.mxu0 %v3674_v15 }
 0x2a0   :  { %16206 = vmatprep.mubr.f32.mxu1 %v20055_v21 }
 0x2a2   :  { %16181 = vmatmul.mubr.f32.gmra.mxu0 %v3684_v3 }
 0x2a3   :  { %16207 = vmatmul.mubr.f32.gmra.mxu1 %v20071_v39  ;;  %16223 = vmatprep.mubr.f32.mxu0 %v19959_v18 }
 0x2a4   :  { %16209 = vmatprep.mubr.f32.mxu1 %v20077_v10 }
 0x2a6   :  { %16224 = vmatmul.mubr.f32.vlgmr.msra.gmra.mxu0 %v19969_v13 }
 0x2a7   :  { %16210 = vmatmul.mubr.f32.gmra.mxu1 %v20094_v47  ;;  %16226 = vmatprep.mubr.f32.mxu0 %v19981_v42 }
 0x2a8   :  { %16212 = vmatprep.mubr.f32.mxu1 %v20101_v12  ;;  %16280 = vmatpush3.msra.mxu0 %v19894_v48 }
 0x2a9   :  { %16281 = vmatprep.subr.mxu0 %v19914_v43 }
 0x2aa   :  { %16227 = vmatmul.mubr.f32.gmra.mxu0 %v19994_v4 }
 0x2ab   :  { %16213 = vmatmul.mubr.f32.gmra.mxu1 %v20114_v19  ;;  %16229 = vmatprep.mubr.f32.mxu0 %v20006_v26 }
 0x2ac   :  { %16255 = vmatprep.mubr.f32.mxu1 %v3532_v52  ;;  %16282 = vmatpush3.msra.mxu0 %v19914_v43 }
 0x2ad   :  { %16283 = vmatprep.subr.mxu0 %v19932_v31 }
 0x2ae   :  { %16230 = vmatmul.mubr.f32.gmra.mxu0 %v20015_v58 }
 0x2af   :  { %16256 = vmatmul.mubr.f32.vlgmr.msra.gmra.mxu1 %v3542_v6  ;;  %16232 = vmatprep.mubr.f32.mxu0 %v20023_v45 }
 0x2b0   :  { %16258 = vmatprep.mubr.f32.mxu1 %v3552_v54  ;;  %16284 = vmatpush3.msra.mxu0 %v19932_v31 }
 0x2b1   :  { %16285 = vmatprep.subr.mxu0 %v19953_v32  ;;  %16312 = vmatpush3.msra.mxu1 %v19860_v5 }
 0x2b2   :  { %16233 = vmatmul.mubr.f32.gmra.mxu0 %v20039_v35  ;;  %16313 = vmatprep.subr.mxu1 %v19874_v50 }
 0x2b3   :  { %16259 = vmatmul.mubr.f32.gmra.mxu1 %v3562_v7  ;;  %16235 = vmatprep.mubr.f32.mxu0 %v20049_v20 }
 0x2b4   :  { %16261 = vmatprep.mubr.f32.mxu1 %v3572_v33  ;;  %16286 = vmatpush3.msra.mxu0 %v19953_v32 }
 0x2b5   :  { %16314 = vmatpush3.msra.mxu1 %v19874_v50 }
 0x2b6   :  { %16236 = vmatmul.mubr.f32.gmra.mxu0 %v20065_v0  ;;  %16315 = vmatprep.subr.mxu1 %v19891_v1 }
 0x2b7   :  { %16262 = vmatmul.mubr.f32.gmra.mxu1 %v3582_v22  ;;  %16238 = vmatprep.mubr.f32.mxu0 %v20075_v44 }
 0x2b8   :  { %16264 = vmatprep.mubr.f32.mxu1 %v3592_v53  ;;  %16316 = vmatpush3.msra.mxu1 %v19891_v1 }
 0x2b9   :  { %16317 = vmatprep.subr.mxu1 %v19909_v29 }
 0x2ba   :  { %16239 = vmatmul.mubr.f32.gmra.mxu0 %v20092_v17  ;;  %16318 = vmatpush3.msra.mxu1 %v19909_v29 }
 0x2bb   :  { %16265 = vmatmul.mubr.f32.gmra.mxu1 %v3602_v46  ;;  %16241 = vmatprep.mubr.f32.mxu0 %v20099_v36 }
 0x2bc   :  { %16267 = vmatprep.mubr.f32.mxu1 %v3612_v14 }
 0x2be   :  { %16242 = vmatmul.mubr.f32.gmra.mxu0 %v20112_v62 }
 0x2bf   :  { %16268 = vmatmul.mubr.f32.gmra.mxu1 %v3622_v61  ;;  %16244 = vmatprep.mubr.f32.mxu0 %v20122_v56 }
 0x2c0   :  { %16270 = vmatprep.mubr.f32.mxu1 %v3632_v25 }
 0x2c2   :  { %16245 = vmatmul.mubr.f32.gmra.mxu0 %v20133_v30 }
 0x2c3   :  { %16271 = vmatmul.mubr.f32.gmra.mxu1 %v3642_v27  ;;  %16287 = vmatprep.mubr.f32.mxu0 %v19942_v9 }
 0x2c4   :  { %16273 = vmatprep.mubr.f32.mxu1 %v3652_v23 }
 0x2c6   :  { %16288 = vmatmul.mubr.f32.vlgmr.msra.gmra.mxu0 %v19948_v55 }
 0x2c7   :  { %16274 = vmatmul.mubr.f32.gmra.mxu1 %v3662_v63  ;;  %16290 = vmatprep.mubr.f32.mxu0 %v19961_v34 }
 0x2c8   :  { %16276 = vmatprep.mubr.f32.mxu1 %v3672_v2 }
 0x2c9   :  { %v20234_v5 = vpop.f32.mrf.mxu0 }
 0x2ca   :  { %16291 = vmatmul.mubr.f32.gmra.mxu0 %v19974_v37 }
 0x2cb   :  { %v20237_v50 = vpop.f32.mrf.mxu0  ;;  %16277 = vmatmul.mubr.f32.gmra.mxu1 %v3682_v41  ;;  %16293 = vmatprep.mubr.f32.mxu0 %v19983_v40 }
 0x2cc   :  { %16319 = vmatprep.mubr.f32.mxu1 %v19942_v9 }
 0x2cd   :  { %v20243_v1 = vpop.f32.mrf.mxu0 }
 0x2ce   :  { %16294 = vmatmul.mubr.f32.gmra.mxu0 %v19990_v51 }
 0x2cf   :  { %16320 = vmatmul.mubr.f32.vlgmr.msra.gmra.mxu1 %v19948_v55  ;;  %16296 = vmatprep.mubr.f32.mxu0 %v19996_v8  ;;  %v20248_v48 = vpop.f32.mrf.mxu0 }
 0x2d0   :  { %16322 = vmatprep.mubr.f32.mxu1 %v19961_v34 }
 0x2d2   :  { %16297 = vmatmul.mubr.f32.gmra.mxu0 %v20017_v28  ;;  %v20252_v29 = vpop.f32.mrf.mxu0  ;;  %v20254_v43 = vpop.f32.mrf.mxu1 }
 0x2d3   :  { %16323 = vmatmul.mubr.f32.gmra.mxu1 %v19974_v37  ;;  %16299 = vmatprep.mubr.f32.mxu0 %v20025_v49 }
 0x2d4   :  { %16325 = vmatprep.mubr.f32.mxu1 %v19983_v40  ;;  %v20259_v31 = vpop.f32.mrf.mxu0  ;;  %v20261_v9 = vpop.f32.mrf.mxu1 }
 0x2d5   :  { %v14213_v15 = vadd.f32 %v20261_v9, %v20254_v43  ;;  %v14160_v43 = vadd.f32 %v20248_v48, %v20243_v1 }
 0x2d6   :  { %16300 = vmatmul.mubr.f32.gmra.mxu0 %v20041_v38 }
 0x2d7   :  { %16326 = vmatmul.mubr.f32.gmra.mxu1 %v19990_v51  ;;  %16302 = vmatprep.mubr.f32.mxu0 %v20055_v21 }
 0x2d8   :  { %16328 = vmatprep.mubr.f32.mxu1 %v19996_v8  ;;  %v20267_v55 = vpop.f32.mrf.mxu0  ;;  %v20269_v32 = vpop.f32.mrf.mxu1 }
 0x2da   :  { %16303 = vmatmul.mubr.f32.gmra.mxu0 %v20071_v39  ;;  %v20272_v18 = vpop.f32.mrf.mxu0  ;;  %v20274_v34 = vpop.f32.mrf.mxu1 }
 0x2db   :  { %16329 = vmatmul.mubr.f32.gmra.mxu1 %v20017_v28  ;;  %16305 = vmatprep.mubr.f32.mxu0 %v20077_v10 }
 0x2dc   :  { %16331 = vmatprep.mubr.f32.mxu1 %v20025_v49 }
 0x2de   :  { %16306 = vmatmul.mubr.f32.gmra.mxu0 %v20094_v47  ;;  %v20280_v13 = vpop.f32.mrf.mxu0  ;;  %v20282_v37 = vpop.f32.mrf.mxu1 }
 0x2df   :  { %16332 = vmatmul.mubr.f32.gmra.mxu1 %v20041_v38  ;;  %16308 = vmatprep.mubr.f32.mxu0 %v20101_v12 }
 0x2e0   :  { %16334 = vmatprep.mubr.f32.mxu1 %v20055_v21  ;;  %v20287_v52 = vpop.f32.mrf.mxu0  ;;  %v20289_v42 = vpop.f32.mrf.mxu1 }
 0x2e2   :  { %16309 = vmatmul.mubr.f32.gmra.mxu0 %v20114_v19 }
 0x2e3   :  { %16335 = vmatmul.mubr.f32.gmra.mxu1 %v20071_v39 }
 0x2e4   :  { %16337 = vmatprep.mubr.f32.mxu1 %v20077_v10  ;;  %v20294_v40 = vpop.f32.mrf.mxu0  ;;  %v20296_v6 = vpop.f32.mrf.mxu1 }
 0x2e6   :  { %v20298_v51 = vpop.f32.mrf.mxu0  ;;  %v20300_v4 = vpop.f32.mrf.mxu1 }
 0x2e7   :  { %16338 = vmatmul.mubr.f32.gmra.mxu1 %v20094_v47 }
 0x2e8   :  { %16340 = vmatprep.mubr.f32.mxu1 %v20101_v12 }
 0x2ea   :  { %v20304_v8 = vpop.f32.mrf.mxu0  ;;  %v20306_v54 = vpop.f32.mrf.mxu1 }
 0x2eb   :  { %25471 = vst [vmem:[#allocation33_spill] sm:$0xff] %v20304_v8  ;;  %16341 = vmatmul.mubr.f32.gmra.mxu1 %v20114_v19 }
 0x2ec   :  { %v20309_v26 = vpop.f32.mrf.mxu0  ;;  %v20311_v58 = vpop.f32.mrf.mxu1 }
 0x2ed   :  { %25472 = vst [vmem:[#allocation51_spill] sm:$0xff] %v20309_v26 }
 0x2f0   :  { %v20313_v28 = vpop.f32.mrf.mxu0  ;;  %v20315_v7 = vpop.f32.mrf.mxu1 }
 0x2f1   :  { %25473 = vst [vmem:[#allocation55_spill] sm:$0xff] %v20313_v28  ;;  %v14157_v28 = vadd.f32 %v20237_v50, %v20234_v5  ;;  %v14219_v5 = vadd.f32 %v20289_v42, %v20282_v37  ;;  %v14222_v37 = vadd.f32 %v20300_v4, %v20296_v6  ;;  %v14225_v6 = vadd.f32 %v20311_v58, %v20306_v54 }
 0x2f2   :  { %v20317_v45 = vpop.f32.mrf.mxu0  ;;  %v20319_v49 = vpop.f32.mrf.mxu1 }
 0x2f3   :  { %25474 = vst [vmem:[#allocation41_spill] sm:$0xff] %v20317_v45 }
 0x2f6   :  { %v20321_v33 = vpop.f32.mrf.mxu1  ;;  %v14267_v22 = vpop.f32.mrf.mxu0 }
 0x2f8   :  { %v20323_v35 = vpop.f32.mrf.mxu1  ;;  %v14268_v38 = vpop.f32.mrf.mxu0 }
 0x2fc   :  { %v20325_v53 = vpop.f32.mrf.mxu1  ;;  %v14270_v20 = vpop.f32.mrf.mxu0 }
 0x2fd   :  { %25475 = vst [vmem:[#allocation23_spill] sm:$0xff] %v20325_v53 }
 0x2fe   :  { %v20327_v21 = vpop.f32.mrf.mxu1  ;;  %v14271_v46 = vpop.f32.mrf.mxu0 }
 0x2ff   :  { %25476 = vst [vmem:[#allocation25_spill] sm:$0xff] %v20327_v21  ;;  %v14269_v21 = vadd.f32 %v14268_v38, %v14267_v22 }
 0x302   :  { %v14273_v0 = vpop.f32.mrf.mxu0  ;;  %v14323_v14 = vpop.f32.mrf.mxu1 }
 0x304   :  { %v14274_v39 = vpop.f32.mrf.mxu0  ;;  %v14324_v44 = vpop.f32.mrf.mxu1 }
 0x308   :  { %v20329_v10 = vpop.f32.mrf.mxu0  ;;  %v14326_v61 = vpop.f32.mrf.mxu1 }
 0x30a   :  { %v14277_v17 = vpop.f32.mrf.mxu0  ;;  %v14327_v47 = vpop.f32.mrf.mxu1 }
 0x30b   :  { %v14328_v38 = vadd.f32 %v14327_v47, %v14326_v61 }
 0x30e   :  { %v20331_v25 = vpop.f32.mrf.mxu0  ;;  %v14329_v36 = vpop.f32.mrf.mxu1 }
 0x310   :  { %v20333_v12 = vpop.f32.mrf.mxu0  ;;  %v14330_v27 = vpop.f32.mrf.mxu1 }
 0x314   :  { %v20335_v62 = vpop.f32.mrf.mxu0  ;;  %v20337_v19 = vpop.f32.mrf.mxu1 }
 0x316   :  { %v20339_v23 = vpop.f32.mrf.mxu0  ;;  %v20341_v56 = vpop.f32.mrf.mxu1 }
 0x31a   :  { %v20343_v63 = vpop.f32.mrf.mxu0  ;;  %v20345_v30 = vpop.f32.mrf.mxu1 }
 0x31b   :  { %25477 = vst [vmem:[#allocation24_spill] sm:$0xff] %v20343_v63  ;;  %v14325_v63 = vadd.f32 %v14324_v44, %v14323_v14 }
 0x31c   :  { %v20347_v2 = vpop.f32.mrf.mxu0  ;;  %v20349_v16 = vpop.f32.mrf.mxu1 }
 0x31d   :  { %25478 = vst [vmem:[#allocation53_spill] sm:$0xff] %v20347_v2  ;;  %v2575_v2 = vadd.f32 %v14213_v15, %v14157_v28 }
 0x31f   :  { %v2762_v9 = vadd.f32 %v14269_v21, %v2575_v2 }
 0x320   :  { %v20351_v57 = vpop.f32.mrf.mxu0  ;;  %v20353_v41 = vpop.f32.mrf.mxu1 }
 0x321   :  { %25479 = vst [vmem:[#allocation52_spill] sm:$0xff] %v20351_v57  ;;  %v2933_v28 = vadd.f32 %v14325_v63, %v2762_v9 }
 0x322   :  { %v20355_v24 = vpop.f32.mrf.mxu0  ;;  %v20357_v59 = vpop.f32.mrf.mxu1 }
 0x323   :  { %25480 = vst [vmem:[#allocation45_spill] sm:$0xff] %v20355_v24  ;;  %25481 = vst [vmem:[#allocation57_spill] sm:$0xff] %v20357_v59  ;;  %v14216_v24 = vadd.f32 %v20274_v34, %v20269_v32  ;;  %v14163_v32 = vadd.f32 %v20259_v31, %v20252_v29  ;;  %v14275_v34 = vadd.f32 %v14274_v39, %v14273_v0 }
 0x324   :  { %v14166_v29 = vadd.f32 %v20272_v18, %v20267_v55 }
 0x325   :  { %v2582_v22 = vadd.f32 %v14216_v24, %v14160_v43 }
 0x326   :  { %v20359_v11 = vpop.f32.mrf.mxu1  ;;  %v14379_v60 = vpop.f32.mrf.mxu0 }
 0x327   :  { %25482 = vst [vmem:[#allocation43_spill] sm:$0xff] %v20359_v11 }
 0x328   :  { %v20363_v3 = vpop.f32.mrf.mxu1  ;;  %v14380_v45 = vpop.f32.mrf.mxu0 }
 0x329   :  { %25483 = vst [vmem:[#allocation73_spill] sm:$0xff] %v20363_v3  ;;  %v14272_v3 = vadd.f32 %v14271_v46, %v14270_v20  ;;  %v14381_v8 = vadd.f32 %v14380_v45, %v14379_v60  ;;  %v2589_v45 = vadd.f32 %v14219_v5, %v14163_v32  ;;  %v14331_v46 = vadd.f32 %v14330_v27, %v14329_v36 }
 0x32a   :  { %v14382_v57 = vpop.f32.mrf.mxu0  ;;  %v2596_v36 = vadd.f32 %v14222_v37, %v14166_v29  ;;  %v14334_v27 = vadd.f32 %v20341_v56, %v20337_v19  ;;  %v14228_v19 = vadd.f32 %v20319_v49, %v20315_v7  ;;  %v14231_v49 = vadd.f32 %v20323_v35, %v20321_v33  ;;  %v25485_v32 = vld [vmem:[#allocation57_spill] sm:$0xff] }
 0x32b   :  { %v20367_v53 = vpop.f32.mrf.mxu1  ;;  %v2771_v44 = vadd.f32 %v14272_v3, %v2582_v22  ;;  %v2780_v31 = vadd.f32 %v14275_v34, %v2589_v45 }
 0x32c   :  { %v14383_v11 = vpop.f32.mrf.mxu0 }
 0x32d   :  { %v20371_v26 = vpop.f32.mrf.mxu1  ;;  %v14384_v1 = vadd.f32 %v14383_v11, %v14382_v57  ;;  %v2944_v42 = vadd.f32 %v14328_v38, %v2771_v44  ;;  %v25487_v44 = vld [vmem:[#allocation51_spill] sm:$0xff] }
 0x32e   :  { %25484 = vst [vmem:[#allocation20_spill] sm:$0xff] %v20371_v26  ;;  %v14385_v59 = vpop.f32.mrf.mxu0  ;;  %v3178_v26 = vadd.f32 %v14381_v8, %v2933_v28  ;;  %v14278_v8 = vadd.f32 %v14277_v17, %v20329_v10  ;;  %v14169_v10 = vadd.f32 %v20287_v52, %v20280_v13  ;;  %v14281_v17 = vadd.f32 %v20333_v12, %v20331_v25 }
 0x32f   :  { %v14435_v50 = vpop.f32.mrf.mxu1  ;;  %v3185_v39 = vadd.f32 %v14384_v1, %v2944_v42  ;;  %v14337_v13 = vadd.f32 %v20349_v16, %v20345_v30  ;;  %v14172_v25 = vadd.f32 %v20298_v51, %v20294_v40  ;;  %v14340_v40 = vadd.f32 %v25485_v32, %v20353_v41  ;;  %v25489_v1 = vld [vmem:[#allocation53_spill] sm:$0xff] }
 0x330   :  { %v14386_v15 = vpop.f32.mrf.mxu0  ;;  %v2603_v3 = vadd.f32 %v14225_v6, %v14169_v10  ;;  %v25491_v41 = vld [vmem:[#allocation25_spill] sm:$0xff] }
 0x331   :  { %v14436_v14 = vpop.f32.mrf.mxu1  ;;  %v14387_v63 = vadd.f32 %v14386_v15, %v14385_v59  ;;  %v2789_v59 = vadd.f32 %v14278_v8, %v2596_v36  ;;  %v2610_v16 = vadd.f32 %v14228_v19, %v14172_v25 }
 0x332   :  { %v14437_v48 = vadd.f32 %v14436_v14, %v14435_v50  ;;  %v14388_v20 = vpop.f32.mrf.mxu0  ;;  %v2798_v12 = vadd.f32 %v14281_v17, %v2603_v3  ;;  %v14284_v50 = vadd.f32 %v20339_v23, %v20335_v62  ;;  %v25486_v14 = vld [vmem:[#allocation33_spill] sm:$0xff]  ;;  %v25488_v23 = vld [vmem:[#allocation24_spill] sm:$0xff] }
 0x333   :  { %v14438_v21 = vpop.f32.mrf.mxu1  ;;  %v2966_v56 = vadd.f32 %v14334_v27, %v2789_v59  ;;  %v14175_v62 = vadd.f32 %v25487_v44, %v25486_v14  ;;  %v25497_v27 = vld [vmem:[#allocation45_spill] sm:$0xff] }
 0x334   :  { %v3331_v61 = vadd.f32 %v14437_v48, %v3178_v26  ;;  %v14389_v47 = vpop.f32.mrf.mxu0  ;;  %v2955_v26 = vadd.f32 %v14331_v46, %v2780_v31  ;;  %v2977_v15 = vadd.f32 %v14337_v13, %v2798_v12  ;;  %v14287_v48 = vadd.f32 %v25489_v1, %v25488_v23  ;;  %v25492_v31 = vld [vmem:[#allocation43_spill] sm:$0xff]  ;;  %v4591_v59 = vld [vmem:[#allocation5 + $0x10] sm:$0xff] }
 0x335   :  { %v14439_v0 = vpop.f32.mrf.mxu1  ;;  %v14390_v60 = vadd.f32 %v14389_v47, %v14388_v20  ;;  %v2807_v45 = vadd.f32 %v14284_v50, %v2610_v16  ;;  %v2617_v42 = vadd.f32 %v14231_v49, %v14175_v62  ;;  %v25499_v3 = vld [vmem:[#allocation20_spill] sm:$0xff] }
 0x336   :  { %3384 = vst.msk [vmem:[#allocation13] sm:$0xff] %vm3383_vm2, %v3331_v61  ;;  %v14440_v2 = vadd.f32 %v14439_v0, %v14438_v21  ;;  %v14391_v57 = vpop.f32.mrf.mxu0  ;;  %v3192_v11 = vadd.f32 %v14387_v63, %v2955_v26  ;;  %v25490_v61 = vld [vmem:[#allocation23_spill] sm:$0xff]  ;;  %v25493_v0 = vld [vmem:[#allocation73_spill] sm:$0xff]  ;;  %v25496_v26 = vld [vmem:[#allocation52_spill] sm:$0xff] }
 0x337   :  { %v14441_v4 = vpop.f32.mrf.mxu1  ;;  %v3199_v22 = vadd.f32 %v14390_v60, %v2966_v56  ;;  %v14234_v47 = vadd.f32 %v25491_v41, %v25490_v61  ;;  %v2988_v29 = vadd.f32 %v14340_v40, %v2807_v45  ;;  %v14343_v8 = vadd.f32 %v25493_v0, %v25492_v31 }
 0x338   :  { %v3338_v55 = vadd.f32 %v14440_v2, %v3185_v39  ;;  %v14392_v18 = vpop.f32.mrf.mxu0  ;;  %v25494_v2 = vld [vmem:[#allocation55_spill] sm:$0xff]  ;;  %v20421_v60 = vand.u32 4294901760, %v4591_v59 }
 0x339   :  { %v14442_v24 = vpop.f32.mrf.mxu1  ;;  %v14393_v28 = vadd.f32 %v14392_v18, %v14391_v57  ;;  %v25495_v57 = vld [vmem:[#allocation41_spill] sm:$0xff] }
 0x33a   :  { %3385 = vst.msk [vmem:[#allocation13 + $0x8] sm:$0xff] %vm3383_vm2, %v3338_v55  ;;  %v14443_v54 = vadd.f32 %v14442_v24, %v14441_v4  ;;  %v14394_v58 = vpop.f32.mrf.mxu0  ;;  %v14178_v6 = vadd.f32 %v25495_v57, %v25494_v2  ;;  %v2816_v4 = vadd.f32 %v14287_v48, %v2617_v42  ;;  %v14290_v55 = vadd.f32 %v25497_v27, %v25496_v26 }
 0x33b   :  { %v14444_v43 = vpop.f32.mrf.mxu1  ;;  %v3206_v21 = vadd.f32 %v14393_v28, %v2977_v15  ;;  %25498 = vst [vmem:[#allocation21_spill] sm:$0xff] %v20421_v60  ;;  %16419 = vmatprep.mubr.f32.mxu1 %v20421_v60 }
 0x33c   :  { %v3345_v52 = vadd.f32 %v14443_v54, %v3192_v11  ;;  %v14395_v9 = vpop.f32.mrf.mxu0  ;;  %v2624_v54 = vadd.f32 %v14234_v47, %v14178_v6 }
 0x33d   :  { %v14445_v5 = vpop.f32.mrf.mxu1  ;;  %v14396_v37 = vadd.f32 %v14395_v9, %v14394_v58  ;;  %v2999_v58 = vadd.f32 %v14343_v8, %v2816_v4 }
 0x33e   :  { %3386 = vst.msk [vmem:[#allocation13 + $0x10] sm:$0xff] %vm3383_vm2, %v3345_v52  ;;  %v14446_v38 = vadd.f32 %v14445_v5, %v14444_v43  ;;  %v14397_v7 = vpop.f32.mrf.mxu0  ;;  %v14346_v43 = vadd.f32 %v25499_v3, %v20367_v53  ;;  %v20428_v52 = vsub.f32 %v4591_v59, %v20421_v60  ;;  %v2825_v9 = vadd.f32 %v14290_v55, %v2624_v54 }
 0x33f   :  { %v14447_v30 = vpop.f32.mrf.mxu1  ;;  %v3213_v18 = vadd.f32 %v14396_v37, %v2988_v29 }
 0x340   :  { %v3352_v51 = vadd.f32 %v14446_v38, %v3199_v22  ;;  %v14398_v34 = vpop.f32.mrf.mxu0  ;;  %25500 = vst [vmem:[#allocation60_spill] sm:$0xff] %v20428_v52  ;;  %v24814_v28 = vand.u32 4294901760, %v20428_v52  ;;  %v3010_v53 = vadd.f32 %v14346_v43, %v2825_v9 }
 0x341   :  { %v14448_v20 = vpop.f32.mrf.mxu1  ;;  %v14399_v10 = vadd.f32 %v14398_v34, %v14397_v7 }
 0x342   :  { %3387 = vst.msk [vmem:[#allocation13 + $0x18] sm:$0xff] %vm3383_vm2, %v3352_v51  ;;  %v14449_v33 = vadd.f32 %v14448_v20, %v14447_v30  ;;  %v14400_v35 = vpop.f32.mrf.mxu0  ;;  %v4683_v30 = vsub.f32 %v20428_v52, %v24814_v28 }
 0x343   :  { %v14450_v46 = vpop.f32.mrf.mxu1  ;;  %v3220_v25 = vadd.f32 %v14399_v10, %v2999_v58 }
 0x344   :  { %v3359_v39 = vadd.f32 %v14449_v33, %v3206_v21  ;;  %v14401_v63 = vpop.f32.mrf.mxu0  ;;  %v4684_v51 = vand.u32 4294901760, %v4683_v30 }
 0x345   :  { %v14451_v36 = vpop.f32.mrf.mxu1  ;;  %v14402_v12 = vadd.f32 %v14401_v63, %v14400_v35 }
 0x346   :  { %3388 = vst.msk [vmem:[#allocation13 + $0x20] sm:$0xff] %vm3383_vm2, %v3359_v39  ;;  %v14452_v17 = vadd.f32 %v14451_v36, %v14450_v46  ;;  %v16161_v24 = vpop.f32.mrf.mxu0  ;;  %16375 = vmatprep.mubr.f32.mxu0 %v4684_v51 }
 0x347   :  { %v14453_v11 = vpop.f32.mrf.mxu1  ;;  %v3227_v16 = vadd.f32 %v14402_v12, %v3010_v53 }
 0x348   :  { %v3366_v19 = vadd.f32 %v14452_v17, %v3213_v18  ;;  %v20425_v56 = vpop.f32.mrf.mxu0 }
 0x349   :  { %v14454_v13 = vpop.f32.mrf.mxu1 }
 0x34a   :  { %3389 = vst.msk [vmem:[#allocation13 + $0x28] sm:$0xff] %vm3383_vm2, %v3366_v19  ;;  %v14455_v5 = vadd.f32 %v14454_v13, %v14453_v11  ;;  %v16164_v50 = vpop.f32.mrf.mxu0 }
 0x34b   :  { %v14456_v22 = vpop.f32.mrf.mxu1 }
 0x34c   :  { %v3373_v38 = vadd.f32 %v14455_v5, %v3220_v25  ;;  %v20433_v7 = vpop.f32.mrf.mxu0 }
 0x34d   :  { %v14457_v49 = vpop.f32.mrf.mxu1 }
 0x34e   :  { %3390 = vst.msk [vmem:[#allocation13 + $0x30] sm:$0xff] %vm3383_vm2, %v3373_v38  ;;  %v14458_v15 = vadd.f32 %v14457_v49, %v14456_v22  ;;  %v16167_v32 = vpop.f32.mrf.mxu0 }
 0x34f   :  { %v16193_v40 = vpop.f32.mrf.mxu1 }
 0x350   :  { %v3380_v34 = vadd.f32 %v14458_v15, %v3227_v16  ;;  %v3784_v14 = vadd.f32 %v16193_v40, %v16161_v24  ;;  %v20439_v44 = vpop.f32.mrf.mxu0 }
 0x351   :  { %v20441_v62 = vpop.f32.mrf.mxu1 }
 0x352   :  { %3391 = vst.msk [vmem:[#allocation13 + $0x38] sm:$0xff] %vm3383_vm2, %v3380_v34  ;;  %v16170_v23 = vpop.f32.mrf.mxu0 }
 0x353   :  { %v16196_v1 = vpop.f32.mrf.mxu1 }
 0x354   :  { %v3796_v48 = vadd.f32 %v16196_v1, %v16164_v50  ;;  %v20444_v20 = vpop.f32.mrf.mxu0 }
 0x355   :  { %v20446_v45 = vpop.f32.mrf.mxu1 }
 0x356   :  { %v16173_v21 = vpop.f32.mrf.mxu0 }
 0x357   :  { %v16199_v37 = vpop.f32.mrf.mxu1 }
 0x358   :  { %v3808_v33 = vadd.f32 %v16199_v37, %v16167_v32  ;;  %v20448_v35 = vpop.f32.mrf.mxu0 }
 0x359   :  { %v20450_v42 = vpop.f32.mrf.mxu1 }
 0x35a   :  { %v16176_v46 = vpop.f32.mrf.mxu0 }
 0x35b   :  { %v16202_v61 = vpop.f32.mrf.mxu1 }
 0x35c   :  { %v20452_v41 = vadd.f32 %v16202_v61, %v16170_v23  ;;  %v20454_v47 = vpop.f32.mrf.mxu0 }
 0x35d   :  { %v20456_v29 = vpop.f32.mrf.mxu1 }
 0x35e   :  { %v16179_v31 = vpop.f32.mrf.mxu0 }
 0x35f   :  { %v16205_v0 = vpop.f32.mrf.mxu1 }
 0x360   :  { %v20458_v8 = vadd.f32 %v16205_v0, %v16173_v21  ;;  %v20460_v39 = vpop.f32.mrf.mxu0 }
 0x361   :  { %v20462_v63 = vpop.f32.mrf.mxu1 }
 0x362   :  { %v20464_v2 = vpop.f32.mrf.mxu0 }
 0x363   :  { %v16208_v57 = vpop.f32.mrf.mxu1 }
 0x364   :  { %v20466_v6 = vadd.f32 %v16208_v57, %v16176_v46  ;;  %v20468_v4 = vpop.f32.mrf.mxu0 }
 0x365   :  { %v20470_v36 = vpop.f32.mrf.mxu1 }
 0x366   :  { %v16225_v26 = vpop.f32.mrf.mxu0 }
 0x367   :  { %v16211_v27 = vpop.f32.mrf.mxu1  ;;  %v3955_v55 = vadd.f32 %v16225_v26, %v3784_v14 }
 0x368   :  { %v20472_v18 = vadd.f32 %v16211_v27, %v16179_v31  ;;  %v20474_v10 = vpop.f32.mrf.mxu0 }
 0x369   :  { %25501 = vst [vmem:[#allocation64_spill] sm:$0xff] %v20474_v10  ;;  %v3849_v17 = vpop.f32.mrf.mxu1 }
 0x36a   :  { %v16228_v24 = vpop.f32.mrf.mxu0 }
 0x36b   :  { %v20476_v59 = vpop.f32.mrf.mxu1  ;;  %v3969_v11 = vadd.f32 %v16228_v24, %v3796_v48 }
 0x36c   :  { %v20478_v54 = vpop.f32.mrf.mxu0 }
 0x36d   :  { %v20480_v58 = vpop.f32.mrf.mxu1 }
 0x36e   :  { %v16231_v3 = vpop.f32.mrf.mxu0 }
 0x36f   :  { %v3983_v43 = vadd.f32 %v16231_v3, %v3808_v33  ;;  %v16257_v19 = vpop.f32.mrf.mxu1 }
 0x370   :  { %v20482_v13 = vadd.f32 %v16257_v19, %v3955_v55  ;;  %v20484_v9 = vpop.f32.mrf.mxu0 }
 0x371   :  { %v20486_v25 = vpop.f32.mrf.mxu1 }
 0x372   :  { %25502 = vst [vmem:[#allocation26_spill] sm:$0xff] %v20482_v13  ;;  %25503 = vst [vmem:[#allocation40_spill] sm:$0xff] %v20486_v25  ;;  %v20488_v12 = vpop.f32.mrf.mxu0 }
 0x373   :  { %v16260_v5 = vpop.f32.mrf.mxu1 }
 0x374   :  { %v20490_v50 = vadd.f32 %v16260_v5, %v3969_v11  ;;  %v20492_v22 = vpop.f32.mrf.mxu0 }
 0x375   :  { %v20494_v53 = vpop.f32.mrf.mxu1 }
 0x376   :  { %25504 = vst [vmem:[#allocation22_spill] sm:$0xff] %v20490_v50  ;;  %25505 = vst [vmem:[#allocation76_spill] sm:$0xff] %v20494_v53  ;;  %v20496_v38 = vpop.f32.mrf.mxu0  ;;  %v3850_v53 = vadd.f32 %v3849_v17, %v20460_v39  ;;  %v3790_v39 = vadd.f32 %v20446_v45, %v20433_v7 }
 0x377   :  { %v16263_v49 = vpop.f32.mrf.mxu1 }
 0x378   :  { %v20498_v30 = vadd.f32 %v16263_v49, %v3983_v43  ;;  %v20500_v16 = vpop.f32.mrf.mxu0 }
 0x379   :  { %v20502_v15 = vpop.f32.mrf.mxu1 }
 0x37a   :  { %25506 = vst [vmem:[#allocation31_spill] sm:$0xff] %v20498_v30  ;;  %25507 = vst [vmem:[#allocation66_spill] sm:$0xff] %v20502_v15  ;;  %v16240_v32 = vpop.f32.mrf.mxu0 }
 0x37b   :  { %v20504_v40 = vpop.f32.mrf.mxu1 }
 0x37c   :  { %v4017_v51 = vpop.f32.mrf.mxu0 }
 0x37d   :  { %v20506_v34 = vpop.f32.mrf.mxu1 }
 0x37e   :  { %v16243_v14 = vpop.f32.mrf.mxu0 }
 0x37f   :  { %v20508_v23 = vpop.f32.mrf.mxu1 }
 0x380   :  { %v4031_v1 = vpop.f32.mrf.mxu0 }
 0x381   :  { %v20510_v48 = vpop.f32.mrf.mxu1  ;;  %v4032_v30 = vadd.f32 %v4031_v1, %v3850_v53 }
 0x382   :  { %v16246_v21 = vpop.f32.mrf.mxu0 }
 0x383   :  { %v16272_v37 = vpop.f32.mrf.mxu1 }
 0x384   :  { %v4045_v33 = vpop.f32.mrf.mxu0 }
 0x385   :  { %v4209_v46 = vpop.f32.mrf.mxu1 }
 0x386   :  { %v20512_v61 = vpop.f32.mrf.mxu0 }
 0x387   :  { %25508 = vst [vmem:[#allocation78_spill] sm:$0xff] %v20512_v61  ;;  %v16275_v31 = vpop.f32.mrf.mxu1 }
 0x388   :  { %v20514_v0 = vpop.f32.mrf.mxu0 }
 0x389   :  { %25509 = vst [vmem:[#allocation68_spill] sm:$0xff] %v20514_v0  ;;  %v4225_v57 = vpop.f32.mrf.mxu1 }
 0x38a   :  { %v20516_v26 = vpop.f32.mrf.mxu0 }
 0x38b   :  { %25510 = vst [vmem:[#allocation36_spill] sm:$0xff] %v20516_v26  ;;  %v16278_v27 = vpop.f32.mrf.mxu1 }
 0x38c   :  { %v20518_v55 = vpop.f32.mrf.mxu0 }
 0x38d   :  { %25511 = vst [vmem:[#allocation58_spill] sm:$0xff] %v20518_v55  ;;  %v4241_v24 = vpop.f32.mrf.mxu1 }
 0x38e   :  { %v20520_v11 = vpop.f32.mrf.mxu0 }
 0x38f   :  { %25512 = vst [vmem:[#allocation29_spill] sm:$0xff] %v20520_v11  ;;  %v20522_v3 = vpop.f32.mrf.mxu1  ;;  %v3868_v11 = vadd.f32 %v20476_v59, %v20464_v2 }
 0x390   :  { %25513 = vst [vmem:[#allocation65_spill] sm:$0xff] %v20522_v3  ;;  %v20524_v43 = vpop.f32.mrf.mxu0 }
 0x391   :  { %25514 = vst [vmem:[#allocation48_spill] sm:$0xff] %v20524_v43  ;;  %v20526_v19 = vpop.f32.mrf.mxu1 }
 0x392   :  { %25515 = vst [vmem:[#allocation44_spill] sm:$0xff] %v20526_v19  ;;  %v20528_v5 = vpop.f32.mrf.mxu0 }
 0x393   :  { %v20530_v49 = vpop.f32.mrf.mxu1 }
 0x394   :  { %25516 = vst [vmem:[#allocation62_spill] sm:$0xff] %v20530_v49  ;;  %v20532_v28 = vpop.f32.mrf.mxu0 }
 0x395   :  { %v20534_v60 = vpop.f32.mrf.mxu1 }
 0x396   :  { %25517 = vst [vmem:[#allocation42_spill] sm:$0xff] %v20534_v60  ;;  %v16301_v52 = vpop.f32.mrf.mxu0  ;;  %v4039_v60 = vadd.f32 %v16243_v14, %v20472_v18  ;;  %v3802_v18 = vadd.f32 %v20450_v42, %v20439_v44 }
 0x397   :  { %v20536_v0 = vpop.f32.mrf.mxu1 }
 0x398   :  { %25518 = vst [vmem:[#allocation49_spill] sm:$0xff] %v20536_v0  ;;  %v4380_v61 = vpop.f32.mrf.mxu0  ;;  %v20548_v0 = vadd.f32 %v20441_v62, %v20425_v56  ;;  %v4234_v15 = vadd.f32 %v16275_v31, %v4039_v60  ;;  %v3862_v56 = vadd.f32 %v20480_v58, %v20468_v4  ;;  %v4011_v60 = vadd.f32 %v20496_v38, %v20458_v8 }
 0x399   :  { %v20538_v13 = vpop.f32.mrf.mxu1  ;;  %v3814_v38 = vadd.f32 %v20456_v29, %v20444_v20 }
 0x39a   :  { %25519 = vst [vmem:[#allocation28_spill] sm:$0xff] %v20538_v13  ;;  %v16304_v25 = vpop.f32.mrf.mxu0  ;;  %25521 = vst [vmem:[#allocation63_spill] sm:$0xff] %v20548_v0  ;;  %v3838_v13 = vadd.f32 %v20470_v36, %v20454_v47  ;;  %v4053_v36 = vadd.f32 %v16246_v21, %v3868_v11  ;;  %v4226_v0 = vadd.f32 %v4225_v57, %v4032_v30 }
 0x39b   :  { %v20540_v3 = vpop.f32.mrf.mxu1  ;;  %v4046_v7 = vadd.f32 %v4045_v33, %v3862_v56  ;;  %v3976_v11 = vadd.f32 %v20484_v9, %v3802_v18  ;;  %v25524_v18 = vld [vmem:[#allocation29_spill] sm:$0xff] }
 0x39c   :  { %v4392_v55 = vpop.f32.mrf.mxu0  ;;  %v4018_v62 = vadd.f32 %v4017_v51, %v3838_v13  ;;  %v4250_v44 = vadd.f32 %v16278_v27, %v4053_v36  ;;  %v4202_v13 = vadd.f32 %v20508_v23, %v4011_v60  ;;  %v25526_v60 = vld [vmem:[#allocation48_spill] sm:$0xff] }
 0x39d   :  { %v20542_v10 = vpop.f32.mrf.mxu1 }
 0x39e   :  { %25520 = vst [vmem:[#allocation47_spill] sm:$0xff] %v20542_v10  ;;  %v16307_v19 = vpop.f32.mrf.mxu0  ;;  %v4025_v10 = vadd.f32 %v16240_v32, %v20466_v6  ;;  %v3826_v6 = vadd.f32 %v20462_v63, %v20448_v35  ;;  %v4210_v45 = vadd.f32 %v4209_v46, %v4018_v62  ;;  %v3990_v46 = vadd.f32 %v20492_v22, %v3814_v38 }
 0x39f   :  { %v16333_v26 = vpop.f32.mrf.mxu1  ;;  %v4411_v2 = vadd.f32 %v16307_v19, %v4234_v15 }
 0x3a0   :  { %v4404_v50 = vpop.f32.mrf.mxu0  ;;  %v4218_v14 = vadd.f32 %v16272_v37, %v4025_v10  ;;  %v4004_v58 = vadd.f32 %v20500_v16, %v3826_v6  ;;  %v4242_v10 = vadd.f32 %v4241_v24, %v4046_v7  ;;  %v4393_v30 = vadd.f32 %v4392_v55, %v4210_v45  ;;  %v25527_v45 = vld [vmem:[#allocation49_spill] sm:$0xff] }
 0x3a1   :  { %v4545_v49 = vpop.f32.mrf.mxu1  ;;  %v4405_v53 = vadd.f32 %v4404_v50, %v4226_v0  ;;  %v4387_v16 = vadd.f32 %v16301_v52, %v4202_v13 }
 0x3a2   :  { %v16310_v17 = vpop.f32.mrf.mxu0  ;;  %v4399_v42 = vadd.f32 %v16304_v25, %v4218_v14  ;;  %v3997_v25 = vadd.f32 %v20488_v12, %v20452_v41  ;;  %v4194_v50 = vadd.f32 %v20510_v48, %v4004_v58  ;;  %v3962_v12 = vadd.f32 %v20478_v54, %v3790_v39  ;;  %v25523_v39 = vld [vmem:[#allocation31_spill] sm:$0xff] }
 0x3a3   :  { %v16336_v43 = vpop.f32.mrf.mxu1  ;;  %v4423_v51 = vadd.f32 %v16310_v17, %v4250_v44  ;;  %v4552_v57 = vadd.f32 %v16333_v26, %v4387_v16  ;;  %v4178_v48 = vadd.f32 %v20506_v34, %v3990_v46  ;;  %v4363_v56 = vadd.f32 %v25524_v18, %v25523_v39  ;;  %v25534_v46 = vld [vmem:[#allocation58_spill] sm:$0xff] }
 0x3a4   :  { %v4416_v15 = vpop.f32.mrf.mxu0  ;;  %v4564_v35 = vadd.f32 %v16336_v43, %v4399_v42  ;;  %v4186_v31 = vadd.f32 %v20504_v40, %v3997_v25  ;;  %v4381_v0 = vadd.f32 %v4380_v61, %v4194_v50  ;;  %v25539_v18 = vld [vmem:[#allocation42_spill] sm:$0xff] }
 0x3a5   :  { %v4557_v47 = vpop.f32.mrf.mxu1  ;;  %v4417_v23 = vadd.f32 %v4416_v15, %v4242_v10  ;;  %v4369_v54 = vadd.f32 %v20532_v28, %v4178_v48  ;;  %v20602_v43 = vand.u32 4294901760, %v4552_v57  ;;  %v25522_v28 = vld [vmem:[#allocation66_spill] sm:$0xff]  ;;  %v25525_v62 = vld [vmem:[#allocation47_spill] sm:$0xff]  ;;  %v25528_v10 = vld [vmem:[#allocation76_spill] sm:$0xff] }
 0x3a6   :  { %v4558_v21 = vadd.f32 %v4557_v47, %v4393_v30  ;;  %v20578_v20 = vand.u32 4294901760, %v4564_v35  ;;  %v4375_v55 = vadd.f32 %v20528_v5, %v4186_v31  ;;  %v4546_v22 = vadd.f32 %v4545_v49, %v4381_v0  ;;  %v25529_v15 = vld [vmem:[#allocation22_spill] sm:$0xff] }
 0x3a7   :  { %v16339_v59 = vpop.f32.mrf.mxu1  ;;  %v4534_v17 = vadd.f32 %v25525_v62, %v4369_v54  ;;  %v20642_v42 = vsub.f32 %v4552_v57, %v20602_v43  ;;  %v4146_v30 = vadd.f32 %v25528_v10, %v3962_v12  ;;  %v25535_v0 = vld [vmem:[#allocation62_spill] sm:$0xff] }
 0x3a8   :  { %v4576_v4 = vadd.f32 %v16339_v59, %v4411_v2  ;;  %v20588_v24 = vand.u32 4294901760, %v4558_v21  ;;  %v4540_v34 = vadd.f32 %v20540_v3, %v4375_v55  ;;  %v20606_v19 = vsub.f32 %v4564_v35, %v20578_v20  ;;  %v25531_v35 = vld [vmem:[#allocation28_spill] sm:$0xff] }
 0x3a9   :  { %v4569_v32 = vpop.f32.mrf.mxu1  ;;  %v4162_v3 = vadd.f32 %v25522_v28, %v3976_v11  ;;  %v20622_v47 = vand.u32 4294901760, %v4546_v22  ;;  %v4528_v59 = vadd.f32 %v25527_v45, %v4363_v56  ;;  %v20657_v38 = vand.u32 4294901760, %v4534_v17  ;;  %v25536_v11 = vld [vmem:[#allocation40_spill] sm:$0xff]  ;;  %v25537_v28 = vld [vmem:[#allocation26_spill] sm:$0xff] }
 0x3aa   :  { %v20567_v63 = vand.u32 4294901760, %v4576_v4  ;;  %v4570_v8 = vadd.f32 %v4569_v32, %v4405_v53  ;;  %v20626_v36 = vsub.f32 %v4558_v21, %v20588_v24  ;;  %v20639_v44 = vand.u32 4294901760, %v4540_v34  ;;  %v25530_v32 = vld [vmem:[#allocation36_spill] sm:$0xff] }
 0x3ab   :  { %v16342_v1 = vpop.f32.mrf.mxu1  ;;  %v4357_v7 = vadd.f32 %v25526_v60, %v4162_v3  ;;  %v20651_v13 = vand.u32 4294901760, %v20606_v19  ;;  %v20661_v25 = vsub.f32 %v4546_v22, %v20622_v47  ;;  %v25533_v21 = vld [vmem:[#allocation64_spill] sm:$0xff]  ;;  %v4345_v31 = vadd.f32 %v25534_v46, %v4146_v30  ;;  %v4592_v22 = vld [vmem:[#allocation5 + $0x30] sm:$0xff]  ;;  %v25538_v3 = vld [vmem:[#allocation78_spill] sm:$0xff] }
 0x3ac   :  { %v20574_v37 = vand.u32 4294901760, %v4570_v8  ;;  %v4588_v33 = vadd.f32 %v16342_v1, %v4423_v51  ;;  %v20581_v41 = vsub.f32 %v4576_v4, %v20567_v63  ;;  %v4351_v51 = vadd.f32 %v25530_v32, %v25529_v15  ;;  %v25540_v45 = vld [vmem:[#allocation68_spill] sm:$0xff] }
 0x3ad   :  { %v4581_v27 = vpop.f32.mrf.mxu1  ;;  %v20667_v1 = vand.u32 4294901760, %v20626_v36  ;;  %v4792_v48 = vsub.f32 %v20606_v19, %v20651_v13  ;;  %v20683_v55 = vand.u32 4294901760, %v20642_v42  ;;  %v4339_v39 = vadd.f32 %v25538_v3, %v25537_v28 }
 0x3ae   :  { %v20583_v29 = vand.u32 4294901760, %v4588_v33  ;;  %v4582_v52 = vadd.f32 %v4581_v27, %v4417_v23  ;;  %v20591_v40 = vsub.f32 %v4570_v8, %v20574_v37  ;;  %v20616_v9 = vand.u32 4294901760, %v20581_v41  ;;  %v25532_v23 = vld [vmem:[#allocation63_spill] sm:$0xff] }
 0x3af   :  { %v4522_v8 = vadd.f32 %v25531_v35, %v4357_v7  ;;  %v4516_v57 = vadd.f32 %v25535_v0, %v4351_v51  ;;  %v20673_v27 = vand.u32 4294901760, %v4528_v59  ;;  %v4510_v56 = vadd.f32 %v25539_v18, %v4345_v31  ;;  %v25542_v35 = vld [vmem:[#allocation44_spill] sm:$0xff] }
 0x3b0   :  { %v20594_v61 = vsub.f32 %v4588_v33, %v20583_v29  ;;  %v20596_v26 = vand.u32 4294901760, %v4582_v52  ;;  %16343 = vmatprep.subr.mxu0 %v20583_v29  ;;  %v20635_v6 = vand.u32 4294901760, %v20591_v40  ;;  %v4778_v58 = vsub.f32 %v20581_v41, %v20616_v9 }
 0x3b1   :  { %16344 = vmatpush3.msra.mxu0 %v20583_v29  ;;  %v3948_v33 = vadd.f32 %v25533_v21, %v25532_v23  ;;  %v20693_v62 = vsub.f32 %v4534_v17, %v20657_v38  ;;  %v4799_v60 = vsub.f32 %v20626_v36, %v20667_v1  ;;  %v20699_v7 = vand.u32 4294901760, %v20661_v25 }
 0x3b2   :  { %v20609_v5 = vsub.f32 %v4582_v52, %v20596_v26  ;;  %16345 = vmatprep.subr.mxu0 %v20596_v26  ;;  %v20613_v49 = vand.u32 4294901760, %v20594_v61  ;;  %v4785_v16 = vsub.f32 %v20591_v40, %v20635_v6  ;;  %v20677_v52 = vsub.f32 %v4540_v34, %v20639_v44 }
 0x3b3   :  { %16346 = vmatpush3.msra.mxu0 %v20596_v26  ;;  %v4779_v12 = vand.u32 4294901760, %v4778_v58  ;;  %v4130_v54 = vadd.f32 %v25536_v11, %v3948_v33  ;;  %v20689_v34 = vand.u32 4294901760, %v4522_v8  ;;  %v20703_v10 = vand.u32 4294901760, %v4516_v57 }
 0x3b4   :  { %16347 = vmatprep.subr.mxu0 %v20567_v63  ;;  %v4764_v14 = vsub.f32 %v20594_v61, %v20613_v49  ;;  %v20632_v2 = vand.u32 4294901760, %v20609_v5  ;;  %v20706_v17 = vand.u32 4294901760, %v4592_v22  ;;  %v20709_v30 = vsub.f32 %v4528_v59, %v20673_v27 }
 0x3b5   :  { %16348 = vmatpush3.msra.mxu0 %v20567_v63  ;;  %v4793_v15 = vand.u32 4294901760, %v4792_v48  ;;  %v4806_v32 = vsub.f32 %v20642_v42, %v20683_v55  ;;  %v20715_v51 = vand.u32 4294901760, %v20677_v52  ;;  %v20722_v59 = vsub.f32 %v4522_v8, %v20689_v34 }
 0x3b6   :  { %16349 = vmatprep.subr.mxu0 %v20574_v37  ;;  %v4765_v53 = vand.u32 4294901760, %v4764_v14  ;;  %v4771_v4 = vsub.f32 %v20609_v5, %v20632_v2  ;;  %v4786_v14 = vand.u32 4294901760, %v4785_v16  ;;  %v20718_v16 = vand.u32 4294901760, %v4510_v56 }
 0x3b7   :  { %16350 = vmatpush3.msra.mxu0 %v20574_v37  ;;  %v4800_v23 = vand.u32 4294901760, %v4799_v60  ;;  %v4813_v21 = vsub.f32 %v20661_v25, %v20699_v7  ;;  %v20728_v33 = vand.u32 4294901760, %v20693_v62  ;;  %v20734_v31 = vsub.f32 %v4592_v22, %v20706_v17 }
 0x3b8   :  { %16351 = vmatprep.subr.mxu0 %v20578_v20  ;;  %16387 = vmatprep.subr.mxu1 %v4765_v53  ;;  %v4772_v50 = vand.u32 4294901760, %v4771_v4  ;;  %v25541_v4 = vld [vmem:[#allocation65_spill] sm:$0xff]  ;;  %v20737_v8 = vsub.f32 %v4516_v57, %v20703_v10  ;;  %v4807_v0 = vand.u32 4294901760, %v4806_v32  ;;  %v20743_v48 = vand.u32 4294901760, %v20709_v30 }
 0x3b9   :  { %16352 = vmatpush3.msra.mxu0 %v20578_v20  ;;  %16388 = vmatpush3.msra.mxu1 %v4765_v53  ;;  %v4333_v53 = vadd.f32 %v25540_v45, %v4130_v54  ;;  %v4504_v58 = vadd.f32 %v25541_v4, %v4339_v39  ;;  %v20749_v22 = vsub.f32 %v4510_v56, %v20718_v16  ;;  %v4814_v57 = vand.u32 4294901760, %v4813_v21 }
 0x3ba   :  { %16353 = vmatprep.subr.mxu0 %v20588_v24  ;;  %16389 = vmatprep.subr.mxu1 %v4772_v50  ;;  %v4827_v54 = vsub.f32 %v20693_v62, %v20728_v33  ;;  %v20755_v28 = vand.u32 4294901760, %v20722_v59  ;;  %v24819_v3 = vand.u32 4294901760, %v20734_v31  ;;  %v4834_v56 = vsub.f32 %v20709_v30, %v20743_v48 }
 0x3bb   :  { %16354 = vmatpush3.msra.mxu0 %v20588_v24  ;;  %16390 = vmatpush3.msra.mxu1 %v4772_v50  ;;  %v4498_v50 = vadd.f32 %v25542_v35, %v4333_v53  ;;  %v20730_v46 = vand.u32 4294901760, %v4504_v58  ;;  %v20776_v4 = vand.u32 4294901760, %v20749_v22 }
 0x3bc   :  { %16355 = vmatprep.subr.mxu0 %v20602_v43  ;;  %16391 = vmatprep.subr.mxu1 %v4779_v12  ;;  %v4828_v45 = vand.u32 4294901760, %v4827_v54  ;;  %v4841_v53 = vsub.f32 %v20722_v59, %v20755_v28 }
 0x3bd   :  { %16356 = vmatpush3.msra.mxu0 %v20602_v43  ;;  %16392 = vmatpush3.msra.mxu1 %v4779_v12  ;;  %v4820_v12 = vsub.f32 %v20677_v52, %v20715_v51  ;;  %v20745_v11 = vand.u32 4294901760, %v4498_v50  ;;  %v20760_v39 = vsub.f32 %v4504_v58, %v20730_v46  ;;  %v4693_v58 = vsub.f32 %v20734_v31, %v24819_v3 }
 0x3be   :  { %16357 = vmatprep.subr.mxu0 %v20622_v47  ;;  %16393 = vmatprep.subr.mxu1 %v4786_v14 }
 0x3bf   :  { %16358 = vmatpush3.msra.mxu0 %v20622_v47  ;;  %16394 = vmatpush3.msra.mxu1 %v4786_v14  ;;  %v4821_v18 = vand.u32 4294901760, %v4820_v12  ;;  %v20766_v14 = vand.u32 4294901760, %v20737_v8  ;;  %v20770_v60 = vsub.f32 %v4498_v50, %v20745_v11  ;;  %v20786_v35 = vand.u32 4294901760, %v20760_v39  ;;  %v4593_v12 = vld [vmem:[#allocation5 + $0x50] sm:$0xff] }
 0x3c0   :  { %16359 = vmatprep.subr.mxu0 %v20639_v44  ;;  %16395 = vmatprep.subr.mxu1 %v4793_v15  ;;  %v4842_v50 = vand.u32 4294901760, %v4841_v53  ;;  %v20803_v53 = vand.u32 4294901760, %v4593_v12 }
 0x3c1   :  { %16360 = vmatpush3.msra.mxu0 %v20639_v44  ;;  %16396 = vmatpush3.msra.mxu1 %v4793_v15  ;;  %v4835_v15 = vand.u32 4294901760, %v4834_v56  ;;  %v4848_v32 = vsub.f32 %v20737_v8, %v20766_v14  ;;  %v20793_v21 = vand.u32 4294901760, %v20770_v60  ;;  %v4862_v54 = vsub.f32 %v20760_v39, %v20786_v35 }
 0x3c2   :  { %16361 = vmatprep.subr.mxu0 %v20657_v38  ;;  %16397 = vmatprep.subr.mxu1 %v4800_v23  ;;  %v20811_v3 = vsub.f32 %v4593_v12, %v20803_v53  ;;  %v4597_v12 = vld [vmem:[#allocation5 + $0xd0] sm:$0xff] }
 0x3c3   :  { %16362 = vmatpush3.msra.mxu0 %v20657_v38  ;;  %16398 = vmatpush3.msra.mxu1 %v4800_v23  ;;  %v4855_v23 = vsub.f32 %v20749_v22, %v20776_v4 }
 0x3c4   :  { %16363 = vmatprep.subr.mxu0 %v20673_v27  ;;  %16399 = vmatprep.subr.mxu1 %v4807_v0 }
 0x3c5   :  { %16364 = vmatpush3.msra.mxu0 %v20673_v27  ;;  %16400 = vmatpush3.msra.mxu1 %v4807_v0  ;;  %v4694_v0 = vand.u32 4294901760, %v4693_v58  ;;  %v4856_v56 = vand.u32 4294901760, %v4855_v23 }
 0x3c6   :  { %16365 = vmatprep.subr.mxu0 %v20689_v34  ;;  %16401 = vmatprep.subr.mxu1 %v4814_v57 }
 0x3c7   :  { %16366 = vmatpush3.msra.mxu0 %v20689_v34  ;;  %16402 = vmatpush3.msra.mxu1 %v4814_v57  ;;  %v4849_v57 = vand.u32 4294901760, %v4848_v32  ;;  %v4595_v32 = vld [vmem:[#allocation5 + $0x90] sm:$0xff] }
 0x3c8   :  { %16367 = vmatprep.subr.mxu0 %v20703_v10  ;;  %16403 = vmatprep.subr.mxu1 %v4821_v18 }
 0x3c9   :  { %16368 = vmatpush3.msra.mxu0 %v20703_v10  ;;  %16404 = vmatpush3.msra.mxu1 %v4821_v18  ;;  %v4594_v18 = vld [vmem:[#allocation5 + $0x70] sm:$0xff] }
 0x3ca   :  { %16369 = vmatprep.subr.mxu0 %v20718_v16  ;;  %16405 = vmatprep.subr.mxu1 %v4828_v45  ;;  %v20805_v58 = vand.u32 4294901760, %v4594_v18 }
 0x3cb   :  { %16370 = vmatpush3.msra.mxu0 %v20718_v16  ;;  %16406 = vmatpush3.msra.mxu1 %v4828_v45  ;;  %v4869_v45 = vsub.f32 %v20770_v60, %v20793_v21 }
 0x3cc   :  { %16371 = vmatprep.subr.mxu0 %v20730_v46  ;;  %16407 = vmatprep.subr.mxu1 %v4835_v15 }
 0x3cd   :  { %16372 = vmatpush3.msra.mxu0 %v20730_v46  ;;  %16408 = vmatpush3.msra.mxu1 %v4835_v15  ;;  %v4863_v15 = vand.u32 4294901760, %v4862_v54  ;;  %v4870_v23 = vand.u32 4294901760, %v4869_v45 }
 0x3ce   :  { %16373 = vmatprep.subr.mxu0 %v20745_v11  ;;  %16409 = vmatprep.subr.mxu1 %v4842_v50 }
 0x3cf   :  { %16374 = vmatpush3.msra.mxu0 %v20745_v11  ;;  %16410 = vmatpush3.msra.mxu1 %v4842_v50  ;;  %v4596_v50 = vld [vmem:[#allocation5 + $0xb0] sm:$0xff] }
 0x3d0   :  { %16411 = vmatprep.subr.mxu1 %v4849_v57  ;;  %16431 = vmatprep.subr.mxu0 %v20594_v61 }
 0x3d1   :  { %16376 = vmatmul.mubr.f32.vlgmr.msra.gmra.mxu0 %v4694_v0  ;;  %16412 = vmatpush3.msra.mxu1 %v4849_v57  ;;  %v20815_v0 = vsub.f32 %v4594_v18, %v20805_v58  ;;  %v20820_v57 = vand.u32 4294901760, %v4596_v50  ;;  %v4598_v18 = vld [vmem:[#allocation5 + $0xf0] sm:$0xff] }
 0x3d2   :  { %16432 = vmatpush3.msra.mxu0 %v20594_v61  ;;  %16413 = vmatprep.subr.mxu1 %v4856_v56  ;;  %v20817_v61 = vand.u32 4294901760, %v4595_v32 }
 0x3d3   :  { %16433 = vmatprep.subr.mxu0 %v20609_v5  ;;  %16414 = vmatpush3.msra.mxu1 %v4856_v56  ;;  %v24820_v54 = vand.u32 4294901760, %v20815_v0  ;;  %v20839_v56 = vand.u32 4294901760, %v4597_v12 }
 0x3d4   :  { %16434 = vmatpush3.msra.mxu0 %v20609_v5  ;;  %16415 = vmatprep.subr.mxu1 %v4863_v15  ;;  %v24821_v5 = vand.u32 4294901760, %v20811_v3 }
 0x3d5   :  { %16435 = vmatprep.subr.mxu0 %v20581_v41  ;;  %16416 = vmatpush3.msra.mxu1 %v4863_v15  ;;  %v4713_v15 = vsub.f32 %v20815_v0, %v24820_v54 }
 0x3d6   :  { %16436 = vmatpush3.msra.mxu0 %v20581_v41  ;;  %16417 = vmatprep.subr.mxu1 %v4870_v23  ;;  %v20830_v41 = vsub.f32 %v4595_v32, %v20817_v61  ;;  %v4703_v45 = vsub.f32 %v20811_v3, %v24821_v5 }
 0x3d7   :  { %16437 = vmatprep.subr.mxu0 %v20591_v40  ;;  %16418 = vmatpush3.msra.mxu1 %v4870_v23 }
 0x3d8   :  { %16438 = vmatpush3.msra.mxu0 %v20591_v40  ;;  %16420 = vmatmul.mubr.f32.vlgmr.msra.gmra.mxu1 %v20706_v17  ;;  %v20835_v40 = vsub.f32 %v4596_v50, %v20820_v57  ;;  %v4722_v32 = vand.u32 4294901760, %v20830_v41  ;;  %v20860_v50 = vsub.f32 %v4597_v12, %v20839_v56  ;;  %v4704_v23 = vand.u32 4294901760, %v4703_v45 }
 0x3d9   :  { %16439 = vmatprep.subr.mxu0 %v20606_v19  ;;  %16475 = vmatprep.subr.mxu1 %v20583_v29 }
 0x3da   :  { %16440 = vmatpush3.msra.mxu0 %v20606_v19  ;;  %16476 = vmatpush3.msra.mxu1 %v20583_v29  ;;  %v20846_v19 = vand.u32 4294901760, %v4598_v18  ;;  %v4723_v5 = vsub.f32 %v20830_v41, %v4722_v32  ;;  %v4742_v12 = vand.u32 4294901760, %v20860_v50 }
 0x3db   :  { %16441 = vmatprep.subr.mxu0 %v20626_v36  ;;  %16477 = vmatprep.subr.mxu1 %v20596_v26 }
 0x3dc   :  { %16442 = vmatpush3.msra.mxu0 %v20626_v36  ;;  %16478 = vmatpush3.msra.mxu1 %v20596_v26  ;;  %v4732_v36 = vand.u32 4294901760, %v20835_v40  ;;  %v20865_v54 = vsub.f32 %v4598_v18, %v20846_v19 }
 0x3dd   :  { %16443 = vmatprep.subr.mxu0 %v20642_v42  ;;  %16479 = vmatprep.subr.mxu1 %v20567_v63 }
 0x3de   :  { %16444 = vmatpush3.msra.mxu0 %v20642_v42  ;;  %16480 = vmatpush3.msra.mxu1 %v20567_v63  ;;  %v4714_v42 = vand.u32 4294901760, %v4713_v15  ;;  %v4752_v18 = vand.u32 4294901760, %v20865_v54  ;;  %v4743_v15 = vsub.f32 %v20860_v50, %v4742_v12 }
 0x3df   :  { %16445 = vmatprep.subr.mxu0 %v20661_v25  ;;  %16481 = vmatprep.subr.mxu1 %v20574_v37 }
 0x3e0   :  { %16446 = vmatpush3.msra.mxu0 %v20661_v25  ;;  %16482 = vmatpush3.msra.mxu1 %v20574_v37  ;;  %v4733_v25 = vsub.f32 %v20835_v40, %v4732_v36 }
 0x3e1   :  { %16447 = vmatprep.subr.mxu0 %v20677_v52  ;;  %16483 = vmatprep.subr.mxu1 %v20578_v20 }
 0x3e2   :  { %16448 = vmatpush3.msra.mxu0 %v20677_v52  ;;  %16484 = vmatpush3.msra.mxu1 %v20578_v20  ;;  %v4724_v52 = vand.u32 4294901760, %v4723_v5  ;;  %v4734_v45 = vand.u32 4294901760, %v4733_v25 }
 0x3e3   :  { %16449 = vmatprep.subr.mxu0 %v20693_v62  ;;  %16485 = vmatprep.subr.mxu1 %v20588_v24 }
 0x3e4   :  { %16378 = vmatprep.mubr.f32.mxu0 %v4704_v23  ;;  %16450 = vmatpush3.msra.mxu0 %v20693_v62  ;;  %v4753_v62 = vsub.f32 %v20865_v54, %v4752_v18 }
 0x3e5   :  { %16486 = vmatpush3.msra.mxu1 %v20588_v24  ;;  %16379 = vmatmul.mubr.f32.gmra.mxu0 %v4714_v42 }
 0x3e6   :  { %16451 = vmatprep.subr.mxu0 %v20709_v30  ;;  %16487 = vmatprep.subr.mxu1 %v20602_v43  ;;  %v4754_v5 = vand.u32 4294901760, %v4753_v62 }
 0x3e7   :  { %16452 = vmatpush3.msra.mxu0 %v20709_v30  ;;  %16488 = vmatpush3.msra.mxu1 %v20602_v43  ;;  %v4744_v30 = vand.u32 4294901760, %v4743_v15 }
 0x3e8   :  { %16453 = vmatprep.subr.mxu0 %v20722_v59  ;;  %16489 = vmatprep.subr.mxu1 %v20622_v47 }
 0x3e9   :  { %16381 = vmatprep.mubr.f32.mxu0 %v4724_v52  ;;  %16454 = vmatpush3.msra.mxu0 %v20722_v59  ;;  %v25543_v59 = vld [vmem:[#allocation60_spill] sm:$0xff] }
 0x3ea   :  { %16490 = vmatpush3.msra.mxu1 %v20622_v47  ;;  %16382 = vmatmul.mubr.f32.gmra.mxu0 %v4734_v45 }
 0x3eb   :  { %16422 = vmatprep.mubr.f32.mxu1 %v20803_v53  ;;  %16455 = vmatprep.subr.mxu0 %v20737_v8 }
 0x3ec   :  { %16491 = vmatprep.subr.mxu1 %v20639_v44  ;;  %16423 = vmatmul.mubr.f32.gmra.mxu1 %v20805_v58 }
 0x3ed   :  { %16456 = vmatpush3.msra.mxu0 %v20737_v8  ;;  %16492 = vmatpush3.msra.mxu1 %v20639_v44 }
 0x3ee   :  { %16457 = vmatprep.subr.mxu0 %v20749_v22  ;;  %16493 = vmatprep.subr.mxu1 %v20657_v38 }
 0x3ef   :  { %16384 = vmatprep.mubr.f32.mxu0 %v4744_v30  ;;  %16458 = vmatpush3.msra.mxu0 %v20749_v22 }
 0x3f0   :  { %16494 = vmatpush3.msra.mxu1 %v20657_v38  ;;  %16385 = vmatmul.mubr.f32.gmra.mxu0 %v4754_v5 }
 0x3f1   :  { %16425 = vmatprep.mubr.f32.mxu1 %v20817_v61  ;;  %16459 = vmatprep.subr.mxu0 %v20760_v39 }
 0x3f2   :  { %16495 = vmatprep.subr.mxu1 %v20673_v27  ;;  %16426 = vmatmul.mubr.f32.gmra.mxu1 %v20820_v57 }
 0x3f3   :  { %16460 = vmatpush3.msra.mxu0 %v20760_v39  ;;  %16496 = vmatpush3.msra.mxu1 %v20673_v27 }
 0x3f4   :  { %16461 = vmatprep.subr.mxu0 %v20770_v60  ;;  %16497 = vmatprep.subr.mxu1 %v20689_v34 }
 0x3f5   :  { %16462 = vmatpush3.msra.mxu0 %v20770_v60  ;;  %16463 = vmatprep.mubr.f32.mxu0 %v25543_v59 }
 0x3f6   :  { %16498 = vmatpush3.msra.mxu1 %v20689_v34  ;;  %16428 = vmatprep.mubr.f32.mxu1 %v20839_v56 }
 0x3f7   :  { %16464 = vmatmul.mubr.f32.vlgmr.msra.gmra.mxu0 %v20734_v31  ;;  %16499 = vmatprep.subr.mxu1 %v20703_v10 }
 0x3f8   :  { %16519 = vmatprep.subr.mxu0 %v20613_v49  ;;  %16429 = vmatmul.mubr.f32.gmra.mxu1 %v20846_v19 }
 0x3f9   :  { %16500 = vmatpush3.msra.mxu1 %v20703_v10  ;;  %16520 = vmatpush3.msra.mxu0 %v20613_v49  ;;  %v25544_v49 = vand.u32 4294901760, %v25543_v59 }
 0x3fa   :  { %16501 = vmatprep.subr.mxu1 %v20718_v16  ;;  %16521 = vmatprep.subr.mxu0 %v20632_v2 }
 0x3fb   :  { %16466 = vmatprep.mubr.f32.mxu0 %v20811_v3  ;;  %16502 = vmatpush3.msra.mxu1 %v20718_v16 }
 0x3fc   :  { %16522 = vmatpush3.msra.mxu0 %v20632_v2  ;;  %16503 = vmatprep.subr.mxu1 %v20730_v46  ;;  %v25545_v2 = vand.u32 4294901760, %v20734_v31  ;;  %v25548_v31 = vld [vmem:[#allocation21_spill] sm:$0xff] }
 0x3fd   :  { %16467 = vmatmul.mubr.f32.gmra.mxu0 %v20815_v0  ;;  %16523 = vmatprep.subr.mxu0 %v20616_v9 }
 0x3fe   :  { %16504 = vmatpush3.msra.mxu1 %v20730_v46  ;;  %16524 = vmatpush3.msra.mxu0 %v20616_v9  ;;  %v25546_v9 = vand.u32 4294901760, %v20811_v3 }
 0x3ff   :  { %16505 = vmatprep.subr.mxu1 %v20745_v11  ;;  %16525 = vmatprep.subr.mxu0 %v20635_v6 }
 0x400   :  { %16469 = vmatprep.mubr.f32.mxu0 %v20830_v41  ;;  %16506 = vmatpush3.msra.mxu1 %v20745_v11 }
 0x401   :  { %16507 = vmatprep.mubr.f32.mxu1 %v25544_v49  ;;  %16526 = vmatpush3.msra.mxu0 %v20635_v6  ;;  %v25547_v6 = vand.u32 4294901760, %v20815_v0 }
 0x402   :  { %16470 = vmatmul.mubr.f32.gmra.mxu0 %v20835_v40  ;;  %16508 = vmatmul.mubr.f32.vlgmr.msra.gmra.mxu1 %v25545_v2 }
 0x403   :  { %16527 = vmatprep.subr.mxu0 %v20651_v13  ;;  %16563 = vmatprep.subr.mxu1 %v20583_v29 }
 0x404   :  { %16528 = vmatpush3.msra.mxu0 %v20651_v13  ;;  %16564 = vmatpush3.msra.mxu1 %v20583_v29 }
 0x405   :  { %16529 = vmatprep.subr.mxu0 %v20667_v1  ;;  %16565 = vmatprep.subr.mxu1 %v20596_v26 }
 0x406   :  { %16472 = vmatprep.mubr.f32.mxu0 %v20860_v50  ;;  %16510 = vmatprep.mubr.f32.mxu1 %v25546_v9 }
 0x407   :  { %16530 = vmatpush3.msra.mxu0 %v20667_v1  ;;  %16566 = vmatpush3.msra.mxu1 %v20596_v26  ;;  %v5567_v26 = vld [vmem:[#allocation10 + $0x10] sm:$0xff] }
 0x408   :  { %16473 = vmatmul.mubr.f32.gmra.mxu0 %v20865_v54  ;;  %16511 = vmatmul.mubr.f32.gmra.mxu1 %v25547_v6  ;;  %v5578_v1 = vsel %vm5570_vm3, %v5567_v26, 0 }
 0x409   :  { %16531 = vmatprep.subr.mxu0 %v20683_v55  ;;  %16567 = vmatprep.subr.mxu1 %v20567_v63 }
 0x40a   :  { %16532 = vmatpush3.msra.mxu0 %v20683_v55  ;;  %16568 = vmatpush3.msra.mxu1 %v20567_v63  ;;  %v5569_v63 = vld [vmem:[#allocation2 + $0x60] sm:$0xff] }
 0x40b   :  { %16533 = vmatprep.subr.mxu0 %v20699_v7  ;;  %16569 = vmatprep.subr.mxu1 %v20574_v37 }
 0x40c   :  { %16513 = vmatprep.mubr.f32.mxu1 %v4722_v32  ;;  %16534 = vmatpush3.msra.mxu0 %v20699_v7 }
 0x40d   :  { %16570 = vmatpush3.msra.mxu1 %v20574_v37  ;;  %16535 = vmatprep.subr.mxu0 %v20715_v51  ;;  %v5565_v37 = vld [vmem:[#allocation10] sm:$0xff] }
 0x40e   :  { %16514 = vmatmul.mubr.f32.gmra.mxu1 %v4732_v36  ;;  %16571 = vmatprep.subr.mxu1 %v20578_v20  ;;  %v5572_v29 = vsel %vm5570_vm3, %v5565_v37, 0 }
 0x40f   :  { %16536 = vmatpush3.msra.mxu0 %v20715_v51  ;;  %16572 = vmatpush3.msra.mxu1 %v20578_v20  ;;  %v20989_v20 = vand.u32 4294901760, %v5569_v63  ;;  %v21018_v51 = vand.u32 4294901760, %v5578_v1 }
 0x410   :  { %16537 = vmatprep.subr.mxu0 %v20728_v33  ;;  %16573 = vmatprep.subr.mxu1 %v20588_v24 }
 0x411   :  { %16516 = vmatprep.mubr.f32.mxu1 %v4742_v12  ;;  %16538 = vmatpush3.msra.mxu0 %v20728_v33  ;;  %v21005_v55 = vsub.f32 %v5569_v63, %v20989_v20  ;;  %v21039_v22 = vsub.f32 %v5578_v1, %v21018_v51 }
 0x412   :  { %16574 = vmatpush3.msra.mxu1 %v20588_v24  ;;  %16539 = vmatprep.subr.mxu0 %v20743_v48  ;;  %v5566_v24 = vld [vmem:[#allocation10 + $0x8] sm:$0xff] }
 0x413   :  { %16517 = vmatmul.mubr.f32.gmra.mxu1 %v4752_v18  ;;  %16575 = vmatprep.subr.mxu1 %v20602_v43  ;;  %v5575_v13 = vsel %vm5570_vm3, %v5566_v24, 0  ;;  %v5671_v39 = vand.u32 4294901760, %v21039_v22 }
 0x414   :  { %16540 = vmatpush3.msra.mxu0 %v20743_v48  ;;  %16576 = vmatpush3.msra.mxu1 %v20602_v43  ;;  %v20998_v43 = vand.u32 4294901760, %v5572_v29 }
 0x415   :  { %16541 = vmatprep.subr.mxu0 %v20755_v28  ;;  %16577 = vmatprep.subr.mxu1 %v20622_v47 }
 0x416   :  { %16542 = vmatpush3.msra.mxu0 %v20755_v28  ;;  %16578 = vmatpush3.msra.mxu1 %v20622_v47  ;;  %v5568_v47 = vld [vmem:[#allocation10 + $0x18] sm:$0xff]  ;;  %v21016_v7 = vsub.f32 %v5572_v29, %v20998_v43 }
 0x417   :  { %16543 = vmatprep.subr.mxu0 %v20766_v14  ;;  %16579 = vmatprep.subr.mxu1 %v20639_v44  ;;  %v5581_v33 = vsel %vm5570_vm3, %v5568_v47, 0 }
 0x418   :  { %16544 = vmatpush3.msra.mxu0 %v20766_v14  ;;  %16580 = vmatpush3.msra.mxu1 %v20639_v44  ;;  %v21011_v44 = vand.u32 4294901760, %v5575_v13  ;;  %v21033_v8 = vand.u32 4294901760, %v5581_v33  ;;  %v5651_v48 = vand.u32 4294901760, %v21016_v7 }
 0x419   :  { %16545 = vmatprep.subr.mxu0 %v20776_v4  ;;  %16581 = vmatprep.subr.mxu1 %v20657_v38 }
 0x41a   :  { %16546 = vmatpush3.msra.mxu0 %v20776_v4  ;;  %16582 = vmatpush3.msra.mxu1 %v20657_v38  ;;  %v21024_v38 = vand.u32 4294901760, %v21005_v55  ;;  %v5680_v3 = vsub.f32 %v5581_v33, %v21033_v8 }
 0x41b   :  { %16547 = vmatprep.subr.mxu0 %v20786_v35  ;;  %16583 = vmatprep.subr.mxu1 %v20673_v27 }
 0x41c   :  { %16548 = vmatpush3.msra.mxu0 %v20786_v35  ;;  %16584 = vmatpush3.msra.mxu1 %v20673_v27  ;;  %v21031_v27 = vsub.f32 %v5575_v13, %v21011_v44  ;;  %v5681_v60 = vand.u32 4294901760, %v5680_v3 }
 0x41d   :  { %16549 = vmatprep.subr.mxu0 %v20793_v21  ;;  %16585 = vmatprep.subr.mxu1 %v20689_v34 }
 0x41e   :  { %16550 = vmatpush3.msra.mxu0 %v20793_v21  ;;  %16551 = vmatprep.mubr.f32.mxu0 %v25548_v31  ;;  %v5661_v28 = vand.u32 4294901760, %v21031_v27 }
 0x41f   :  { %16586 = vmatpush3.msra.mxu1 %v20689_v34  ;;  %16552 = vmatmul.mubr.f32.vlgmr.msra.gmra.mxu0 %v20706_v17  ;;  %v5723_v34 = vsub.f32 %v21005_v55, %v21024_v38 }
 0x420   :  { %16587 = vmatprep.subr.mxu1 %v20703_v10  ;;  %16554 = vmatprep.mubr.f32.mxu0 %v20803_v53 }
 0x421   :  { %16588 = vmatpush3.msra.mxu1 %v20703_v10  ;;  %16595 = vmatprep.mubr.f32.mxu1 %v25548_v31  ;;  %v5652_v10 = vsub.f32 %v21016_v7, %v5651_v48  ;;  %v5724_v14 = vand.u32 4294901760, %v5723_v34 }
 0x422   :  { %16589 = vmatprep.subr.mxu1 %v20718_v16  ;;  %16607 = vmatprep.subr.mxu0 %v20989_v20 }
 0x423   :  { %16590 = vmatpush3.msra.mxu1 %v20718_v16  ;;  %16555 = vmatmul.mubr.f32.gmra.mxu0 %v20805_v58  ;;  %v5662_v16 = vsub.f32 %v21031_v27, %v5661_v28  ;;  %v5653_v4 = vand.u32 4294901760, %v5652_v10 }
 0x424   :  { %16591 = vmatprep.subr.mxu1 %v20730_v46  ;;  %16557 = vmatprep.mubr.f32.mxu0 %v20817_v61 }
 0x425   :  { %16592 = vmatpush3.msra.mxu1 %v20730_v46  ;;  %16608 = vmatpush3.msra.mxu0 %v20989_v20  ;;  %v5672_v46 = vsub.f32 %v21039_v22, %v5671_v39  ;;  %v5663_v35 = vand.u32 4294901760, %v5662_v16 }
 0x426   :  { %16593 = vmatprep.subr.mxu1 %v20745_v11  ;;  %16623 = vmatprep.subr.mxu0 %v21005_v55 }
 0x427   :  { %16594 = vmatpush3.msra.mxu1 %v20745_v11  ;;  %16558 = vmatmul.mubr.f32.gmra.mxu0 %v20820_v57  ;;  %v5682_v11 = vsub.f32 %v5680_v3, %v5681_v60  ;;  %v5673_v21 = vand.u32 4294901760, %v5672_v46 }
 0x428   :  { %16596 = vmatmul.mubr.f32.vlgmr.msra.gmra.mxu1 %v20706_v17  ;;  %16560 = vmatprep.mubr.f32.mxu0 %v20839_v56 }
 0x429   :  { %16598 = vmatprep.mubr.f32.mxu1 %v20803_v53  ;;  %16615 = vmatprep.subr.mxu1 %v5724_v14  ;;  %v5683_v17 = vand.u32 4294901760, %v5682_v11  ;;  %v6158_v53 = vld [vmem:[#allocation5 + $0x18] sm:$0xff] }
 0x42a   :  { %16616 = vmatpush3.msra.mxu1 %v5724_v14 }
 0x42b   :  { %16561 = vmatmul.mubr.f32.gmra.mxu0 %v20846_v19  ;;  %16631 = vmatprep.subr.mxu1 %v20989_v20 }
 0x42c   :  { %16599 = vmatmul.mubr.f32.gmra.mxu1 %v20805_v58  ;;  %16609 = vmatprep.mubr.f32.mxu0 %v5653_v4  ;;  %v6167_v58 = vsel %vm3412_vm1, %v6158_v53, 0 }
 0x42d   :  { %16601 = vmatprep.mubr.f32.mxu1 %v20817_v61  ;;  %v21095_v0 = vand.u32 4294901760, %v6167_v58 }
 0x42f   :  { %16610 = vmatmul.mubr.f32.vlgmr.msra.gmra.mxu0 %v5663_v35  ;;  %v21098_v61 = vsub.f32 %v6167_v58, %v21095_v0 }
 0x430   :  { %16602 = vmatmul.mubr.f32.gmra.mxu1 %v20820_v57  ;;  %16612 = vmatprep.mubr.f32.mxu0 %v5673_v21 }
 0x431   :  { %16604 = vmatprep.mubr.f32.mxu1 %v20839_v56  ;;  %16624 = vmatpush3.msra.mxu0 %v21005_v55  ;;  %v6261_v57 = vand.u32 4294901760, %v21098_v61 }
 0x432   :  { %16639 = vmatprep.subr.mxu0 %v21024_v38 }
 0x433   :  { %16613 = vmatmul.mubr.f32.gmra.mxu0 %v5683_v17  ;;  %v6262_v54 = vsub.f32 %v21098_v61, %v6261_v57 }
 0x434   :  { %16605 = vmatmul.mubr.f32.gmra.mxu1 %v20846_v19  ;;  %16625 = vmatprep.mubr.f32.mxu0 %v21016_v7 }
 0x435   :  { %16617 = vmatprep.mubr.f32.mxu1 %v20998_v43  ;;  %v6263_v41 = vand.u32 4294901760, %v6262_v54 }
 0x437   :  { %16626 = vmatmul.mubr.f32.vlgmr.msra.gmra.mxu0 %v21031_v27 }
 0x438   :  { %16618 = vmatmul.mubr.f32.vlgmr.msra.gmra.mxu1 %v21011_v44  ;;  %16628 = vmatprep.mubr.f32.mxu0 %v21039_v22 }
 0x439   :  { %16620 = vmatprep.mubr.f32.mxu1 %v21018_v51  ;;  %16632 = vmatpush3.msra.mxu1 %v20989_v20 }
 0x43a   :  { %16640 = vmatpush3.msra.mxu0 %v21024_v38  ;;  %16647 = vmatprep.subr.mxu1 %v20989_v20 }
 0x43b   :  { %16629 = vmatmul.mubr.f32.gmra.mxu0 %v5680_v3 }
 0x43c   :  { %16621 = vmatmul.mubr.f32.gmra.mxu1 %v21033_v8  ;;  %16641 = vmatprep.mubr.f32.mxu0 %v20998_v43 }
 0x43d   :  { %16633 = vmatprep.mubr.f32.mxu1 %v5651_v48 }
 0x43f   :  { %16642 = vmatmul.mubr.f32.vlgmr.msra.gmra.mxu0 %v21011_v44 }
 0x440   :  { %16634 = vmatmul.mubr.f32.vlgmr.msra.gmra.mxu1 %v5661_v28  ;;  %16644 = vmatprep.mubr.f32.mxu0 %v21018_v51 }
 0x441   :  { %16636 = vmatprep.mubr.f32.mxu1 %v5671_v39  ;;  %16648 = vmatpush3.msra.mxu1 %v20989_v20 }
 0x443   :  { %16645 = vmatmul.mubr.f32.gmra.mxu0 %v21033_v8 }
 0x444   :  { %16637 = vmatmul.mubr.f32.gmra.mxu1 %v5681_v60  ;;  %16663 = vmatprep.mubr.f32.mxu0 %v6263_v41 }
 0x445   :  { %16649 = vmatprep.mubr.f32.mxu1 %v20998_v43 }
 0x448   :  { %16650 = vmatmul.mubr.f32.vlgmr.msra.gmra.mxu1 %v21011_v44 }
 0x449   :  { %16652 = vmatprep.mubr.f32.mxu1 %v21018_v51 }
 0x44c   :  { %16653 = vmatmul.mubr.f32.gmra.mxu1 %v21033_v8 }
 0x44d   :  { %16683 = vmatprep.mubr.f32.mxu1 %v21095_v0 }
 0x491   :  { %v16377_v40 = vpop.f32.mrf.mxu0 }
 0x493   :  { %v4686_v56 = vpop.f32.mrf.mxu0 }
 0x498   :  { %v16421_v36 = vpop.f32.mrf.mxu1 }
 0x499   :  { %v4914_v47 = vadd.f32 %v16421_v36, %v16377_v40 }
 0x49a   :  { %v4907_v23 = vpop.f32.mrf.mxu1 }
 0x49b   :  { %v4908_v7 = vadd.f32 %v4907_v23, %v4686_v56 }
 0x4a5   :  { %v16380_v19 = vpop.f32.mrf.mxu0 }
 0x4a7   :  { %v4706_v32 = vpop.f32.mrf.mxu0 }
 0x4aa   :  { %v16383_v50 = vpop.f32.mrf.mxu0 }
 0x4ac   :  { %v16424_v42 = vpop.f32.mrf.mxu1  ;;  %v4726_v25 = vpop.f32.mrf.mxu0 }
 0x4ad   :  { %v4926_v38 = vadd.f32 %v16424_v42, %v16380_v19 }
 0x4ae   :  { %v4919_v12 = vpop.f32.mrf.mxu1 }
 0x4af   :  { %v4920_v22 = vadd.f32 %v4919_v12, %v4706_v32 }
 0x4b0   :  { %v16386_v18 = vpop.f32.mrf.mxu0 }
 0x4b2   :  { %v16427_v52 = vpop.f32.mrf.mxu1  ;;  %v4746_v45 = vpop.f32.mrf.mxu0 }
 0x4b3   :  { %v4938_v39 = vadd.f32 %v16427_v52, %v16383_v50 }
 0x4b4   :  { %v4931_v15 = vpop.f32.mrf.mxu1 }
 0x4b5   :  { %v4932_v11 = vadd.f32 %v4931_v15, %v4726_v25 }
 0x4b7   :  { %v16465_v62 = vpop.f32.mrf.mxu0 }
 0x4b8   :  { %v16430_v30 = vpop.f32.mrf.mxu1  ;;  %v5061_v51 = vadd.f32 %v16465_v62, %v4914_v47 }
 0x4b9   :  { %v5053_v5 = vpop.f32.mrf.mxu0  ;;  %v4950_v40 = vadd.f32 %v16430_v30, %v16386_v18 }
 0x4ba   :  { %v4943_v59 = vpop.f32.mrf.mxu1  ;;  %v5054_v31 = vadd.f32 %v5053_v5, %v4908_v7 }
 0x4bb   :  { %v4944_v42 = vadd.f32 %v4943_v59, %v4746_v45 }
 0x4bd   :  { %v16468_v49 = vpop.f32.mrf.mxu0 }
 0x4be   :  { %v5075_v34 = vadd.f32 %v16468_v49, %v4926_v38 }
 0x4bf   :  { %v5067_v9 = vpop.f32.mrf.mxu0 }
 0x4c0   :  { %v5068_v16 = vadd.f32 %v5067_v9, %v4920_v22 }
 0x4c2   :  { %v16509_v2 = vpop.f32.mrf.mxu1  ;;  %v16471_v63 = vpop.f32.mrf.mxu0 }
 0x4c3   :  { %v5200_v27 = vadd.f32 %v16509_v2, %v5061_v51  ;;  %v5089_v17 = vadd.f32 %v16471_v63, %v4938_v39 }
 0x4c4   :  { %v5191_v6 = vpop.f32.mrf.mxu1  ;;  %v5081_v20 = vpop.f32.mrf.mxu0 }
 0x4c5   :  { %v5192_v28 = vadd.f32 %v5191_v6, %v5054_v31  ;;  %v5082_v19 = vadd.f32 %v5081_v20, %v4932_v11 }
 0x4c8   :  { %v16512_v37 = vpop.f32.mrf.mxu1  ;;  %v16474_v24 = vpop.f32.mrf.mxu0 }
 0x4c9   :  { %v5216_v60 = vadd.f32 %v16512_v37, %v5075_v34  ;;  %v5103_v25 = vadd.f32 %v16474_v24, %v4950_v40 }
 0x4ca   :  { %v5207_v29 = vpop.f32.mrf.mxu1  ;;  %v5095_v43 = vpop.f32.mrf.mxu0 }
 0x4cb   :  { %v5208_v53 = vadd.f32 %v5207_v29, %v5068_v16  ;;  %v5096_v2 = vadd.f32 %v5095_v43, %v4944_v42  ;;  %v6160_v16 = vld [vmem:[#allocation5 + $0x58] sm:$0xff] }
 0x4ce   :  { %v16515_v26 = vpop.f32.mrf.mxu1 }
 0x4cf   :  { %v5232_v32 = vadd.f32 %v16515_v26, %v5089_v17 }
 0x4d0   :  { %v5223_v13 = vpop.f32.mrf.mxu1 }
 0x4d1   :  { %v5224_v52 = vadd.f32 %v5223_v13, %v5082_v19 }
 0x4d3   :  { %v16518_v44 = vpop.f32.mrf.mxu1 }
 0x4d4   :  { %v5248_v18 = vadd.f32 %v16518_v44, %v5103_v25 }
 0x4d5   :  { %v5239_v48 = vpop.f32.mrf.mxu1 }
 0x4d6   :  { %v5240_v37 = vadd.f32 %v5239_v48, %v5096_v2 }
 0x4df   :  { %v16553_v1 = vpop.f32.mrf.mxu0 }
 0x4e0   :  { %v5373_v3 = vadd.f32 %v16553_v1, %v5200_v27 }
 0x4e1   :  { %v5366_v55 = vpop.f32.mrf.mxu0 }
 0x4e2   :  { %v5367_v4 = vadd.f32 %v5366_v55, %v5192_v28 }
 0x4e3   :  { %v16556_v33 = vpop.f32.mrf.mxu0 }
 0x4e4   :  { %v5385_v58 = vadd.f32 %v16556_v33, %v5216_v60 }
 0x4e5   :  { %v5378_v8 = vpop.f32.mrf.mxu0 }
 0x4e6   :  { %v5379_v36 = vadd.f32 %v5378_v8, %v5208_v53  ;;  %v6159_v8 = vld [vmem:[#allocation5 + $0x38] sm:$0xff] }
 0x4e7   :  { %v16559_v10 = vpop.f32.mrf.mxu0 }
 0x4e8   :  { %v16597_v14 = vpop.f32.mrf.mxu1  ;;  %v5397_v15 = vadd.f32 %v16559_v10, %v5232_v32  ;;  %v6170_v10 = vsel %vm3412_vm1, %v6159_v8, 0 }
 0x4e9   :  { %v5502_v46 = vadd.f32 %v16597_v14, %v5373_v3  ;;  %v5390_v35 = vpop.f32.mrf.mxu0  ;;  %v21114_v11 = vand.u32 4294901760, %v6170_v10 }
 0x4ea   :  { %v5495_v21 = vpop.f32.mrf.mxu1  ;;  %v5391_v30 = vadd.f32 %v5390_v35, %v5224_v52 }
 0x4eb   :  { %5542 = vst.msk [vmem:[#allocation13 + $0x48] sm:$0xff] %vm3383_vm2, %v5502_v46  ;;  %v5496_v54 = vadd.f32 %v5495_v21, %v5367_v4  ;;  %v16562_v41 = vpop.f32.mrf.mxu0  ;;  %v6161_v21 = vld [vmem:[#allocation5 + $0x78] sm:$0xff] }
 0x4ec   :  { %v16600_v56 = vpop.f32.mrf.mxu1  ;;  %v5409_v20 = vadd.f32 %v16562_v41, %v5248_v18  ;;  %v6176_v32 = vsel %vm3412_vm1, %v6161_v21, 0 }
 0x4ed   :  { %5541 = vst.msk [vmem:[#allocation13 + $0x40] sm:$0xff] %vm3383_vm2, %v5496_v54  ;;  %v5514_v50 = vadd.f32 %v16600_v56, %v5385_v58  ;;  %v5402_v23 = vpop.f32.mrf.mxu0  ;;  %v6173_v58 = vsel %vm3412_vm1, %v6160_v16, 0 }
 0x4ee   :  { %v5507_v12 = vpop.f32.mrf.mxu1  ;;  %v5403_v24 = vadd.f32 %v5402_v23, %v5240_v37  ;;  %v21119_v23 = vsub.f32 %v6170_v10, %v21114_v11  ;;  %v21121_v42 = vand.u32 4294901760, %v6173_v58 }
 0x4ef   :  { %5544 = vst.msk [vmem:[#allocation13 + $0x58] sm:$0xff] %vm3383_vm2, %v5514_v50  ;;  %v5508_v62 = vadd.f32 %v5507_v12, %v5379_v36  ;;  %v16611_v5 = vpop.f32.mrf.mxu0  ;;  %v6162_v36 = vld [vmem:[#allocation5 + $0x98] sm:$0xff] }
 0x4f0   :  { %v16603_v49 = vpop.f32.mrf.mxu1  ;;  %v6179_v2 = vsel %vm3412_vm1, %v6162_v36, 0  ;;  %v6271_v37 = vand.u32 4294901760, %v21119_v23 }
 0x4f1   :  { %5543 = vst.msk [vmem:[#allocation13 + $0x50] sm:$0xff] %vm3383_vm2, %v5508_v62  ;;  %v5526_v9 = vadd.f32 %v16603_v49, %v5397_v15  ;;  %v5655_v6 = vpop.f32.mrf.mxu0  ;;  %v6163_v15 = vld [vmem:[#allocation5 + $0xb8] sm:$0xff]  ;;  %v21123_v49 = vand.u32 4294901760, %v6176_v32 }
 0x4f2   :  { %v5519_v63 = vpop.f32.mrf.mxu1 }
 0x4f3   :  { %5546 = vst.msk [vmem:[#allocation13 + $0x68] sm:$0xff] %vm3383_vm2, %v5526_v9  ;;  %v5520_v45 = vadd.f32 %v5519_v63, %v5391_v30  ;;  %v16614_v59 = vpop.f32.mrf.mxu0  ;;  %v6164_v9 = vld [vmem:[#allocation5 + $0xd8] sm:$0xff] }
 0x4f4   :  { %v16606_v29 = vpop.f32.mrf.mxu1 }
 0x4f5   :  { %5545 = vst.msk [vmem:[#allocation13 + $0x60] sm:$0xff] %vm3383_vm2, %v5520_v45  ;;  %v5538_v26 = vadd.f32 %v16606_v29, %v5409_v20  ;;  %v5675_v13 = vpop.f32.mrf.mxu0  ;;  %v21130_v20 = vsub.f32 %v6173_v58, %v21121_v42  ;;  %v6182_v45 = vsel %vm3412_vm1, %v6163_v15, 0 }
 0x4f6   :  { %v5531_v43 = vpop.f32.mrf.mxu1 }
 0x4f7   :  { %5548 = vst.msk [vmem:[#allocation13 + $0x78] sm:$0xff] %vm3383_vm2, %v5538_v26  ;;  %v5532_v1 = vadd.f32 %v5531_v43, %v5403_v24  ;;  %v16627_v47 = vpop.f32.mrf.mxu0  ;;  %v21133_v24 = vand.u32 4294901760, %v6179_v2  ;;  %v6165_v26 = vld [vmem:[#allocation5 + $0xf8] sm:$0xff] }
 0x4f8   :  { %v16619_v55 = vpop.f32.mrf.mxu1 }
 0x4f9   :  { %5547 = vst.msk [vmem:[#allocation13 + $0x70] sm:$0xff] %vm3383_vm2, %v5532_v1  ;;  %v5853_v44 = vpop.f32.mrf.mxu0  ;;  %v5768_v38 = vadd.f32 %v16619_v55, %v16611_v5  ;;  %v21138_v1 = vsub.f32 %v6176_v32, %v21123_v49 }
 0x4fa   :  { %v5761_v7 = vpop.f32.mrf.mxu1 }
 0x4fb   :  { %v16630_v51 = vpop.f32.mrf.mxu0  ;;  %v5762_v48 = vadd.f32 %v5761_v7, %v5655_v6  ;;  %v5861_v28 = vadd.f32 %v16627_v47, %v5768_v38  ;;  %v6185_v47 = vsel %vm3412_vm1, %v6164_v9, 0  ;;  %v21143_v7 = vand.u32 4294901760, %v6182_v45 }
 0x4fc   :  { %v16622_v33 = vpop.f32.mrf.mxu1  ;;  %v6281_v38 = vand.u32 4294901760, %v21130_v20 }
 0x4fd   :  { %v5867_v31 = vpop.f32.mrf.mxu0  ;;  %v5780_v3 = vadd.f32 %v16622_v33, %v16614_v59  ;;  %v5854_v60 = vadd.f32 %v5853_v44, %v5762_v48  ;;  %v6272_v33 = vsub.f32 %v21119_v23, %v6271_v37  ;;  %v21158_v48 = vsub.f32 %v6179_v2, %v21133_v24 }
 0x4fe   :  { %v5773_v27 = vpop.f32.mrf.mxu1 }
 0x4ff   :  { %v16643_v22 = vpop.f32.mrf.mxu0  ;;  %v5774_v4 = vadd.f32 %v5773_v27, %v5675_v13  ;;  %v5875_v17 = vadd.f32 %v16630_v51, %v5780_v3  ;;  %v6273_v16 = vand.u32 4294901760, %v6272_v33  ;;  %v6301_v21 = vand.u32 4294901760, %v21158_v48  ;;  %v7021_v33 = vld [vmem:[#allocation2 + $0x20] sm:$0xff] }
 0x500   :  { %v16635_v34 = vpop.f32.mrf.mxu1 }
 0x501   :  { %v6046_v14 = vpop.f32.mrf.mxu0  ;;  %v5957_v46 = vadd.f32 %v16635_v34, %v5861_v28  ;;  %v5868_v40 = vadd.f32 %v5867_v31, %v5774_v4  ;;  %v6188_v31 = vsel %vm3412_vm1, %v6165_v26, 0  ;;  %v6291_v28 = vand.u32 4294901760, %v21138_v1  ;;  %v7023_v26 = vld [vmem:[#allocation2 + $0x30] sm:$0xff] }
 0x502   :  { %v5948_v39 = vpop.f32.mrf.mxu1 }
 0x503   :  { %v5949_v53 = vadd.f32 %v5948_v39, %v5854_v60  ;;  %v16646_v41 = vpop.f32.mrf.mxu0  ;;  %v6053_v56 = vadd.f32 %v16643_v22, %v5957_v46  ;;  %v21160_v22 = vand.u32 4294901760, %v6185_v47  ;;  %v21170_v39 = vsub.f32 %v6182_v45, %v21143_v7 }
 0x504   :  { %v16638_v35 = vpop.f32.mrf.mxu1  ;;  %v6282_v60 = vsub.f32 %v21130_v20, %v6281_v38 }
 0x505   :  { %v5973_v19 = vadd.f32 %v16638_v35, %v5875_v17  ;;  %v6047_v12 = vadd.f32 %v6046_v14, %v5949_v53  ;;  %v6058_v62 = vpop.f32.mrf.mxu0  ;;  %v21172_v14 = vand.u32 4294901760, %v6188_v31  ;;  %v21187_v17 = vsub.f32 %v6185_v47, %v21160_v22 }
 0x506   :  { %v5964_v54 = vpop.f32.mrf.mxu1  ;;  %v6292_v53 = vsub.f32 %v21138_v1, %v6291_v28  ;;  %v21250_v47 = vand.u32 4294901760, %v7023_v26 }
 0x507   :  { %v5965_v25 = vadd.f32 %v5964_v54, %v5868_v40  ;;  %v6065_v18 = vadd.f32 %v16646_v41, %v5973_v19  ;;  %v6311_v40 = vand.u32 4294901760, %v21170_v39  ;;  %v6283_v19 = vand.u32 4294901760, %v6282_v60  ;;  %v6988_v60 = vld [vmem:[#allocation7 + $0x118] sm:$0xff] }
 0x508   :  { %v16651_v50 = vpop.f32.mrf.mxu1 }
 0x509   :  { %v6143_v52 = vadd.f32 %v16651_v50, %v6053_v56  ;;  %v6059_v59 = vadd.f32 %v6058_v62, %v5965_v25  ;;  %v21199_v56 = vsub.f32 %v6188_v31, %v21172_v14  ;;  %v6302_v50 = vsub.f32 %v21158_v48, %v6301_v21 }
 0x50a   :  { %v6136_v5 = vpop.f32.mrf.mxu1  ;;  %v6293_v25 = vand.u32 4294901760, %v6292_v53  ;;  %v6312_v15 = vsub.f32 %v21170_v39, %v6311_v40  ;;  %v7018_v53 = vld [vmem:[#allocation2 + $0x8] sm:$0xff] }
 0x50b   :  { %v6137_v30 = vadd.f32 %v6136_v5, %v6047_v12  ;;  %v21126_v6 = vand.u32 4294901760, %v6143_v52  ;;  %v6321_v12 = vand.u32 4294901760, %v21187_v17  ;;  %v6331_v62 = vand.u32 4294901760, %v21199_v56 }
 0x50c   :  { %v16654_v63 = vpop.f32.mrf.mxu1  ;;  %v6303_v2 = vand.u32 4294901760, %v6302_v50  ;;  %v6313_v9 = vand.u32 4294901760, %v6312_v15 }
 0x50d   :  { %v6155_v29 = vadd.f32 %v16654_v63, %v6065_v18  ;;  %v21135_v13 = vand.u32 4294901760, %v6137_v30  ;;  %v21146_v51 = vsub.f32 %v6143_v52, %v21126_v6  ;;  %v6322_v18 = vsub.f32 %v21187_v17, %v6321_v12 }
 0x50e   :  { %v6148_v43 = vpop.f32.mrf.mxu1  ;;  %v6332_v63 = vsub.f32 %v21199_v56, %v6331_v62 }
 0x50f   :  { %v21141_v55 = vand.u32 4294901760, %v6155_v29  ;;  %v6149_v44 = vadd.f32 %v6148_v43, %v6059_v59  ;;  %v6386_v34 = vsub.f32 %v6137_v30, %v21135_v13  ;;  %v21179_v4 = vand.u32 4294901760, %v21146_v51 }
 0x510   :  { %v6323_v45 = vand.u32 4294901760, %v6322_v18  ;;  %v6333_v59 = vand.u32 4294901760, %v6332_v63 }
 0x511   :  { %v6365_v27 = vsub.f32 %v6155_v29, %v21141_v55  ;;  %v21154_v8 = vand.u32 4294901760, %v6149_v44  ;;  %16655 = vmatprep.subr.mxu0 %v21141_v55  ;;  %v21193_v58 = vand.u32 4294901760, %v6386_v34  ;;  %v6381_v32 = vsub.f32 %v21146_v51, %v21179_v4  ;;  %v7024_v29 = vld [vmem:[#allocation2 + $0x38] sm:$0xff] }
 0x512   :  { %16656 = vmatpush3.msra.mxu0 %v21141_v55  ;;  %v21246_v43 = vand.u32 4294901760, %v7024_v29 }
 0x513   :  { %v6372_v3 = vsub.f32 %v6149_v44, %v21154_v8  ;;  %16657 = vmatprep.subr.mxu0 %v21154_v8  ;;  %v21167_v10 = vand.u32 4294901760, %v6365_v27  ;;  %v6388_v52 = vsub.f32 %v6386_v34, %v21193_v58  ;;  %v6382_v5 = vand.u32 4294901760, %v6381_v32  ;;  %v7022_v44 = vld [vmem:[#allocation2 + $0x28] sm:$0xff] }
 0x514   :  { %16658 = vmatpush3.msra.mxu0 %v21154_v8  ;;  %v21260_v31 = vsub.f32 %v7024_v29, %v21246_v43 }
 0x515   :  { %16659 = vmatprep.subr.mxu0 %v21126_v6  ;;  %v6367_v46 = vsub.f32 %v6365_v27, %v21167_v10  ;;  %v21183_v35 = vand.u32 4294901760, %v6372_v3  ;;  %v6389_v30 = vand.u32 4294901760, %v6388_v52 }
 0x516   :  { %16660 = vmatpush3.msra.mxu0 %v21126_v6 }
 0x517   :  { %16661 = vmatprep.subr.mxu0 %v21135_v13  ;;  %v6368_v54 = vand.u32 4294901760, %v6367_v46  ;;  %v6374_v41 = vsub.f32 %v6372_v3, %v21183_v35 }
 0x518   :  { %16662 = vmatpush3.msra.mxu0 %v21135_v13 }
 0x519   :  { %16664 = vmatmul.mubr.f32.vlgmr.msra.gmra.mxu0 %v6273_v16  ;;  %16675 = vmatprep.subr.mxu1 %v6368_v54  ;;  %v6375_v36 = vand.u32 4294901760, %v6374_v41  ;;  %v6990_v41 = vld [vmem:[#allocation7 + $0x128] sm:$0xff] }
 0x51a   :  { %16695 = vmatprep.subr.mxu0 %v6365_v27  ;;  %16676 = vmatpush3.msra.mxu1 %v6368_v54  ;;  %v7041_v15 = vsel %vm146_vm0, %v6990_v41, 0 }
 0x51b   :  { %16696 = vmatpush3.msra.mxu0 %v6365_v27  ;;  %16677 = vmatprep.subr.mxu1 %v6375_v36  ;;  %v21264_v27 = vand.u32 4294901760, %v7022_v44 }
 0x51c   :  { %16697 = vmatprep.subr.mxu0 %v6372_v3  ;;  %16666 = vmatprep.mubr.f32.mxu0 %v6283_v19 }
 0x51d   :  { %16678 = vmatpush3.msra.mxu1 %v6375_v36  ;;  %16698 = vmatpush3.msra.mxu0 %v6372_v3  ;;  %v6987_v3 = vld [vmem:[#allocation7 + $0x110] sm:$0xff] }
 0x51e   :  { %16667 = vmatmul.mubr.f32.gmra.mxu0 %v6293_v25  ;;  %16679 = vmatprep.subr.mxu1 %v6382_v5  ;;  %v6991_v25 = vld [vmem:[#allocation7 + $0x130] sm:$0xff] }
 0x51f   :  { %16699 = vmatprep.subr.mxu0 %v21146_v51  ;;  %16680 = vmatpush3.msra.mxu1 %v6382_v5 }
 0x520   :  { %16700 = vmatpush3.msra.mxu0 %v21146_v51  ;;  %16681 = vmatprep.subr.mxu1 %v6389_v30  ;;  %v6985_v51 = vld [vmem:[#allocation7 + $0x100] sm:$0xff] }
 0x521   :  { %16701 = vmatprep.subr.mxu0 %v6386_v34  ;;  %16669 = vmatprep.mubr.f32.mxu0 %v6303_v2 }
 0x522   :  { %16682 = vmatpush3.msra.mxu1 %v6389_v30  ;;  %16702 = vmatpush3.msra.mxu0 %v6386_v34  ;;  %v21280_v34 = vand.u32 4294901760, %v21260_v31 }
 0x523   :  { %16670 = vmatmul.mubr.f32.gmra.mxu0 %v6313_v9  ;;  %16684 = vmatmul.mubr.f32.vlgmr.msra.gmra.mxu1 %v21114_v11  ;;  %v6992_v9 = vld [vmem:[#allocation7 + $0x138] sm:$0xff] }
 0x524   :  { %16715 = vmatprep.subr.mxu1 %v21141_v55  ;;  %16735 = vmatprep.subr.mxu0 %v21167_v10 }
 0x525   :  { %16716 = vmatpush3.msra.mxu1 %v21141_v55  ;;  %16672 = vmatprep.mubr.f32.mxu0 %v6323_v45 }
 0x526   :  { %16717 = vmatprep.subr.mxu1 %v21154_v8  ;;  %16686 = vmatprep.mubr.f32.mxu1 %v21121_v42 }
 0x527   :  { %16718 = vmatpush3.msra.mxu1 %v21154_v8  ;;  %16673 = vmatmul.mubr.f32.gmra.mxu0 %v6333_v59 }
 0x528   :  { %16687 = vmatmul.mubr.f32.gmra.mxu1 %v21123_v49  ;;  %16719 = vmatprep.subr.mxu1 %v21126_v6 }
 0x529   :  { %16720 = vmatpush3.msra.mxu1 %v21126_v6  ;;  %16689 = vmatprep.mubr.f32.mxu1 %v21133_v24 }
 0x52a   :  { %16721 = vmatprep.subr.mxu1 %v21135_v13  ;;  %16703 = vmatprep.mubr.f32.mxu0 %v21098_v61  ;;  %v21267_v61 = vsub.f32 %v7023_v26, %v21250_v47 }
 0x52b   :  { %16722 = vmatpush3.msra.mxu1 %v21135_v13  ;;  %16704 = vmatmul.mubr.f32.vlgmr.msra.gmra.mxu0 %v21119_v23  ;;  %v6986_v23 = vld [vmem:[#allocation7 + $0x108] sm:$0xff] }
 0x52c   :  { %16690 = vmatmul.mubr.f32.gmra.mxu1 %v21143_v7  ;;  %16736 = vmatpush3.msra.mxu0 %v21167_v10  ;;  %v7029_v16 = vsel %vm146_vm0, %v6986_v23, 0  ;;  %v7047_v23 = vsel %vm146_vm0, %v6992_v9, 0 }
 0x52d   :  { %16755 = vmatprep.subr.mxu1 %v21141_v55  ;;  %16737 = vmatprep.subr.mxu0 %v21183_v35  ;;  %v21411_v41 = vand.u32 4294901760, %v7047_v23 }
 0x52e   :  { %16738 = vmatpush3.msra.mxu0 %v21183_v35  ;;  %16692 = vmatprep.mubr.f32.mxu1 %v21160_v22  ;;  %v21308_v35 = vand.u32 4294901760, %v7029_v16 }
 0x52f   :  { %16706 = vmatprep.mubr.f32.mxu0 %v21130_v20  ;;  %16739 = vmatprep.subr.mxu0 %v21179_v4  ;;  %v7019_v20 = vld [vmem:[#allocation2 + $0x10] sm:$0xff]  ;;  %25562 = vst [vmem:[#allocation79_spill] sm:$0xff] %v21411_v41 }
 0x530   :  { %16693 = vmatmul.mubr.f32.gmra.mxu1 %v21172_v14  ;;  %16707 = vmatmul.mubr.f32.gmra.mxu0 %v21138_v1  ;;  %v21306_v46 = vand.u32 4294901760, %v7019_v20  ;;  %25551 = vst [vmem:[#allocation59_spill] sm:$0xff] %v21308_v35 }
 0x531   :  { %16740 = vmatpush3.msra.mxu0 %v21179_v4  ;;  %16709 = vmatprep.mubr.f32.mxu0 %v21158_v48  ;;  %v7032_v4 = vsel %vm146_vm0, %v6987_v3, 0  ;;  %v6989_v48 = vld [vmem:[#allocation7 + $0x120] sm:$0xff] }
 0x532   :  { %16741 = vmatprep.subr.mxu0 %v21193_v58  ;;  %16723 = vmatprep.mubr.f32.mxu1 %v6261_v57  ;;  %v7026_v57 = vsel %vm146_vm0, %v6985_v51, 0  ;;  %v7038_v50 = vsel %vm146_vm0, %v6989_v48, 0  ;;  %v21348_v52 = vsub.f32 %v7019_v20, %v21306_v46  ;;  %v6993_v51 = vld [vmem:[#allocation7 + $0x140] sm:$0xff]  ;;  %v6995_v48 = vld [vmem:[#allocation7 + $0x150] sm:$0xff] }
 0x533   :  { %16742 = vmatpush3.msra.mxu0 %v21193_v58  ;;  %v21291_v10 = vand.u32 4294901760, %v7026_v57  ;;  %v7056_v9 = vsel %vm146_vm0, %v6995_v48, 0 }
 0x534   :  { %16710 = vmatmul.mubr.f32.gmra.mxu0 %v21170_v39  ;;  %16724 = vmatmul.mubr.f32.vlgmr.msra.gmra.mxu1 %v6271_v37  ;;  %v21275_v37 = vand.u32 4294901760, %v7021_v33  ;;  %v21327_v39 = vand.u32 4294901760, %v7032_v4 }
 0x535   :  { %16756 = vmatpush3.msra.mxu1 %v21141_v55  ;;  %16712 = vmatprep.mubr.f32.mxu0 %v21187_v17  ;;  %v7020_v55 = vld [vmem:[#allocation2 + $0x18] sm:$0xff]  ;;  %25550 = vst [vmem:[#allocation35_spill] sm:$0xff] %v21291_v10  ;;  %v21322_v54 = vsub.f32 %v7026_v57, %v21291_v10  ;;  %v21342_v17 = vand.u32 4294901760, %v7018_v53 }
 0x536   :  { %16757 = vmatprep.subr.mxu1 %v21154_v8  ;;  %16726 = vmatprep.mubr.f32.mxu1 %v6281_v38  ;;  %v21286_v38 = vand.u32 4294901760, %v21267_v61  ;;  %v21298_v1 = vand.u32 4294901760, %v7020_v55  ;;  %25553 = vst [vmem:[#allocation38_spill] sm:$0xff] %v21327_v39  ;;  %v21362_v45 = vsub.f32 %v7032_v4, %v21327_v39 }
 0x537   :  { %16758 = vmatpush3.msra.mxu1 %v21154_v8  ;;  %16775 = vmatprep.subr.mxu0 %v21246_v43  ;;  %v21289_v8 = vsub.f32 %v7022_v44, %v21264_v27  ;;  %v24823_v30 = vand.u32 4294901760, %v21322_v54  ;;  %v21377_v44 = vand.u32 4294901760, %v7041_v15  ;;  %v21386_v57 = vsub.f32 %v7018_v53, %v21342_v17 }
 0x538   :  { %16759 = vmatprep.subr.mxu1 %v21126_v6  ;;  %16713 = vmatmul.mubr.f32.gmra.mxu0 %v21199_v56  ;;  %25549 = vst [vmem:[#allocation80_spill] sm:$0xff] %v21286_v38  ;;  %v21335_v32 = vsub.f32 %v7020_v55, %v21298_v1  ;;  %v21364_v56 = vand.u32 4294901760, %v7038_v50 }
 0x539   :  { %16727 = vmatmul.mubr.f32.gmra.mxu1 %v6291_v28  ;;  %16743 = vmatprep.mubr.f32.mxu0 %v21095_v0  ;;  %v21301_v28 = vsub.f32 %v7021_v33, %v21275_v37  ;;  %v21319_v58 = vand.u32 4294901760, %v21289_v8  ;;  %25559 = vst [vmem:[#allocation71_spill] sm:$0xff] %v21377_v44  ;;  %v21383_v33 = vand.u32 4294901760, %v21348_v52  ;;  %v7197_v3 = vsub.f32 %v21322_v54, %v24823_v30  ;;  %v6997_v30 = vld [vmem:[#allocation7 + $0x160] sm:$0xff] }
 0x53a   :  { %16760 = vmatpush3.msra.mxu1 %v21126_v6  ;;  %16729 = vmatprep.mubr.f32.mxu1 %v6301_v21  ;;  %v7035_v6 = vsel %vm146_vm0, %v6988_v60, 0  ;;  %v7534_v21 = vsub.f32 %v21260_v31, %v21280_v34  ;;  %25556 = vst [vmem:[#allocation75_spill] sm:$0xff] %v21364_v56  ;;  %v21372_v29 = vand.u32 4294901760, %v21335_v32  ;;  %v21401_v4 = vsub.f32 %v7038_v50, %v21364_v56 }
 0x53b   :  { %16761 = vmatprep.subr.mxu1 %v21135_v13  ;;  %25552 = vst [vmem:[#allocation70_spill] sm:$0xff] %v21319_v58  ;;  %v21332_v19 = vand.u32 4294901760, %v21301_v28  ;;  %v21337_v36 = vand.u32 4294901760, %v7035_v6  ;;  %v7548_v18 = vsub.f32 %v21289_v8, %v21319_v58  ;;  %25560 = vst [vmem:[#allocation56_spill] sm:$0xff] %v21383_v33  ;;  %v21409_v53 = vsub.f32 %v7041_v15, %v21377_v44 }
 0x53c   :  { %16762 = vmatpush3.msra.mxu1 %v21135_v13  ;;  %16744 = vmatmul.mubr.f32.vlgmr.msra.gmra.mxu0 %v21114_v11  ;;  %v7541_v13 = vsub.f32 %v21267_v61, %v21286_v38  ;;  %v7535_v5 = vand.u32 4294901760, %v7534_v21  ;;  %25557 = vst [vmem:[#allocation46_spill] sm:$0xff] %v21372_v29  ;;  %v7562_v21 = vsub.f32 %v21335_v32, %v21372_v29 }
 0x53d   :  { %16730 = vmatmul.mubr.f32.gmra.mxu1 %v6311_v40  ;;  %16776 = vmatpush3.msra.mxu0 %v21246_v43  ;;  %v7017_v40 = vld [vmem:[#allocation2] sm:$0xff]  ;;  %25554 = vst [vmem:[#allocation67_spill] sm:$0xff] %v21332_v19  ;;  %25555 = vst [vmem:[#allocation54_spill] sm:$0xff] %v21337_v36  ;;  %v7555_v59 = vsub.f32 %v21301_v28, %v21332_v19  ;;  %v21375_v26 = vsub.f32 %v7035_v6, %v21337_v36  ;;  %v7549_v55 = vand.u32 4294901760, %v7548_v18  ;;  %v6994_v6 = vld [vmem:[#allocation7 + $0x148] sm:$0xff] }
 0x53e   :  { %16777 = vmatprep.subr.mxu0 %v21250_v47  ;;  %16732 = vmatprep.mubr.f32.mxu1 %v6321_v12  ;;  %v21345_v12 = vsub.f32 %v7029_v16, %v21308_v35  ;;  %v7542_v2 = vand.u32 4294901760, %v7541_v13  ;;  %v21359_v63 = vand.u32 4294901760, %v7017_v40  ;;  %v24824_v16 = vand.u32 4294901760, %v21362_v45 }
 0x53f   :  { %16746 = vmatprep.mubr.f32.mxu0 %v21121_v42  ;;  %16778 = vmatpush3.msra.mxu0 %v21250_v47  ;;  %25558 = vst [vmem:[#allocation19_spill] sm:$0xff] %v21375_v26  ;;  %v24827_v13 = vand.u32 4294901760, %v21375_v26 }
 0x540   :  { %16747 = vmatmul.mubr.f32.gmra.mxu0 %v21123_v49  ;;  %16779 = vmatprep.subr.mxu0 %v21264_v27  ;;  %v21398_v60 = vsub.f32 %v7017_v40, %v21359_v63  ;;  %v7556_v40 = vand.u32 4294901760, %v7555_v59  ;;  %v6996_v59 = vld [vmem:[#allocation7 + $0x158] sm:$0xff] }
 0x541   :  { %16733 = vmatmul.mubr.f32.gmra.mxu1 %v6331_v62  ;;  %16780 = vmatpush3.msra.mxu0 %v21264_v27  ;;  %v7044_v62 = vsel %vm146_vm0, %v6991_v25, 0  ;;  %v7569_v25 = vsub.f32 %v21348_v52, %v21383_v33  ;;  %v7227_v48 = vsub.f32 %v21375_v26, %v24827_v13 }
 0x542   :  { %16781 = vmatprep.subr.mxu0 %v21275_v37  ;;  %16749 = vmatprep.mubr.f32.mxu0 %v21133_v24  ;;  %v21393_v20 = vand.u32 4294901760, %v7044_v62 }
 0x543   :  { %16763 = vmatprep.mubr.f32.mxu1 %v21095_v0  ;;  %16782 = vmatpush3.msra.mxu0 %v21275_v37  ;;  %v24822_v0 = vand.u32 4294901760, %v21345_v12  ;;  %v7570_v13 = vand.u32 4294901760, %v7569_v25  ;;  %v25568_v25 = vand.u32 4294901760, %v21401_v4 }
 0x544   :  { %16750 = vmatmul.mubr.f32.gmra.mxu0 %v21143_v7  ;;  %16783 = vmatprep.subr.mxu0 %v21298_v1  ;;  %25561 = vst [vmem:[#allocation77_spill] sm:$0xff] %v21393_v20  ;;  %v21425_v15 = vsub.f32 %v7044_v62, %v21393_v20  ;;  %v21451_v62 = vand.u32 4294901760, %v7056_v9 }
 0x545   :  { %16764 = vmatmul.mubr.f32.vlgmr.msra.gmra.mxu1 %v21114_v11  ;;  %16839 = vmatprep.subr.mxu1 %v7535_v5  ;;  %v7050_v11 = vsel %vm146_vm0, %v6993_v51, 0  ;;  %v7207_v50 = vsub.f32 %v21345_v12, %v24822_v0  ;;  %v7198_v51 = vand.u32 4294901760, %v7197_v3  ;;  %v7217_v0 = vsub.f32 %v21362_v45, %v24824_v16 }
 0x546   :  { %16784 = vmatpush3.msra.mxu0 %v21298_v1  ;;  %16840 = vmatpush3.msra.mxu1 %v7535_v5  ;;  %v21421_v5 = vand.u32 4294901760, %v21386_v57  ;;  %v21427_v18 = vand.u32 4294901760, %v7050_v11  ;;  %v21446_v3 = vsub.f32 %v7047_v23, %v21411_v41  ;;  %25567 = vst [vmem:[#allocation72_spill] sm:$0xff] %v21451_v62  ;;  %v7237_v58 = vsub.f32 %v21401_v4, %v25568_v25 }
 0x547   :  { %16785 = vmatprep.subr.mxu0 %v21306_v46  ;;  %16841 = vmatprep.subr.mxu1 %v7542_v2  ;;  %v7208_v16 = vand.u32 4294901760, %v7207_v50  ;;  %v6999_v50 = vld [vmem:[#allocation7 + $0x170] sm:$0xff]  ;;  %v7218_v19 = vand.u32 4294901760, %v7217_v0  ;;  %v25569_v23 = vand.u32 4294901760, %v21409_v53  ;;  %v21480_v25 = vsub.f32 %v7056_v9, %v21451_v62 }
 0x548   :  { %16752 = vmatprep.mubr.f32.mxu0 %v21160_v22  ;;  %16766 = vmatprep.mubr.f32.mxu1 %v21121_v42  ;;  %25563 = vst [vmem:[#allocation37_spill] sm:$0xff] %v21421_v5  ;;  %25564 = vst [vmem:[#allocation39_spill] sm:$0xff] %v21427_v18  ;;  %v7053_v42 = vsel %vm146_vm0, %v6994_v6, 0  ;;  %v7563_v6 = vand.u32 4294901760, %v7562_v21  ;;  %v7059_v21 = vsel %vm146_vm0, %v6996_v59, 0  ;;  %v21459_v29 = vsub.f32 %v7050_v11, %v21427_v18 }
 0x549   :  { %16786 = vmatpush3.msra.mxu0 %v21306_v46  ;;  %16842 = vmatpush3.msra.mxu1 %v7542_v2  ;;  %v21437_v2 = vand.u32 4294901760, %v21398_v60  ;;  %v21449_v33 = vand.u32 4294901760, %v7053_v42  ;;  %v7228_v11 = vand.u32 4294901760, %v7227_v48  ;;  %v7247_v26 = vsub.f32 %v21409_v53, %v25569_v23 }
 0x54a   :  { %16753 = vmatmul.mubr.f32.gmra.mxu0 %v21172_v14  ;;  %16767 = vmatmul.mubr.f32.gmra.mxu1 %v21123_v49  ;;  %v7576_v49 = vsub.f32 %v21386_v57, %v21421_v5  ;;  %v7062_v5 = vsel %vm146_vm0, %v6997_v30, 0  ;;  %v21473_v38 = vand.u32 4294901760, %v7059_v21  ;;  %v25571_v48 = vand.u32 4294901760, %v21425_v15 }
 0x54b   :  { %25565 = vst [vmem:[#allocation69_spill] sm:$0xff] %v21437_v2  ;;  %16787 = vmatprep.subr.mxu0 %v21342_v17  ;;  %16843 = vmatprep.subr.mxu1 %v7549_v55  ;;  %25566 = vst [vmem:[#allocation27_spill] sm:$0xff] %v21449_v33  ;;  %v7583_v59 = vsub.f32 %v21398_v60, %v21437_v2  ;;  %v21477_v0 = vsub.f32 %v7053_v42, %v21449_v33  ;;  %v7000_v42 = vld [vmem:[#allocation7 + $0x178] sm:$0xff]  ;;  %v7001_v2 = vld [vmem:[#allocation7 + $0x180] sm:$0xff] }
 0x54c   :  { %16788 = vmatpush3.msra.mxu0 %v21342_v17  ;;  %16844 = vmatpush3.msra.mxu1 %v7549_v55  ;;  %v6998_v55 = vld [vmem:[#allocation7 + $0x168] sm:$0xff]  ;;  %25570 = vst [vmem:[#allocation50_spill] sm:$0xff] %v21473_v38  ;;  %v7257_v23 = vsub.f32 %v21425_v15, %v25571_v48  ;;  %v25574_v48 = vand.u32 4294901760, %v21446_v3 }
 0x54d   :  { %16789 = vmatprep.subr.mxu0 %v21359_v63  ;;  %16845 = vmatprep.subr.mxu1 %v7556_v40  ;;  %v7065_v30 = vsel %vm146_vm0, %v6998_v55, 0  ;;  %v7584_v9 = vand.u32 4294901760, %v7583_v59  ;;  %v7248_v55 = vand.u32 4294901760, %v7247_v26  ;;  %v24844_v26 = vand.u32 4294901760, %v21480_v25 }
 0x54e   :  { %16769 = vmatprep.mubr.f32.mxu1 %v21133_v24  ;;  %16790 = vmatpush3.msra.mxu0 %v21359_v63  ;;  %v7238_v24 = vand.u32 4294901760, %v7237_v58  ;;  %v24843_v58 = vand.u32 4294901760, %v21477_v0 }
 0x54f   :  { %16791 = vmatprep.mubr.f32.mxu0 %v7198_v51  ;;  %16846 = vmatpush3.msra.mxu1 %v7556_v40  ;;  %v7068_v40 = vsel %vm146_vm0, %v6999_v50, 0  ;;  %v7577_v51 = vand.u32 4294901760, %v7576_v49  ;;  %v21492_v50 = vsub.f32 %v7059_v21, %v21473_v38  ;;  %v7258_v21 = vand.u32 4294901760, %v7257_v23 }
 0x550   :  { %16770 = vmatmul.mubr.f32.gmra.mxu1 %v21143_v7  ;;  %16792 = vmatmul.mubr.f32.vlgmr.msra.gmra.mxu0 %v7208_v16  ;;  %v24842_v7 = vand.u32 4294901760, %v21459_v29  ;;  %v21489_v16 = vand.u32 4294901760, %v7062_v5  ;;  %v21496_v49 = vand.u32 4294901760, %v7068_v40 }
 0x551   :  { %16847 = vmatprep.subr.mxu1 %v7563_v6  ;;  %16772 = vmatprep.mubr.f32.mxu1 %v21160_v22  ;;  %v21494_v22 = vand.u32 4294901760, %v7065_v30 }
 0x552   :  { %25572 = vst [vmem:[#allocation34_spill] sm:$0xff] %v21489_v16  ;;  %16848 = vmatpush3.msra.mxu1 %v7563_v6  ;;  %16794 = vmatprep.mubr.f32.mxu0 %v7218_v19  ;;  %v7267_v19 = vsub.f32 %v21446_v3, %v25574_v48  ;;  %v7071_v6 = vsel %vm146_vm0, %v7000_v42, 0  ;;  %v7277_v59 = vsub.f32 %v21459_v29, %v24842_v7  ;;  %v7002_v48 = vld [vmem:[#allocation7 + $0x188] sm:$0xff] }
 0x553   :  { %16849 = vmatprep.subr.mxu1 %v7570_v13  ;;  %25573 = vst [vmem:[#allocation30_spill] sm:$0xff] %v21494_v22  ;;  %16903 = vmatprep.subr.mxu0 %v21260_v31  ;;  %v21519_v23 = vsub.f32 %v7068_v40, %v21496_v49  ;;  %v21521_v7 = vand.u32 4294901760, %v7071_v6 }
 0x554   :  { %16850 = vmatpush3.msra.mxu1 %v7570_v13  ;;  %16795 = vmatmul.mubr.f32.gmra.mxu0 %v7228_v11  ;;  %v21510_v13 = vsub.f32 %v7062_v5, %v21489_v16  ;;  %v7074_v11 = vsel %vm146_vm0, %v7001_v2, 0  ;;  %v7003_v5 = vld [vmem:[#allocation7 + $0x190] sm:$0xff]  ;;  %v7287_v2 = vsub.f32 %v21477_v0, %v24843_v58  ;;  %v25577_v58 = vand.u32 4294901760, %v21492_v50 }
 0x555   :  { %16773 = vmatmul.mubr.f32.gmra.mxu1 %v21172_v14  ;;  %16851 = vmatprep.subr.mxu1 %v7577_v51  ;;  %v21516_v14 = vsub.f32 %v7065_v30, %v21494_v22  ;;  %25576 = vst [vmem:[#allocation74_spill] sm:$0xff] %v21519_v23  ;;  %v7278_v30 = vand.u32 4294901760, %v7277_v59  ;;  %v21531_v42 = vand.u32 4294901760, %v7074_v11  ;;  %v21543_v40 = vsub.f32 %v7071_v6, %v21521_v7 }
 0x556   :  { %25575 = vst [vmem:[#allocation32_spill] sm:$0xff] %v21510_v13  ;;  %16852 = vmatpush3.msra.mxu1 %v7577_v51  ;;  %16797 = vmatprep.mubr.f32.mxu0 %v7238_v24  ;;  %v7268_v24 = vand.u32 4294901760, %v7267_v19  ;;  %v7297_v51 = vsub.f32 %v21480_v25, %v24844_v26  ;;  %v7004_v19 = vld [vmem:[#allocation7 + $0x198] sm:$0xff]  ;;  %v7307_v26 = vsub.f32 %v21492_v50, %v25577_v58  ;;  %v25579_v58 = vand.u32 4294901760, %v21510_v13 }
 0x557   :  { %16853 = vmatprep.subr.mxu1 %v7584_v9  ;;  %16855 = vmatprep.mubr.f32.mxu1 %v21291_v10  ;;  %v21555_v59 = vsub.f32 %v7074_v11, %v21531_v42  ;;  %v25581_v11 = vand.u32 4294901760, %v21519_v23 }
 0x558   :  { %16854 = vmatpush3.msra.mxu1 %v7584_v9  ;;  %16798 = vmatmul.mubr.f32.gmra.mxu0 %v7248_v55  ;;  %v7077_v9 = vsel %vm146_vm0, %v7002_v48, 0  ;;  %v7080_v55 = vsel %vm146_vm0, %v7003_v5, 0  ;;  %v7288_v48 = vand.u32 4294901760, %v7287_v2  ;;  %v7298_v5 = vand.u32 4294901760, %v7297_v51  ;;  %v7006_v2 = vld [vmem:[#allocation7 + $0x1a8] sm:$0xff]  ;;  %v7007_v51 = vld [vmem:[#allocation7 + $0x1b0] sm:$0xff] }
 0x559   :  { %16856 = vmatmul.mubr.f32.vlgmr.msra.gmra.mxu1 %v21308_v35  ;;  %16800 = vmatprep.mubr.f32.mxu0 %v7258_v21  ;;  %v7005_v35 = vld [vmem:[#allocation7 + $0x1a0] sm:$0xff]  ;;  %v7317_v6 = vsub.f32 %v21510_v13, %v25579_v58  ;;  %v21557_v21 = vand.u32 4294901760, %v7080_v55  ;;  %v7337_v10 = vsub.f32 %v21519_v23, %v25581_v11 }
 0x55a   :  { %16858 = vmatprep.mubr.f32.mxu1 %v21327_v39  ;;  %16904 = vmatpush3.msra.mxu0 %v21260_v31  ;;  %v21547_v31 = vand.u32 4294901760, %v7077_v9  ;;  %v7086_v39 = vsel %vm146_vm0, %v7005_v35, 0 }
 0x55b   :  { %16967 = vmatprep.subr.mxu1 %v21246_v43  ;;  %16905 = vmatprep.subr.mxu0 %v21267_v61  ;;  %v21583_v13 = vsub.f32 %v7080_v55, %v21557_v21  ;;  %v25583_v55 = vand.u32 4294901760, %v21543_v40 }
 0x55c   :  { %16801 = vmatmul.mubr.f32.gmra.mxu0 %v7268_v24  ;;  %25578 = vst [vmem:[#allocation61_spill] sm:$0xff] %v21547_v31  ;;  %16968 = vmatpush3.msra.mxu1 %v21246_v43  ;;  %v7083_v24 = vsel %vm146_vm0, %v7004_v19, 0  ;;  %v21573_v35 = vsub.f32 %v7077_v9, %v21547_v31  ;;  %v7318_v19 = vand.u32 4294901760, %v7317_v6  ;;  %v7008_v9 = vld [vmem:[#allocation7 + $0x1b8] sm:$0xff] }
 0x55d   :  { %16859 = vmatmul.mubr.f32.gmra.mxu1 %v21337_v36  ;;  %16803 = vmatprep.mubr.f32.mxu0 %v7278_v30  ;;  %v7308_v30 = vand.u32 4294901760, %v7307_v26  ;;  %v25580_v36 = vand.u32 4294901760, %v21516_v14  ;;  %v7089_v26 = vsel %vm146_vm0, %v7006_v2, 0 }
 0x55e   :  { %16861 = vmatprep.mubr.f32.mxu1 %v21364_v56  ;;  %16906 = vmatpush3.msra.mxu0 %v21267_v61  ;;  %25582 = vst [vmem:[#allocation57_spill] sm:$0xff] %v21573_v35  ;;  %v21575_v61 = vand.u32 4294901760, %v7083_v24  ;;  %v7009_v56 = vld [vmem:[#allocation7 + $0x1c0] sm:$0xff]  ;;  %v21589_v23 = vand.u32 4294901760, %v7089_v26 }
 0x55f   :  { %v7327_v58 = vsub.f32 %v21516_v14, %v25580_v36  ;;  %16969 = vmatprep.subr.mxu1 %v21250_v47  ;;  %16907 = vmatprep.subr.mxu0 %v21289_v8  ;;  %v7092_v36 = vsel %vm146_vm0, %v7007_v51, 0  ;;  %v7338_v51 = vand.u32 4294901760, %v7337_v10  ;;  %v25584_v10 = vand.u32 4294901760, %v21555_v59 }
 0x560   :  { %16804 = vmatmul.mubr.f32.gmra.mxu0 %v7288_v48  ;;  %16970 = vmatpush3.msra.mxu1 %v21250_v47  ;;  %v21585_v48 = vand.u32 4294901760, %v7086_v39  ;;  %v21600_v11 = vsub.f32 %v7083_v24, %v21575_v61  ;;  %v7098_v6 = vsel %vm146_vm0, %v7009_v56, 0  ;;  %v7010_v24 = vld [vmem:[#allocation7 + $0x1c8] sm:$0xff]  ;;  %v25587_v56 = vand.u32 4294901760, %v21573_v35 }
 0x561   :  { %16862 = vmatmul.mubr.f32.gmra.mxu1 %v21377_v44  ;;  %16806 = vmatprep.mubr.f32.mxu0 %v7298_v5  ;;  %v7328_v2 = vand.u32 4294901760, %v7327_v58  ;;  %v21591_v44 = vand.u32 4294901760, %v7092_v36  ;;  %v7347_v5 = vsub.f32 %v21543_v40, %v25583_v55 }
 0x562   :  { %16864 = vmatprep.mubr.f32.mxu1 %v21393_v20  ;;  %16908 = vmatpush3.msra.mxu0 %v21289_v8  ;;  %v7095_v8 = vsel %vm146_vm0, %v7008_v9, 0  ;;  %v21610_v55 = vsub.f32 %v7086_v39, %v21585_v48  ;;  %v21616_v9 = vsub.f32 %v7089_v26, %v21589_v23  ;;  %v7367_v58 = vsub.f32 %v21573_v35, %v25587_v56 }
 0x563   :  { %16909 = vmatprep.subr.mxu0 %v21301_v28  ;;  %16971 = vmatprep.subr.mxu1 %v21264_v27  ;;  %v7348_v39 = vand.u32 4294901760, %v7347_v5  ;;  %v21629_v26 = vand.u32 4294901760, %v7098_v6  ;;  %v7101_v5 = vsel %vm146_vm0, %v7010_v24, 0  ;;  %v25589_v24 = vand.u32 4294901760, %v21600_v11 }
 0x564   :  { %16807 = vmatmul.mubr.f32.gmra.mxu0 %v7308_v30  ;;  %16972 = vmatpush3.msra.mxu1 %v21264_v27  ;;  %v7357_v30 = vsub.f32 %v21555_v59, %v25584_v10  ;;  %25585 = vst [vmem:[#allocation33_spill] sm:$0xff] %v21610_v55  ;;  %v7011_v10 = vld [vmem:[#allocation7 + $0x1d0] sm:$0xff]  ;;  %v21654_v35 = vand.u32 4294901760, %v7101_v5 }
 0x565   :  { %16865 = vmatmul.mubr.f32.gmra.mxu1 %v21411_v41  ;;  %16809 = vmatprep.mubr.f32.mxu0 %v7318_v19  ;;  %v21619_v19 = vsub.f32 %v7092_v36, %v21591_v44  ;;  %v21621_v41 = vand.u32 4294901760, %v7095_v8  ;;  %v7104_v56 = vsel %vm146_vm0, %v7011_v10, 0  ;;  %v7387_v10 = vsub.f32 %v21600_v11, %v25589_v24  ;;  %v7014_v24 = vld [vmem:[#allocation7 + $0x1e8] sm:$0xff] }
 0x566   :  { %16867 = vmatprep.mubr.f32.mxu1 %v21427_v18  ;;  %16910 = vmatpush3.msra.mxu0 %v21301_v28  ;;  %v7358_v36 = vand.u32 4294901760, %v7357_v30  ;;  %v25588_v18 = vand.u32 4294901760, %v21583_v13  ;;  %v7012_v28 = vld [vmem:[#allocation7 + $0x1d8] sm:$0xff] }
 0x567   :  { %25586 = vst [vmem:[#allocation51_spill] sm:$0xff] %v21619_v19  ;;  %16911 = vmatprep.subr.mxu0 %v21335_v32  ;;  %16973 = vmatprep.subr.mxu1 %v21275_v37  ;;  %v21644_v30 = vsub.f32 %v7095_v8, %v21621_v41 }
 0x568   :  { %16810 = vmatmul.mubr.f32.gmra.mxu0 %v7328_v2  ;;  %16974 = vmatpush3.msra.mxu1 %v21275_v37  ;;  %v7377_v20 = vsub.f32 %v21583_v13, %v25588_v18  ;;  %v24875_v2 = vand.u32 4294901760, %v21610_v55  ;;  %v7368_v18 = vand.u32 4294901760, %v7367_v58  ;;  %v21661_v58 = vand.u32 4294901760, %v7104_v56 }
 0x569   :  { %16868 = vmatmul.mubr.f32.gmra.mxu1 %v21449_v33  ;;  %16812 = vmatprep.mubr.f32.mxu0 %v7338_v51  ;;  %v7013_v33 = vld [vmem:[#allocation7 + $0x1e0] sm:$0xff]  ;;  %v7107_v51 = vsel %vm146_vm0, %v7012_v28, 0 }
 0x56a   :  { %16870 = vmatprep.mubr.f32.mxu1 %v21451_v62  ;;  %16912 = vmatpush3.msra.mxu0 %v21335_v32  ;;  %v21652_v32 = vsub.f32 %v7098_v6, %v21629_v26  ;;  %v7378_v8 = vand.u32 4294901760, %v7377_v20  ;;  %v7110_v6 = vsel %vm146_vm0, %v7013_v33, 0  ;;  %v25590_v62 = vand.u32 4294901760, %v21616_v9 }
 0x56b   :  { %16913 = vmatprep.subr.mxu0 %v21348_v52  ;;  %16975 = vmatprep.subr.mxu1 %v21298_v1  ;;  %v25591_v20 = vand.u32 4294901760, %v21619_v19  ;;  %v7388_v33 = vand.u32 4294901760, %v7387_v10  ;;  %v7016_v10 = vld [vmem:[#allocation7 + $0x1f8] sm:$0xff] }
 0x56c   :  { %16813 = vmatmul.mubr.f32.gmra.mxu0 %v7348_v39  ;;  %16976 = vmatpush3.msra.mxu1 %v21298_v1  ;;  %v7397_v39 = vsub.f32 %v21610_v55, %v24875_v2  ;;  %v7015_v55 = vld [vmem:[#allocation7 + $0x1f0] sm:$0xff]  ;;  %v21687_v2 = vand.u32 4294901760, %v7110_v6 }
 0x56d   :  { %16871 = vmatmul.mubr.f32.gmra.mxu1 %v21473_v38  ;;  %16815 = vmatprep.mubr.f32.mxu0 %v7358_v36  ;;  %v7407_v36 = vsub.f32 %v21616_v9, %v25590_v62  ;;  %v7417_v38 = vsub.f32 %v21619_v19, %v25591_v20  ;;  %v21685_v20 = vsub.f32 %v7104_v56, %v21661_v58  ;;  %v25593_v56 = vand.u32 4294901760, %v21652_v32 }
 0x56e   :  { %16873 = vmatprep.mubr.f32.mxu1 %v21489_v16  ;;  %16914 = vmatpush3.msra.mxu0 %v21348_v52  ;;  %v21678_v52 = vsub.f32 %v7101_v5, %v21654_v35  ;;  %v21680_v16 = vand.u32 4294901760, %v7107_v51  ;;  %v7398_v62 = vand.u32 4294901760, %v7397_v39  ;;  %v7116_v5 = vsel %vm146_vm0, %v7015_v55, 0 }
 0x56f   :  { %16915 = vmatprep.subr.mxu0 %v21386_v57  ;;  %16977 = vmatprep.subr.mxu1 %v21306_v46  ;;  %v7408_v28 = vand.u32 4294901760, %v7407_v36  ;;  %v7418_v19 = vand.u32 4294901760, %v7417_v38  ;;  %v7437_v39 = vsub.f32 %v21652_v32, %v25593_v56  ;;  %v24887_v38 = vand.u32 4294901760, %v21685_v20 }
 0x570   :  { %16816 = vmatmul.mubr.f32.gmra.mxu0 %v7368_v18  ;;  %16978 = vmatpush3.msra.mxu1 %v21306_v46  ;;  %v7113_v18 = vsel %vm146_vm0, %v7014_v24, 0  ;;  %v24884_v55 = vand.u32 4294901760, %v21678_v52  ;;  %v21703_v24 = vsub.f32 %v7107_v51, %v21680_v16  ;;  %v21713_v36 = vand.u32 4294901760, %v7116_v5 }
 0x571   :  { %16874 = vmatmul.mubr.f32.gmra.mxu1 %v21494_v22  ;;  %16818 = vmatprep.mubr.f32.mxu0 %v7378_v8  ;;  %v25592_v22 = vand.u32 4294901760, %v21644_v30 }
 0x572   :  { %16876 = vmatprep.mubr.f32.mxu1 %v21496_v49  ;;  %16916 = vmatpush3.msra.mxu0 %v21386_v57  ;;  %v21705_v57 = vand.u32 4294901760, %v7113_v18 }
 0x573   :  { %v7427_v8 = vsub.f32 %v21644_v30, %v25592_v22  ;;  %16917 = vmatprep.subr.mxu0 %v21398_v60  ;;  %16979 = vmatprep.subr.mxu1 %v21342_v17  ;;  %v21711_v22 = vsub.f32 %v7110_v6, %v21687_v2  ;;  %v24888_v6 = vand.u32 4294901760, %v21703_v24 }
 0x574   :  { %16819 = vmatmul.mubr.f32.gmra.mxu0 %v7388_v33  ;;  %16980 = vmatpush3.msra.mxu1 %v21342_v17  ;;  %v7119_v33 = vsel %vm146_vm0, %v7016_v10, 0  ;;  %v21725_v56 = vsub.f32 %v7113_v18, %v21705_v57 }
 0x575   :  { %16877 = vmatmul.mubr.f32.gmra.mxu1 %v21521_v7  ;;  %16821 = vmatprep.mubr.f32.mxu0 %v7398_v62  ;;  %v7428_v51 = vand.u32 4294901760, %v7427_v8  ;;  %v7447_v62 = vsub.f32 %v21678_v52, %v24884_v55  ;;  %v21727_v10 = vand.u32 4294901760, %v7119_v33  ;;  %v24889_v8 = vand.u32 4294901760, %v21711_v22 }
 0x576   :  { %16879 = vmatprep.mubr.f32.mxu1 %v21531_v42  ;;  %16918 = vmatpush3.msra.mxu0 %v21398_v60  ;;  %v7438_v60 = vand.u32 4294901760, %v7437_v39  ;;  %v21736_v55 = vsub.f32 %v7116_v5, %v21713_v36  ;;  %v7486_v39 = vand.u32 4294901760, %v21725_v56 }
 0x577   :  { %16981 = vmatprep.subr.mxu1 %v21359_v63  ;;  %17031 = vmatprep.subr.mxu0 %v21280_v34  ;;  %v7448_v18 = vand.u32 4294901760, %v7447_v62 }
 0x578   :  { %16822 = vmatmul.mubr.f32.gmra.mxu0 %v7408_v28  ;;  %16982 = vmatpush3.msra.mxu1 %v21359_v63  ;;  %v7457_v28 = vsub.f32 %v21685_v20, %v24887_v38  ;;  %v7477_v38 = vsub.f32 %v21711_v22, %v24889_v8 }
 0x579   :  { %16880 = vmatmul.mubr.f32.gmra.mxu1 %v21547_v31  ;;  %16824 = vmatprep.mubr.f32.mxu0 %v7418_v19  ;;  %v7467_v19 = vsub.f32 %v21703_v24, %v24888_v6  ;;  %v21745_v31 = vsub.f32 %v7119_v33, %v21727_v10  ;;  %v7487_v6 = vsub.f32 %v21725_v56, %v7486_v39 }
 0x57a   :  { %16882 = vmatprep.mubr.f32.mxu1 %v21557_v21  ;;  %17095 = vmatprep.subr.mxu1 %v21246_v43  ;;  %v7458_v5 = vand.u32 4294901760, %v7457_v28 }
 0x57b   :  { %v7468_v62 = vand.u32 4294901760, %v7467_v19  ;;  %v7506_v33 = vand.u32 4294901760, %v21745_v31  ;;  %v7488_v8 = vand.u32 4294901760, %v7487_v6  ;;  %v25594_v6 = vld [vmem:[#allocation80_spill] sm:$0xff] }
 0x57c   :  { %16825 = vmatmul.mubr.f32.gmra.mxu0 %v7428_v51  ;;  %v7496_v51 = vand.u32 4294901760, %v21736_v55 }
 0x57d   :  { %16883 = vmatmul.mubr.f32.gmra.mxu1 %v21575_v61  ;;  %16827 = vmatprep.mubr.f32.mxu0 %v7438_v60  ;;  %v7478_v60 = vand.u32 4294901760, %v7477_v38 }
 0x57e   :  { %16885 = vmatprep.mubr.f32.mxu1 %v21585_v48  ;;  %v7497_v28 = vsub.f32 %v21736_v55, %v7496_v51 }
 0x580   :  { %16828 = vmatmul.mubr.f32.gmra.mxu0 %v7448_v18  ;;  %v7507_v18 = vsub.f32 %v21745_v31, %v7506_v33  ;;  %v7498_v19 = vand.u32 4294901760, %v7497_v28  ;;  %v25605_v28 = vand.u32 4294901760, %v21425_v15 }
 0x581   :  { %16886 = vmatmul.mubr.f32.gmra.mxu1 %v21589_v23  ;;  %16830 = vmatprep.mubr.f32.mxu0 %v7458_v5  ;;  %v25596_v5 = vand.u32 4294901760, %v21322_v54 }
 0x582   :  { %16888 = vmatprep.mubr.f32.mxu1 %v21591_v44  ;;  %v7508_v38 = vand.u32 4294901760, %v7507_v18  ;;  %v25607_v18 = vand.u32 4294901760, %v21446_v3 }
 0x584   :  { %16831 = vmatmul.mubr.f32.gmra.mxu0 %v7468_v62  ;;  %v25597_v62 = vld [vmem:[#allocation70_spill] sm:$0xff] }
 0x585   :  { %16889 = vmatmul.mubr.f32.gmra.mxu1 %v21621_v41  ;;  %16833 = vmatprep.mubr.f32.mxu0 %v7478_v60  ;;  %v25598_v60 = vand.u32 4294901760, %v21345_v12 }
 0x586   :  { %16891 = vmatprep.mubr.f32.mxu1 %v21629_v26 }
 0x588   :  { %16834 = vmatmul.mubr.f32.gmra.mxu0 %v7488_v8  ;;  %v25595_v8 = vld [vmem:[#allocation19_spill] sm:$0xff] }
 0x589   :  { %16892 = vmatmul.mubr.f32.gmra.mxu1 %v21654_v35  ;;  %16836 = vmatprep.mubr.f32.mxu0 %v7498_v19  ;;  %v25609_v19 = vand.u32 4294901760, %v21459_v29 }
 0x58a   :  { %16894 = vmatprep.mubr.f32.mxu1 %v21661_v58 }
 0x58c   :  { %16837 = vmatmul.mubr.f32.gmra.mxu0 %v7508_v38  ;;  %v25613_v38 = vand.u32 4294901760, %v21480_v25 }
 0x58d   :  { %16895 = vmatmul.mubr.f32.gmra.mxu1 %v21680_v16  ;;  %16919 = vmatprep.mubr.f32.mxu0 %v21322_v54  ;;  %v25600_v54 = vand.u32 4294901760, %v25595_v8 }
 0x58e   :  { %16897 = vmatprep.mubr.f32.mxu1 %v21687_v2 }
 0x590   :  { %16920 = vmatmul.mubr.f32.vlgmr.msra.gmra.mxu0 %v21345_v12  ;;  %v25601_v12 = vand.u32 4294901760, %v21401_v4 }
 0x591   :  { %16898 = vmatmul.mubr.f32.gmra.mxu1 %v21705_v57  ;;  %16922 = vmatprep.mubr.f32.mxu0 %v21362_v45 }
 0x592   :  { %16900 = vmatprep.mubr.f32.mxu1 %v21713_v36  ;;  %17032 = vmatpush3.msra.mxu0 %v21280_v34  ;;  %v25599_v34 = vand.u32 4294901760, %v21362_v45  ;;  %v25602_v45 = vld [vmem:[#allocation67_spill] sm:$0xff] }
 0x593   :  { %17033 = vmatprep.subr.mxu0 %v25594_v6 }
 0x594   :  { %16923 = vmatmul.mubr.f32.gmra.mxu0 %v25595_v8 }
 0x595   :  { %16901 = vmatmul.mubr.f32.gmra.mxu1 %v21727_v10  ;;  %16925 = vmatprep.mubr.f32.mxu0 %v21401_v4  ;;  %v25606_v4 = vld [vmem:[#allocation56_spill] sm:$0xff] }
 0x596   :  { %16983 = vmatprep.mubr.f32.mxu1 %v25596_v5  ;;  %17034 = vmatpush3.msra.mxu0 %v25594_v6  ;;  %v25621_v6 = vld [vmem:[#allocation33_spill] sm:$0xff]  ;;  %v25625_v5 = vand.u32 4294901760, %v21583_v13 }
 0x597   :  { %17035 = vmatprep.subr.mxu0 %v25597_v62 }
 0x598   :  { %16926 = vmatmul.mubr.f32.gmra.mxu0 %v21409_v53 }
 0x599   :  { %16984 = vmatmul.mubr.f32.vlgmr.msra.gmra.mxu1 %v25598_v60  ;;  %16928 = vmatprep.mubr.f32.mxu0 %v21425_v15  ;;  %v25610_v15 = vld [vmem:[#allocation37_spill] sm:$0xff]  ;;  %v25633_v60 = vand.u32 4294901760, %v21685_v20 }
 0x59a   :  { %16986 = vmatprep.mubr.f32.mxu1 %v25599_v34  ;;  %17096 = vmatpush3.msra.mxu1 %v21246_v43  ;;  %v25603_v43 = vld [vmem:[#allocation46_spill] sm:$0xff]  ;;  %v25635_v34 = vld [vmem:[#allocation35_spill] sm:$0xff] }
 0x59b   :  { %17097 = vmatprep.subr.mxu1 %v21250_v47  ;;  %17036 = vmatpush3.msra.mxu0 %v25597_v62  ;;  %v25631_v62 = vand.u32 4294901760, %v21652_v32 }
 0x59c   :  { %16929 = vmatmul.mubr.f32.gmra.mxu0 %v21446_v3  ;;  %17098 = vmatpush3.msra.mxu1 %v21250_v47  ;;  %v25604_v47 = vand.u32 4294901760, %v21409_v53  ;;  %v25608_v53 = vld [vmem:[#allocation32_spill] sm:$0xff]  ;;  %v25612_v3 = vld [vmem:[#allocation74_spill] sm:$0xff] }
 0x59d   :  { %16987 = vmatmul.mubr.f32.gmra.mxu1 %v25600_v54  ;;  %16931 = vmatprep.mubr.f32.mxu0 %v21459_v29  ;;  %v25614_v29 = vld [vmem:[#allocation69_spill] sm:$0xff]  ;;  %v25637_v54 = vld [vmem:[#allocation59_spill] sm:$0xff] }
 0x59e   :  { %16989 = vmatprep.mubr.f32.mxu1 %v25601_v12  ;;  %17037 = vmatprep.subr.mxu0 %v25602_v45  ;;  %v25645_v12 = vld [vmem:[#allocation27_spill] sm:$0xff] }
 0x59f   :  { %17038 = vmatpush3.msra.mxu0 %v25602_v45  ;;  %17099 = vmatprep.subr.mxu1 %v21264_v27 }
 0x5a0   :  { %16932 = vmatmul.mubr.f32.gmra.mxu0 %v21477_v0  ;;  %17039 = vmatprep.subr.mxu0 %v25603_v43 }
 0x5a1   :  { %16990 = vmatmul.mubr.f32.gmra.mxu1 %v25604_v47  ;;  %16934 = vmatprep.mubr.f32.mxu0 %v21480_v25  ;;  %v25617_v25 = vld [vmem:[#allocation57_spill] sm:$0xff] }
 0x5a2   :  { %16992 = vmatprep.mubr.f32.mxu1 %v25605_v28  ;;  %17040 = vmatpush3.msra.mxu0 %v25603_v43  ;;  %v25623_v8 = vand.u32 4294901760, %v25617_v25  ;;  %v25646_v43 = vld [vmem:[#allocation72_spill] sm:$0xff] }
 0x5a3   :  { %17100 = vmatpush3.msra.mxu1 %v21264_v27  ;;  %17041 = vmatprep.subr.mxu0 %v25606_v4  ;;  %v25611_v27 = vand.u32 4294901760, %v21477_v0  ;;  %v25616_v0 = vand.u32 4294901760, %v25608_v53 }
 0x5a4   :  { %16935 = vmatmul.mubr.f32.gmra.mxu0 %v21492_v50  ;;  %17101 = vmatprep.subr.mxu1 %v21275_v37 }
 0x5a5   :  { %16993 = vmatmul.mubr.f32.gmra.mxu1 %v25607_v18  ;;  %16937 = vmatprep.mubr.f32.mxu0 %v25608_v53  ;;  %v25648_v18 = vld [vmem:[#allocation34_spill] sm:$0xff] }
 0x5a6   :  { %16995 = vmatprep.mubr.f32.mxu1 %v25609_v19  ;;  %17042 = vmatpush3.msra.mxu0 %v25606_v4  ;;  %v25647_v4 = vld [vmem:[#allocation50_spill] sm:$0xff] }
 0x5a7   :  { %17043 = vmatprep.subr.mxu0 %v25610_v15  ;;  %17102 = vmatpush3.msra.mxu1 %v21275_v37  ;;  %v25615_v37 = vand.u32 4294901760, %v21492_v50  ;;  %v25619_v50 = vand.u32 4294901760, %v25612_v3 }
 0x5a8   :  { %16938 = vmatmul.mubr.f32.gmra.mxu0 %v21516_v14  ;;  %17103 = vmatprep.subr.mxu1 %v21298_v1 }
 0x5a9   :  { %16996 = vmatmul.mubr.f32.gmra.mxu1 %v25611_v27  ;;  %16940 = vmatprep.mubr.f32.mxu0 %v25612_v3  ;;  %v25649_v27 = vld [vmem:[#allocation30_spill] sm:$0xff] }
 0x5aa   :  { %16998 = vmatprep.mubr.f32.mxu1 %v25613_v38  ;;  %17044 = vmatpush3.msra.mxu0 %v25610_v15 }
 0x5ab   :  { %17045 = vmatprep.subr.mxu0 %v25614_v29  ;;  %17104 = vmatpush3.msra.mxu1 %v21298_v1  ;;  %v25618_v1 = vand.u32 4294901760, %v21516_v14  ;;  %v25622_v14 = vand.u32 4294901760, %v21555_v59 }
 0x5ac   :  { %16941 = vmatmul.mubr.f32.gmra.mxu0 %v21543_v40  ;;  %17105 = vmatprep.subr.mxu1 %v21306_v46 }
 0x5ad   :  { %16999 = vmatmul.mubr.f32.gmra.mxu1 %v25615_v37  ;;  %16943 = vmatprep.mubr.f32.mxu0 %v21555_v59  ;;  %v25628_v59 = vand.u32 4294901760, %v21616_v9 }
 0x5ae   :  { %17001 = vmatprep.mubr.f32.mxu1 %v25616_v0  ;;  %17046 = vmatpush3.msra.mxu0 %v25614_v29 }
 0x5af   :  { %17106 = vmatpush3.msra.mxu1 %v21306_v46  ;;  %v25620_v46 = vand.u32 4294901760, %v21543_v40  ;;  %v25627_v40 = vand.u32 4294901760, %v25621_v6 }
 0x5b0   :  { %16944 = vmatmul.mubr.f32.gmra.mxu0 %v25617_v25  ;;  %17107 = vmatprep.subr.mxu1 %v21342_v17 }
 0x5b1   :  { %17002 = vmatmul.mubr.f32.gmra.mxu1 %v25618_v1  ;;  %16946 = vmatprep.mubr.f32.mxu0 %v21583_v13 }
 0x5b2   :  { %17004 = vmatprep.mubr.f32.mxu1 %v25619_v50  ;;  %17108 = vmatpush3.msra.mxu1 %v21342_v17  ;;  %v25624_v17 = vld [vmem:[#allocation51_spill] sm:$0xff]  ;;  %v25650_v50 = vld [vmem:[#allocation61_spill] sm:$0xff] }
 0x5b3   :  { %17109 = vmatprep.subr.mxu1 %v21359_v63  ;;  %v25629_v13 = vand.u32 4294901760, %v25624_v17 }
 0x5b4   :  { %16947 = vmatmul.mubr.f32.gmra.mxu0 %v21600_v11  ;;  %17110 = vmatpush3.msra.mxu1 %v21359_v63  ;;  %v25626_v63 = vand.u32 4294901760, %v21600_v11  ;;  %v25630_v11 = vand.u32 4294901760, %v21644_v30 }
 0x5b5   :  { %17005 = vmatmul.mubr.f32.gmra.mxu1 %v25620_v46  ;;  %16949 = vmatprep.mubr.f32.mxu0 %v25621_v6 }
 0x5b6   :  { %17007 = vmatprep.mubr.f32.mxu1 %v25622_v14 }
 0x5b8   :  { %16950 = vmatmul.mubr.f32.gmra.mxu0 %v21616_v9  ;;  %v25632_v9 = vand.u32 4294901760, %v21678_v52 }
 0x5b9   :  { %17008 = vmatmul.mubr.f32.gmra.mxu1 %v25623_v8  ;;  %16952 = vmatprep.mubr.f32.mxu0 %v25624_v17 }
 0x5ba   :  { %17010 = vmatprep.mubr.f32.mxu1 %v25625_v5 }
 0x5bc   :  { %16953 = vmatmul.mubr.f32.gmra.mxu0 %v21644_v30  ;;  %v25634_v30 = vand.u32 4294901760, %v21703_v24 }
 0x5bd   :  { %17011 = vmatmul.mubr.f32.gmra.mxu1 %v25626_v63  ;;  %16955 = vmatprep.mubr.f32.mxu0 %v21652_v32  ;;  %v25636_v32 = vand.u32 4294901760, %v21711_v22 }
 0x5be   :  { %17013 = vmatprep.mubr.f32.mxu1 %v25627_v40 }
 0x5c0   :  { %16956 = vmatmul.mubr.f32.gmra.mxu0 %v21678_v52  ;;  %v25638_v52 = vld [vmem:[#allocation38_spill] sm:$0xff] }
 0x5c1   :  { %17014 = vmatmul.mubr.f32.gmra.mxu1 %v25628_v59  ;;  %16958 = vmatprep.mubr.f32.mxu0 %v21685_v20  ;;  %v25639_v20 = vld [vmem:[#allocation54_spill] sm:$0xff] }
 0x5c2   :  { %17016 = vmatprep.mubr.f32.mxu1 %v25629_v13 }
 0x5c4   :  { %16959 = vmatmul.mubr.f32.gmra.mxu0 %v21703_v24  ;;  %v25640_v24 = vld [vmem:[#allocation75_spill] sm:$0xff] }
 0x5c5   :  { %17017 = vmatmul.mubr.f32.gmra.mxu1 %v25630_v11  ;;  %16961 = vmatprep.mubr.f32.mxu0 %v21711_v22  ;;  %v25641_v22 = vld [vmem:[#allocation71_spill] sm:$0xff] }
 0x5c6   :  { %17019 = vmatprep.mubr.f32.mxu1 %v25631_v62 }
 0x5c8   :  { %16962 = vmatmul.mubr.f32.gmra.mxu0 %v21725_v56  ;;  %v25642_v56 = vld [vmem:[#allocation77_spill] sm:$0xff] }
 0x5c9   :  { %17020 = vmatmul.mubr.f32.gmra.mxu1 %v25632_v9  ;;  %16964 = vmatprep.mubr.f32.mxu0 %v21736_v55 }
 0x5ca   :  { %17022 = vmatprep.mubr.f32.mxu1 %v25633_v60 }
 0x5cc   :  { %16965 = vmatmul.mubr.f32.gmra.mxu0 %v21745_v31  ;;  %v25644_v31 = vld [vmem:[#allocation39_spill] sm:$0xff] }
 0x5cd   :  { %17023 = vmatmul.mubr.f32.gmra.mxu1 %v25634_v30  ;;  %17047 = vmatprep.mubr.f32.mxu0 %v25635_v34 }
 0x5ce   :  { %17025 = vmatprep.mubr.f32.mxu1 %v25636_v32 }
 0x5d0   :  { %17048 = vmatmul.mubr.f32.vlgmr.msra.gmra.mxu0 %v25637_v54 }
 0x5d1   :  { %17026 = vmatmul.mubr.f32.gmra.mxu1 %v7486_v39  ;;  %17050 = vmatprep.mubr.f32.mxu0 %v25638_v52 }
 0x5d2   :  { %17028 = vmatprep.mubr.f32.mxu1 %v7496_v51  ;;  %v25643_v51 = vld [vmem:[#allocation79_spill] sm:$0xff] }
 0x5d4   :  { %17051 = vmatmul.mubr.f32.gmra.mxu0 %v25639_v20 }
 0x5d5   :  { %17029 = vmatmul.mubr.f32.gmra.mxu1 %v7506_v33  ;;  %17053 = vmatprep.mubr.f32.mxu0 %v25640_v24 }
 0x5d6   :  { %17111 = vmatprep.mubr.f32.mxu1 %v25635_v34 }
 0x5d8   :  { %17054 = vmatmul.mubr.f32.gmra.mxu0 %v25641_v22 }
 0x5d9   :  { %17112 = vmatmul.mubr.f32.vlgmr.msra.gmra.mxu1 %v25637_v54  ;;  %17056 = vmatprep.mubr.f32.mxu0 %v25642_v56  ;;  %v21909_v39 = vpop.f32.mrf.mxu0 }
 0x5da   :  { %17114 = vmatprep.mubr.f32.mxu1 %v25638_v52 }
 0x5db   :  { %v21912_v55 = vpop.f32.mrf.mxu0 }
 0x5dc   :  { %17057 = vmatmul.mubr.f32.gmra.mxu0 %v25643_v51 }
 0x5dd   :  { %17115 = vmatmul.mubr.f32.gmra.mxu1 %v25639_v20  ;;  %17059 = vmatprep.mubr.f32.mxu0 %v25644_v31 }
 0x5de   :  { %17117 = vmatprep.mubr.f32.mxu1 %v25640_v24  ;;  %v21918_v33 = vpop.f32.mrf.mxu0 }
 0x5e0   :  { %17060 = vmatmul.mubr.f32.gmra.mxu0 %v25645_v12  ;;  %v21921_v45 = vpop.f32.mrf.mxu0 }
 0x5e1   :  { %17118 = vmatmul.mubr.f32.gmra.mxu1 %v25641_v22  ;;  %17062 = vmatprep.mubr.f32.mxu0 %v25646_v43 }
 0x5e2   :  { %17120 = vmatprep.mubr.f32.mxu1 %v25642_v56 }
 0x5e3   :  { %v21926_v47 = vpop.f32.mrf.mxu0  ;;  %v16685_v28 = vpop.f32.mrf.mxu1 }
 0x5e4   :  { %17063 = vmatmul.mubr.f32.gmra.mxu0 %v25647_v4  ;;  %v6433_v62 = vadd.f32 %v16685_v28, %v21909_v39 }
 0x5e5   :  { %17121 = vmatmul.mubr.f32.gmra.mxu1 %v25643_v51  ;;  %17065 = vmatprep.mubr.f32.mxu0 %v25648_v18  ;;  %v21931_v53 = vpop.f32.mrf.mxu0  ;;  %v6426_v19 = vpop.f32.mrf.mxu1 }
 0x5e6   :  { %17123 = vmatprep.mubr.f32.mxu1 %v25644_v31  ;;  %v6427_v30 = vadd.f32 %v6426_v19, %v21912_v55 }
 0x5e7   :  { %v21934_v15 = vpop.f32.mrf.mxu0 }
 0x5e8   :  { %17066 = vmatmul.mubr.f32.gmra.mxu0 %v25649_v27  ;;  %v16688_v3 = vpop.f32.mrf.mxu1 }
 0x5e9   :  { %17124 = vmatmul.mubr.f32.gmra.mxu1 %v25645_v12  ;;  %17068 = vmatprep.mubr.f32.mxu0 %v21496_v49  ;;  %v21939_v38 = vpop.f32.mrf.mxu0 }
 0x5ea   :  { %17126 = vmatprep.mubr.f32.mxu1 %v25646_v43  ;;  %v6438_v29 = vpop.f32.mrf.mxu1 }
 0x5eb   :  { %v16705_v37 = vpop.f32.mrf.mxu0  ;;  %v6439_v39 = vadd.f32 %v6438_v29, %v21921_v45 }
 0x5ec   :  { %17069 = vmatmul.mubr.f32.gmra.mxu0 %v21521_v7  ;;  %v21943_v0 = vpop.f32.mrf.mxu1 }
 0x5ed   :  { %17127 = vmatmul.mubr.f32.gmra.mxu1 %v25647_v4  ;;  %17071 = vmatprep.mubr.f32.mxu0 %v21531_v42  ;;  %v6548_v25 = vpop.f32.mrf.mxu0  ;;  %v6457_v45 = vadd.f32 %v21943_v0, %v21926_v47 }
 0x5ee   :  { %17129 = vmatprep.mubr.f32.mxu1 %v25648_v18  ;;  %v21948_v1 = vpop.f32.mrf.mxu1  ;;  %v6549_v32 = vadd.f32 %v6548_v25, %v6427_v30 }
 0x5ef   :  { %v6451_v19 = vadd.f32 %v21948_v1, %v21931_v53 }
 0x5f0   :  { %17072 = vmatmul.mubr.f32.gmra.mxu0 %v25650_v50  ;;  %v21951_v46 = vpop.f32.mrf.mxu1  ;;  %v16708_v6 = vpop.f32.mrf.mxu0 }
 0x5f1   :  { %17130 = vmatmul.mubr.f32.gmra.mxu1 %v25649_v27  ;;  %17074 = vmatprep.mubr.f32.mxu0 %v21557_v21  ;;  %v6469_v25 = vadd.f32 %v21951_v46, %v21934_v15 }
 0x5f2   :  { %17132 = vmatprep.mubr.f32.mxu1 %v21496_v49  ;;  %v21956_v14 = vpop.f32.mrf.mxu1  ;;  %v6562_v8 = vpop.f32.mrf.mxu0 }
 0x5f4   :  { %17075 = vmatmul.mubr.f32.gmra.mxu0 %v21575_v61  ;;  %v21959_v17 = vpop.f32.mrf.mxu0  ;;  %v16725_v5 = vpop.f32.mrf.mxu1 }
 0x5f5   :  { %17133 = vmatmul.mubr.f32.gmra.mxu1 %v21521_v7  ;;  %17077 = vmatprep.mubr.f32.mxu0 %v21585_v48  ;;  %v6584_v27 = vadd.f32 %v21959_v17, %v6457_v45 }
 0x5f6   :  { %17135 = vmatprep.mubr.f32.mxu1 %v21531_v42  ;;  %v21964_v63 = vpop.f32.mrf.mxu0  ;;  %v6674_v40 = vpop.f32.mrf.mxu1 }
 0x5f7   :  { %v6675_v24 = vadd.f32 %v6674_v40, %v6549_v32 }
 0x5f8   :  { %17078 = vmatmul.mubr.f32.gmra.mxu0 %v21589_v23  ;;  %v21967_v49 = vpop.f32.mrf.mxu0 }
 0x5f9   :  { %17136 = vmatmul.mubr.f32.gmra.mxu1 %v25650_v50  ;;  %17080 = vmatprep.mubr.f32.mxu0 %v21591_v44  ;;  %v16728_v59 = vpop.f32.mrf.mxu1  ;;  %v6463_v50 = vadd.f32 %v21956_v14, %v21939_v38 }
 0x5fa   :  { %17138 = vmatprep.mubr.f32.mxu1 %v21557_v21  ;;  %v21972_v13 = vpop.f32.mrf.mxu0  ;;  %v6556_v21 = vadd.f32 %v16705_v37, %v6433_v62 }
 0x5fb   :  { %v6690_v7 = vpop.f32.mrf.mxu1 }
 0x5fc   :  { %17081 = vmatmul.mubr.f32.gmra.mxu0 %v21621_v41  ;;  %v16745_v42 = vpop.f32.mrf.mxu0  ;;  %v6683_v54 = vadd.f32 %v16725_v5, %v6556_v21 }
 0x5fd   :  { %17139 = vmatmul.mubr.f32.gmra.mxu1 %v21575_v61  ;;  %17083 = vmatprep.mubr.f32.mxu0 %v21629_v26  ;;  %v16731_v11 = vpop.f32.mrf.mxu1 }
 0x5fe   :  { %17141 = vmatprep.mubr.f32.mxu1 %v21585_v48  ;;  %v6813_v9 = vpop.f32.mrf.mxu0  ;;  %v6445_v48 = vadd.f32 %v16688_v3, %v21918_v33  ;;  %v6820_v22 = vadd.f32 %v16745_v42, %v6683_v54  ;;  %v6563_v33 = vadd.f32 %v6562_v8, %v6439_v39  ;;  %v6715_v0 = vadd.f32 %v16731_v11, %v6584_v27 }
 0x5ff   :  { %v6706_v60 = vpop.f32.mrf.mxu1  ;;  %v6814_v51 = vadd.f32 %v6813_v9, %v6675_v24 }
 0x600   :  { %17084 = vmatmul.mubr.f32.gmra.mxu0 %v21654_v35  ;;  %v16748_v34 = vpop.f32.mrf.mxu0  ;;  %v6570_v55 = vadd.f32 %v16708_v6, %v6445_v48  ;;  %v6598_v6 = vadd.f32 %v21967_v49, %v6469_v25 }
 0x601   :  { %17142 = vmatmul.mubr.f32.gmra.mxu1 %v21589_v23  ;;  %17086 = vmatprep.mubr.f32.mxu0 %v21661_v58  ;;  %v16734_v61 = vpop.f32.mrf.mxu1 }
 0x602   :  { %17144 = vmatprep.mubr.f32.mxu1 %v21591_v44  ;;  %v6825_v52 = vpop.f32.mrf.mxu0  ;;  %v6699_v12 = vadd.f32 %v16728_v59, %v6570_v55  ;;  %v6731_v15 = vadd.f32 %v16734_v61, %v6598_v6 }
 0x603   :  { %v6722_v20 = vpop.f32.mrf.mxu1 }
 0x604   :  { %17087 = vmatmul.mubr.f32.gmra.mxu0 %v21680_v16  ;;  %v16751_v56 = vpop.f32.mrf.mxu0  ;;  %v6832_v4 = vadd.f32 %v16748_v34, %v6699_v12 }
 0x605   :  { %17145 = vmatmul.mubr.f32.gmra.mxu1 %v21621_v41  ;;  %17089 = vmatprep.mubr.f32.mxu0 %v21687_v2  ;;  %v16765_v23 = vpop.f32.mrf.mxu1  ;;  %v6691_v41 = vadd.f32 %v6690_v7, %v6563_v33  ;;  %v6844_v1 = vadd.f32 %v16751_v56, %v6715_v0 }
 0x606   :  { %17147 = vmatprep.mubr.f32.mxu1 %v21629_v26  ;;  %v6937_v44 = vadd.f32 %v16765_v23, %v6820_v22  ;;  %v6837_v31 = vpop.f32.mrf.mxu0 }
 0x607   :  { %v6930_v43 = vpop.f32.mrf.mxu1  ;;  %v6826_v3 = vadd.f32 %v6825_v52, %v6691_v41 }
 0x608   :  { %6977 = vst.msk [vmem:[#allocation13 + $0xc8] sm:$0xff] %vm3383_vm2, %v6937_v44  ;;  %17090 = vmatmul.mubr.f32.gmra.mxu0 %v21705_v57  ;;  %v6931_v28 = vadd.f32 %v6930_v43, %v6814_v51 }
 0x609   :  { %17148 = vmatmul.mubr.f32.gmra.mxu1 %v21654_v35  ;;  %17092 = vmatprep.mubr.f32.mxu0 %v21713_v36  ;;  %v6577_v35 = vadd.f32 %v21964_v63, %v6451_v19 }
 0x60a   :  { %6976 = vst.msk [vmem:[#allocation13 + $0xc0] sm:$0xff] %vm3383_vm2, %v6931_v28  ;;  %17150 = vmatprep.mubr.f32.mxu1 %v21661_v58  ;;  %v16754_v26 = vpop.f32.mrf.mxu0  ;;  %v16768_v18 = vpop.f32.mrf.mxu1 }
 0x60b   :  { %v6949_v29 = vadd.f32 %v16768_v18, %v6832_v4  ;;  %v6707_v53 = vadd.f32 %v6706_v60, %v6577_v35  ;;  %v6856_v14 = vadd.f32 %v16754_v26, %v6731_v15 }
 0x60c   :  { %17093 = vmatmul.mubr.f32.gmra.mxu0 %v21727_v10  ;;  %v6849_v47 = vpop.f32.mrf.mxu0  ;;  %v6942_v37 = vpop.f32.mrf.mxu1 }
 0x60d   :  { %6979 = vst.msk [vmem:[#allocation13 + $0xd8] sm:$0xff] %vm3383_vm2, %v6949_v29  ;;  %17151 = vmatmul.mubr.f32.gmra.mxu1 %v21680_v16  ;;  %v6943_v58 = vadd.f32 %v6942_v37, %v6826_v3  ;;  %v6838_v5 = vadd.f32 %v6837_v31, %v6707_v53  ;;  %v6591_v16 = vadd.f32 %v21972_v13, %v6463_v50 }
 0x60e   :  { %17153 = vmatprep.mubr.f32.mxu1 %v21687_v2 }
 0x60f   :  { %6978 = vst.msk [vmem:[#allocation13 + $0xd0] sm:$0xff] %vm3383_vm2, %v6943_v58  ;;  %v6723_v38 = vadd.f32 %v6722_v20, %v6591_v16 }
 0x610   :  { %v16771_v8 = vpop.f32.mrf.mxu1  ;;  %v16793_v17 = vpop.f32.mrf.mxu0 }
 0x611   :  { %v6961_v63 = vadd.f32 %v16771_v8, %v6844_v1  ;;  %17154 = vmatmul.mubr.f32.gmra.mxu1 %v21705_v57  ;;  %v6850_v57 = vadd.f32 %v6849_v47, %v6723_v38 }
 0x612   :  { %v6954_v46 = vpop.f32.mrf.mxu1  ;;  %v22014_v2 = vpop.f32.mrf.mxu0  ;;  %17156 = vmatprep.mubr.f32.mxu1 %v21713_v36 }
 0x613   :  { %6981 = vst.msk [vmem:[#allocation13 + $0xe8] sm:$0xff] %vm3383_vm2, %v6961_v63  ;;  %v6955_v40 = vadd.f32 %v6954_v46, %v6838_v5 }
 0x614   :  { %v16796_v49 = vpop.f32.mrf.mxu0 }
 0x615   :  { %6980 = vst.msk [vmem:[#allocation13 + $0xe0] sm:$0xff] %vm3383_vm2, %v6955_v40  ;;  %v16774_v59 = vpop.f32.mrf.mxu1  ;;  %17157 = vmatmul.mubr.f32.gmra.mxu1 %v21727_v10 }
 0x616   :  { %v6973_v7 = vadd.f32 %v16774_v59, %v6856_v14  ;;  %v22020_v13 = vpop.f32.mrf.mxu0 }
 0x617   :  { %v6966_v42 = vpop.f32.mrf.mxu1 }
 0x618   :  { %6983 = vst.msk [vmem:[#allocation13 + $0xf8] sm:$0xff] %vm3383_vm2, %v6973_v7  ;;  %v6967_v11 = vadd.f32 %v6966_v42, %v6850_v57  ;;  %v16799_v36 = vpop.f32.mrf.mxu0 }
 0x619   :  { %v16857_v62 = vpop.f32.mrf.mxu1 }
 0x61a   :  { %6982 = vst.msk [vmem:[#allocation13 + $0xf0] sm:$0xff] %vm3383_vm2, %v6967_v11  ;;  %v22024_v9 = vadd.f32 %v16857_v62, %v16793_v17  ;;  %v22026_v60 = vpop.f32.mrf.mxu0 }
 0x61b   :  { %v22028_v30 = vpop.f32.mrf.mxu1 }
 0x61c   :  { %v16802_v21 = vpop.f32.mrf.mxu0 }
 0x61d   :  { %v16860_v10 = vpop.f32.mrf.mxu1 }
 0x61e   :  { %v22030_v34 = vadd.f32 %v16860_v10, %v16796_v49  ;;  %v22032_v61 = vpop.f32.mrf.mxu0 }
 0x61f   :  { %v22034_v32 = vpop.f32.mrf.mxu1 }
 0x620   :  { %v16805_v54 = vpop.f32.mrf.mxu0 }
 0x621   :  { %v16863_v52 = vpop.f32.mrf.mxu1 }
 0x622   :  { %v22036_v48 = vadd.f32 %v16863_v52, %v16799_v36  ;;  %v22038_v20 = vpop.f32.mrf.mxu0 }
 0x623   :  { %v22040_v24 = vpop.f32.mrf.mxu1 }
 0x624   :  { %v16808_v22 = vpop.f32.mrf.mxu0 }
 0x625   :  { %v16866_v56 = vpop.f32.mrf.mxu1 }
 0x626   :  { %v22042_v39 = vadd.f32 %v16866_v56, %v16802_v21  ;;  %v22044_v55 = vpop.f32.mrf.mxu0 }
 0x627   :  { %v22046_v23 = vpop.f32.mrf.mxu1 }
 0x628   :  { %v16811_v51 = vpop.f32.mrf.mxu0 }
 0x629   :  { %v16869_v44 = vpop.f32.mrf.mxu1 }
 0x62a   :  { %v22048_v31 = vadd.f32 %v16869_v44, %v16805_v54  ;;  %v22050_v33 = vpop.f32.mrf.mxu0 }
 0x62b   :  { %v22052_v12 = vpop.f32.mrf.mxu1 }
 0x62c   :  { %v16814_v43 = vpop.f32.mrf.mxu0 }
 0x62d   :  { %v16872_v28 = vpop.f32.mrf.mxu1 }
 0x62e   :  { %v22054_v45 = vadd.f32 %v16872_v28, %v16808_v22  ;;  %v22056_v41 = vpop.f32.mrf.mxu0 }
 0x62f   :  { %v22058_v4 = vpop.f32.mrf.mxu1 }
 0x630   :  { %v16817_v26 = vpop.f32.mrf.mxu0 }
 0x631   :  { %v16875_v18 = vpop.f32.mrf.mxu1 }
 0x632   :  { %v22060_v19 = vadd.f32 %v16875_v18, %v16811_v51  ;;  %v22062_v27 = vpop.f32.mrf.mxu0 }
 0x633   :  { %v22064_v3 = vpop.f32.mrf.mxu1 }
 0x634   :  { %v16820_v29 = vpop.f32.mrf.mxu0 }
 0x635   :  { %v16878_v47 = vpop.f32.mrf.mxu1 }
 0x636   :  { %v22066_v37 = vadd.f32 %v16878_v47, %v16814_v43  ;;  %v22068_v35 = vpop.f32.mrf.mxu0 }
 0x637   :  { %v22070_v0 = vpop.f32.mrf.mxu1 }
 0x638   :  { %v16823_v58 = vpop.f32.mrf.mxu0 }
 0x639   :  { %v16881_v25 = vpop.f32.mrf.mxu1 }
 0x63a   :  { %v22072_v53 = vadd.f32 %v16881_v25, %v16817_v26  ;;  %v22074_v1 = vpop.f32.mrf.mxu0 }
 0x63b   :  { %v22076_v50 = vpop.f32.mrf.mxu1 }
 0x63c   :  { %v16826_v6 = vpop.f32.mrf.mxu0 }
 0x63d   :  { %v16884_v8 = vpop.f32.mrf.mxu1 }
 0x63e   :  { %v22078_v17 = vadd.f32 %v16884_v8, %v16820_v29  ;;  %v22080_v5 = vpop.f32.mrf.mxu0 }
 0x63f   :  { %v22082_v63 = vpop.f32.mrf.mxu1 }
 0x640   :  { %v16829_v16 = vpop.f32.mrf.mxu0 }
 0x641   :  { %v16887_v15 = vpop.f32.mrf.mxu1 }
 0x642   :  { %v22084_v46 = vadd.f32 %v16887_v15, %v16823_v58  ;;  %v22086_v40 = vpop.f32.mrf.mxu0 }
 0x643   :  { %v22088_v38 = vpop.f32.mrf.mxu1 }
 0x644   :  { %v16832_v14 = vpop.f32.mrf.mxu0 }
 0x645   :  { %v16890_v49 = vpop.f32.mrf.mxu1 }
 0x646   :  { %v22090_v59 = vadd.f32 %v16890_v49, %v16826_v6  ;;  %v22092_v57 = vpop.f32.mrf.mxu0 }
 0x647   :  { %v22094_v7 = vpop.f32.mrf.mxu1 }
 0x648   :  { %v16835_v42 = vpop.f32.mrf.mxu0 }
 0x649   :  { %v16893_v11 = vpop.f32.mrf.mxu1 }
 0x64a   :  { %v22096_v36 = vadd.f32 %v16893_v11, %v16829_v16  ;;  %v22098_v62 = vpop.f32.mrf.mxu0 }
 0x64b   :  { %v22100_v21 = vpop.f32.mrf.mxu1 }
 0x64c   :  { %v16838_v10 = vpop.f32.mrf.mxu0 }
 0x64d   :  { %v16896_v54 = vpop.f32.mrf.mxu1 }
 0x64e   :  { %v22102_v52 = vadd.f32 %v16896_v54, %v16832_v14  ;;  %v22104_v22 = vpop.f32.mrf.mxu0 }
 0x64f   :  { %v22106_v56 = vpop.f32.mrf.mxu1 }
 0x650   :  { %v16921_v51 = vpop.f32.mrf.mxu0 }
 0x651   :  { %v16899_v44 = vpop.f32.mrf.mxu1  ;;  %v7903_v43 = vadd.f32 %v16921_v51, %v22024_v9 }
 0x652   :  { %v22109_v28 = vadd.f32 %v16899_v44, %v16835_v42  ;;  %v22111_v26 = vpop.f32.mrf.mxu0 }
 0x653   :  { %v22113_v18 = vpop.f32.mrf.mxu1 }
 0x654   :  { %v16924_v29 = vpop.f32.mrf.mxu0 }
 0x655   :  { %v16902_v47 = vpop.f32.mrf.mxu1  ;;  %v7917_v58 = vadd.f32 %v16924_v29, %v22030_v34 }
 0x656   :  { %v22116_v25 = vadd.f32 %v16902_v47, %v16838_v10  ;;  %v22118_v6 = vpop.f32.mrf.mxu0 }
 0x657   :  { %v22120_v8 = vpop.f32.mrf.mxu1 }
 0x658   :  { %25651 = vst [vmem:[#allocation24_spill] sm:$0xff] %v22116_v25  ;;  %v16927_v16 = vpop.f32.mrf.mxu0 }
 0x659   :  { %v7931_v15 = vadd.f32 %v16927_v16, %v22036_v48  ;;  %v16985_v9 = vpop.f32.mrf.mxu1 }
 0x65a   :  { %v22123_v14 = vadd.f32 %v16985_v9, %v7903_v43  ;;  %v22125_v49 = vpop.f32.mrf.mxu0 }
 0x65b   :  { %v22127_v42 = vpop.f32.mrf.mxu1 }
 0x65c   :  { %25652 = vst [vmem:[#allocation53_spill] sm:$0xff] %v22127_v42  ;;  %v16930_v11 = vpop.f32.mrf.mxu0 }
 0x65d   :  { %v7945_v54 = vadd.f32 %v16930_v11, %v22042_v39  ;;  %v16988_v34 = vpop.f32.mrf.mxu1 }
 0x65e   :  { %v22130_v10 = vadd.f32 %v16988_v34, %v7917_v58  ;;  %v22132_v51 = vpop.f32.mrf.mxu0 }
 0x65f   :  { %25653 = vst [vmem:[#allocation23_spill] sm:$0xff] %v22132_v51  ;;  %v22134_v44 = vpop.f32.mrf.mxu1 }
 0x660   :  { %25654 = vst [vmem:[#allocation25_spill] sm:$0xff] %v22134_v44  ;;  %v16933_v29 = vpop.f32.mrf.mxu0 }
 0x661   :  { %v7959_v48 = vadd.f32 %v16933_v29, %v22048_v31  ;;  %v16991_v47 = vpop.f32.mrf.mxu1 }
 0x662   :  { %v22137_v43 = vadd.f32 %v16991_v47, %v7931_v15  ;;  %v22139_v16 = vpop.f32.mrf.mxu0 }
 0x663   :  { %25655 = vst [vmem:[#allocation43_spill] sm:$0xff] %v22139_v16  ;;  %v22141_v9 = vpop.f32.mrf.mxu1 }
 0x664   :  { %25656 = vst [vmem:[#allocation73_spill] sm:$0xff] %v22141_v9  ;;  %v16936_v25 = vpop.f32.mrf.mxu0 }
 0x665   :  { %v7973_v39 = vadd.f32 %v16936_v25, %v22054_v45  ;;  %v16994_v11 = vpop.f32.mrf.mxu1 }
 0x666   :  { %v22144_v58 = vadd.f32 %v16994_v11, %v7945_v54  ;;  %v22146_v34 = vpop.f32.mrf.mxu0 }
 0x667   :  { %25657 = vst [vmem:[#allocation55_spill] sm:$0xff] %v22146_v34  ;;  %v22148_v51 = vpop.f32.mrf.mxu1 }
 0x668   :  { %25658 = vst [vmem:[#allocation41_spill] sm:$0xff] %v22148_v51  ;;  %v16939_v44 = vpop.f32.mrf.mxu0  ;;  %v8992_v51 = vld [vmem:[#allocation5 + $0x8] sm:$0xff] }
 0x669   :  { %v7987_v31 = vadd.f32 %v16939_v44, %v22060_v19  ;;  %v16997_v29 = vpop.f32.mrf.mxu1  ;;  %v22164_v19 = vand.u32 4294901760, %v8992_v51 }
 0x66a   :  { %v22151_v15 = vadd.f32 %v16997_v29, %v7959_v48  ;;  %v22153_v47 = vpop.f32.mrf.mxu0 }
 0x66b   :  { %v22155_v16 = vpop.f32.mrf.mxu1  ;;  %25663 = vst [vmem:[#allocation31_spill] sm:$0xff] %v22164_v19  ;;  %9449 = vmatprep.mubr.f32.mxu1 %v22164_v19 }
 0x66c   :  { %25659 = vst [vmem:[#allocation52_spill] sm:$0xff] %v22151_v15  ;;  %v16942_v9 = vpop.f32.mrf.mxu0 }
 0x66d   :  { %v8001_v45 = vadd.f32 %v16942_v9, %v22066_v37  ;;  %v17000_v25 = vpop.f32.mrf.mxu1  ;;  %v22172_v37 = vsub.f32 %v8992_v51, %v22164_v19 }
 0x66e   :  { %v22158_v54 = vadd.f32 %v17000_v25, %v7973_v39  ;;  %v22160_v11 = vpop.f32.mrf.mxu0 }
 0x66f   :  { %25661 = vst [vmem:[#allocation20_spill] sm:$0xff] %v22160_v11  ;;  %v22162_v34 = vpop.f32.mrf.mxu1  ;;  %25666 = vst [vmem:[#allocation48_spill] sm:$0xff] %v22172_v37  ;;  %v24892_v25 = vand.u32 4294901760, %v22172_v37 }
 0x670   :  { %25660 = vst [vmem:[#allocation45_spill] sm:$0xff] %v22158_v54  ;;  %25662 = vst [vmem:[#allocation66_spill] sm:$0xff] %v22162_v34  ;;  %v16945_v42 = vpop.f32.mrf.mxu0 }
 0x671   :  { %v8015_v44 = vadd.f32 %v16945_v42, %v22072_v53  ;;  %v17003_v48 = vpop.f32.mrf.mxu1  ;;  %v9106_v42 = vsub.f32 %v22172_v37, %v24892_v25 }
 0x672   :  { %v22167_v29 = vadd.f32 %v17003_v48, %v7987_v31  ;;  %v22169_v15 = vpop.f32.mrf.mxu0 }
 0x673   :  { %25665 = vst [vmem:[#allocation47_spill] sm:$0xff] %v22169_v15  ;;  %v22175_v9 = vpop.f32.mrf.mxu1  ;;  %v9107_v48 = vand.u32 4294901760, %v9106_v42 }
 0x674   :  { %25664 = vst [vmem:[#allocation29_spill] sm:$0xff] %v22167_v29  ;;  %25667 = vst [vmem:[#allocation49_spill] sm:$0xff] %v22175_v9  ;;  %v16948_v39 = vpop.f32.mrf.mxu0 }
 0x675   :  { %v8029_v54 = vadd.f32 %v16948_v39, %v22078_v17  ;;  %v17006_v34 = vpop.f32.mrf.mxu1  ;;  %9108 = vmatprep.mubr.f32.mxu0 %v9107_v48 }
 0x676   :  { %v22179_v11 = vadd.f32 %v17006_v34, %v8001_v45  ;;  %v22181_v53 = vpop.f32.mrf.mxu0 }
 0x677   :  { %v22186_v51 = vpop.f32.mrf.mxu1 }
 0x678   :  { %25668 = vst [vmem:[#allocation76_spill] sm:$0xff] %v22179_v11  ;;  %v16951_v31 = vpop.f32.mrf.mxu0 }
 0x679   :  { %v8043_v19 = vadd.f32 %v16951_v31, %v22084_v46  ;;  %v17009_v29 = vpop.f32.mrf.mxu1 }
 0x67a   :  { %v22189_v9 = vadd.f32 %v17009_v29, %v8015_v44  ;;  %v22191_v15 = vpop.f32.mrf.mxu0 }
 0x67b   :  { %v22193_v17 = vpop.f32.mrf.mxu1 }
 0x67c   :  { %25669 = vst [vmem:[#allocation22_spill] sm:$0xff] %v22189_v9  ;;  %v16954_v34 = vpop.f32.mrf.mxu0 }
 0x67d   :  { %v8057_v45 = vadd.f32 %v16954_v34, %v22090_v59  ;;  %v17012_v39 = vpop.f32.mrf.mxu1 }
 0x67e   :  { %v22196_v11 = vadd.f32 %v17012_v39, %v8029_v54  ;;  %v22198_v25 = vpop.f32.mrf.mxu0 }
 0x67f   :  { %v22200_v37 = vpop.f32.mrf.mxu1 }
 0x680   :  { %25670 = vst [vmem:[#allocation36_spill] sm:$0xff] %v22196_v11  ;;  %25671 = vst [vmem:[#allocation28_spill] sm:$0xff] %v22200_v37  ;;  %v16957_v42 = vpop.f32.mrf.mxu0 }
 0x681   :  { %v8071_v46 = vadd.f32 %v16957_v42, %v22096_v36  ;;  %v17015_v44 = vpop.f32.mrf.mxu1 }
 0x682   :  { %v22203_v29 = vadd.f32 %v17015_v44, %v8043_v19  ;;  %v22205_v31 = vpop.f32.mrf.mxu0 }
 0x683   :  { %v22207_v48 = vpop.f32.mrf.mxu1 }
 0x684   :  { %25672 = vst [vmem:[#allocation63_spill] sm:$0xff] %v22203_v29  ;;  %25673 = vst [vmem:[#allocation64_spill] sm:$0xff] %v22207_v48  ;;  %v16960_v9 = vpop.f32.mrf.mxu0 }
 0x685   :  { %v8085_v59 = vadd.f32 %v16960_v9, %v22102_v52  ;;  %v17018_v34 = vpop.f32.mrf.mxu1 }
 0x686   :  { %v22210_v54 = vadd.f32 %v17018_v34, %v8057_v45  ;;  %v22212_v39 = vpop.f32.mrf.mxu0 }
 0x687   :  { %v22214_v11 = vpop.f32.mrf.mxu1 }
 0x688   :  { %25674 = vst [vmem:[#allocation58_spill] sm:$0xff] %v22210_v54  ;;  %25675 = vst [vmem:[#allocation62_spill] sm:$0xff] %v22214_v11  ;;  %v16963_v37 = vpop.f32.mrf.mxu0 }
 0x689   :  { %v8099_v36 = vadd.f32 %v16963_v37, %v22109_v28  ;;  %v17021_v42 = vpop.f32.mrf.mxu1 }
 0x68a   :  { %v22217_v19 = vadd.f32 %v17021_v42, %v8071_v46  ;;  %v22219_v44 = vpop.f32.mrf.mxu0 }
 0x68b   :  { %v22221_v29 = vpop.f32.mrf.mxu1 }
 0x68c   :  { %25676 = vst [vmem:[#allocation40_spill] sm:$0xff] %v22217_v19  ;;  %25677 = vst [vmem:[#allocation26_spill] sm:$0xff] %v22221_v29  ;;  %v22223_v48 = vpop.f32.mrf.mxu0 }
 0x68d   :  { %25678 = vst [vmem:[#allocation78_spill] sm:$0xff] %v22223_v48  ;;  %v17024_v52 = vpop.f32.mrf.mxu1 }
 0x68e   :  { %v22225_v9 = vadd.f32 %v17024_v52, %v8085_v59  ;;  %v22227_v45 = vpop.f32.mrf.mxu0 }
 0x68f   :  { %25680 = vst [vmem:[#allocation68_spill] sm:$0xff] %v22227_v45  ;;  %v22229_v34 = vpop.f32.mrf.mxu1 }
 0x690   :  { %25679 = vst [vmem:[#allocation42_spill] sm:$0xff] %v22225_v9  ;;  %25681 = vst [vmem:[#allocation65_spill] sm:$0xff] %v22229_v34  ;;  %v17049_v54 = vpop.f32.mrf.mxu0 }
 0x691   :  { %v17027_v11 = vpop.f32.mrf.mxu1  ;;  %v8543_v28 = vadd.f32 %v17049_v54, %v22123_v14 }
 0x692   :  { %v22232_v37 = vadd.f32 %v17027_v11, %v8099_v36  ;;  %v22234_v46 = vpop.f32.mrf.mxu0 }
 0x693   :  { %v22236_v42 = vpop.f32.mrf.mxu1 }
 0x694   :  { %25682 = vst [vmem:[#allocation44_spill] sm:$0xff] %v22232_v37  ;;  %25683 = vst [vmem:[#allocation60_spill] sm:$0xff] %v22236_v42  ;;  %v17052_v19 = vpop.f32.mrf.mxu0 }
 0x695   :  { %v22238_v29 = vpop.f32.mrf.mxu1  ;;  %v8555_v59 = vadd.f32 %v17052_v19, %v22130_v10 }
 0x696   :  { %25684 = vst [vmem:[#allocation21_spill] sm:$0xff] %v22238_v29  ;;  %v22241_v52 = vpop.f32.mrf.mxu0 }
 0x697   :  { %25685 = vst [vmem:[#allocation80_spill] sm:$0xff] %v22241_v52  ;;  %v22243_v9 = vpop.f32.mrf.mxu1 }
 0x698   :  { %25686 = vst [vmem:[#allocation19_spill] sm:$0xff] %v22243_v9  ;;  %v17055_v34 = vpop.f32.mrf.mxu0 }
 0x699   :  { %v8567_v45 = vadd.f32 %v17055_v34, %v22137_v43  ;;  %v17113_v48 = vpop.f32.mrf.mxu1 }
 0x69a   :  { %v22246_v14 = vadd.f32 %v17113_v48, %v8543_v28  ;;  %v22248_v11 = vpop.f32.mrf.mxu0 }
 0x69b   :  { %v22250_v54 = vpop.f32.mrf.mxu1 }
 0x69c   :  { %25687 = vst [vmem:[#allocation70_spill] sm:$0xff] %v22246_v14  ;;  %25688 = vst [vmem:[#allocation67_spill] sm:$0xff] %v22250_v54  ;;  %v17058_v36 = vpop.f32.mrf.mxu0 }
 0x69d   :  { %v8579_v37 = vadd.f32 %v17058_v36, %v22144_v58  ;;  %v17116_v29 = vpop.f32.mrf.mxu1 }
 0x69e   :  { %v22253_v42 = vadd.f32 %v17116_v29, %v8555_v59  ;;  %v22255_v10 = vpop.f32.mrf.mxu0 }
 0x69f   :  { %v22257_v19 = vpop.f32.mrf.mxu1 }
 0x6a0   :  { %25689 = vst [vmem:[#allocation46_spill] sm:$0xff] %v22253_v42  ;;  %25690 = vst [vmem:[#allocation56_spill] sm:$0xff] %v22257_v19  ;;  %v22259_v9 = vpop.f32.mrf.mxu0 }
 0x6a1   :  { %v17119_v43 = vpop.f32.mrf.mxu1 }
 0x6a2   :  { %v22261_v34 = vpop.f32.mrf.mxu0  ;;  %v22263_v48 = vadd.f32 %v17119_v43, %v8567_v45  ;;  %v8991_v43 = vld [vmem:[#allocation5] sm:$0xff] }
 0x6a3   :  { %25691 = vst [vmem:[#allocation32_spill] sm:$0xff] %v22261_v34  ;;  %v22265_v28 = vpop.f32.mrf.mxu1 }
 0x6a4   :  { %25692 = vst [vmem:[#allocation37_spill] sm:$0xff] %v22263_v48  ;;  %25693 = vst [vmem:[#allocation74_spill] sm:$0xff] %v22265_v28  ;;  %v22267_v14 = vpop.f32.mrf.mxu0 }
 0x6a5   :  { %v17122_v54 = vpop.f32.mrf.mxu1 }
 0x6a6   :  { %v22269_v58 = vadd.f32 %v17122_v54, %v8579_v37  ;;  %v22271_v29 = vpop.f32.mrf.mxu0  ;;  %v22291_v54 = vand.u32 4294901760, %v8991_v43 }
 0x6a7   :  { %v22273_v59 = vpop.f32.mrf.mxu1 }
 0x6a8   :  { %25694 = vst [vmem:[#allocation69_spill] sm:$0xff] %v22269_v58  ;;  %25695 = vst [vmem:[#allocation57_spill] sm:$0xff] %v22273_v59  ;;  %v22275_v36 = vpop.f32.mrf.mxu0 }
 0x6a9   :  { %25696 = vst [vmem:[#allocation33_spill] sm:$0xff] %v22275_v36  ;;  %v22277_v19 = vpop.f32.mrf.mxu1  ;;  %25703 = vst [vmem:[#allocation71_spill] sm:$0xff] %v22291_v54  ;;  %v8994_v36 = vld [vmem:[#allocation5 + $0x28] sm:$0xff] }
 0x6aa   :  { %v22279_v42 = vpop.f32.mrf.mxu0 }
 0x6ab   :  { %25697 = vst [vmem:[#allocation51_spill] sm:$0xff] %v22279_v42  ;;  %v22281_v52 = vpop.f32.mrf.mxu1 }
 0x6ac   :  { %25698 = vst [vmem:[#allocation35_spill] sm:$0xff] %v22281_v52  ;;  %v22283_v45 = vpop.f32.mrf.mxu0  ;;  %v22304_v52 = vand.u32 4294901760, %v8994_v36 }
 0x6ad   :  { %25699 = vst [vmem:[#allocation59_spill] sm:$0xff] %v22283_v45  ;;  %v22285_v48 = vpop.f32.mrf.mxu1  ;;  %v22302_v45 = vsub.f32 %v8991_v43, %v22291_v54  ;;  %v7670_v43 = vadd.f32 %v22052_v12, %v22038_v20  ;;  %v7682_v54 = vadd.f32 %v22058_v4, %v22044_v55  ;;  %v7766_v12 = vadd.f32 %v22100_v21, %v22086_v40  ;;  %v25715_v21 = vld [vmem:[#allocation25_spill] sm:$0xff] }
 0x6ae   :  { %25700 = vst [vmem:[#allocation38_spill] sm:$0xff] %v22285_v48  ;;  %v22287_v28 = vpop.f32.mrf.mxu0  ;;  %25709 = vst [vmem:[#allocation50_spill] sm:$0xff] %v22304_v52  ;;  %v22338_v55 = vsub.f32 %v8994_v36, %v22304_v52 }
 0x6af   :  { %25701 = vst [vmem:[#allocation54_spill] sm:$0xff] %v22287_v28  ;;  %v22289_v37 = vpop.f32.mrf.mxu1  ;;  %25708 = vst [vmem:[#allocation72_spill] sm:$0xff] %v22302_v45  ;;  %v7622_v28 = vadd.f32 %v22028_v30, %v22014_v2  ;;  %v7694_v2 = vadd.f32 %v22064_v3, %v22050_v33  ;;  %v7730_v30 = vadd.f32 %v22082_v63, %v22068_v35  ;;  %v25713_v63 = vld [vmem:[#allocation53_spill] sm:$0xff] }
 0x6b0   :  { %25702 = vst [vmem:[#allocation75_spill] sm:$0xff] %v22289_v37  ;;  %v22293_v59 = vpop.f32.mrf.mxu0  ;;  %v7634_v37 = vadd.f32 %v22034_v32, %v22020_v13  ;;  %v7706_v13 = vadd.f32 %v22070_v0, %v22056_v41  ;;  %v7742_v32 = vadd.f32 %v22088_v38, %v22074_v1  ;;  %25710 = vst [vmem:[#allocation34_spill] sm:$0xff] %v22338_v55  ;;  %v25714_v38 = vld [vmem:[#allocation23_spill] sm:$0xff] }
 0x6b1   :  { %25704 = vst [vmem:[#allocation77_spill] sm:$0xff] %v22293_v59  ;;  %v22295_v58 = vpop.f32.mrf.mxu1  ;;  %v8993_v59 = vld [vmem:[#allocation5 + $0x20] sm:$0xff]  ;;  %v7754_v33 = vadd.f32 %v22094_v7, %v22080_v5  ;;  %v7896_v41 = vadd.f32 %v22111_v26, %v7622_v28  ;;  %v7778_v3 = vadd.f32 %v22106_v56, %v22092_v57  ;;  %v7790_v35 = vadd.f32 %v22113_v18, %v22098_v62  ;;  %v8996_v5 = vld [vmem:[#allocation5 + $0x48] sm:$0xff] }
 0x6b2   :  { %25705 = vst [vmem:[#allocation79_spill] sm:$0xff] %v22295_v58  ;;  %v22297_v34 = vpop.f32.mrf.mxu0  ;;  %v7646_v58 = vadd.f32 %v22040_v24, %v22026_v60  ;;  %v7718_v60 = vadd.f32 %v22076_v50, %v22062_v27  ;;  %v24901_v24 = vand.u32 4294901760, %v22302_v45  ;;  %v7910_v4 = vadd.f32 %v22118_v6, %v7634_v37  ;;  %v25716_v6 = vld [vmem:[#allocation43_spill] sm:$0xff]  ;;  %v25722_v37 = vld [vmem:[#allocation41_spill] sm:$0xff] }
 0x6b3   :  { %25706 = vst [vmem:[#allocation39_spill] sm:$0xff] %v22297_v34  ;;  %v22299_v42 = vpop.f32.mrf.mxu1  ;;  %v7658_v34 = vadd.f32 %v22046_v23, %v22032_v61  ;;  %v22340_v23 = vand.u32 4294901760, %v8993_v59  ;;  %v7802_v0 = vadd.f32 %v22120_v8, %v22104_v22  ;;  %v8194_v40 = vadd.f32 %v25713_v63, %v7896_v41  ;;  %v8995_v62 = vld [vmem:[#allocation5 + $0x40] sm:$0xff] }
 0x6b4   :  { %25707 = vst [vmem:[#allocation27_spill] sm:$0xff] %v22299_v42  ;;  %v22310_v48 = vpop.f32.mrf.mxu0  ;;  %v7924_v1 = vadd.f32 %v22125_v49, %v7646_v58  ;;  %v22362_v26 = vadd.f32 %v25715_v21, %v7910_v4  ;;  %v7952_v57 = vadd.f32 %v25716_v6, %v7670_v43  ;;  %v25717_v18 = vld [vmem:[#allocation55_spill] sm:$0xff]  ;;  %v22373_v8 = vsub.f32 %v22302_v45, %v24901_v24  ;;  %v25721_v58 = vld [vmem:[#allocation73_spill] sm:$0xff]  ;;  %v25725_v6 = vld [vmem:[#allocation66_spill] sm:$0xff] }
 0x6b5   :  { %v22320_v42 = vpop.f32.mrf.mxu1  ;;  %25711 = vst [vmem:[#allocation30_spill] sm:$0xff] %v22340_v23  ;;  %v7938_v7 = vadd.f32 %v25714_v38, %v7658_v34  ;;  %v7966_v28 = vadd.f32 %v25717_v18, %v7682_v54  ;;  %v22377_v34 = vsub.f32 %v8993_v59, %v22340_v23  ;;  %v7980_v41 = vadd.f32 %v22153_v47, %v7694_v2  ;;  %v25724_v38 = vld [vmem:[#allocation20_spill] sm:$0xff]  ;;  %v25727_v49 = vld [vmem:[#allocation47_spill] sm:$0xff] }
 0x6b6   :  { %v22330_v61 = vpop.f32.mrf.mxu0  ;;  %25719 = vst [vmem:[#allocation23_spill] sm:$0xff] %v22373_v8  ;;  %v8226_v36 = vadd.f32 %v25721_v58, %v7924_v1  ;;  %v22384_v54 = vand.u32 4294901760, %v8996_v5  ;;  %v8258_v63 = vadd.f32 %v22155_v16, %v7952_v57  ;;  %v7994_v21 = vadd.f32 %v25724_v38, %v7706_v13  ;;  %v25728_v58 = vld [vmem:[#allocation49_spill] sm:$0xff]  ;;  %v25729_v2 = vld [vmem:[#allocation52_spill] sm:$0xff]  ;;  %v25772_v8 = vld [vmem:[#allocation51_spill] sm:$0xff] }
 0x6b7   :  { %v22334_v20 = vpop.f32.mrf.mxu1  ;;  %25720 = vst [vmem:[#allocation25_spill] sm:$0xff] %v22377_v34  ;;  %v8242_v43 = vadd.f32 %v25722_v37, %v7938_v7  ;;  %v8274_v18 = vadd.f32 %v25725_v6, %v7966_v28  ;;  %v22391_v59 = vand.u32 4294901760, %v8995_v62  ;;  %v8008_v1 = vadd.f32 %v25727_v49, %v7718_v60  ;;  %v25741_v57 = vld [vmem:[#allocation45_spill] sm:$0xff] }
 0x6b8   :  { %v22348_v27 = vpop.f32.mrf.mxu0  ;;  %25723 = vst [vmem:[#allocation43_spill] sm:$0xff] %v22384_v54  ;;  %v22395_v7 = vadd.f32 %v25728_v58, %v7980_v41  ;;  %v8022_v47 = vadd.f32 %v22181_v53, %v7730_v30  ;;  %v8591_v37 = vadd.f32 %v22259_v9, %v25729_v2  ;;  %v22403_v16 = vadd.f32 %v22186_v51, %v7994_v21  ;;  %v25733_v21 = vld [vmem:[#allocation28_spill] sm:$0xff] }
 0x6b9   :  { %v22357_v50 = vpop.f32.mrf.mxu1  ;;  %25726 = vst [vmem:[#allocation55_spill] sm:$0xff] %v22391_v59  ;;  %v25730_v28 = vand.u32 4294901760, %v22338_v55  ;;  %v8036_v53 = vadd.f32 %v22191_v15, %v7742_v32  ;;  %v8050_v9 = vadd.f32 %v22198_v25, %v7754_v33  ;;  %v22420_v51 = vsub.f32 %v8996_v5, %v22384_v54  ;;  %v25735_v25 = vld [vmem:[#allocation64_spill] sm:$0xff]  ;;  %v25736_v33 = vld [vmem:[#allocation62_spill] sm:$0xff]  ;;  %v25760_v54 = vld [vmem:[#allocation35_spill] sm:$0xff] }
 0x6ba   :  { %25712 = vst [vmem:[#allocation61_spill] sm:$0xff] %v22357_v50  ;;  %v22365_v56 = vpop.f32.mrf.mxu0  ;;  %v8856_v30 = vadd.f32 %v22277_v19, %v8591_v37  ;;  %v22423_v38 = vadd.f32 %v22193_v17, %v8008_v1  ;;  %v22426_v6 = vadd.f32 %v25733_v21, %v8022_v47  ;;  %v8064_v58 = vadd.f32 %v22205_v31, %v7766_v12  ;;  %v25737_v47 = vld [vmem:[#allocation26_spill] sm:$0xff]  ;;  %v25738_v31 = vld [vmem:[#allocation24_spill] sm:$0xff] }
 0x6bb   :  { %v22368_v22 = vpop.f32.mrf.mxu1  ;;  %v22411_v60 = vsub.f32 %v22338_v55, %v25730_v28  ;;  %25732 = vst [vmem:[#allocation41_spill] sm:$0xff] %v22420_v51  ;;  %v22432_v15 = vsub.f32 %v8995_v62, %v22391_v59  ;;  %v22435_v19 = vadd.f32 %v25735_v25, %v8036_v53  ;;  %v8078_v32 = vadd.f32 %v22212_v39, %v7778_v3  ;;  %v25739_v12 = vld [vmem:[#allocation78_spill] sm:$0xff]  ;;  %v25740_v62 = vld [vmem:[#allocation68_spill] sm:$0xff]  ;;  %v25742_v39 = vld [vmem:[#allocation65_spill] sm:$0xff] }
 0x6bc   :  { %25718 = vst [vmem:[#allocation53_spill] sm:$0xff] %v22368_v22  ;;  %v22382_v4 = vpop.f32.mrf.mxu0  ;;  %v22439_v5 = vadd.f32 %v25736_v33, %v8050_v9  ;;  %v8092_v17 = vadd.f32 %v22219_v44, %v7790_v35  ;;  %v22445_v37 = vadd.f32 %v25737_v47, %v8064_v58  ;;  %v8113_v28 = vadd.f32 %v25739_v12, %v25738_v31  ;;  %v25744_v33 = vld [vmem:[#allocation60_spill] sm:$0xff]  ;;  %v25755_v55 = vld [vmem:[#allocation75_spill] sm:$0xff] }
 0x6bd   :  { %v22389_v24 = vpop.f32.mrf.mxu1  ;;  %25731 = vst [vmem:[#allocation73_spill] sm:$0xff] %v22411_v60  ;;  %25734 = vst [vmem:[#allocation20_spill] sm:$0xff] %v22432_v15  ;;  %v8106_v21 = vadd.f32 %v25740_v62, %v7802_v0  ;;  %v8603_v53 = vadd.f32 %v22267_v14, %v25741_v57  ;;  %v22455_v3 = vadd.f32 %v25742_v39, %v8078_v32  ;;  %v22459_v9 = vand.u32 4294901760, %v8856_v30  ;;  %v25745_v57 = vld [vmem:[#allocation38_spill] sm:$0xff]  ;;  %v25746_v32 = vld [vmem:[#allocation21_spill] sm:$0xff] }
 0x6be   :  { %v22400_v45 = vpop.f32.mrf.mxu0  ;;  %v8537_v44 = vadd.f32 %v22234_v46, %v8194_v40  ;;  %v8561_v35 = vadd.f32 %v22248_v11, %v8226_v36  ;;  %v22464_v47 = vadd.f32 %v25744_v33, %v8092_v17  ;;  %v8573_v0 = vadd.f32 %v22255_v10, %v8242_v43  ;;  %v25747_v46 = vld [vmem:[#allocation32_spill] sm:$0xff]  ;;  %v25748_v40 = vld [vmem:[#allocation74_spill] sm:$0xff]  ;;  %v25749_v39 = vld [vmem:[#allocation69_spill] sm:$0xff] }
 0x6bf   :  { %v22405_v13 = vpop.f32.mrf.mxu1  ;;  %25743 = vst [vmem:[#allocation66_spill] sm:$0xff] %v22459_v9  ;;  %v8597_v14 = vadd.f32 %v22271_v29, %v8274_v18  ;;  %v8868_v31 = vadd.f32 %v25745_v57, %v8603_v53  ;;  %v22472_v62 = vadd.f32 %v25746_v32, %v8113_v28  ;;  %v8585_v11 = vadd.f32 %v25747_v46, %v8258_v63  ;;  %v25751_v33 = vld [vmem:[#allocation80_spill] sm:$0xff]  ;;  %v25752_v43 = vld [vmem:[#allocation57_spill] sm:$0xff]  ;;  %v25756_v32 = vld [vmem:[#allocation19_spill] sm:$0xff] }
 0x6c0   :  { %v22417_v41 = vpop.f32.mrf.mxu0  ;;  %v8826_v36 = vadd.f32 %v25748_v40, %v8561_v35  ;;  %v22477_v49 = vand.u32 4294901760, %v25749_v39  ;;  %v8549_v10 = vadd.f32 %v25751_v33, %v22362_v26  ;;  %v8838_v29 = vadd.f32 %v25752_v43, %v8573_v0  ;;  %v25753_v18 = vld [vmem:[#allocation29_spill] sm:$0xff]  ;;  %v25757_v35 = vld [vmem:[#allocation67_spill] sm:$0xff]  ;;  %v25761_v0 = vld [vmem:[#allocation70_spill] sm:$0xff] }
 0x6c1   :  { %v22429_v2 = vpop.f32.mrf.mxu1  ;;  %v25754_v53 = vld [vmem:[#allocation33_spill] sm:$0xff]  ;;  %v8862_v59 = vadd.f32 %v25755_v55, %v8597_v14  ;;  %v22488_v63 = vadd.f32 %v25756_v32, %v8106_v21  ;;  %v22491_v46 = vadd.f32 %v25757_v35, %v8537_v44  ;;  %v22494_v40 = vsub.f32 %v8856_v30, %v22459_v9  ;;  %v25765_v14 = vld [vmem:[#allocation79_spill] sm:$0xff]  ;;  %v25766_v44 = vld [vmem:[#allocation56_spill] sm:$0xff] }
 0x6c2   :  { %v22442_v1 = vpop.f32.mrf.mxu0  ;;  %25750 = vst [vmem:[#allocation47_spill] sm:$0xff] %v22477_v49  ;;  %v8615_v57 = vadd.f32 %v25754_v53, %v25753_v18  ;;  %v8850_v26 = vadd.f32 %v25760_v54, %v8585_v11  ;;  %v22498_v43 = vand.u32 4294901760, %v25761_v0  ;;  %v25763_v18 = vld [vmem:[#allocation46_spill] sm:$0xff]  ;;  %v22503_v55 = vand.u32 4294901760, %v8868_v31  ;;  %v25768_v30 = vld [vmem:[#allocation37_spill] sm:$0xff] }
 0x6c3   :  { %v22452_v25 = vpop.f32.mrf.mxu1  ;;  %25758 = vst [vmem:[#allocation49_spill] sm:$0xff] %v22491_v46  ;;  %25759 = vst [vmem:[#allocation52_spill] sm:$0xff] %v22494_v40  ;;  %v22501_v53 = vand.u32 4294901760, %v25763_v18  ;;  %v22509_v35 = vadd.f32 %v25766_v44, %v8549_v10  ;;  %v22512_v23 = vand.u32 4294901760, %v25768_v30  ;;  %v22514_v54 = vand.u32 4294901760, %v8826_v36 }
 0x6c4   :  { %v22461_v58 = vpop.f32.mrf.mxu0  ;;  %25762 = vst [vmem:[#allocation28_spill] sm:$0xff] %v22498_v43  ;;  %v8880_v21 = vadd.f32 %v25765_v14, %v8615_v57  ;;  %v22518_v11 = vsub.f32 %v25749_v39, %v22477_v49  ;;  %v22520_v52 = vand.u32 4294901760, %v8838_v29  ;;  %v8609_v15 = vadd.f32 %v25772_v8, %v22395_v7  ;;  %v25773_v57 = vld [vmem:[#allocation76_spill] sm:$0xff]  ;;  %v25774_v14 = vld [vmem:[#allocation59_spill] sm:$0xff]  ;;  %v25777_v43 = vld [vmem:[#allocation54_spill] sm:$0xff] }
 0x6c5   :  { %v22469_v12 = vpop.f32.mrf.mxu1  ;;  %25764 = vst [vmem:[#allocation64_spill] sm:$0xff] %v22501_v53  ;;  %25767 = vst [vmem:[#allocation62_spill] sm:$0xff] %v22509_v35  ;;  %v8627_v34 = vadd.f32 %v25774_v14, %v25773_v57  ;;  %v22526_v60 = vand.u32 4294901760, %v8862_v59  ;;  %v22531_v51 = vand.u32 4294901760, %v22491_v46  ;;  %v22534_v39 = vand.u32 4294901760, %v8850_v26  ;;  %v25779_v57 = vld [vmem:[#allocation27_spill] sm:$0xff] }
 0x6c6   :  { %v8692_v17 = vpop.f32.mrf.mxu0  ;;  %25769 = vst [vmem:[#allocation26_spill] sm:$0xff] %v22512_v23  ;;  %25770 = vst [vmem:[#allocation24_spill] sm:$0xff] %v22514_v54  ;;  %v8621_v49 = vadd.f32 %v25777_v43, %v22403_v16  ;;  %v22539_v8 = vsub.f32 %v8868_v31, %v22503_v55  ;;  %v22541_v7 = vand.u32 4294901760, %v8880_v21  ;;  %v8874_v14 = vadd.f32 %v25779_v57, %v8609_v15  ;;  %v25787_v43 = vld [vmem:[#allocation77_spill] sm:$0xff] }
 0x6c7   :  { %v22485_v28 = vpop.f32.mrf.mxu1  ;;  %25771 = vst [vmem:[#allocation78_spill] sm:$0xff] %v22520_v52  ;;  %25775 = vst [vmem:[#allocation68_spill] sm:$0xff] %v22531_v51  ;;  %v8892_v22 = vadd.f32 %v22320_v42, %v8627_v34  ;;  %v22547_v46 = vsub.f32 %v25763_v18, %v22501_v53  ;;  %v22550_v0 = vand.u32 4294901760, %v22509_v35  ;;  %v22554_v16 = vsub.f32 %v25768_v30, %v22512_v23  ;;  %v25786_v53 = vld [vmem:[#allocation22_spill] sm:$0xff] }
 0x6c8   :  { %v17091_v33 = vpop.f32.mrf.mxu0  ;;  %25776 = vst [vmem:[#allocation45_spill] sm:$0xff] %v22534_v39  ;;  %25778 = vst [vmem:[#allocation65_spill] sm:$0xff] %v22541_v7  ;;  %v22557_v31 = vsub.f32 %v8826_v36, %v22514_v54  ;;  %v22561_v15 = vsub.f32 %v8838_v29, %v22520_v52  ;;  %v22564_v42 = vsub.f32 %v8862_v59, %v22526_v60  ;;  %v25784_v51 = vand.u32 4294901760, %v22494_v40  ;;  %v25788_v29 = vld [vmem:[#allocation44_spill] sm:$0xff] }
 0x6c9   :  { %v22506_v32 = vpop.f32.mrf.mxu1  ;;  %25780 = vst [vmem:[#allocation60_spill] sm:$0xff] %v22547_v46  ;;  %25781 = vst [vmem:[#allocation38_spill] sm:$0xff] %v22550_v0  ;;  %v8886_v34 = vadd.f32 %v22334_v20, %v8621_v49  ;;  %v22573_v36 = vsub.f32 %v8850_v26, %v22534_v39  ;;  %v22577_v54 = vadd.f32 %v25787_v43, %v25786_v53  ;;  %v22584_v49 = vand.u32 4294901760, %v8874_v14  ;;  %v25790_v0 = vld [vmem:[#allocation42_spill] sm:$0xff] }
 0x6ca   :  { %v8704_v10 = vpop.f32.mrf.mxu0  ;;  %25782 = vst [vmem:[#allocation21_spill] sm:$0xff] %v22554_v16  ;;  %25783 = vst [vmem:[#allocation32_spill] sm:$0xff] %v22557_v31  ;;  %v22570_v30 = vsub.f32 %v22494_v40, %v25784_v51  ;;  %v8711_v46 = vadd.f32 %v17091_v33, %v25788_v29  ;;  %v22582_v20 = vsub.f32 %v8880_v21, %v22541_v7  ;;  %v22586_v35 = vand.u32 4294901760, %v8892_v22  ;;  %v25789_v40 = vld [vmem:[#allocation36_spill] sm:$0xff] }
 0x6cb   :  { %v22528_v44 = vpop.f32.mrf.mxu1  ;;  %v22590_v26 = vadd.f32 %v22310_v48, %v25789_v40  ;;  %v8699_v53 = vadd.f32 %v22461_v58, %v25790_v0  ;;  %v8705_v43 = vadd.f32 %v8704_v10, %v22464_v47  ;;  %v24948_v29 = vand.u32 4294901760, %v22564_v42 }
 0x6cc   :  { %v17094_v18 = vpop.f32.mrf.mxu0  ;;  %25785 = vst [vmem:[#allocation74_spill] sm:$0xff] %v22570_v30  ;;  %v22598_v21 = vadd.f32 %v22330_v61, %v22426_v6  ;;  %v22600_v59 = vand.u32 4294901760, %v8886_v34  ;;  %v8693_v23 = vadd.f32 %v8692_v17, %v22455_v3  ;;  %v24942_v47 = vand.u32 4294901760, %v22582_v20  ;;  %v25792_v6 = vld [vmem:[#allocation40_spill] sm:$0xff] }
 0x6cd   :  { %v17152_v50 = vpop.f32.mrf.mxu1  ;;  %v8723_v48 = vadd.f32 %v17094_v18, %v22472_v62  ;;  %v22611_v61 = vsub.f32 %v8892_v22, %v22586_v35  ;;  %v8687_v0 = vadd.f32 %v22417_v41, %v25792_v6  ;;  %v8681_v22 = vadd.f32 %v22442_v1, %v22445_v37 }
 0x6ce   :  { %v8716_v31 = vpop.f32.mrf.mxu0  ;;  %v8964_v40 = vadd.f32 %v17152_v50, %v8699_v53  ;;  %v22619_v18 = vsub.f32 %v8886_v34, %v22600_v59 }
 0x6cf   :  { %v8957_v57 = vpop.f32.mrf.mxu1  ;;  %v8717_v17 = vadd.f32 %v8716_v31, %v22488_v63  ;;  %v8946_v1 = vadd.f32 %v22528_v44, %v8681_v22 }
 0x6d0   :  { %v8958_v10 = vadd.f32 %v8957_v57, %v8693_v23  ;;  %v22626_v41 = vand.u32 4294901760, %v8964_v40  ;;  %v24939_v57 = vand.u32 4294901760, %v22611_v61  ;;  %v24938_v6 = vand.u32 4294901760, %v22619_v18 }
 0x6d1   :  { %v17155_v51 = vpop.f32.mrf.mxu1 }
 0x6d2   :  { %v8976_v33 = vadd.f32 %v17155_v51, %v8711_v46  ;;  %v22608_v46 = vsub.f32 %v8874_v14, %v22584_v49  ;;  %v8952_v51 = vadd.f32 %v22506_v32, %v8687_v0  ;;  %v22638_v37 = vand.u32 4294901760, %v8958_v10 }
 0x6d3   :  { %v8969_v30 = vpop.f32.mrf.mxu1  ;;  %v8669_v0 = vadd.f32 %v22400_v45, %v22439_v5  ;;  %v9228_v45 = vsub.f32 %v22611_v61, %v24939_v57  ;;  %v8657_v5 = vadd.f32 %v22365_v56, %v22435_v19 }
 0x6d4   :  { %v22604_v52 = vand.u32 4294901760, %v8976_v33  ;;  %v8970_v58 = vadd.f32 %v8969_v30, %v8705_v43  ;;  %v25793_v30 = vld [vmem:[#allocation63_spill] sm:$0xff]  ;;  %v24943_v34 = vand.u32 4294901760, %v22608_v46  ;;  %v25794_v43 = vld [vmem:[#allocation58_spill] sm:$0xff]  ;;  %v22653_v44 = vand.u32 4294901760, %v8952_v51 }
 0x6d5   :  { %v17158_v3 = vpop.f32.mrf.mxu1  ;;  %v8663_v14 = vadd.f32 %v22348_v27, %v25793_v30  ;;  %v8675_v27 = vadd.f32 %v22382_v4, %v25794_v43  ;;  %v22675_v30 = vsub.f32 %v8958_v10, %v22638_v37  ;;  %v9235_v10 = vsub.f32 %v22619_v18, %v24938_v6 }
 0x6d6   :  { %25791 = vst [vmem:[#allocation69_spill] sm:$0xff] %v22604_v52  ;;  %v22616_v62 = vand.u32 4294901760, %v8970_v58  ;;  %v8988_v50 = vadd.f32 %v17158_v3, %v8723_v48  ;;  %v22629_v63 = vsub.f32 %v8976_v33, %v22604_v52  ;;  %25795 = vst [vmem:[#allocation80_spill] sm:$0xff] %v22653_v44 }
 0x6d7   :  { %v8981_v53 = vpop.f32.mrf.mxu1  ;;  %v8940_v4 = vadd.f32 %v22469_v12, %v8675_v27  ;;  %v8934_v12 = vadd.f32 %v22485_v28, %v8669_v0  ;;  %v8928_v56 = vadd.f32 %v22429_v2, %v8663_v14  ;;  %v22687_v28 = vsub.f32 %v8952_v51, %v22653_v44 }
 0x6d8   :  { %v22631_v23 = vand.u32 4294901760, %v8988_v50  ;;  %v8982_v31 = vadd.f32 %v8981_v53, %v8717_v17  ;;  %v22641_v32 = vsub.f32 %v8970_v58, %v22616_v62  ;;  %v22657_v58 = vsub.f32 %v8964_v40, %v22626_v41 }
 0x6d9   :  { %v22671_v40 = vand.u32 4294901760, %v8946_v1  ;;  %v22684_v19 = vand.u32 4294901760, %v8940_v4  ;;  %v9242_v51 = vsub.f32 %v22582_v20, %v24942_v47  ;;  %v8922_v0 = vadd.f32 %v22452_v25, %v8657_v5 }
 0x6da   :  { %v22644_v33 = vsub.f32 %v8988_v50, %v22631_v23  ;;  %v22646_v48 = vand.u32 4294901760, %v8982_v31  ;;  %15065 = vmatprep.subr.mxu0 %v22631_v23  ;;  %v24940_v50 = vand.u32 4294901760, %v22629_v63  ;;  %v24945_v14 = vand.u32 4294901760, %v22657_v58 }
 0x6db   :  { %15066 = vmatpush3.msra.mxu0 %v22586_v35  ;;  %25796 = vst [vmem:[#allocation57_spill] sm:$0xff] %v22671_v40  ;;  %25797 = vst [vmem:[#allocation29_spill] sm:$0xff] %v22684_v19  ;;  %v22705_v6 = vand.u32 4294901760, %v8934_v12  ;;  %v22709_v57 = vsub.f32 %v8946_v1, %v22671_v40  ;;  %v24946_v47 = vand.u32 4294901760, %v22675_v30  ;;  %v8916_v25 = vadd.f32 %v22389_v24, %v22590_v26 }
 0x6dc   :  { %v22660_v3 = vsub.f32 %v8982_v31, %v22646_v48  ;;  %15067 = vmatprep.subr.mxu0 %v22646_v48  ;;  %v24947_v17 = vand.u32 4294901760, %v22644_v33  ;;  %v24944_v31 = vand.u32 4294901760, %v22641_v32  ;;  %v9354_v2 = vsub.f32 %v22629_v63, %v24940_v50 }
 0x6dd   :  { %15068 = vmatpush3.msra.mxu0 %v22600_v59  ;;  %25798 = vst [vmem:[#allocation33_spill] sm:$0xff] %v22705_v6  ;;  %v22718_v5 = vand.u32 4294901760, %v8928_v56  ;;  %v9236_v1 = vand.u32 4294901760, %v9235_v10  ;;  %v9368_v24 = vsub.f32 %v22657_v58, %v24945_v14  ;;  %v24949_v26 = vand.u32 4294901760, %v22687_v28 }
 0x6de   :  { %15069 = vmatprep.subr.mxu0 %v22604_v52  ;;  %v9340_v22 = vsub.f32 %v22644_v33, %v24947_v17  ;;  %v24941_v53 = vand.u32 4294901760, %v22660_v3  ;;  %v24950_v14 = vand.u32 4294901760, %v22709_v57  ;;  %v25804_v17 = vld [vmem:[#allocation61_spill] sm:$0xff] }
 0x6df   :  { %15070 = vmatpush3.msra.mxu0 %v22541_v7  ;;  %25799 = vst [vmem:[#allocation75_spill] sm:$0xff] %v22718_v5 }
 0x6e0   :  { %15071 = vmatprep.subr.mxu0 %v22616_v62  ;;  %v9341_v43 = vand.u32 4294901760, %v9340_v22  ;;  %v9347_v27 = vsub.f32 %v22660_v3, %v24941_v53  ;;  %v9229_v22 = vand.u32 4294901760, %v9228_v45  ;;  %v9361_v53 = vsub.f32 %v22641_v32, %v24944_v31 }
 0x6e1   :  { %15072 = vmatpush3.msra.mxu0 %v22584_v49  ;;  %v9249_v45 = vsub.f32 %v22608_v46, %v24943_v34  ;;  %v8910_v34 = vadd.f32 %v22405_v13, %v22598_v21  ;;  %v22737_v31 = vand.u32 4294901760, %v8922_v0  ;;  %v22749_v21 = vand.u32 4294901760, %v8916_v25 }
 0x6e2   :  { %15073 = vmatprep.subr.mxu0 %v22626_v41  ;;  %15121 = vmatprep.subr.mxu1 %v9341_v43  ;;  %v9348_v50 = vand.u32 4294901760, %v9347_v27  ;;  %v22725_v43 = vsub.f32 %v8940_v4, %v22684_v19  ;;  %v9355_v27 = vand.u32 4294901760, %v9354_v2  ;;  %v9243_v4 = vand.u32 4294901760, %v9242_v51 }
 0x6e3   :  { %15074 = vmatpush3.msra.mxu0 %v22503_v55  ;;  %15122 = vmatpush3.msra.mxu1 %v9229_v22  ;;  %v25800_v22 = vand.u32 4294901760, %v22539_v8  ;;  %25801 = vst [vmem:[#allocation19_spill] sm:$0xff] %v22737_v31  ;;  %v9362_v2 = vand.u32 4294901760, %v9361_v53  ;;  %25802 = vst [vmem:[#allocation67_spill] sm:$0xff] %v22749_v21  ;;  %v9250_v51 = vand.u32 4294901760, %v9249_v45  ;;  %v22756_v53 = vsub.f32 %v8928_v56, %v22718_v5 }
 0x6e4   :  { %15075 = vmatprep.subr.mxu0 %v22638_v37  ;;  %15123 = vmatprep.subr.mxu1 %v9348_v50  ;;  %v22741_v50 = vsub.f32 %v8934_v12, %v22705_v6  ;;  %v9263_v12 = vsub.f32 %v22564_v42, %v24948_v29  ;;  %v8904_v13 = vadd.f32 %v25804_v17, %v22577_v54  ;;  %v22767_v29 = vand.u32 4294901760, %v8910_v34  ;;  %v25807_v17 = vld [vmem:[#allocation53_spill] sm:$0xff] }
 0x6e5   :  { %v9256_v10 = vsub.f32 %v22539_v8, %v25800_v22  ;;  %15076 = vmatpush3.msra.mxu0 %v22526_v60  ;;  %15124 = vmatpush3.msra.mxu1 %v9236_v1  ;;  %v9375_v22 = vsub.f32 %v22675_v30, %v24946_v47  ;;  %v9369_v1 = vand.u32 4294901760, %v9368_v24  ;;  %v22771_v24 = vsub.f32 %v8922_v0, %v22737_v31  ;;  %v25808_v47 = vld [vmem:[#allocation47_spill] sm:$0xff] }
 0x6e6   :  { %15077 = vmatprep.subr.mxu0 %v22653_v44  ;;  %15125 = vmatprep.subr.mxu1 %v9355_v27  ;;  %v9382_v27 = vsub.f32 %v22687_v28, %v24949_v26  ;;  %25805 = vst [vmem:[#allocation35_spill] sm:$0xff] %v22767_v29  ;;  %v25809_v0 = vand.u32 4294901760, %v22573_v36 }
 0x6e7   :  { %15078 = vmatpush3.msra.mxu0 %v22459_v9  ;;  %15126 = vmatpush3.msra.mxu1 %v9243_v4  ;;  %v25803_v4 = vld [vmem:[#allocation39_spill] sm:$0xff]  ;;  %v9257_v56 = vand.u32 4294901760, %v9256_v10  ;;  %25806 = vst [vmem:[#allocation46_spill] sm:$0xff] %v22771_v24  ;;  %v9264_v10 = vand.u32 4294901760, %v9263_v12  ;;  %v25812_v12 = vand.u32 4294901760, %v22518_v11  ;;  %v25830_v9 = vld [vmem:[#allocation70_spill] sm:$0xff] }
 0x6e8   :  { %15079 = vmatprep.subr.mxu0 %v22671_v40  ;;  %15127 = vmatprep.subr.mxu1 %v9362_v2  ;;  %v8633_v45 = vadd.f32 %v25803_v4, %v22423_v38  ;;  %v9376_v2 = vand.u32 4294901760, %v9375_v22  ;;  %v9389_v38 = vsub.f32 %v22709_v57, %v24950_v14  ;;  %v22785_v22 = vsub.f32 %v8916_v25, %v22749_v21  ;;  %v25814_v25 = vld [vmem:[#allocation78_spill] sm:$0xff] }
 0x6e9   :  { %15080 = vmatpush3.msra.mxu0 %v22534_v39  ;;  %15128 = vmatpush3.msra.mxu1 %v9250_v51  ;;  %v9277_v51 = vsub.f32 %v22573_v36, %v25809_v0  ;;  %v25811_v14 = vand.u32 4294901760, %v22725_v43  ;;  %v22796_v0 = vand.u32 4294901760, %v8904_v13  ;;  %v25815_v4 = vld [vmem:[#allocation74_spill] sm:$0xff]  ;;  %v25827_v39 = vand.u32 4294901760, %v22554_v16 }
 0x6ea   :  { %15081 = vmatprep.subr.mxu0 %v22684_v19  ;;  %15129 = vmatprep.subr.mxu1 %v9369_v1  ;;  %v8898_v26 = vadd.f32 %v25807_v17, %v8633_v45  ;;  %25810 = vst [vmem:[#allocation79_spill] sm:$0xff] %v22785_v22  ;;  %v9383_v1 = vand.u32 4294901760, %v9382_v27  ;;  %v9284_v17 = vsub.f32 %v22518_v11, %v25812_v12 }
 0x6eb   :  { %15082 = vmatpush3.msra.mxu0 %v25808_v47  ;;  %15130 = vmatpush3.msra.mxu1 %v9257_v56  ;;  %v9396_v54 = vsub.f32 %v22725_v43, %v25811_v14  ;;  %25813 = vst [vmem:[#allocation56_spill] sm:$0xff] %v22796_v0  ;;  %v22801_v27 = vsub.f32 %v8910_v34, %v22767_v29  ;;  %v9390_v14 = vand.u32 4294901760, %v9389_v38  ;;  %v25817_v56 = vand.u32 4294901760, %v22741_v50  ;;  %v25823_v38 = vld [vmem:[#allocation62_spill] sm:$0xff] }
 0x6ec   :  { %15083 = vmatprep.subr.mxu0 %v22705_v6  ;;  %15131 = vmatprep.subr.mxu1 %v9376_v2  ;;  %v9271_v2 = vand.u32 4294901760, %v25815_v4  ;;  %v25818_v6 = vld [vmem:[#allocation32_spill] sm:$0xff]  ;;  %v22809_v19 = vand.u32 4294901760, %v8898_v26  ;;  %v9278_v4 = vand.u32 4294901760, %v9277_v51  ;;  %v25821_v34 = vand.u32 4294901760, %v22561_v15 }
 0x6ed   :  { %15084 = vmatpush3.msra.mxu0 %v25814_v25  ;;  %15132 = vmatpush3.msra.mxu1 %v9264_v10  ;;  %25816 = vst [vmem:[#allocation37_spill] sm:$0xff] %v22801_v27  ;;  %v9403_v45 = vsub.f32 %v22741_v50, %v25817_v56  ;;  %v25820_v10 = vld [vmem:[#allocation26_spill] sm:$0xff]  ;;  %v9397_v56 = vand.u32 4294901760, %v9396_v54  ;;  %v25825_v47 = vand.u32 4294901760, %v22756_v53  ;;  %v22829_v40 = vsub.f32 %v8904_v13, %v22796_v0  ;;  %v8998_v54 = vld [vmem:[#allocation5 + $0x68] sm:$0xff] }
 0x6ee   :  { %15085 = vmatprep.subr.mxu0 %v22718_v5  ;;  %15133 = vmatprep.subr.mxu1 %v9383_v1  ;;  %25819 = vst [vmem:[#allocation51_spill] sm:$0xff] %v22809_v19  ;;  %v9291_v5 = vsub.f32 %v22561_v15, %v25821_v34  ;;  %v25822_v1 = vld [vmem:[#allocation38_spill] sm:$0xff]  ;;  %v9298_v34 = vsub.f32 %v22554_v16, %v25827_v39  ;;  %v25831_v51 = vand.u32 4294901760, %v22771_v24 }
 0x6ef   :  { %15086 = vmatpush3.msra.mxu0 %v25820_v10  ;;  %15134 = vmatpush3.msra.mxu1 %v9271_v2  ;;  %v22817_v25 = vsub.f32 %v25823_v38, %v25822_v1  ;;  %v9410_v12 = vsub.f32 %v22756_v53, %v25825_v47  ;;  %v25826_v2 = vld [vmem:[#allocation60_spill] sm:$0xff]  ;;  %v9404_v47 = vand.u32 4294901760, %v9403_v45  ;;  %v22842_v10 = vsub.f32 %v8898_v26, %v22809_v19  ;;  %v8997_v45 = vld [vmem:[#allocation5 + $0x60] sm:$0xff] }
 0x6f0   :  { %15087 = vmatprep.subr.mxu0 %v22737_v31  ;;  %15135 = vmatprep.subr.mxu1 %v9390_v14  ;;  %v25828_v38 = vld [vmem:[#allocation24_spill] sm:$0xff]  ;;  %v9285_v14 = vand.u32 4294901760, %v9284_v17  ;;  %v9417_v39 = vsub.f32 %v22771_v24, %v25831_v51  ;;  %v9292_v17 = vand.u32 4294901760, %v9291_v5  ;;  %v25836_v26 = vand.u32 4294901760, %v22785_v22 }
 0x6f1   :  { %25824 = vst [vmem:[#allocation76_spill] sm:$0xff] %v22817_v25  ;;  %15088 = vmatpush3.msra.mxu0 %v25828_v38  ;;  %15136 = vmatpush3.msra.mxu1 %v9278_v4  ;;  %v25829_v31 = vld [vmem:[#allocation28_spill] sm:$0xff]  ;;  %25832 = vst [vmem:[#allocation59_spill] sm:$0xff] %v22842_v10  ;;  %v9411_v51 = vand.u32 4294901760, %v9410_v12  ;;  %v9299_v16 = vand.u32 4294901760, %v9298_v34 }
 0x6f2   :  { %v22834_v44 = vsub.f32 %v25830_v9, %v25829_v31  ;;  %15089 = vmatprep.subr.mxu0 %v22749_v21  ;;  %15137 = vmatprep.subr.mxu1 %v9397_v56  ;;  %v25833_v4 = vld [vmem:[#allocation64_spill] sm:$0xff]  ;;  %v25834_v9 = vand.u32 4294901760, %v25818_v6  ;;  %v25835_v21 = vld [vmem:[#allocation41_spill] sm:$0xff]  ;;  %v9424_v13 = vsub.f32 %v22785_v22, %v25836_v26  ;;  %v9418_v26 = vand.u32 4294901760, %v9417_v39 }
 0x6f3   :  { %15090 = vmatpush3.msra.mxu0 %v25833_v4  ;;  %15138 = vmatpush3.msra.mxu1 %v9285_v14  ;;  %v22854_v4 = vand.u32 4294901760, %v8998_v54  ;;  %v25838_v5 = vld [vmem:[#allocation68_spill] sm:$0xff]  ;;  %v25839_v14 = vld [vmem:[#allocation49_spill] sm:$0xff]  ;;  %v22870_v22 = vand.u32 4294901760, %v8997_v45 }
 0x6f4   :  { %v9305_v38 = vsub.f32 %v25818_v6, %v25834_v9  ;;  %15091 = vmatprep.subr.mxu0 %v22767_v29  ;;  %15139 = vmatprep.subr.mxu1 %v9404_v47  ;;  %v22858_v24 = vsub.f32 %v25839_v14, %v25838_v5  ;;  %v25841_v9 = vand.u32 4294901760, %v25826_v2  ;;  %v25842_v29 = vand.u32 4294901760, %v22801_v27 }
 0x6f5   :  { %25837 = vst [vmem:[#allocation54_spill] sm:$0xff] %v22854_v4  ;;  %15092 = vmatpush3.msra.mxu0 %v25822_v1  ;;  %15140 = vmatpush3.msra.mxu1 %v9292_v17  ;;  %25843 = vst [vmem:[#allocation22_spill] sm:$0xff] %v22870_v22  ;;  %v25844_v17 = vld [vmem:[#allocation73_spill] sm:$0xff]  ;;  %v9425_v39 = vand.u32 4294901760, %v9424_v13  ;;  %v25850_v13 = vand.u32 4294901760, %v25835_v21 }
 0x6f6   :  { %25840 = vst [vmem:[#allocation27_spill] sm:$0xff] %v22858_v24  ;;  %v9312_v56 = vsub.f32 %v25826_v2, %v25841_v9  ;;  %15093 = vmatprep.subr.mxu0 %v22796_v0  ;;  %15141 = vmatprep.subr.mxu1 %v9411_v51  ;;  %v9431_v14 = vsub.f32 %v22801_v27, %v25842_v29  ;;  %v9306_v9 = vand.u32 4294901760, %v9305_v38  ;;  %v9122_v34 = vand.u32 4294901760, %v25844_v17  ;;  %v25845_v1 = vld [vmem:[#allocation25_spill] sm:$0xff]  ;;  %v9000_v51 = vld [vmem:[#allocation5 + $0x88] sm:$0xff] }
 0x6f7   :  { %15094 = vmatpush3.msra.mxu0 %v25829_v31  ;;  %15142 = vmatpush3.msra.mxu1 %v9299_v16  ;;  %v25846_v12 = vand.u32 4294901760, %v25845_v1  ;;  %v25847_v29 = vand.u32 4294901760, %v22817_v25  ;;  %v25848_v31 = vld [vmem:[#allocation20_spill] sm:$0xff]  ;;  %v22884_v38 = vsub.f32 %v8998_v54, %v22854_v4  ;;  %v25849_v0 = vand.u32 4294901760, %v22829_v40 }
 0x6f8   :  { %15095 = vmatprep.subr.mxu0 %v22809_v19  ;;  %15143 = vmatprep.subr.mxu1 %v9418_v26  ;;  %v9136_v19 = vsub.f32 %v25835_v21, %v25850_v13  ;;  %v25851_v16 = vand.u32 4294901760, %v22834_v44  ;;  %v9432_v17 = vand.u32 4294901760, %v9431_v14  ;;  %v25855_v13 = vand.u32 4294901760, %v22842_v10 }
 0x6f9   :  { %v9127_v47 = vsub.f32 %v25845_v1, %v25846_v12  ;;  %v9319_v27 = vsub.f32 %v22817_v25, %v25847_v29  ;;  %15096 = vmatpush3.msra.mxu0 %v25838_v5  ;;  %15144 = vmatpush3.msra.mxu1 %v9306_v9  ;;  %v9313_v12 = vand.u32 4294901760, %v9312_v56  ;;  %v9438_v26 = vsub.f32 %v22829_v40, %v25849_v0  ;;  %v8999_v29 = vld [vmem:[#allocation5 + $0x80] sm:$0xff] }
 0x6fa   :  { %v9326_v54 = vsub.f32 %v22834_v44, %v25851_v16  ;;  %v25852_v1 = vld [vmem:[#allocation23_spill] sm:$0xff]  ;;  %15145 = vmatprep.subr.mxu1 %v9425_v39  ;;  %v22900_v56 = vsub.f32 %v8997_v45, %v22870_v22  ;;  %v22902_v9 = vand.u32 4294901760, %v9000_v51  ;;  %15177 = vmatprep.subr.mxu0 %v22644_v33  ;;  %v9445_v5 = vsub.f32 %v22842_v10, %v25855_v13  ;;  %v9002_v13 = vld [vmem:[#allocation5 + $0xa8] sm:$0xff] }
 0x6fb   :  { %v25853_v25 = vand.u32 4294901760, %v25852_v1  ;;  %15146 = vmatpush3.msra.mxu1 %v9313_v12  ;;  %v9128_v0 = vand.u32 4294901760, %v9127_v47  ;;  %v9320_v1 = vand.u32 4294901760, %v9319_v27  ;;  %v22913_v39 = vand.u32 4294901760, %v8999_v29 }
 0x6fc   :  { %25854 = vst [vmem:[#allocation77_spill] sm:$0xff] %v22902_v9  ;;  %15147 = vmatprep.subr.mxu1 %v9432_v17  ;;  %v9439_v47 = vand.u32 4294901760, %v9438_v26  ;;  %v25858_v16 = vand.u32 4294901760, %v22858_v24  ;;  %v9327_v27 = vand.u32 4294901760, %v9326_v54  ;;  %v9137_v17 = vand.u32 4294901760, %v9136_v19 }
 0x6fd   :  { %9114 = vmatmul.mubr.f32.vlgmr.msra.gmra.mxu0 %v25853_v25  ;;  %v25856_v25 = vand.u32 4294901760, %v25848_v31  ;;  %25857 = vst [vmem:[#allocation44_spill] sm:$0xff] %v22913_v39  ;;  %15148 = vmatpush3.msra.mxu1 %v9320_v1  ;;  %v22922_v45 = vsub.f32 %v9000_v51, %v22902_v9  ;;  %v22929_v54 = vsub.f32 %v8999_v29, %v22913_v39  ;;  %v22931_v19 = vand.u32 4294901760, %v9002_v13  ;;  %v9004_v29 = vld [vmem:[#allocation5 + $0xc8] sm:$0xff] }
 0x6fe   :  { %15178 = vmatpush3.msra.mxu0 %v22611_v61  ;;  %9123 = vmatprep.mubr.f32.mxu0 %v9122_v34  ;;  %v9333_v12 = vsub.f32 %v22858_v24, %v25858_v16  ;;  %v9001_v34 = vld [vmem:[#allocation5 + $0xa0] sm:$0xff]  ;;  %v25860_v16 = vand.u32 4294901760, %v22884_v38 }
 0x6ff   :  { %v9142_v14 = vsub.f32 %v25848_v31, %v25856_v25  ;;  %15179 = vmatprep.subr.mxu0 %v22660_v3  ;;  %v24990_v25 = vand.u32 4294901760, %v22900_v56  ;;  %25859 = vst [vmem:[#allocation36_spill] sm:$0xff] %v22922_v45  ;;  %15149 = vmatprep.subr.mxu1 %v9439_v47  ;;  %v9446_v31 = vand.u32 4294901760, %v9445_v5  ;;  %25861 = vst [vmem:[#allocation42_spill] sm:$0xff] %v22929_v54  ;;  %v25864_v47 = vld [vmem:[#allocation71_spill] sm:$0xff] }
 0x700   :  { %15180 = vmatpush3.msra.mxu0 %v22619_v18  ;;  %15150 = vmatpush3.msra.mxu1 %v9327_v27  ;;  %v9151_v1 = vsub.f32 %v22884_v38, %v25860_v16  ;;  %25862 = vst [vmem:[#allocation40_spill] sm:$0xff] %v22931_v19  ;;  %v9334_v51 = vand.u32 4294901760, %v9333_v12  ;;  %v24994_v12 = vand.u32 4294901760, %v22929_v54  ;;  %v22945_v27 = vsub.f32 %v9002_v13, %v22931_v19  ;;  %v25866_v13 = vld [vmem:[#allocation50_spill] sm:$0xff] }
 0x701   :  { %9129 = vmatmul.mubr.f32.gmra.mxu0 %v9128_v0  ;;  %15181 = vmatprep.subr.mxu0 %v22629_v63  ;;  %v9143_v26 = vand.u32 4294901760, %v9142_v14  ;;  %v9157_v5 = vsub.f32 %v22900_v56, %v24990_v25  ;;  %v24991_v0 = vand.u32 4294901760, %v22922_v45  ;;  %v22939_v14 = vand.u32 4294901760, %v9001_v34  ;;  %v25870_v25 = vld [vmem:[#allocation52_spill] sm:$0xff] }
 0x702   :  { %15182 = vmatpush3.msra.mxu0 %v22582_v20  ;;  %15151 = vmatprep.subr.mxu1 %v9446_v31  ;;  %v9152_v31 = vand.u32 4294901760, %v9151_v1 }
 0x703   :  { %15183 = vmatprep.subr.mxu0 %v22641_v32  ;;  %9138 = vmatprep.mubr.f32.mxu0 %v9137_v17  ;;  %25863 = vst [vmem:[#allocation63_spill] sm:$0xff] %v22939_v14  ;;  %v9003_v17 = vld [vmem:[#allocation5 + $0xc0] sm:$0xff]  ;;  %v9158_v16 = vand.u32 4294901760, %v9157_v5  ;;  %v22955_v1 = vsub.f32 %v9001_v34, %v22939_v14  ;;  %v9172_v5 = vsub.f32 %v22929_v54, %v24994_v12  ;;  %v9006_v34 = vld [vmem:[#allocation5 + $0xe8] sm:$0xff] }
 0x704   :  { %15152 = vmatpush3.msra.mxu1 %v9334_v51  ;;  %15184 = vmatpush3.msra.mxu0 %v22608_v46  ;;  %v22957_v51 = vand.u32 4294901760, %v9004_v29  ;;  %v9005_v12 = vld [vmem:[#allocation5 + $0xe0] sm:$0xff] }
 0x705   :  { %9144 = vmatmul.mubr.f32.gmra.mxu0 %v9143_v26  ;;  %9451 = vmatmul.mubr.f32.vlgmr.msra.gmra.mxu1 %v25864_v47  ;;  %v9166_v26 = vsub.f32 %v22922_v45, %v24991_v0  ;;  %v22966_v47 = vand.u32 4294901760, %v9003_v17  ;;  %v25868_v0 = vld [vmem:[#allocation30_spill] sm:$0xff]  ;;  %v9173_v54 = vand.u32 4294901760, %v9172_v5 }
 0x706   :  { %15185 = vmatprep.subr.mxu0 %v22657_v58  ;;  %15233 = vmatprep.subr.mxu1 %v22631_v23  ;;  %25865 = vst [vmem:[#allocation58_spill] sm:$0xff] %v22957_v51 }
 0x707   :  { %15186 = vmatpush3.msra.mxu0 %v22539_v8  ;;  %15234 = vmatpush3.msra.mxu1 %v22586_v35  ;;  %25867 = vst [vmem:[#allocation39_spill] sm:$0xff] %v22966_v47  ;;  %v9167_v45 = vand.u32 4294901760, %v9166_v26  ;;  %v22983_v26 = vsub.f32 %v9003_v17, %v22966_v47  ;;  %v25876_v17 = vld [vmem:[#allocation55_spill] sm:$0xff] }
 0x708   :  { %15187 = vmatprep.subr.mxu0 %v22675_v30  ;;  %15235 = vmatprep.subr.mxu1 %v22646_v48 }
 0x709   :  { %9153 = vmatprep.mubr.f32.mxu0 %v9152_v31  ;;  %9456 = vmatprep.mubr.f32.mxu1 %v25866_v13  ;;  %v22973_v13 = vsub.f32 %v9004_v29, %v22957_v51  ;;  %25872 = vst [vmem:[#allocation53_spill] sm:$0xff] %v22983_v26  ;;  %v22985_v31 = vand.u32 4294901760, %v9006_v34  ;;  %v25874_v29 = vld [vmem:[#allocation43_spill] sm:$0xff] }
 0x70a   :  { %15188 = vmatpush3.msra.mxu0 %v22564_v42  ;;  %15236 = vmatpush3.msra.mxu1 %v22600_v59 }
 0x70b   :  { %9159 = vmatmul.mubr.f32.gmra.mxu0 %v9158_v16  ;;  %9458 = vmatmul.mubr.f32.gmra.mxu1 %v25868_v0  ;;  %25869 = vst [vmem:[#allocation61_spill] sm:$0xff] %v22973_v13  ;;  %v25871_v16 = vand.u32 4294901760, %v22945_v27  ;;  %25873 = vst [vmem:[#allocation74_spill] sm:$0xff] %v22985_v31 }
 0x70c   :  { %15189 = vmatprep.subr.mxu0 %v22687_v28  ;;  %15237 = vmatprep.subr.mxu1 %v22604_v52  ;;  %v22994_v52 = vand.u32 4294901760, %v9005_v12 }
 0x70d   :  { %15190 = vmatpush3.msra.mxu0 %v25870_v25  ;;  %15238 = vmatpush3.msra.mxu1 %v22541_v7  ;;  %v9181_v0 = vsub.f32 %v22945_v27, %v25871_v16  ;;  %v25875_v25 = vand.u32 4294901760, %v22955_v1  ;;  %v24999_v7 = vand.u32 4294901760, %v22973_v13 }
 0x70e   :  { %15191 = vmatprep.subr.mxu0 %v22709_v57  ;;  %15239 = vmatprep.subr.mxu1 %v22616_v62 }
 0x70f   :  { %9168 = vmatprep.mubr.f32.mxu0 %v9167_v45  ;;  %9463 = vmatprep.mubr.f32.mxu1 %v25874_v29  ;;  %v9187_v5 = vsub.f32 %v22955_v1, %v25875_v25  ;;  %v9182_v16 = vand.u32 4294901760, %v9181_v0  ;;  %v25002_v45 = vand.u32 4294901760, %v22983_v26  ;;  %v23001_v29 = vsub.f32 %v9006_v34, %v22985_v31 }
 0x710   :  { %15192 = vmatpush3.msra.mxu0 %v22573_v36  ;;  %15240 = vmatpush3.msra.mxu1 %v22584_v49  ;;  %v23011_v0 = vsub.f32 %v9005_v12, %v22994_v52 }
 0x711   :  { %9174 = vmatmul.mubr.f32.gmra.mxu0 %v9173_v54  ;;  %9465 = vmatmul.mubr.f32.gmra.mxu1 %v25876_v17  ;;  %25877 = vst [vmem:[#allocation32_spill] sm:$0xff] %v23001_v29  ;;  %v9188_v25 = vand.u32 4294901760, %v9187_v5  ;;  %v9196_v54 = vsub.f32 %v22973_v13, %v24999_v7  ;;  %v9202_v34 = vsub.f32 %v22983_v26, %v25002_v45  ;;  %v25009_v5 = vand.u32 4294901760, %v23001_v29  ;;  %v25880_v17 = vld [vmem:[#allocation66_spill] sm:$0xff] }
 0x712   :  { %15193 = vmatprep.subr.mxu0 %v22725_v43  ;;  %15241 = vmatprep.subr.mxu1 %v22626_v41  ;;  %v25014_v7 = vand.u32 4294901760, %v23011_v0  ;;  %v25881_v13 = vld [vmem:[#allocation46_spill] sm:$0xff] }
 0x713   :  { %15194 = vmatpush3.msra.mxu0 %v22518_v11  ;;  %15242 = vmatpush3.msra.mxu1 %v22503_v55  ;;  %v9197_v12 = vand.u32 4294901760, %v9196_v54  ;;  %v9203_v45 = vand.u32 4294901760, %v9202_v34  ;;  %v9211_v26 = vsub.f32 %v23001_v29, %v25009_v5  ;;  %v25884_v5 = vld [vmem:[#allocation79_spill] sm:$0xff]  ;;  %v25885_v29 = vld [vmem:[#allocation29_spill] sm:$0xff] }
 0x714   :  { %15195 = vmatprep.subr.mxu0 %v22741_v50  ;;  %15243 = vmatprep.subr.mxu1 %v22638_v37  ;;  %v9217_v54 = vsub.f32 %v23011_v0, %v25014_v7  ;;  %v25888_v7 = vld [vmem:[#allocation33_spill] sm:$0xff] }
 0x715   :  { %9183 = vmatprep.mubr.f32.mxu0 %v9182_v16  ;;  %9470 = vmatprep.mubr.f32.mxu1 %v22854_v4  ;;  %v25878_v16 = vld [vmem:[#allocation80_spill] sm:$0xff]  ;;  %v25879_v4 = vld [vmem:[#allocation21_spill] sm:$0xff]  ;;  %v9212_v34 = vand.u32 4294901760, %v9211_v26  ;;  %v25891_v26 = vld [vmem:[#allocation75_spill] sm:$0xff] }
 0x716   :  { %15196 = vmatpush3.msra.mxu0 %v22561_v15  ;;  %15244 = vmatpush3.msra.mxu1 %v22526_v60 }
 0x717   :  { %9189 = vmatmul.mubr.f32.gmra.mxu0 %v9188_v25  ;;  %9472 = vmatmul.mubr.f32.gmra.mxu1 %v22870_v22  ;;  %v25882_v25 = vld [vmem:[#allocation57_spill] sm:$0xff] }
 0x718   :  { %15197 = vmatprep.subr.mxu0 %v22756_v53  ;;  %15245 = vmatprep.subr.mxu1 %v25878_v16  ;;  %v25883_v22 = vld [vmem:[#allocation45_spill] sm:$0xff] }
 0x719   :  { %15198 = vmatpush3.msra.mxu0 %v25879_v4  ;;  %15246 = vmatpush3.msra.mxu1 %v25880_v17 }
 0x71a   :  { %15199 = vmatprep.subr.mxu0 %v25881_v13  ;;  %15247 = vmatprep.subr.mxu1 %v25882_v25  ;;  %v25887_v25 = vld [vmem:[#allocation37_spill] sm:$0xff] }
 0x71b   :  { %9198 = vmatprep.mubr.f32.mxu0 %v9197_v12  ;;  %9477 = vmatprep.mubr.f32.mxu1 %v22902_v9  ;;  %v25886_v12 = vld [vmem:[#allocation47_spill] sm:$0xff]  ;;  %v9218_v9 = vand.u32 4294901760, %v9217_v54  ;;  %v25892_v54 = vld [vmem:[#allocation26_spill] sm:$0xff] }
 0x71c   :  { %15200 = vmatpush3.msra.mxu0 %v25818_v6  ;;  %15248 = vmatpush3.msra.mxu1 %v25883_v22 }
 0x71d   :  { %9204 = vmatmul.mubr.f32.gmra.mxu0 %v9203_v45  ;;  %9479 = vmatmul.mubr.f32.gmra.mxu1 %v22913_v39  ;;  %v25889_v45 = vld [vmem:[#allocation76_spill] sm:$0xff]  ;;  %v25890_v39 = vld [vmem:[#allocation78_spill] sm:$0xff] }
 0x71e   :  { %15201 = vmatprep.subr.mxu0 %v25884_v5  ;;  %15249 = vmatprep.subr.mxu1 %v25885_v29 }
 0x71f   :  { %15202 = vmatpush3.msra.mxu0 %v25826_v2  ;;  %15250 = vmatpush3.msra.mxu1 %v25886_v12 }
 0x720   :  { %15203 = vmatprep.subr.mxu0 %v25887_v25  ;;  %15251 = vmatprep.subr.mxu1 %v25888_v7 }
 0x721   :  { %9213 = vmatprep.mubr.f32.mxu0 %v9212_v34  ;;  %9484 = vmatprep.mubr.f32.mxu1 %v22931_v19  ;;  %v25893_v34 = vld [vmem:[#allocation19_spill] sm:$0xff]  ;;  %v25894_v19 = vld [vmem:[#allocation48_spill] sm:$0xff] }
 0x722   :  { %15204 = vmatpush3.msra.mxu0 %v25889_v45  ;;  %15252 = vmatpush3.msra.mxu1 %v25890_v39 }
 0x723   :  { %9219 = vmatmul.mubr.f32.gmra.mxu0 %v9218_v9  ;;  %9486 = vmatmul.mubr.f32.gmra.mxu1 %v22939_v14  ;;  %v25895_v9 = vld [vmem:[#allocation24_spill] sm:$0xff] }
 0x724   :  { %15205 = vmatprep.subr.mxu0 %v22829_v40  ;;  %15253 = vmatprep.subr.mxu1 %v25891_v26  ;;  %v25896_v14 = vld [vmem:[#allocation72_spill] sm:$0xff]  ;;  %v25897_v26 = vld [vmem:[#allocation67_spill] sm:$0xff] }
 0x725   :  { %15206 = vmatpush3.msra.mxu0 %v22834_v44  ;;  %15254 = vmatpush3.msra.mxu1 %v25892_v54  ;;  %v25898_v54 = vand.u32 4294901760, %v22644_v33  ;;  %v25906_v33 = vld [vmem:[#allocation25_spill] sm:$0xff] }
 0x726   :  { %15207 = vmatprep.subr.mxu0 %v22842_v10  ;;  %15255 = vmatprep.subr.mxu1 %v25893_v34  ;;  %v25899_v10 = vld [vmem:[#allocation64_spill] sm:$0xff]  ;;  %v25900_v34 = vand.u32 4294901760, %v22611_v61 }
 0x727   :  { %9491 = vmatprep.mubr.f32.mxu1 %v22957_v51  ;;  %15208 = vmatpush3.msra.mxu0 %v22858_v24  ;;  %v25901_v51 = vld [vmem:[#allocation35_spill] sm:$0xff]  ;;  %v25902_v24 = vand.u32 4294901760, %v22660_v3  ;;  %v25907_v61 = vld [vmem:[#allocation56_spill] sm:$0xff] }
 0x728   :  { %9635 = vmatprep.mubr.f32.mxu0 %v25894_v19  ;;  %15256 = vmatpush3.msra.mxu1 %v25895_v9  ;;  %v25904_v9 = vld [vmem:[#allocation38_spill] sm:$0xff]  ;;  %v25909_v3 = vld [vmem:[#allocation28_spill] sm:$0xff] }
 0x729   :  { %9493 = vmatmul.mubr.f32.gmra.mxu1 %v22966_v47  ;;  %9638 = vmatmul.mubr.f32.vlgmr.msra.gmra.mxu0 %v25896_v14  ;;  %v25903_v47 = vld [vmem:[#allocation34_spill] sm:$0xff] }
 0x72a   :  { %15257 = vmatprep.subr.mxu1 %v25897_v26  ;;  %15289 = vmatprep.subr.mxu0 %v25898_v54  ;;  %v25905_v26 = vand.u32 4294901760, %v22619_v18  ;;  %v25908_v54 = vand.u32 4294901760, %v22629_v63  ;;  %v25913_v18 = vld [vmem:[#allocation68_spill] sm:$0xff]  ;;  %v25915_v63 = vand.u32 4294901760, %v22608_v46  ;;  %v25921_v46 = vand.u32 4294901760, %v25903_v47 }
 0x72b   :  { %15258 = vmatpush3.msra.mxu1 %v25899_v10  ;;  %15290 = vmatpush3.msra.mxu0 %v25900_v34  ;;  %v25911_v34 = vld [vmem:[#allocation51_spill] sm:$0xff] }
 0x72c   :  { %15259 = vmatprep.subr.mxu1 %v25901_v51  ;;  %15291 = vmatprep.subr.mxu0 %v25902_v24  ;;  %v25910_v24 = vand.u32 4294901760, %v22582_v20  ;;  %v25917_v20 = vand.u32 4294901760, %v25896_v14  ;;  %v25928_v14 = vld [vmem:[#allocation65_spill] sm:$0xff] }
 0x72d   :  { %9498 = vmatprep.mubr.f32.mxu1 %v22985_v31  ;;  %9644 = vmatprep.mubr.f32.mxu0 %v25903_v47  ;;  %v25912_v31 = vand.u32 4294901760, %v22641_v32  ;;  %v25919_v32 = vand.u32 4294901760, %v22539_v8  ;;  %v25923_v8 = vand.u32 4294901760, %v25906_v33  ;;  %v25931_v47 = vand.u32 4294901760, %v25835_v21 }
 0x72e   :  { %15260 = vmatpush3.msra.mxu1 %v25904_v9  ;;  %15292 = vmatpush3.msra.mxu0 %v25905_v26  ;;  %v25914_v26 = vand.u32 4294901760, %v25894_v19  ;;  %v25920_v19 = vand.u32 4294901760, %v22675_v30 }
 0x72f   :  { %9500 = vmatmul.mubr.f32.gmra.mxu1 %v22994_v52  ;;  %9647 = vmatmul.mubr.f32.gmra.mxu0 %v25906_v33 }
 0x730   :  { %15261 = vmatprep.subr.mxu1 %v25907_v61  ;;  %15293 = vmatprep.subr.mxu0 %v25908_v54  ;;  %v25916_v54 = vld [vmem:[#allocation20_spill] sm:$0xff] }
 0x731   :  { %15262 = vmatpush3.msra.mxu1 %v25909_v3  ;;  %15294 = vmatpush3.msra.mxu0 %v25910_v24  ;;  %v25918_v24 = vand.u32 4294901760, %v22657_v58  ;;  %v25922_v58 = vand.u32 4294901760, %v22564_v42  ;;  %v25929_v42 = vand.u32 4294901760, %v22709_v57  ;;  %v25934_v33 = vand.u32 4294901760, %v25916_v54 }
 0x732   :  { %15263 = vmatprep.subr.mxu1 %v25911_v34  ;;  %15295 = vmatprep.subr.mxu0 %v25912_v31  ;;  %v25933_v31 = vld [vmem:[#allocation42_spill] sm:$0xff]  ;;  %v25935_v57 = vand.u32 4294901760, %v22725_v43  ;;  %v25939_v43 = vand.u32 4294901760, %v22561_v15  ;;  %v25943_v15 = vand.u32 4294901760, %v25881_v13  ;;  %v25951_v13 = vand.u32 4294901760, %v25826_v2 }
 0x733   :  { %9653 = vmatprep.mubr.f32.mxu0 %v25835_v21  ;;  %15264 = vmatpush3.msra.mxu1 %v25913_v18  ;;  %v25947_v21 = vand.u32 4294901760, %v25818_v6  ;;  %v25952_v6 = vand.u32 4294901760, %v25887_v25  ;;  %v25956_v2 = vand.u32 4294901760, %v22955_v1  ;;  %v25958_v25 = vld [vmem:[#allocation75_spill] sm:$0xff] }
 0x734   :  { %9805 = vmatprep.mubr.f32.mxu1 %v25914_v26  ;;  %15296 = vmatpush3.msra.mxu0 %v25915_v63  ;;  %v25960_v26 = vld [vmem:[#allocation26_spill] sm:$0xff]  ;;  %v25961_v63 = vld [vmem:[#allocation59_spill] sm:$0xff] }
 0x735   :  { %9656 = vmatmul.mubr.f32.gmra.mxu0 %v25916_v54  ;;  %9809 = vmatmul.mubr.f32.vlgmr.msra.gmra.mxu1 %v25917_v20  ;;  %v25962_v54 = vand.u32 4294901760, %v25961_v63  ;;  %v25965_v20 = vld [vmem:[#allocation27_spill] sm:$0xff] }
 0x736   :  { %15297 = vmatprep.subr.mxu0 %v25918_v24  ;;  %15345 = vmatprep.subr.mxu1 %v22631_v23  ;;  %v25925_v23 = vld [vmem:[#allocation69_spill] sm:$0xff]  ;;  %v25966_v24 = vand.u32 4294901760, %v25965_v20 }
 0x737   :  { %15298 = vmatpush3.msra.mxu0 %v25919_v32  ;;  %15346 = vmatpush3.msra.mxu1 %v22586_v35  ;;  %v25924_v35 = vand.u32 4294901760, %v22687_v28  ;;  %v25932_v28 = vand.u32 4294901760, %v22573_v36  ;;  %v25937_v36 = vand.u32 4294901760, %v22741_v50  ;;  %v25967_v32 = vld [vmem:[#allocation31_spill] sm:$0xff] }
 0x738   :  { %15299 = vmatprep.subr.mxu0 %v25920_v19  ;;  %15347 = vmatprep.subr.mxu1 %v22646_v48  ;;  %v25926_v48 = vld [vmem:[#allocation52_spill] sm:$0xff] }
 0x739   :  { %9662 = vmatprep.mubr.f32.mxu0 %v22884_v38  ;;  %9816 = vmatprep.mubr.f32.mxu1 %v25921_v46  ;;  %v25927_v30 = vand.u32 4294901760, %v25926_v48  ;;  %v25968_v19 = vld [vmem:[#allocation24_spill] sm:$0xff]  ;;  %v25971_v48 = vld [vmem:[#allocation67_spill] sm:$0xff] }
 0x73a   :  { %15300 = vmatpush3.msra.mxu0 %v25922_v58  ;;  %15348 = vmatpush3.msra.mxu1 %v22600_v59  ;;  %v25930_v59 = vld [vmem:[#allocation36_spill] sm:$0xff] }
 0x73b   :  { %9665 = vmatmul.mubr.f32.gmra.mxu0 %v22900_v56  ;;  %9820 = vmatmul.mubr.f32.gmra.mxu1 %v25923_v8  ;;  %v25946_v50 = vand.u32 4294901760, %v25930_v59 }
 0x73c   :  { %15301 = vmatprep.subr.mxu0 %v25924_v35  ;;  %15349 = vmatprep.subr.mxu1 %v25925_v23  ;;  %v25970_v35 = vld [vmem:[#allocation71_spill] sm:$0xff]  ;;  %v10287_v23 = vld [vmem:[#allocation2 + $0x40] sm:$0xff] }
 0x73d   :  { %15302 = vmatpush3.msra.mxu0 %v25927_v30  ;;  %15350 = vmatpush3.msra.mxu1 %v25928_v14  ;;  %v25973_v14 = vld [vmem:[#allocation50_spill] sm:$0xff] }
 0x73e   :  { %15303 = vmatprep.subr.mxu0 %v25929_v42  ;;  %15351 = vmatprep.subr.mxu1 %v22616_v62  ;;  %v25936_v62 = vand.u32 4294901760, %v22518_v11  ;;  %v25940_v11 = vand.u32 4294901760, %v22900_v56  ;;  %v25950_v56 = vand.u32 4294901760, %v25884_v5  ;;  %v10289_v5 = vld [vmem:[#allocation2 + $0x50] sm:$0xff]  ;;  %v23226_v42 = vand.u32 4294901760, %v10287_v23 }
 0x73f   :  { %9671 = vmatprep.mubr.f32.mxu0 %v25930_v59  ;;  %9827 = vmatprep.mubr.f32.mxu1 %v25931_v47  ;;  %v10271_v59 = vld [vmem:[#allocation8 + $0x80] sm:$0xff] }
 0x740   :  { %15304 = vmatpush3.msra.mxu0 %v25932_v28  ;;  %15352 = vmatpush3.msra.mxu1 %v22584_v49  ;;  %v25938_v49 = vand.u32 4294901760, %v22884_v38  ;;  %v10290_v38 = vld [vmem:[#allocation2 + $0x58] sm:$0xff] }
 0x741   :  { %9674 = vmatmul.mubr.f32.gmra.mxu0 %v25933_v31  ;;  %9831 = vmatmul.mubr.f32.gmra.mxu1 %v25934_v33  ;;  %v10272_v33 = vld [vmem:[#allocation8 + $0x88] sm:$0xff] }
 0x742   :  { %15305 = vmatprep.subr.mxu0 %v25935_v57  ;;  %15353 = vmatprep.subr.mxu1 %v22626_v41  ;;  %v25942_v41 = vand.u32 4294901760, %v25879_v4  ;;  %v25949_v4 = vand.u32 4294901760, %v25933_v31  ;;  %v25976_v57 = vld [vmem:[#allocation43_spill] sm:$0xff] }
 0x743   :  { %15306 = vmatpush3.msra.mxu0 %v25936_v62  ;;  %15354 = vmatpush3.msra.mxu1 %v22503_v55  ;;  %v25941_v55 = vand.u32 4294901760, %v22756_v53  ;;  %v25948_v53 = vld [vmem:[#allocation53_spill] sm:$0xff]  ;;  %v10292_v62 = vsel %vm3412_vm1, %v10271_v59, 0 }
 0x744   :  { %15307 = vmatprep.subr.mxu0 %v25937_v36  ;;  %15355 = vmatprep.subr.mxu1 %v22638_v37  ;;  %v25944_v37 = vld [vmem:[#allocation57_spill] sm:$0xff]  ;;  %v25969_v8 = vand.u32 4294901760, %v25948_v53 }
 0x745   :  { %9680 = vmatprep.mubr.f32.mxu0 %v22945_v27  ;;  %9838 = vmatprep.mubr.f32.mxu1 %v25938_v49  ;;  %v10273_v49 = vld [vmem:[#allocation8 + $0x90] sm:$0xff] }
 0x746   :  { %15308 = vmatpush3.msra.mxu0 %v25939_v43  ;;  %15356 = vmatpush3.msra.mxu1 %v22526_v60  ;;  %v25945_v60 = vld [vmem:[#allocation61_spill] sm:$0xff]  ;;  %v10295_v43 = vsel %vm3412_vm1, %v10272_v33, 0 }
 0x747   :  { %9683 = vmatmul.mubr.f32.gmra.mxu0 %v22955_v1  ;;  %9842 = vmatmul.mubr.f32.gmra.mxu1 %v25940_v11  ;;  %v25963_v1 = vld [vmem:[#allocation19_spill] sm:$0xff]  ;;  %v23259_v11 = vand.u32 4294901760, %v10292_v62 }
 0x748   :  { %15309 = vmatprep.subr.mxu0 %v25941_v55  ;;  %15357 = vmatprep.subr.mxu1 %v25878_v16  ;;  %v25954_v16 = vand.u32 4294901760, %v22945_v27  ;;  %v10298_v55 = vsel %vm3412_vm1, %v10273_v49, 0 }
 0x749   :  { %15310 = vmatpush3.msra.mxu0 %v25942_v41  ;;  %15358 = vmatpush3.msra.mxu1 %v25880_v17  ;;  %v25953_v17 = vld [vmem:[#allocation32_spill] sm:$0xff]  ;;  %v10274_v41 = vld [vmem:[#allocation8 + $0x98] sm:$0xff] }
 0x74a   :  { %15311 = vmatprep.subr.mxu0 %v25943_v15  ;;  %15359 = vmatprep.subr.mxu1 %v25944_v37  ;;  %v25972_v30 = vand.u32 4294901760, %v25953_v17 }
 0x74b   :  { %9689 = vmatprep.mubr.f32.mxu0 %v25945_v60  ;;  %9849 = vmatprep.mubr.f32.mxu1 %v25946_v50  ;;  %v10275_v50 = vld [vmem:[#allocation8 + $0xa0] sm:$0xff] }
 0x74c   :  { %15312 = vmatpush3.msra.mxu0 %v25947_v21  ;;  %15360 = vmatpush3.msra.mxu1 %v25883_v22  ;;  %v23177_v22 = vand.u32 4294901760, %v10290_v38  ;;  %v25979_v21 = vld [vmem:[#allocation22_spill] sm:$0xff] }
 0x74d   :  { %9692 = vmatmul.mubr.f32.gmra.mxu0 %v25948_v53  ;;  %9853 = vmatmul.mubr.f32.gmra.mxu1 %v25949_v4  ;;  %v25980_v53 = vld [vmem:[#allocation77_spill] sm:$0xff]  ;;  %v23276_v4 = vsub.f32 %v10292_v62, %v23259_v11 }
 0x74e   :  { %15313 = vmatprep.subr.mxu0 %v25950_v56  ;;  %15361 = vmatprep.subr.mxu1 %v25885_v29  ;;  %v25955_v29 = vand.u32 4294901760, %v25889_v45  ;;  %v23194_v27 = vsub.f32 %v10290_v38, %v23177_v22  ;;  %v25959_v45 = vand.u32 4294901760, %v22834_v44  ;;  %v23278_v38 = vand.u32 4294901760, %v10298_v55  ;;  %v10281_v62 = vld [vmem:[#allocation8 + $0xd0] sm:$0xff] }
 0x74f   :  { %15314 = vmatpush3.msra.mxu0 %v25951_v13  ;;  %15362 = vmatpush3.msra.mxu1 %v25886_v12  ;;  %v23191_v12 = vand.u32 4294901760, %v10289_v5  ;;  %v10301_v56 = vsel %vm3412_vm1, %v10274_v41, 0  ;;  %v10276_v13 = vld [vmem:[#allocation8 + $0xa8] sm:$0xff] }
 0x750   :  { %15315 = vmatprep.subr.mxu0 %v25952_v6  ;;  %15363 = vmatprep.subr.mxu1 %v25888_v7  ;;  %v25957_v7 = vand.u32 4294901760, %v22829_v40  ;;  %v25964_v40 = vand.u32 4294901760, %v25945_v60  ;;  %v23211_v46 = vand.u32 4294901760, %v23194_v27  ;;  %v10304_v6 = vsel %vm3412_vm1, %v10275_v50, 0  ;;  %v10282_v50 = vld [vmem:[#allocation8 + $0xd8] sm:$0xff] }
 0x751   :  { %9698 = vmatprep.mubr.f32.mxu0 %v25953_v17  ;;  %9860 = vmatprep.mubr.f32.mxu1 %v25954_v16  ;;  %v23214_v58 = vsub.f32 %v10289_v5, %v23191_v12  ;;  %v10277_v17 = vld [vmem:[#allocation8 + $0xb0] sm:$0xff]  ;;  %v23300_v63 = vand.u32 4294901760, %v10304_v6 }
 0x752   :  { %15316 = vmatpush3.msra.mxu0 %v25955_v29  ;;  %15364 = vmatpush3.msra.mxu1 %v25890_v39  ;;  %v10288_v39 = vld [vmem:[#allocation2 + $0x48] sm:$0xff]  ;;  %v10596_v47 = vsub.f32 %v23194_v27, %v23211_v46 }
 0x753   :  { %9701 = vmatmul.mubr.f32.gmra.mxu0 %v23011_v0  ;;  %9864 = vmatmul.mubr.f32.gmra.mxu1 %v25956_v2  ;;  %v23208_v44 = vand.u32 4294901760, %v10288_v39  ;;  %v23231_v28 = vand.u32 4294901760, %v23214_v58  ;;  %v25981_v2 = vld [vmem:[#allocation44_spill] sm:$0xff]  ;;  %v23323_v59 = vsub.f32 %v10304_v6, %v23300_v63 }
 0x754   :  { %15317 = vmatprep.subr.mxu0 %v25957_v7  ;;  %15365 = vmatprep.subr.mxu1 %v25958_v25  ;;  %v10597_v36 = vand.u32 4294901760, %v10596_v47  ;;  %v23291_v7 = vand.u32 4294901760, %v10301_v56  ;;  %v10307_v25 = vsel %vm3412_vm1, %v10276_v13, 0  ;;  %v10283_v13 = vld [vmem:[#allocation8 + $0xe0] sm:$0xff] }
 0x755   :  { %15318 = vmatpush3.msra.mxu0 %v25959_v45  ;;  %15366 = vmatpush3.msra.mxu1 %v25960_v26  ;;  %v23234_v31 = vsub.f32 %v10288_v39, %v23208_v44  ;;  %v25982_v45 = vld [vmem:[#allocation40_spill] sm:$0xff]  ;;  %v10410_v26 = vand.u32 4294901760, %v23276_v4  ;;  %v23298_v39 = vsub.f32 %v10298_v55, %v23278_v38 }
 0x756   :  { %15319 = vmatprep.subr.mxu0 %v25962_v54  ;;  %15367 = vmatprep.subr.mxu1 %v25963_v1  ;;  %v10310_v54 = vsel %vm3412_vm1, %v10277_v17, 0  ;;  %v10278_v1 = vld [vmem:[#allocation8 + $0xb8] sm:$0xff] }
 0x757   :  { %9871 = vmatprep.mubr.f32.mxu1 %v25964_v40  ;;  %15320 = vmatpush3.msra.mxu0 %v25966_v24  ;;  %v10279_v40 = vld [vmem:[#allocation8 + $0xc0] sm:$0xff] }
 0x758   :  { %10052 = vmatprep.mubr.f32.mxu0 %v25967_v32  ;;  %15368 = vmatpush3.msra.mxu1 %v25968_v19  ;;  %v25983_v19 = vld [vmem:[#allocation63_spill] sm:$0xff]  ;;  %v10316_v47 = vsel %vm3412_vm1, %v10279_v40, 0  ;;  %v10284_v40 = vld [vmem:[#allocation8 + $0xe8] sm:$0xff] }
 0x759   :  { %9875 = vmatmul.mubr.f32.gmra.mxu1 %v25969_v8  ;;  %10054 = vmatmul.mubr.f32.vlgmr.msra.gmra.mxu0 %v25970_v35  ;;  %v23311_v8 = vsub.f32 %v10301_v56, %v23291_v7 }
 0x75a   :  { %15369 = vmatprep.subr.mxu1 %v25971_v48  ;;  %9882 = vmatprep.mubr.f32.mxu1 %v25972_v30  ;;  %v25984_v48 = vld [vmem:[#allocation58_spill] sm:$0xff]  ;;  %v10411_v30 = vsub.f32 %v23276_v4, %v10410_v26 }
 0x75b   :  { %15370 = vmatpush3.msra.mxu1 %v25899_v10  ;;  %10059 = vmatprep.mubr.f32.mxu0 %v25973_v14  ;;  %v25974_v10 = vld [vmem:[#allocation30_spill] sm:$0xff] }
 0x75c   :  { %15371 = vmatprep.subr.mxu1 %v25901_v51  ;;  %17159 = vmatprep.subr.mxu0 %v23177_v22  ;;  %v25975_v51 = vand.u32 4294901760, %v23011_v0  ;;  %v23249_v0 = vand.u32 4294901760, %v23234_v31  ;;  %v10412_v55 = vand.u32 4294901760, %v10411_v30  ;;  %v10285_v30 = vld [vmem:[#allocation8 + $0xf0] sm:$0xff] }
 0x75d   :  { %15372 = vmatpush3.msra.mxu1 %v25904_v9  ;;  %10061 = vmatmul.mubr.f32.gmra.mxu0 %v25974_v10  ;;  %v10603_v9 = vsub.f32 %v23214_v58, %v23231_v28 }
 0x75e   :  { %9886 = vmatmul.mubr.f32.gmra.mxu1 %v25975_v51  ;;  %15373 = vmatprep.subr.mxu1 %v25907_v61  ;;  %v23252_v61 = vsub.f32 %v10287_v23, %v23226_v42  ;;  %v10610_v37 = vsub.f32 %v23234_v31, %v23249_v0  ;;  %v10313_v23 = vsel %vm3412_vm1, %v10278_v1, 0  ;;  %v10328_v1 = vsel %vm3412_vm1, %v10283_v13, 0  ;;  %v10286_v13 = vld [vmem:[#allocation8 + $0xf8] sm:$0xff] }
 0x75f   :  { %15374 = vmatpush3.msra.mxu1 %v25909_v3  ;;  %10066 = vmatprep.mubr.f32.mxu0 %v25976_v57  ;;  %v25977_v3 = vld [vmem:[#allocation55_spill] sm:$0xff]  ;;  %v10604_v15 = vand.u32 4294901760, %v10603_v9  ;;  %v10440_v9 = vand.u32 4294901760, %v23311_v8 }
 0x760   :  { %15375 = vmatprep.subr.mxu1 %v25911_v34  ;;  %10205 = vmatprep.mubr.f32.mxu1 %v25967_v32  ;;  %v25978_v34 = vld [vmem:[#allocation54_spill] sm:$0xff]  ;;  %v23270_v60 = vand.u32 4294901760, %v23252_v61  ;;  %v10611_v5 = vand.u32 4294901760, %v10610_v37  ;;  %v23307_v32 = vand.u32 4294901760, %v10307_v25  ;;  %v10322_v37 = vsel %vm3412_vm1, %v10281_v62, 0 }
 0x761   :  { %15376 = vmatpush3.msra.mxu1 %v25913_v18  ;;  %10068 = vmatmul.mubr.f32.gmra.mxu0 %v25977_v3  ;;  %v23265_v18 = vand.u32 4294901760, %v10295_v43  ;;  %v10441_v17 = vsub.f32 %v23311_v8, %v10440_v9 }
 0x762   :  { %10207 = vmatmul.mubr.f32.vlgmr.msra.gmra.mxu1 %v25970_v35  ;;  %10073 = vmatprep.mubr.f32.mxu0 %v25978_v34  ;;  %v10617_v29 = vsub.f32 %v23252_v61, %v23270_v60  ;;  %v23313_v35 = vand.u32 4294901760, %v10310_v54  ;;  %v23332_v33 = vsub.f32 %v10307_v25, %v23307_v32 }
 0x763   :  { %10212 = vmatprep.mubr.f32.mxu1 %v25973_v14  ;;  %17160 = vmatpush3.msra.mxu0 %v23177_v22  ;;  %v23286_v16 = vsub.f32 %v10295_v43, %v23265_v18  ;;  %v10430_v14 = vand.u32 4294901760, %v23298_v39 }
 0x764   :  { %17161 = vmatprep.subr.mxu0 %v23191_v12  ;;  %17191 = vmatprep.subr.mxu1 %v10597_v36  ;;  %v10618_v24 = vand.u32 4294901760, %v10617_v29  ;;  %v23340_v49 = vsub.f32 %v10310_v54, %v23313_v35  ;;  %v10325_v54 = vsel %vm3412_vm1, %v10282_v50, 0  ;;  %v10334_v50 = vsel %vm3412_vm1, %v10285_v30, 0 }
 0x765   :  { %10075 = vmatmul.mubr.f32.gmra.mxu0 %v25979_v21  ;;  %17192 = vmatpush3.msra.mxu1 %v10597_v36  ;;  %v10420_v20 = vand.u32 4294901760, %v23286_v16  ;;  %v25985_v36 = vld [vmem:[#allocation39_spill] sm:$0xff]  ;;  %v10431_v41 = vsub.f32 %v23298_v39, %v10430_v14  ;;  %v10337_v30 = vsel %vm3412_vm1, %v10286_v13, 0 }
 0x766   :  { %10214 = vmatmul.mubr.f32.gmra.mxu1 %v25974_v10  ;;  %10080 = vmatprep.mubr.f32.mxu0 %v25980_v53  ;;  %v10280_v10 = vld [vmem:[#allocation8 + $0xc8] sm:$0xff] }
 0x767   :  { %10219 = vmatprep.mubr.f32.mxu1 %v25976_v57  ;;  %17162 = vmatpush3.msra.mxu0 %v23191_v12  ;;  %v10421_v51 = vsub.f32 %v23286_v16, %v10420_v20  ;;  %v23334_v57 = vand.u32 4294901760, %v10313_v23  ;;  %v10319_v43 = vsel %vm3412_vm1, %v10280_v10, 0 }
 0x768   :  { %17163 = vmatprep.subr.mxu0 %v23208_v44  ;;  %17193 = vmatprep.subr.mxu1 %v10604_v15  ;;  %v23358_v56 = vand.u32 4294901760, %v10319_v43 }
 0x769   :  { %10082 = vmatmul.mubr.f32.gmra.mxu0 %v25981_v2  ;;  %17194 = vmatpush3.msra.mxu1 %v10604_v15  ;;  %v10450_v15 = vand.u32 4294901760, %v23323_v59  ;;  %v10422_v6 = vand.u32 4294901760, %v10421_v51  ;;  %v23388_v51 = vand.u32 4294901760, %v10325_v54 }
 0x76a   :  { %10221 = vmatmul.mubr.f32.gmra.mxu1 %v25977_v3  ;;  %10087 = vmatprep.mubr.f32.mxu0 %v25982_v45  ;;  %v23342_v3 = vand.u32 4294901760, %v10316_v47 }
 0x76b   :  { %10226 = vmatprep.mubr.f32.mxu1 %v25978_v34  ;;  %17164 = vmatpush3.msra.mxu0 %v23208_v44  ;;  %v25986_v34 = vld [vmem:[#allocation74_spill] sm:$0xff]  ;;  %v10451_v25 = vsub.f32 %v23323_v59, %v10450_v15 }
 0x76c   :  { %17165 = vmatprep.subr.mxu0 %v23226_v42  ;;  %17195 = vmatprep.subr.mxu1 %v10611_v5  ;;  %v23366_v29 = vsub.f32 %v10316_v47, %v23342_v3  ;;  %v10442_v47 = vand.u32 4294901760, %v10441_v17 }
 0x76d   :  { %10089 = vmatmul.mubr.f32.gmra.mxu0 %v25983_v19  ;;  %17196 = vmatpush3.msra.mxu1 %v10611_v5  ;;  %v10470_v5 = vand.u32 4294901760, %v23340_v49  ;;  %v10452_v62 = vand.u32 4294901760, %v10451_v25 }
 0x76e   :  { %10228 = vmatmul.mubr.f32.gmra.mxu1 %v25979_v21  ;;  %10094 = vmatprep.mubr.f32.mxu0 %v25984_v48  ;;  %v10460_v21 = vand.u32 4294901760, %v23332_v33 }
 0x76f   :  { %10233 = vmatprep.mubr.f32.mxu1 %v25980_v53  ;;  %17166 = vmatpush3.msra.mxu0 %v23226_v42  ;;  %v23356_v53 = vsub.f32 %v10313_v23, %v23334_v57  ;;  %v23382_v23 = vsub.f32 %v10319_v43, %v23358_v56  ;;  %v10471_v10 = vsub.f32 %v23340_v49, %v10470_v5  ;;  %v23394_v43 = vand.u32 4294901760, %v10328_v1 }
 0x770   :  { %17197 = vmatprep.subr.mxu1 %v10618_v24  ;;  %17223 = vmatprep.subr.mxu0 %v23194_v27 }
 0x771   :  { %10096 = vmatmul.mubr.f32.gmra.mxu0 %v25985_v36  ;;  %17198 = vmatpush3.msra.mxu1 %v10618_v24  ;;  %v10461_v24 = vsub.f32 %v23332_v33, %v10460_v21  ;;  %v10500_v17 = vand.u32 4294901760, %v23382_v23 }
 0x772   :  { %10235 = vmatmul.mubr.f32.gmra.mxu1 %v25981_v2  ;;  %10101 = vmatprep.mubr.f32.mxu0 %v25986_v34  ;;  %v10432_v2 = vand.u32 4294901760, %v10431_v41  ;;  %v10331_v41 = vsel %vm3412_vm1, %v10284_v40, 0  ;;  %v23416_v40 = vsub.f32 %v10328_v1, %v23394_v43 }
 0x773   :  { %10240 = vmatprep.mubr.f32.mxu1 %v25982_v45  ;;  %17255 = vmatprep.subr.mxu1 %v23177_v22  ;;  %v23372_v45 = vand.u32 4294901760, %v10322_v37 }
 0x774   :  { %v10530_v13 = vand.u32 4294901760, %v23416_v40 }
 0x775   :  { %10103 = vmatmul.mubr.f32.gmra.mxu0 %v22994_v52 }
 0x776   :  { %10242 = vmatmul.mubr.f32.gmra.mxu1 %v25983_v19  ;;  %17167 = vmatprep.mubr.f32.mxu0 %v10412_v55  ;;  %v10480_v19 = vand.u32 4294901760, %v23356_v53  ;;  %v23392_v55 = vsub.f32 %v10322_v37, %v23372_v45  ;;  %v10472_v37 = vand.u32 4294901760, %v10471_v10  ;;  %v23431_v10 = vand.u32 4294901760, %v10337_v30 }
 0x777   :  { %10247 = vmatprep.mubr.f32.mxu1 %v25984_v48  ;;  %v10490_v48 = vand.u32 4294901760, %v23366_v29 }
 0x778   :  { %v10510_v25 = vand.u32 4294901760, %v23392_v55 }
 0x779   :  { %17168 = vmatmul.mubr.f32.vlgmr.msra.gmra.mxu0 %v10422_v6  ;;  %v10462_v6 = vand.u32 4294901760, %v10461_v24  ;;  %v23418_v24 = vand.u32 4294901760, %v10334_v50 }
 0x77a   :  { %10249 = vmatmul.mubr.f32.gmra.mxu1 %v25985_v36  ;;  %17170 = vmatprep.mubr.f32.mxu0 %v10432_v2  ;;  %v10481_v36 = vsub.f32 %v23356_v53, %v10480_v19  ;;  %v23411_v2 = vand.u32 4294901760, %v10331_v41 }
 0x77b   :  { %10254 = vmatprep.mubr.f32.mxu1 %v25986_v34  ;;  %17224 = vmatpush3.msra.mxu0 %v23194_v27  ;;  %v10491_v34 = vsub.f32 %v23366_v29, %v10490_v48  ;;  %v23409_v27 = vsub.f32 %v10325_v54, %v23388_v51 }
 0x77c   :  { %17225 = vmatprep.subr.mxu0 %v23214_v58  ;;  %v10482_v54 = vand.u32 4294901760, %v10481_v36  ;;  %v23429_v1 = vsub.f32 %v10331_v41, %v23411_v2 }
 0x77d   :  { %17171 = vmatmul.mubr.f32.gmra.mxu0 %v10442_v47  ;;  %v10520_v47 = vand.u32 4294901760, %v23409_v27 }
 0x77e   :  { %10256 = vmatmul.mubr.f32.gmra.mxu1 %v22994_v52  ;;  %17173 = vmatprep.mubr.f32.mxu0 %v10452_v62  ;;  %v10501_v52 = vsub.f32 %v23382_v23, %v10500_v17  ;;  %v10492_v62 = vand.u32 4294901760, %v10491_v34  ;;  %v23450_v34 = vsub.f32 %v10337_v30, %v23431_v10 }
 0x77f   :  { %17199 = vmatprep.mubr.f32.mxu1 %v23259_v11  ;;  %17226 = vmatpush3.msra.mxu0 %v23214_v58  ;;  %v10511_v58 = vsub.f32 %v23392_v55, %v10510_v25  ;;  %v10521_v36 = vsub.f32 %v23409_v27, %v10520_v47 }
 0x780   :  { %17227 = vmatprep.subr.mxu0 %v23234_v31  ;;  %v10502_v41 = vand.u32 4294901760, %v10501_v52 }
 0x781   :  { %17174 = vmatmul.mubr.f32.gmra.mxu0 %v10462_v6  ;;  %v23439_v6 = vsub.f32 %v10334_v50, %v23418_v24  ;;  %v10531_v50 = vsub.f32 %v23416_v40, %v10530_v13  ;;  %v10522_v30 = vand.u32 4294901760, %v10521_v36 }
 0x782   :  { %17200 = vmatmul.mubr.f32.vlgmr.msra.gmra.mxu1 %v23265_v18  ;;  %17176 = vmatprep.mubr.f32.mxu0 %v10472_v37  ;;  %v10540_v37 = vand.u32 4294901760, %v23429_v1 }
 0x783   :  { %17202 = vmatprep.mubr.f32.mxu1 %v23278_v38  ;;  %17228 = vmatpush3.msra.mxu0 %v23234_v31  ;;  %v10512_v31 = vand.u32 4294901760, %v10511_v58  ;;  %v10532_v58 = vand.u32 4294901760, %v10531_v50 }
 0x784   :  { %17229 = vmatprep.subr.mxu0 %v23252_v61  ;;  %17256 = vmatpush3.msra.mxu1 %v23177_v22  ;;  %v10541_v52 = vsub.f32 %v23429_v1, %v10540_v37 }
 0x785   :  { %17177 = vmatmul.mubr.f32.gmra.mxu0 %v10482_v54  ;;  %17257 = vmatprep.subr.mxu1 %v23191_v12  ;;  %v10550_v54 = vand.u32 4294901760, %v23439_v6 }
 0x786   :  { %17203 = vmatmul.mubr.f32.gmra.mxu1 %v23291_v7  ;;  %17179 = vmatprep.mubr.f32.mxu0 %v10492_v62  ;;  %v10560_v62 = vand.u32 4294901760, %v23450_v34 }
 0x787   :  { %17205 = vmatprep.mubr.f32.mxu1 %v23300_v63  ;;  %17230 = vmatpush3.msra.mxu0 %v23252_v61  ;;  %v10551_v61 = vsub.f32 %v23439_v6, %v10550_v54 }
 0x788   :  { %17258 = vmatpush3.msra.mxu1 %v23191_v12  ;;  %17287 = vmatprep.subr.mxu0 %v23211_v46  ;;  %v10561_v36 = vsub.f32 %v23450_v34, %v10560_v62 }
 0x789   :  { %17180 = vmatmul.mubr.f32.gmra.mxu0 %v10502_v41  ;;  %17259 = vmatprep.subr.mxu1 %v23208_v44  ;;  %v10542_v41 = vand.u32 4294901760, %v10541_v52 }
 0x78a   :  { %17206 = vmatmul.mubr.f32.gmra.mxu1 %v23307_v32  ;;  %17182 = vmatprep.mubr.f32.mxu0 %v10512_v31  ;;  %v10552_v31 = vand.u32 4294901760, %v10551_v61  ;;  %v10562_v50 = vand.u32 4294901760, %v10561_v36 }
 0x78b   :  { %17208 = vmatprep.mubr.f32.mxu1 %v23313_v35  ;;  %17260 = vmatpush3.msra.mxu1 %v23208_v44 }
 0x78c   :  { %17261 = vmatprep.subr.mxu1 %v23226_v42 }
 0x78d   :  { %17183 = vmatmul.mubr.f32.gmra.mxu0 %v10522_v30  ;;  %17262 = vmatpush3.msra.mxu1 %v23226_v42 }
 0x78e   :  { %17209 = vmatmul.mubr.f32.gmra.mxu1 %v23334_v57  ;;  %17185 = vmatprep.mubr.f32.mxu0 %v10532_v58 }
 0x78f   :  { %17211 = vmatprep.mubr.f32.mxu1 %v23342_v3  ;;  %17319 = vmatprep.subr.mxu1 %v23177_v22 }
 0x791   :  { %17186 = vmatmul.mubr.f32.gmra.mxu0 %v10542_v41 }
 0x792   :  { %17212 = vmatmul.mubr.f32.gmra.mxu1 %v23358_v56  ;;  %17188 = vmatprep.mubr.f32.mxu0 %v10552_v31 }
 0x793   :  { %17214 = vmatprep.mubr.f32.mxu1 %v23372_v45 }
 0x795   :  { %17189 = vmatmul.mubr.f32.gmra.mxu0 %v10562_v50 }
 0x796   :  { %17215 = vmatmul.mubr.f32.gmra.mxu1 %v23388_v51  ;;  %17231 = vmatprep.mubr.f32.mxu0 %v23276_v4 }
 0x797   :  { %17217 = vmatprep.mubr.f32.mxu1 %v23394_v43 }
 0x799   :  { %17232 = vmatmul.mubr.f32.vlgmr.msra.gmra.mxu0 %v23286_v16 }
 0x79a   :  { %17218 = vmatmul.mubr.f32.gmra.mxu1 %v23411_v2  ;;  %17234 = vmatprep.mubr.f32.mxu0 %v23298_v39 }
 0x79b   :  { %17220 = vmatprep.mubr.f32.mxu1 %v23418_v24  ;;  %17288 = vmatpush3.msra.mxu0 %v23211_v46 }
 0x79c   :  { %17289 = vmatprep.subr.mxu0 %v23231_v28 }
 0x79d   :  { %17235 = vmatmul.mubr.f32.gmra.mxu0 %v23311_v8 }
 0x79e   :  { %17221 = vmatmul.mubr.f32.gmra.mxu1 %v23431_v10  ;;  %17237 = vmatprep.mubr.f32.mxu0 %v23323_v59 }
 0x79f   :  { %17263 = vmatprep.mubr.f32.mxu1 %v10410_v26  ;;  %17290 = vmatpush3.msra.mxu0 %v23231_v28 }
 0x7a0   :  { %17291 = vmatprep.subr.mxu0 %v23249_v0 }
 0x7a1   :  { %17238 = vmatmul.mubr.f32.gmra.mxu0 %v23332_v33 }
 0x7a2   :  { %17264 = vmatmul.mubr.f32.vlgmr.msra.gmra.mxu1 %v10420_v20  ;;  %17240 = vmatprep.mubr.f32.mxu0 %v23340_v49 }
 0x7a3   :  { %17266 = vmatprep.mubr.f32.mxu1 %v10430_v14  ;;  %17292 = vmatpush3.msra.mxu0 %v23249_v0 }
 0x7a4   :  { %17293 = vmatprep.subr.mxu0 %v23270_v60  ;;  %17320 = vmatpush3.msra.mxu1 %v23177_v22 }
 0x7a5   :  { %17241 = vmatmul.mubr.f32.gmra.mxu0 %v23356_v53  ;;  %17321 = vmatprep.subr.mxu1 %v23191_v12 }
 0x7a6   :  { %17267 = vmatmul.mubr.f32.gmra.mxu1 %v10440_v9  ;;  %17243 = vmatprep.mubr.f32.mxu0 %v23366_v29 }
 0x7a7   :  { %17269 = vmatprep.mubr.f32.mxu1 %v10450_v15  ;;  %17294 = vmatpush3.msra.mxu0 %v23270_v60 }
 0x7a8   :  { %17322 = vmatpush3.msra.mxu1 %v23191_v12 }
 0x7a9   :  { %17244 = vmatmul.mubr.f32.gmra.mxu0 %v23382_v23  ;;  %17323 = vmatprep.subr.mxu1 %v23208_v44 }
 0x7aa   :  { %17270 = vmatmul.mubr.f32.gmra.mxu1 %v10460_v21  ;;  %17246 = vmatprep.mubr.f32.mxu0 %v23392_v55 }
 0x7ab   :  { %17272 = vmatprep.mubr.f32.mxu1 %v10470_v5  ;;  %17324 = vmatpush3.msra.mxu1 %v23208_v44 }
 0x7ac   :  { %17325 = vmatprep.subr.mxu1 %v23226_v42 }
 0x7ad   :  { %17247 = vmatmul.mubr.f32.gmra.mxu0 %v23409_v27  ;;  %17326 = vmatpush3.msra.mxu1 %v23226_v42 }
 0x7ae   :  { %17273 = vmatmul.mubr.f32.gmra.mxu1 %v10480_v19  ;;  %17249 = vmatprep.mubr.f32.mxu0 %v23416_v40 }
 0x7af   :  { %17275 = vmatprep.mubr.f32.mxu1 %v10490_v48 }
 0x7b1   :  { %17250 = vmatmul.mubr.f32.gmra.mxu0 %v23429_v1 }
 0x7b2   :  { %17276 = vmatmul.mubr.f32.gmra.mxu1 %v10500_v17  ;;  %17252 = vmatprep.mubr.f32.mxu0 %v23439_v6 }
 0x7b3   :  { %17278 = vmatprep.mubr.f32.mxu1 %v10510_v25 }
 0x7b5   :  { %17253 = vmatmul.mubr.f32.gmra.mxu0 %v23450_v34 }
 0x7b6   :  { %17279 = vmatmul.mubr.f32.gmra.mxu1 %v10520_v47  ;;  %17295 = vmatprep.mubr.f32.mxu0 %v23259_v11 }
 0x7b7   :  { %17281 = vmatprep.mubr.f32.mxu1 %v10530_v13 }
 0x7b9   :  { %17296 = vmatmul.mubr.f32.vlgmr.msra.gmra.mxu0 %v23265_v18 }
 0x7ba   :  { %17282 = vmatmul.mubr.f32.gmra.mxu1 %v10540_v37  ;;  %17298 = vmatprep.mubr.f32.mxu0 %v23278_v38 }
 0x7bb   :  { %17284 = vmatprep.mubr.f32.mxu1 %v10550_v54 }
 0x7bd   :  { %v23551_v22 = vpop.f32.mrf.mxu0  ;;  %17299 = vmatmul.mubr.f32.gmra.mxu0 %v23291_v7 }
 0x7be   :  { %17285 = vmatmul.mubr.f32.gmra.mxu1 %v10560_v62  ;;  %17301 = vmatprep.mubr.f32.mxu0 %v23300_v63 }
 0x7bf   :  { %v23554_v12 = vpop.f32.mrf.mxu0  ;;  %17327 = vmatprep.mubr.f32.mxu1 %v23259_v11 }
 0x7c1   :  { %v23560_v44 = vpop.f32.mrf.mxu0  ;;  %17302 = vmatmul.mubr.f32.gmra.mxu0 %v23307_v32 }
 0x7c2   :  { %17328 = vmatmul.mubr.f32.vlgmr.msra.gmra.mxu1 %v23265_v18  ;;  %17304 = vmatprep.mubr.f32.mxu0 %v23313_v35 }
 0x7c3   :  { %v23565_v46 = vpop.f32.mrf.mxu0  ;;  %17330 = vmatprep.mubr.f32.mxu1 %v23278_v38 }
 0x7c5   :  { %17305 = vmatmul.mubr.f32.gmra.mxu0 %v23334_v57  ;;  %v23569_v42 = vpop.f32.mrf.mxu0  ;;  %v23571_v28 = vpop.f32.mrf.mxu1 }
 0x7c6   :  { %17331 = vmatmul.mubr.f32.gmra.mxu1 %v23291_v7  ;;  %17307 = vmatprep.mubr.f32.mxu0 %v23342_v3 }
 0x7c7   :  { %17333 = vmatprep.mubr.f32.mxu1 %v23300_v63  ;;  %v23576_v0 = vpop.f32.mrf.mxu0  ;;  %v23578_v11 = vpop.f32.mrf.mxu1 }
 0x7c8   :  { %v15155_v31 = vadd.f32 %v23578_v11, %v23571_v28  ;;  %v15102_v28 = vadd.f32 %v23565_v46, %v23560_v44 }
 0x7c9   :  { %17308 = vmatmul.mubr.f32.gmra.mxu0 %v23358_v56 }
 0x7ca   :  { %17334 = vmatmul.mubr.f32.gmra.mxu1 %v23307_v32  ;;  %17310 = vmatprep.mubr.f32.mxu0 %v23372_v45 }
 0x7cb   :  { %17336 = vmatprep.mubr.f32.mxu1 %v23313_v35  ;;  %v23584_v18 = vpop.f32.mrf.mxu0  ;;  %v23586_v60 = vpop.f32.mrf.mxu1 }
 0x7cd   :  { %17311 = vmatmul.mubr.f32.gmra.mxu0 %v23388_v51  ;;  %v23589_v4 = vpop.f32.mrf.mxu0  ;;  %v23591_v38 = vpop.f32.mrf.mxu1 }
 0x7ce   :  { %17337 = vmatmul.mubr.f32.gmra.mxu1 %v23334_v57  ;;  %17313 = vmatprep.mubr.f32.mxu0 %v23394_v43 }
 0x7cf   :  { %17339 = vmatprep.mubr.f32.mxu1 %v23342_v3 }
 0x7d1   :  { %17314 = vmatmul.mubr.f32.gmra.mxu0 %v23411_v2  ;;  %v23597_v16 = vpop.f32.mrf.mxu0  ;;  %v23599_v7 = vpop.f32.mrf.mxu1 }
 0x7d2   :  { %17340 = vmatmul.mubr.f32.gmra.mxu1 %v23358_v56  ;;  %17316 = vmatprep.mubr.f32.mxu0 %v23418_v24 }
 0x7d3   :  { %17342 = vmatprep.mubr.f32.mxu1 %v23372_v45  ;;  %v23604_v26 = vpop.f32.mrf.mxu0  ;;  %v23606_v39 = vpop.f32.mrf.mxu1 }
 0x7d5   :  { %17317 = vmatmul.mubr.f32.gmra.mxu0 %v23431_v10 }
 0x7d6   :  { %17343 = vmatmul.mubr.f32.gmra.mxu1 %v23388_v51 }
 0x7d7   :  { %17345 = vmatprep.mubr.f32.mxu1 %v23394_v43  ;;  %v23611_v63 = vpop.f32.mrf.mxu0  ;;  %v23613_v20 = vpop.f32.mrf.mxu1 }
 0x7d9   :  { %v23615_v32 = vpop.f32.mrf.mxu0  ;;  %v23617_v8 = vpop.f32.mrf.mxu1 }
 0x7da   :  { %17346 = vmatmul.mubr.f32.gmra.mxu1 %v23411_v2 }
 0x7db   :  { %17348 = vmatprep.mubr.f32.mxu1 %v23418_v24 }
 0x7dd   :  { %v23621_v35 = vpop.f32.mrf.mxu0  ;;  %v23623_v14 = vpop.f32.mrf.mxu1 }
 0x7de   :  { %25987 = vst [vmem:[#allocation62_spill] sm:$0xff] %v23621_v35  ;;  %17349 = vmatmul.mubr.f32.gmra.mxu1 %v23431_v10 }
 0x7df   :  { %v23626_v59 = vpop.f32.mrf.mxu0  ;;  %v23628_v33 = vpop.f32.mrf.mxu1 }
 0x7e0   :  { %25988 = vst [vmem:[#allocation60_spill] sm:$0xff] %v23626_v59 }
 0x7e3   :  { %v23630_v57 = vpop.f32.mrf.mxu0  ;;  %v23632_v9 = vpop.f32.mrf.mxu1 }
 0x7e4   :  { %25989 = vst [vmem:[#allocation70_spill] sm:$0xff] %v23630_v57  ;;  %v15099_v57 = vadd.f32 %v23554_v12, %v23551_v22  ;;  %v15161_v22 = vadd.f32 %v23606_v39, %v23599_v7  ;;  %v15164_v7 = vadd.f32 %v23617_v8, %v23613_v20  ;;  %v15167_v20 = vadd.f32 %v23628_v33, %v23623_v14 }
 0x7e5   :  { %v23634_v49 = vpop.f32.mrf.mxu0  ;;  %v23636_v3 = vpop.f32.mrf.mxu1 }
 0x7e6   :  { %25990 = vst [vmem:[#allocation41_spill] sm:$0xff] %v23634_v49 }
 0x7e9   :  { %v23638_v15 = vpop.f32.mrf.mxu1  ;;  %v15209_v21 = vpop.f32.mrf.mxu0 }
 0x7eb   :  { %v23640_v53 = vpop.f32.mrf.mxu1  ;;  %v15210_v56 = vpop.f32.mrf.mxu0 }
 0x7ef   :  { %v23642_v5 = vpop.f32.mrf.mxu1  ;;  %v15212_v29 = vpop.f32.mrf.mxu0 }
 0x7f0   :  { %25991 = vst [vmem:[#allocation49_spill] sm:$0xff] %v23642_v5 }
 0x7f1   :  { %v23644_v45 = vpop.f32.mrf.mxu1  ;;  %v15213_v19 = vpop.f32.mrf.mxu0 }
 0x7f2   :  { %25992 = vst [vmem:[#allocation73_spill] sm:$0xff] %v23644_v45  ;;  %v15211_v45 = vadd.f32 %v15210_v56, %v15209_v21 }
 0x7f5   :  { %v15215_v23 = vpop.f32.mrf.mxu0  ;;  %v15265_v48 = vpop.f32.mrf.mxu1 }
 0x7f7   :  { %v15216_v51 = vpop.f32.mrf.mxu0  ;;  %v15266_v55 = vpop.f32.mrf.mxu1 }
 0x7fb   :  { %v23646_v43 = vpop.f32.mrf.mxu0  ;;  %v15268_v17 = vpop.f32.mrf.mxu1 }
 0x7fd   :  { %v15219_v27 = vpop.f32.mrf.mxu0  ;;  %v15269_v2 = vpop.f32.mrf.mxu1 }
 0x7fe   :  { %v15270_v56 = vadd.f32 %v15269_v2, %v15268_v17  ;;  %v15108_v2 = vadd.f32 %v23589_v4, %v23584_v18  ;;  %v15111_v4 = vadd.f32 %v23604_v26, %v23597_v16 }
 0x801   :  { %v23648_v25 = vpop.f32.mrf.mxu0  ;;  %v15271_v40 = vpop.f32.mrf.mxu1 }
 0x803   :  { %v23650_v24 = vpop.f32.mrf.mxu0  ;;  %v15272_v47 = vpop.f32.mrf.mxu1 }
 0x807   :  { %v23652_v1 = vpop.f32.mrf.mxu0  ;;  %v23654_v10 = vpop.f32.mrf.mxu1 }
 0x809   :  { %v23656_v13 = vpop.f32.mrf.mxu0  ;;  %v15275_v6 = vpop.f32.mrf.mxu1 }
 0x80d   :  { %v23658_v37 = vpop.f32.mrf.mxu0  ;;  %v23660_v34 = vpop.f32.mrf.mxu1 }
 0x80e   :  { %25993 = vst [vmem:[#allocation23_spill] sm:$0xff] %v23658_v37  ;;  %v15267_v37 = vadd.f32 %v15266_v55, %v15265_v48 }
 0x80f   :  { %v23662_v54 = vpop.f32.mrf.mxu0  ;;  %v23664_v30 = vpop.f32.mrf.mxu1 }
 0x810   :  { %25994 = vst [vmem:[#allocation80_spill] sm:$0xff] %v23662_v54  ;;  %v9453_v54 = vadd.f32 %v15155_v31, %v15099_v57  ;;  %v15279_v16 = vadd.f32 %v23664_v30, %v23660_v34 }
 0x812   :  { %v9640_v11 = vadd.f32 %v15211_v45, %v9453_v54 }
 0x813   :  { %v23666_v52 = vpop.f32.mrf.mxu0  ;;  %v23668_v62 = vpop.f32.mrf.mxu1 }
 0x814   :  { %25995 = vst [vmem:[#allocation21_spill] sm:$0xff] %v23666_v52  ;;  %v9811_v57 = vadd.f32 %v15267_v37, %v9640_v11 }
 0x815   :  { %v23670_v58 = vpop.f32.mrf.mxu0  ;;  %v23672_v61 = vpop.f32.mrf.mxu1 }
 0x816   :  { %25996 = vst [vmem:[#allocation66_spill] sm:$0xff] %v23670_v58  ;;  %25997 = vst [vmem:[#allocation46_spill] sm:$0xff] %v23672_v61  ;;  %v15158_v58 = vadd.f32 %v23591_v38, %v23586_v60  ;;  %v15105_v60 = vadd.f32 %v23576_v0, %v23569_v42  ;;  %v15217_v38 = vadd.f32 %v15216_v51, %v15215_v23 }
 0x817   :  { %v15220_v23 = vadd.f32 %v15219_v27, %v23646_v43  ;;  %v15223_v43 = vadd.f32 %v23650_v24, %v23648_v25  ;;  %v15114_v25 = vadd.f32 %v23615_v32, %v23611_v63 }
 0x818   :  { %v9460_v21 = vadd.f32 %v15158_v58, %v15102_v28 }
 0x819   :  { %v23674_v41 = vpop.f32.mrf.mxu1  ;;  %v15321_v36 = vpop.f32.mrf.mxu0 }
 0x81a   :  { %25998 = vst [vmem:[#allocation45_spill] sm:$0xff] %v23674_v41 }
 0x81b   :  { %v23678_v50 = vpop.f32.mrf.mxu1  ;;  %v15322_v49 = vpop.f32.mrf.mxu0 }
 0x81c   :  { %25999 = vst [vmem:[#allocation79_spill] sm:$0xff] %v23678_v50  ;;  %v15214_v50 = vadd.f32 %v15213_v19, %v15212_v29  ;;  %v15323_v35 = vadd.f32 %v15322_v49, %v15321_v36  ;;  %v9467_v49 = vadd.f32 %v15161_v22, %v15105_v60  ;;  %v15273_v19 = vadd.f32 %v15272_v47, %v15271_v40 }
 0x81d   :  { %v15324_v52 = vpop.f32.mrf.mxu0  ;;  %v9474_v40 = vadd.f32 %v15164_v7, %v15108_v2  ;;  %v15276_v47 = vadd.f32 %v15275_v6, %v23654_v10  ;;  %v15170_v10 = vadd.f32 %v23636_v3, %v23632_v9  ;;  %v15173_v3 = vadd.f32 %v23640_v53, %v23638_v15  ;;  %v26001_v60 = vld [vmem:[#allocation46_spill] sm:$0xff] }
 0x81e   :  { %v23682_v5 = vpop.f32.mrf.mxu1  ;;  %v9649_v55 = vadd.f32 %v15214_v50, %v9460_v21  ;;  %v9658_v42 = vadd.f32 %v15217_v38, %v9467_v49  ;;  %v9481_v50 = vadd.f32 %v15167_v20, %v15111_v4  ;;  %v15282_v63 = vadd.f32 %v26001_v60, %v23668_v62  ;;  %v26007_v62 = vld [vmem:[#allocation73_spill] sm:$0xff] }
 0x81f   :  { %v15325_v41 = vpop.f32.mrf.mxu0  ;;  %v9488_v30 = vadd.f32 %v15170_v10, %v15114_v25 }
 0x820   :  { %v23686_v59 = vpop.f32.mrf.mxu1  ;;  %v15326_v44 = vadd.f32 %v15325_v41, %v15324_v52  ;;  %v9822_v39 = vadd.f32 %v15270_v56, %v9649_v55  ;;  %v9676_v24 = vadd.f32 %v15223_v43, %v9481_v50  ;;  %v26003_v55 = vld [vmem:[#allocation60_spill] sm:$0xff] }
 0x821   :  { %26000 = vst [vmem:[#allocation29_spill] sm:$0xff] %v23686_v59  ;;  %v15327_v61 = vpop.f32.mrf.mxu0  ;;  %v10056_v59 = vadd.f32 %v15323_v35, %v9811_v57 }
 0x822   :  { %v15377_v12 = vpop.f32.mrf.mxu1  ;;  %v10063_v35 = vadd.f32 %v15326_v44, %v9822_v39  ;;  %v26005_v44 = vld [vmem:[#allocation80_spill] sm:$0xff] }
 0x823   :  { %v15328_v31 = vpop.f32.mrf.mxu0 }
 0x824   :  { %v15378_v48 = vpop.f32.mrf.mxu1  ;;  %v15329_v51 = vadd.f32 %v15328_v31, %v15327_v61  ;;  %v9667_v61 = vadd.f32 %v15220_v23, %v9474_v40  ;;  %v9855_v31 = vadd.f32 %v15279_v16, %v9676_v24 }
 0x825   :  { %v15379_v46 = vadd.f32 %v15378_v48, %v15377_v12  ;;  %v15330_v29 = vpop.f32.mrf.mxu0  ;;  %v15226_v12 = vadd.f32 %v23656_v13, %v23652_v1  ;;  %v26002_v48 = vld [vmem:[#allocation62_spill] sm:$0xff]  ;;  %v26004_v13 = vld [vmem:[#allocation23_spill] sm:$0xff] }
 0x826   :  { %v15380_v45 = vpop.f32.mrf.mxu1  ;;  %v9844_v6 = vadd.f32 %v15276_v47, %v9667_v61  ;;  %v15117_v1 = vadd.f32 %v26003_v55, %v26002_v48  ;;  %v26013_v47 = vld [vmem:[#allocation66_spill] sm:$0xff]  ;;  %v11469_v61 = vld [vmem:[#allocation5 + $0x10] sm:$0xff] }
 0x827   :  { %v10209_v37 = vadd.f32 %v15379_v46, %v10056_v59  ;;  %v15331_v17 = vpop.f32.mrf.mxu0  ;;  %v9833_v59 = vadd.f32 %v15273_v19, %v9658_v42  ;;  %v15229_v46 = vadd.f32 %v26005_v44, %v26004_v13  ;;  %v9685_v49 = vadd.f32 %v15226_v12, %v9488_v30  ;;  %v26008_v42 = vld [vmem:[#allocation45_spill] sm:$0xff] }
 0x828   :  { %v15381_v0 = vpop.f32.mrf.mxu1  ;;  %v15332_v36 = vadd.f32 %v15331_v17, %v15330_v29  ;;  %v9495_v39 = vadd.f32 %v15173_v3, %v15117_v1  ;;  %v26015_v50 = vld [vmem:[#allocation29_spill] sm:$0xff] }
 0x829   :  { %10262 = vst.msk [vmem:[#allocation13 + $0x100] sm:$0xff] %vm3383_vm2, %v10209_v37  ;;  %v15382_v54 = vadd.f32 %v15381_v0, %v15380_v45  ;;  %v15333_v52 = vpop.f32.mrf.mxu0  ;;  %v10070_v41 = vadd.f32 %v15329_v51, %v9833_v59  ;;  %v26006_v37 = vld [vmem:[#allocation49_spill] sm:$0xff]  ;;  %v9866_v2 = vadd.f32 %v15282_v63, %v9685_v49  ;;  %v26009_v0 = vld [vmem:[#allocation79_spill] sm:$0xff] }
 0x82a   :  { %v15383_v8 = vpop.f32.mrf.mxu1  ;;  %v10077_v21 = vadd.f32 %v15332_v36, %v9844_v6  ;;  %v15176_v17 = vadd.f32 %v26007_v62, %v26006_v37  ;;  %v15285_v23 = vadd.f32 %v26009_v0, %v26008_v42  ;;  %v26012_v59 = vld [vmem:[#allocation21_spill] sm:$0xff]  ;;  %v23735_v36 = vand.u32 4294901760, %v11469_v61 }
 0x82b   :  { %v10216_v58 = vadd.f32 %v15382_v54, %v10063_v35  ;;  %v15334_v18 = vpop.f32.mrf.mxu0  ;;  %v26010_v54 = vld [vmem:[#allocation70_spill] sm:$0xff] }
 0x82c   :  { %v15384_v27 = vpop.f32.mrf.mxu1  ;;  %v15335_v57 = vadd.f32 %v15334_v18, %v15333_v52  ;;  %v26011_v52 = vld [vmem:[#allocation41_spill] sm:$0xff]  ;;  %26014 = vst [vmem:[#allocation47_spill] sm:$0xff] %v23735_v36  ;;  %17427 = vmatprep.mubr.f32.mxu1 %v23735_v36 }
 0x82d   :  { %10263 = vst.msk [vmem:[#allocation13 + $0x108] sm:$0xff] %vm3383_vm2, %v10216_v58  ;;  %v15385_v14 = vadd.f32 %v15384_v27, %v15383_v8  ;;  %v15336_v33 = vpop.f32.mrf.mxu0  ;;  %v15120_v20 = vadd.f32 %v26011_v52, %v26010_v54  ;;  %v9694_v8 = vadd.f32 %v15229_v46, %v9495_v39  ;;  %v15232_v58 = vadd.f32 %v26013_v47, %v26012_v59 }
 0x82e   :  { %v15386_v28 = vpop.f32.mrf.mxu1  ;;  %v10084_v45 = vadd.f32 %v15335_v57, %v9855_v31 }
 0x82f   :  { %v10223_v26 = vadd.f32 %v15385_v14, %v10070_v41  ;;  %v15337_v11 = vpop.f32.mrf.mxu0  ;;  %v9502_v14 = vadd.f32 %v15176_v17, %v15120_v20 }
 0x830   :  { %v15387_v22 = vpop.f32.mrf.mxu1  ;;  %v15338_v7 = vadd.f32 %v15337_v11, %v15336_v33  ;;  %v9877_v33 = vadd.f32 %v15285_v23, %v9694_v8 }
 0x831   :  { %10264 = vst.msk [vmem:[#allocation13 + $0x110] sm:$0xff] %vm3383_vm2, %v10223_v26  ;;  %v15388_v56 = vadd.f32 %v15387_v22, %v15386_v28  ;;  %v15339_v9 = vpop.f32.mrf.mxu0  ;;  %v15288_v28 = vadd.f32 %v26015_v50, %v23682_v5  ;;  %v23740_v26 = vsub.f32 %v11469_v61, %v23735_v36  ;;  %v9703_v11 = vadd.f32 %v15232_v58, %v9502_v14 }
 0x832   :  { %v15389_v34 = vpop.f32.mrf.mxu1  ;;  %v10091_v18 = vadd.f32 %v15338_v7, %v9866_v2 }
 0x833   :  { %v10230_v32 = vadd.f32 %v15388_v56, %v10077_v21  ;;  %v15340_v38 = vpop.f32.mrf.mxu0  ;;  %26016 = vst [vmem:[#allocation37_spill] sm:$0xff] %v23740_v26  ;;  %v25029_v57 = vand.u32 4294901760, %v23740_v26  ;;  %v9888_v56 = vadd.f32 %v15288_v28, %v9703_v11 }
 0x834   :  { %v15390_v29 = vpop.f32.mrf.mxu1  ;;  %v15341_v4 = vadd.f32 %v15340_v38, %v15339_v9 }
 0x835   :  { %10265 = vst.msk [vmem:[#allocation13 + $0x118] sm:$0xff] %vm3383_vm2, %v10230_v32  ;;  %v15391_v15 = vadd.f32 %v15390_v29, %v15389_v34  ;;  %v15342_v53 = vpop.f32.mrf.mxu0  ;;  %v11561_v34 = vsub.f32 %v23740_v26, %v25029_v57 }
 0x836   :  { %v15392_v19 = vpop.f32.mrf.mxu1  ;;  %v10098_v25 = vadd.f32 %v15341_v4, %v9877_v33 }
 0x837   :  { %v10237_v35 = vadd.f32 %v15391_v15, %v10084_v45  ;;  %v15343_v51 = vpop.f32.mrf.mxu0  ;;  %v11562_v32 = vand.u32 4294901760, %v11561_v34 }
 0x838   :  { %v15393_v40 = vpop.f32.mrf.mxu1  ;;  %v15344_v24 = vadd.f32 %v15343_v51, %v15342_v53 }
 0x839   :  { %10266 = vst.msk [vmem:[#allocation13 + $0x120] sm:$0xff] %vm3383_vm2, %v10237_v35  ;;  %v15394_v43 = vadd.f32 %v15393_v40, %v15392_v19  ;;  %v17169_v27 = vpop.f32.mrf.mxu0  ;;  %17383 = vmatprep.mubr.f32.mxu0 %v11562_v32 }
 0x83a   :  { %v15395_v41 = vpop.f32.mrf.mxu1  ;;  %v10105_v30 = vadd.f32 %v15344_v24, %v9888_v56 }
 0x83b   :  { %v10244_v10 = vadd.f32 %v15394_v43, %v10091_v18  ;;  %v10414_v6 = vpop.f32.mrf.mxu0 }
 0x83c   :  { %v15396_v16 = vpop.f32.mrf.mxu1 }
 0x83d   :  { %10267 = vst.msk [vmem:[#allocation13 + $0x128] sm:$0xff] %vm3383_vm2, %v10244_v10  ;;  %v15397_v22 = vadd.f32 %v15396_v16, %v15395_v41  ;;  %v17172_v12 = vpop.f32.mrf.mxu0 }
 0x83e   :  { %v15398_v21 = vpop.f32.mrf.mxu1 }
 0x83f   :  { %v10251_v5 = vadd.f32 %v15397_v22, %v10098_v25  ;;  %v10434_v9 = vpop.f32.mrf.mxu0 }
 0x840   :  { %v15399_v3 = vpop.f32.mrf.mxu1 }
 0x841   :  { %10268 = vst.msk [vmem:[#allocation13 + $0x130] sm:$0xff] %vm3383_vm2, %v10251_v5  ;;  %v15400_v31 = vadd.f32 %v15399_v3, %v15398_v21  ;;  %v17175_v60 = vpop.f32.mrf.mxu0 }
 0x842   :  { %v17201_v63 = vpop.f32.mrf.mxu1 }
 0x843   :  { %v10258_v38 = vadd.f32 %v15400_v31, %v10105_v30  ;;  %v10662_v48 = vadd.f32 %v17201_v63, %v17169_v27  ;;  %v10454_v55 = vpop.f32.mrf.mxu0 }
 0x844   :  { %v10655_v1 = vpop.f32.mrf.mxu1 }
 0x845   :  { %10269 = vst.msk [vmem:[#allocation13 + $0x138] sm:$0xff] %vm3383_vm2, %v10258_v38  ;;  %v10656_v13 = vadd.f32 %v10655_v1, %v10414_v6  ;;  %v17178_v44 = vpop.f32.mrf.mxu0 }
 0x846   :  { %v17204_v46 = vpop.f32.mrf.mxu1 }
 0x847   :  { %v10674_v29 = vadd.f32 %v17204_v46, %v17172_v12  ;;  %v10474_v49 = vpop.f32.mrf.mxu0 }
 0x848   :  { %v10667_v45 = vpop.f32.mrf.mxu1 }
 0x849   :  { %v10668_v7 = vadd.f32 %v10667_v45, %v10434_v9  ;;  %v17181_v15 = vpop.f32.mrf.mxu0 }
 0x84a   :  { %v17207_v53 = vpop.f32.mrf.mxu1 }
 0x84b   :  { %v10686_v39 = vadd.f32 %v17207_v53, %v17175_v60  ;;  %v10494_v19 = vpop.f32.mrf.mxu0 }
 0x84c   :  { %v10679_v37 = vpop.f32.mrf.mxu1 }
 0x84d   :  { %v10680_v62 = vadd.f32 %v10679_v37, %v10454_v55  ;;  %v17184_v17 = vpop.f32.mrf.mxu0 }
 0x84e   :  { %v17210_v2 = vpop.f32.mrf.mxu1 }
 0x84f   :  { %v23750_v42 = vadd.f32 %v17210_v2, %v17178_v44  ;;  %v10514_v0 = vpop.f32.mrf.mxu0 }
 0x850   :  { %v10691_v23 = vpop.f32.mrf.mxu1 }
 0x851   :  { %v23752_v35 = vadd.f32 %v10691_v23, %v10474_v49  ;;  %v17187_v51 = vpop.f32.mrf.mxu0 }
 0x852   :  { %v17213_v54 = vpop.f32.mrf.mxu1 }
 0x853   :  { %v23754_v52 = vadd.f32 %v17213_v54, %v17181_v15  ;;  %v10534_v20 = vpop.f32.mrf.mxu0 }
 0x854   :  { %v10703_v8 = vpop.f32.mrf.mxu1 }
 0x855   :  { %v23756_v40 = vadd.f32 %v10703_v8, %v10494_v19  ;;  %v23758_v59 = vpop.f32.mrf.mxu0 }
 0x856   :  { %v17216_v47 = vpop.f32.mrf.mxu1 }
 0x857   :  { %v23760_v58 = vadd.f32 %v17216_v47, %v17184_v17  ;;  %v23762_v18 = vpop.f32.mrf.mxu0 }
 0x858   :  { %v10715_v4 = vpop.f32.mrf.mxu1 }
 0x859   :  { %v23764_v43 = vadd.f32 %v10715_v4, %v10514_v0  ;;  %v17233_v27 = vpop.f32.mrf.mxu0 }
 0x85a   :  { %v17219_v61 = vpop.f32.mrf.mxu1  ;;  %v10833_v41 = vadd.f32 %v17233_v27, %v10662_v48 }
 0x85b   :  { %v23766_v14 = vadd.f32 %v17219_v61, %v17187_v51  ;;  %v10825_v33 = vpop.f32.mrf.mxu0 }
 0x85c   :  { %v10727_v50 = vpop.f32.mrf.mxu1  ;;  %v10826_v28 = vadd.f32 %v10825_v33, %v10656_v13 }
 0x85d   :  { %v23768_v10 = vadd.f32 %v10727_v50, %v10534_v20  ;;  %v17236_v6 = vpop.f32.mrf.mxu0 }
 0x85e   :  { %v23770_v16 = vpop.f32.mrf.mxu1  ;;  %v10847_v11 = vadd.f32 %v17236_v6, %v10674_v29 }
 0x85f   :  { %v10839_v25 = vpop.f32.mrf.mxu0 }
 0x860   :  { %v23772_v24 = vpop.f32.mrf.mxu1  ;;  %v10840_v22 = vadd.f32 %v10839_v25, %v10668_v7 }
 0x861   :  { %v17239_v12 = vpop.f32.mrf.mxu0 }
 0x862   :  { %v10861_v21 = vadd.f32 %v17239_v12, %v10686_v39  ;;  %v17265_v56 = vpop.f32.mrf.mxu1 }
 0x863   :  { %v23774_v5 = vadd.f32 %v17265_v56, %v10833_v41  ;;  %v10853_v9 = vpop.f32.mrf.mxu0 }
 0x864   :  { %v10854_v3 = vadd.f32 %v10853_v9, %v10680_v62  ;;  %v11007_v34 = vpop.f32.mrf.mxu1 }
 0x865   :  { %26017 = vst [vmem:[#allocation33_spill] sm:$0xff] %v23774_v5  ;;  %v23776_v30 = vadd.f32 %v11007_v34, %v10826_v28  ;;  %v23778_v31 = vpop.f32.mrf.mxu0 }
 0x866   :  { %v17268_v60 = vpop.f32.mrf.mxu1 }
 0x867   :  { %26018 = vst [vmem:[#allocation76_spill] sm:$0xff] %v23776_v30  ;;  %v23780_v63 = vadd.f32 %v17268_v60, %v10847_v11  ;;  %v23782_v32 = vpop.f32.mrf.mxu0 }
 0x868   :  { %v11023_v38 = vpop.f32.mrf.mxu1 }
 0x869   :  { %v23784_v48 = vadd.f32 %v11023_v38, %v10840_v22  ;;  %v17245_v55 = vpop.f32.mrf.mxu0 }
 0x86a   :  { %v17271_v1 = vpop.f32.mrf.mxu1 }
 0x86b   :  { %26019 = vst [vmem:[#allocation78_spill] sm:$0xff] %v23784_v48  ;;  %v23786_v13 = vadd.f32 %v17271_v1, %v10861_v21  ;;  %v23788_v44 = vpop.f32.mrf.mxu0 }
 0x86c   :  { %v11039_v46 = vpop.f32.mrf.mxu1 }
 0x86d   :  { %v23790_v29 = vadd.f32 %v11039_v46, %v10854_v3  ;;  %v17248_v49 = vpop.f32.mrf.mxu0 }
 0x86e   :  { %v23792_v45 = vpop.f32.mrf.mxu1 }
 0x86f   :  { %v10895_v7 = vpop.f32.mrf.mxu0 }
 0x870   :  { %v23794_v15 = vpop.f32.mrf.mxu1 }
 0x871   :  { %v17251_v53 = vpop.f32.mrf.mxu0 }
 0x872   :  { %v17277_v39 = vpop.f32.mrf.mxu1  ;;  %v10917_v36 = vadd.f32 %v17251_v53, %v23766_v14  ;;  %v10889_v53 = vadd.f32 %v17245_v55, %v23754_v52  ;;  %v10875_v55 = vadd.f32 %v23778_v31, %v23750_v42 }
 0x873   :  { %v10909_v19 = vpop.f32.mrf.mxu0 }
 0x874   :  { %v23796_v37 = vpop.f32.mrf.mxu1 }
 0x875   :  { %v17254_v62 = vpop.f32.mrf.mxu0 }
 0x876   :  { %v17280_v17 = vpop.f32.mrf.mxu1 }
 0x877   :  { %v10923_v2 = vpop.f32.mrf.mxu0 }
 0x878   :  { %v11087_v0 = vpop.f32.mrf.mxu1 }
 0x879   :  { %v23798_v23 = vpop.f32.mrf.mxu0 }
 0x87a   :  { %26020 = vst [vmem:[#allocation48_spill] sm:$0xff] %v23798_v23  ;;  %v17283_v51 = vpop.f32.mrf.mxu1  ;;  %v10896_v23 = vadd.f32 %v10895_v7, %v23764_v43 }
 0x87b   :  { %v23800_v54 = vpop.f32.mrf.mxu0  ;;  %v11112_v30 = vadd.f32 %v17283_v51, %v10917_v36 }
 0x87c   :  { %26021 = vst [vmem:[#allocation72_spill] sm:$0xff] %v23800_v54  ;;  %v11103_v20 = vpop.f32.mrf.mxu1  ;;  %v10910_v54 = vadd.f32 %v10909_v19, %v23768_v10 }
 0x87d   :  { %v23802_v8 = vpop.f32.mrf.mxu0 }
 0x87e   :  { %26022 = vst [vmem:[#allocation64_spill] sm:$0xff] %v23802_v8  ;;  %v17286_v47 = vpop.f32.mrf.mxu1 }
 0x87f   :  { %v23804_v4 = vpop.f32.mrf.mxu0 }
 0x880   :  { %26023 = vst [vmem:[#allocation35_spill] sm:$0xff] %v23804_v4  ;;  %v11119_v27 = vpop.f32.mrf.mxu1 }
 0x881   :  { %v23806_v61 = vpop.f32.mrf.mxu0 }
 0x882   :  { %v23808_v41 = vpop.f32.mrf.mxu1 }
 0x883   :  { %26024 = vst [vmem:[#allocation34_spill] sm:$0xff] %v23808_v41  ;;  %v23810_v33 = vpop.f32.mrf.mxu0  ;;  %v10903_v41 = vadd.f32 %v17248_v49, %v23760_v58 }
 0x884   :  { %v23812_v50 = vpop.f32.mrf.mxu1 }
 0x885   :  { %26025 = vst [vmem:[#allocation38_spill] sm:$0xff] %v23812_v50  ;;  %v23814_v28 = vpop.f32.mrf.mxu0  ;;  %v10746_v50 = vadd.f32 %v23770_v16, %v23758_v59  ;;  %v11096_v48 = vadd.f32 %v17280_v17, %v10903_v41  ;;  %v11088_v59 = vadd.f32 %v11087_v0, %v10896_v23 }
 0x886   :  { %v23816_v6 = vpop.f32.mrf.mxu1 }
 0x887   :  { %26026 = vst [vmem:[#allocation25_spill] sm:$0xff] %v23816_v6  ;;  %v23818_v11 = vpop.f32.mrf.mxu0  ;;  %v10931_v4 = vadd.f32 %v17254_v62, %v10746_v50 }
 0x888   :  { %v23820_v25 = vpop.f32.mrf.mxu1 }
 0x889   :  { %26027 = vst [vmem:[#allocation56_spill] sm:$0xff] %v23820_v25  ;;  %v17309_v22 = vpop.f32.mrf.mxu0  ;;  %v10740_v25 = vadd.f32 %v23772_v24, %v23762_v18  ;;  %v11128_v58 = vadd.f32 %v17286_v47, %v10931_v4  ;;  %v10882_v18 = vadd.f32 %v23788_v44, %v23756_v40  ;;  %v11080_v24 = vadd.f32 %v17277_v39, %v10889_v53 }
 0x88a   :  { %v23822_v12 = vpop.f32.mrf.mxu1  ;;  %v10868_v39 = vadd.f32 %v23782_v32, %v23752_v35 }
 0x88b   :  { %v11258_v21 = vpop.f32.mrf.mxu0  ;;  %v10924_v8 = vadd.f32 %v10923_v2, %v10740_v25  ;;  %v11265_v2 = vadd.f32 %v17309_v22, %v11080_v24 }
 0x88c   :  { %v23824_v56 = vpop.f32.mrf.mxu1  ;;  %v11056_v4 = vadd.f32 %v23794_v15, %v10868_v39 }
 0x88d   :  { %26028 = vst [vmem:[#allocation28_spill] sm:$0xff] %v23824_v56  ;;  %v17312_v9 = vpop.f32.mrf.mxu0  ;;  %v11104_v56 = vadd.f32 %v11103_v20, %v10910_v54  ;;  %v11120_v43 = vadd.f32 %v11119_v27, %v10924_v8 }
 0x88e   :  { %v23826_v3 = vpop.f32.mrf.mxu1  ;;  %v11277_v49 = vadd.f32 %v17312_v9, %v11096_v48  ;;  %v11072_v48 = vadd.f32 %v23796_v37, %v10882_v18 }
 0x88f   :  { %v11270_v34 = vpop.f32.mrf.mxu0 }
 0x890   :  { %v23828_v60 = vpop.f32.mrf.mxu1  ;;  %v11271_v7 = vadd.f32 %v11270_v34, %v11088_v59 }
 0x891   :  { %v17315_v38 = vpop.f32.mrf.mxu0 }
 0x892   :  { %v17341_v1 = vpop.f32.mrf.mxu1  ;;  %v11289_v14 = vadd.f32 %v17315_v38, %v11112_v30 }
 0x893   :  { %v11282_v46 = vpop.f32.mrf.mxu0  ;;  %v11430_v20 = vadd.f32 %v17341_v1, %v11265_v2  ;;  %v11470_v2 = vld [vmem:[#allocation5 + $0x30] sm:$0xff] }
 0x894   :  { %v11423_v57 = vpop.f32.mrf.mxu1  ;;  %v11283_v10 = vadd.f32 %v11282_v46, %v11104_v56 }
 0x895   :  { %v17318_v5 = vpop.f32.mrf.mxu0  ;;  %v23873_v15 = vand.u32 4294901760, %v11430_v20 }
 0x896   :  { %v17344_v26 = vpop.f32.mrf.mxu1  ;;  %v11301_v17 = vadd.f32 %v17318_v5, %v11128_v58  ;;  %v11259_v5 = vadd.f32 %v11258_v21, %v11072_v48 }
 0x897   :  { %v11294_v19 = vpop.f32.mrf.mxu0  ;;  %v11442_v51 = vadd.f32 %v17344_v26, %v11277_v49  ;;  %v11064_v26 = vadd.f32 %v23792_v45, %v10875_v55  ;;  %v23913_v46 = vsub.f32 %v11430_v20, %v23873_v15 }
 0x898   :  { %v11435_v6 = vpop.f32.mrf.mxu1  ;;  %v11295_v23 = vadd.f32 %v11294_v19, %v11120_v43  ;;  %v11424_v41 = vadd.f32 %v11423_v57, %v11259_v5  ;;  %v26032_v43 = vld [vmem:[#allocation35_spill] sm:$0xff]  ;;  %v26033_v19 = vld [vmem:[#allocation25_spill] sm:$0xff] }
 0x899   :  { %v11436_v54 = vadd.f32 %v11435_v6, %v11271_v7  ;;  %v23851_v47 = vand.u32 4294901760, %v11442_v51  ;;  %v11253_v27 = vadd.f32 %v23814_v28, %v11064_v26  ;;  %v11247_v6 = vadd.f32 %v23818_v11, %v11056_v4  ;;  %v26037_v4 = vld [vmem:[#allocation76_spill] sm:$0xff] }
 0x89a   :  { %v17347_v16 = vpop.f32.mrf.mxu1  ;;  %v11241_v11 = vadd.f32 %v23806_v61, %v23786_v13  ;;  %v23892_v9 = vand.u32 4294901760, %v11424_v41  ;;  %v11235_v13 = vadd.f32 %v23810_v33, %v23790_v29  ;;  %v26029_v33 = vld [vmem:[#allocation64_spill] sm:$0xff]  ;;  %v23952_v48 = vand.u32 4294901760, %v23913_v46 }
 0x89b   :  { %v11454_v36 = vadd.f32 %v17347_v16, %v11289_v14  ;;  %v23860_v50 = vand.u32 4294901760, %v11436_v54  ;;  %v11418_v25 = vadd.f32 %v23826_v3, %v11253_v27  ;;  %v23877_v57 = vsub.f32 %v11442_v51, %v23851_v47  ;;  %v26030_v16 = vld [vmem:[#allocation28_spill] sm:$0xff] }
 0x89c   :  { %v11447_v62 = vpop.f32.mrf.mxu1  ;;  %v11412_v56 = vadd.f32 %v23828_v60, %v11247_v6  ;;  %v11406_v61 = vadd.f32 %v23822_v12, %v11241_v11  ;;  %v11229_v12 = vadd.f32 %v26029_v33, %v23780_v63  ;;  %v11400_v58 = vadd.f32 %v26030_v16, %v11235_v13  ;;  %v26031_v63 = vld [vmem:[#allocation78_spill] sm:$0xff]  ;;  %v26038_v27 = vld [vmem:[#allocation72_spill] sm:$0xff] }
 0x89d   :  { %v23841_v30 = vand.u32 4294901760, %v11454_v36  ;;  %v11448_v52 = vadd.f32 %v11447_v62, %v11283_v10  ;;  %v23896_v3 = vsub.f32 %v11436_v54, %v23860_v50  ;;  %v23910_v60 = vand.u32 4294901760, %v11418_v25  ;;  %v26039_v6 = vld [vmem:[#allocation34_spill] sm:$0xff] }
 0x89e   :  { %v17350_v0 = vpop.f32.mrf.mxu1  ;;  %v23922_v29 = vand.u32 4294901760, %v23877_v57  ;;  %v23927_v49 = vand.u32 4294901760, %v11412_v56  ;;  %v23931_v10 = vsub.f32 %v11424_v41, %v23892_v9  ;;  %v11223_v7 = vadd.f32 %v26032_v43, %v26031_v63 }
 0x89f   :  { %v23846_v40 = vand.u32 4294901760, %v11448_v52  ;;  %v11466_v44 = vadd.f32 %v17350_v0, %v11301_v17  ;;  %v23854_v42 = vsub.f32 %v11454_v36, %v23841_v30  ;;  %v23937_v24 = vand.u32 4294901760, %v23896_v3  ;;  %v26034_v0 = vld [vmem:[#allocation33_spill] sm:$0xff] }
 0x8a0   :  { %v11459_v8 = vpop.f32.mrf.mxu1  ;;  %v11394_v62 = vadd.f32 %v26033_v19, %v11229_v12  ;;  %v23942_v17 = vand.u32 4294901760, %v11406_v61  ;;  %v23946_v51 = vsub.f32 %v11418_v25, %v23910_v60  ;;  %v11670_v55 = vsub.f32 %v23877_v57, %v23922_v29 }
 0x8a1   :  { %v23856_v31 = vand.u32 4294901760, %v11466_v44  ;;  %v11460_v37 = vadd.f32 %v11459_v8, %v11295_v23  ;;  %v23863_v35 = vsub.f32 %v11448_v52, %v23846_v40  ;;  %v23887_v21 = vand.u32 4294901760, %v23854_v42  ;;  %v26035_v23 = vld [vmem:[#allocation48_spill] sm:$0xff] }
 0x8a2   :  { %v11217_v54 = vadd.f32 %v26035_v23, %v26034_v0  ;;  %v23957_v26 = vand.u32 4294901760, %v11400_v58  ;;  %v23961_v5 = vsub.f32 %v11412_v56, %v23927_v49  ;;  %v11677_v8 = vsub.f32 %v23896_v3, %v23937_v24 }
 0x8a3   :  { %v23866_v32 = vsub.f32 %v11466_v44, %v23856_v31  ;;  %v23868_v45 = vand.u32 4294901760, %v11460_v37  ;;  %17351 = vmatprep.subr.mxu0 %v23856_v31  ;;  %v23905_v1 = vand.u32 4294901760, %v23863_v35  ;;  %v11656_v59 = vsub.f32 %v23854_v42, %v23887_v21  ;;  %v26036_v44 = vld [vmem:[#allocation56_spill] sm:$0xff] }
 0x8a4   :  { %17352 = vmatpush3.msra.mxu0 %v23856_v31  ;;  %v11388_v39 = vadd.f32 %v26036_v44, %v11223_v7  ;;  %v11211_v41 = vadd.f32 %v26038_v27, %v26037_v4  ;;  %v11382_v25 = vadd.f32 %v26039_v6, %v11217_v54  ;;  %v23972_v11 = vand.u32 4294901760, %v11394_v62 }
 0x8a5   :  { %v23880_v28 = vsub.f32 %v11460_v37, %v23868_v45  ;;  %17353 = vmatprep.subr.mxu0 %v23868_v45  ;;  %v23884_v22 = vand.u32 4294901760, %v23866_v32  ;;  %v11663_v18 = vsub.f32 %v23863_v35, %v23905_v1  ;;  %v11657_v52 = vand.u32 4294901760, %v11656_v59  ;;  %v26040_v59 = vld [vmem:[#allocation38_spill] sm:$0xff] }
 0x8a6   :  { %17354 = vmatpush3.msra.mxu0 %v23868_v45  ;;  %v23967_v37 = vand.u32 4294901760, %v23931_v10  ;;  %v23975_v56 = vand.u32 4294901760, %v11470_v2  ;;  %v11671_v13 = vand.u32 4294901760, %v11670_v55  ;;  %v11376_v33 = vadd.f32 %v26040_v59, %v11211_v41 }
 0x8a7   :  { %17355 = vmatprep.subr.mxu0 %v23841_v30  ;;  %v11642_v34 = vsub.f32 %v23866_v32, %v23884_v22  ;;  %v23902_v38 = vand.u32 4294901760, %v23880_v28  ;;  %v11664_v20 = vand.u32 4294901760, %v11663_v18  ;;  %v23987_v12 = vand.u32 4294901760, %v11388_v39 }
 0x8a8   :  { %17356 = vmatpush3.msra.mxu0 %v23841_v30  ;;  %v11678_v16 = vand.u32 4294901760, %v11677_v8  ;;  %v23997_v18 = vand.u32 4294901760, %v23961_v5  ;;  %v23999_v63 = vand.u32 4294901760, %v11382_v25  ;;  %v24003_v43 = vsub.f32 %v11470_v2, %v23975_v56 }
 0x8a9   :  { %17357 = vmatprep.subr.mxu0 %v23846_v40  ;;  %v11643_v14 = vand.u32 4294901760, %v11642_v34  ;;  %v11649_v53 = vsub.f32 %v23880_v28, %v23902_v38  ;;  %v23978_v34 = vsub.f32 %v11406_v61, %v23942_v17  ;;  %v23991_v61 = vsub.f32 %v11400_v58, %v23957_v26 }
 0x8aa   :  { %17358 = vmatpush3.msra.mxu0 %v23846_v40  ;;  %v24006_v58 = vsub.f32 %v11394_v62, %v23972_v11  ;;  %v24014_v55 = vand.u32 4294901760, %v11376_v33  ;;  %v24018_v2 = vsub.f32 %v11388_v39, %v23987_v12  ;;  %v11705_v0 = vsub.f32 %v23961_v5, %v23997_v18 }
 0x8ab   :  { %17359 = vmatprep.subr.mxu0 %v23851_v47  ;;  %17395 = vmatprep.subr.mxu1 %v11643_v14  ;;  %v11650_v36 = vand.u32 4294901760, %v11649_v53  ;;  %v23984_v53 = vand.u32 4294901760, %v23946_v51  ;;  %v24024_v23 = vand.u32 4294901760, %v23991_v61  ;;  %v11570_v54 = vand.u32 4294901760, %v24003_v43 }
 0x8ac   :  { %17360 = vmatpush3.msra.mxu0 %v23851_v47  ;;  %17396 = vmatpush3.msra.mxu1 %v11643_v14  ;;  %v11684_v14 = vsub.f32 %v23913_v46, %v23952_v48  ;;  %v24029_v44 = vsub.f32 %v11382_v25, %v23999_v63  ;;  %v24035_v8 = vand.u32 4294901760, %v24006_v58  ;;  %v24039_v4 = vsub.f32 %v11376_v33, %v24014_v55 }
 0x8ad   :  { %17361 = vmatprep.subr.mxu0 %v23860_v50  ;;  %17397 = vmatprep.subr.mxu1 %v11650_v36  ;;  %v11698_v19 = vsub.f32 %v23946_v51, %v23984_v53  ;;  %v11706_v27 = vand.u32 4294901760, %v11705_v0  ;;  %v11719_v41 = vsub.f32 %v23991_v61, %v24024_v23  ;;  %v24045_v6 = vand.u32 4294901760, %v24018_v2  ;;  %v11471_v0 = vld [vmem:[#allocation5 + $0x50] sm:$0xff] }
 0x8ae   :  { %17362 = vmatpush3.msra.mxu0 %v23860_v50  ;;  %17398 = vmatpush3.msra.mxu1 %v11650_v36  ;;  %v11691_v36 = vsub.f32 %v23931_v10, %v23967_v37  ;;  %v11685_v7 = vand.u32 4294901760, %v11684_v14  ;;  %v11571_v25 = vsub.f32 %v24003_v43, %v11570_v54  ;;  %v11726_v14 = vsub.f32 %v24006_v58, %v24035_v8 }
 0x8af   :  { %17363 = vmatprep.subr.mxu0 %v23873_v15  ;;  %17399 = vmatprep.subr.mxu1 %v11657_v52  ;;  %v11699_v39 = vand.u32 4294901760, %v11698_v19  ;;  %v24055_v59 = vand.u32 4294901760, %v24029_v44  ;;  %v11720_v33 = vand.u32 4294901760, %v11719_v41  ;;  %v24072_v41 = vand.u32 4294901760, %v11471_v0 }
 0x8b0   :  { %17364 = vmatpush3.msra.mxu0 %v23873_v15  ;;  %17400 = vmatpush3.msra.mxu1 %v11657_v52  ;;  %v24012_v52 = vand.u32 4294901760, %v23978_v34  ;;  %v11692_v62 = vand.u32 4294901760, %v11691_v36  ;;  %v24062_v36 = vand.u32 4294901760, %v24039_v4  ;;  %v11727_v19 = vand.u32 4294901760, %v11726_v14  ;;  %v11473_v14 = vld [vmem:[#allocation5 + $0x90] sm:$0xff] }
 0x8b1   :  { %17365 = vmatprep.subr.mxu0 %v23892_v9  ;;  %17401 = vmatprep.subr.mxu1 %v11664_v20 }
 0x8b2   :  { %17366 = vmatpush3.msra.mxu0 %v23892_v9  ;;  %17402 = vmatpush3.msra.mxu1 %v11664_v20  ;;  %v11712_v20 = vsub.f32 %v23978_v34, %v24012_v52 }
 0x8b3   :  { %17367 = vmatprep.subr.mxu0 %v23910_v60  ;;  %17403 = vmatprep.subr.mxu1 %v11671_v13 }
 0x8b4   :  { %17368 = vmatpush3.msra.mxu0 %v23910_v60  ;;  %17404 = vmatpush3.msra.mxu1 %v11671_v13  ;;  %v11713_v13 = vand.u32 4294901760, %v11712_v20 }
 0x8b5   :  { %17369 = vmatprep.subr.mxu0 %v23927_v49  ;;  %17405 = vmatprep.subr.mxu1 %v11678_v16 }
 0x8b6   :  { %17370 = vmatpush3.msra.mxu0 %v23927_v49  ;;  %17406 = vmatpush3.msra.mxu1 %v11678_v16  ;;  %v11733_v16 = vsub.f32 %v24018_v2, %v24045_v6 }
 0x8b7   :  { %17371 = vmatprep.subr.mxu0 %v23942_v17  ;;  %17407 = vmatprep.subr.mxu1 %v11685_v7 }
 0x8b8   :  { %17372 = vmatpush3.msra.mxu0 %v23942_v17  ;;  %17408 = vmatpush3.msra.mxu1 %v11685_v7  ;;  %v11572_v7 = vand.u32 4294901760, %v11571_v25  ;;  %v11734_v20 = vand.u32 4294901760, %v11733_v16  ;;  %v11474_v16 = vld [vmem:[#allocation5 + $0xb0] sm:$0xff] }
 0x8b9   :  { %17373 = vmatprep.subr.mxu0 %v23957_v26  ;;  %17409 = vmatprep.subr.mxu1 %v11692_v62 }
 0x8ba   :  { %17374 = vmatpush3.msra.mxu0 %v23957_v26  ;;  %17410 = vmatpush3.msra.mxu1 %v11692_v62  ;;  %v11740_v62 = vsub.f32 %v24029_v44, %v24055_v59 }
 0x8bb   :  { %17375 = vmatprep.subr.mxu0 %v23972_v11  ;;  %17411 = vmatprep.subr.mxu1 %v11699_v39 }
 0x8bc   :  { %17376 = vmatpush3.msra.mxu0 %v23972_v11  ;;  %17412 = vmatpush3.msra.mxu1 %v11699_v39  ;;  %v11472_v39 = vld [vmem:[#allocation5 + $0x70] sm:$0xff]  ;;  %v11741_v25 = vand.u32 4294901760, %v11740_v62 }
 0x8bd   :  { %17377 = vmatprep.subr.mxu0 %v23987_v12  ;;  %17413 = vmatprep.subr.mxu1 %v11706_v27  ;;  %v11475_v62 = vld [vmem:[#allocation5 + $0xd0] sm:$0xff] }
 0x8be   :  { %17378 = vmatpush3.msra.mxu0 %v23987_v12  ;;  %17414 = vmatpush3.msra.mxu1 %v11706_v27  ;;  %v11747_v27 = vsub.f32 %v24039_v4, %v24062_v36 }
 0x8bf   :  { %17379 = vmatprep.subr.mxu0 %v23999_v63  ;;  %17415 = vmatprep.subr.mxu1 %v11713_v13 }
 0x8c0   :  { %17380 = vmatpush3.msra.mxu0 %v23999_v63  ;;  %17416 = vmatpush3.msra.mxu1 %v11713_v13  ;;  %v24075_v13 = vand.u32 4294901760, %v11472_v39 }
 0x8c1   :  { %17381 = vmatprep.subr.mxu0 %v24014_v55  ;;  %17417 = vmatprep.subr.mxu1 %v11720_v33 }
 0x8c2   :  { %17382 = vmatpush3.msra.mxu0 %v24014_v55  ;;  %17418 = vmatpush3.msra.mxu1 %v11720_v33  ;;  %v11748_v33 = vand.u32 4294901760, %v11747_v27  ;;  %v24108_v27 = vand.u32 4294901760, %v11475_v62 }
 0x8c3   :  { %17419 = vmatprep.subr.mxu1 %v11727_v19  ;;  %17439 = vmatprep.subr.mxu0 %v23866_v32 }
 0x8c4   :  { %17384 = vmatmul.mubr.f32.vlgmr.msra.gmra.mxu0 %v11572_v7  ;;  %17420 = vmatpush3.msra.mxu1 %v11727_v19  ;;  %v24081_v7 = vsub.f32 %v11471_v0, %v24072_v41  ;;  %v24087_v19 = vand.u32 4294901760, %v11473_v14 }
 0x8c5   :  { %17440 = vmatpush3.msra.mxu0 %v23866_v32  ;;  %17421 = vmatprep.subr.mxu1 %v11734_v20  ;;  %v24085_v32 = vsub.f32 %v11472_v39, %v24075_v13 }
 0x8c6   :  { %17441 = vmatprep.subr.mxu0 %v23880_v28  ;;  %17422 = vmatpush3.msra.mxu1 %v11734_v20  ;;  %v24101_v39 = vsub.f32 %v11473_v14, %v24087_v19  ;;  %v11476_v20 = vld [vmem:[#allocation5 + $0xf0] sm:$0xff] }
 0x8c7   :  { %17442 = vmatpush3.msra.mxu0 %v23880_v28  ;;  %17423 = vmatprep.subr.mxu1 %v11741_v25  ;;  %v24090_v28 = vand.u32 4294901760, %v11474_v16  ;;  %v25034_v0 = vand.u32 4294901760, %v24085_v32 }
 0x8c8   :  { %17443 = vmatprep.subr.mxu0 %v23854_v42  ;;  %17424 = vmatpush3.msra.mxu1 %v11741_v25  ;;  %v24117_v25 = vand.u32 4294901760, %v11476_v20  ;;  %v11600_v14 = vand.u32 4294901760, %v24101_v39 }
 0x8c9   :  { %17444 = vmatpush3.msra.mxu0 %v23854_v42  ;;  %17425 = vmatprep.subr.mxu1 %v11748_v33  ;;  %v25035_v42 = vand.u32 4294901760, %v24081_v7 }
 0x8ca   :  { %17445 = vmatprep.subr.mxu0 %v23863_v35  ;;  %17426 = vmatpush3.msra.mxu1 %v11748_v33 }
 0x8cb   :  { %17446 = vmatpush3.msra.mxu0 %v23863_v35  ;;  %17483 = vmatprep.subr.mxu1 %v23856_v31  ;;  %v24106_v35 = vsub.f32 %v11474_v16, %v24090_v28  ;;  %v24129_v16 = vsub.f32 %v11475_v62, %v24108_v27  ;;  %v11601_v62 = vsub.f32 %v24101_v39, %v11600_v14 }
 0x8cc   :  { %17447 = vmatprep.subr.mxu0 %v23877_v57  ;;  %17428 = vmatmul.mubr.f32.vlgmr.msra.gmra.mxu1 %v23975_v56 }
 0x8cd   :  { %17448 = vmatpush3.msra.mxu0 %v23877_v57  ;;  %17484 = vmatpush3.msra.mxu1 %v23856_v31  ;;  %v11581_v57 = vsub.f32 %v24081_v7, %v25035_v42  ;;  %v11610_v33 = vand.u32 4294901760, %v24106_v35 }
 0x8ce   :  { %17449 = vmatprep.subr.mxu0 %v23896_v3  ;;  %17485 = vmatprep.subr.mxu1 %v23868_v45 }
 0x8cf   :  { %17450 = vmatpush3.msra.mxu0 %v23896_v3  ;;  %17486 = vmatpush3.msra.mxu1 %v23868_v45  ;;  %v11591_v3 = vsub.f32 %v24085_v32, %v25034_v0  ;;  %v24136_v0 = vsub.f32 %v11476_v20, %v24117_v25  ;;  %v11620_v20 = vand.u32 4294901760, %v24129_v16 }
 0x8d0   :  { %17451 = vmatprep.subr.mxu0 %v23913_v46  ;;  %17487 = vmatprep.subr.mxu1 %v23841_v30 }
 0x8d1   :  { %17452 = vmatpush3.msra.mxu0 %v23913_v46  ;;  %17488 = vmatpush3.msra.mxu1 %v23841_v30  ;;  %v11582_v46 = vand.u32 4294901760, %v11581_v57  ;;  %v11592_v42 = vand.u32 4294901760, %v11591_v3  ;;  %v11602_v57 = vand.u32 4294901760, %v11601_v62 }
 0x8d2   :  { %17453 = vmatprep.subr.mxu0 %v23931_v10  ;;  %17489 = vmatprep.subr.mxu1 %v23846_v40 }
 0x8d3   :  { %17454 = vmatpush3.msra.mxu0 %v23931_v10  ;;  %17490 = vmatpush3.msra.mxu1 %v23846_v40  ;;  %v11611_v10 = vsub.f32 %v24106_v35, %v11610_v33 }
 0x8d4   :  { %17455 = vmatprep.subr.mxu0 %v23946_v51  ;;  %17491 = vmatprep.subr.mxu1 %v23851_v47 }
 0x8d5   :  { %17456 = vmatpush3.msra.mxu0 %v23946_v51  ;;  %17492 = vmatpush3.msra.mxu1 %v23851_v47  ;;  %v11630_v51 = vand.u32 4294901760, %v24136_v0  ;;  %v11612_v3 = vand.u32 4294901760, %v11611_v10 }
 0x8d6   :  { %17457 = vmatprep.subr.mxu0 %v23961_v5  ;;  %17493 = vmatprep.subr.mxu1 %v23860_v50 }
 0x8d7   :  { %17458 = vmatpush3.msra.mxu0 %v23961_v5  ;;  %17494 = vmatpush3.msra.mxu1 %v23860_v50  ;;  %v11621_v5 = vsub.f32 %v24129_v16, %v11620_v20 }
 0x8d8   :  { %17386 = vmatprep.mubr.f32.mxu0 %v11582_v46  ;;  %17459 = vmatprep.subr.mxu0 %v23978_v34 }
 0x8d9   :  { %17495 = vmatprep.subr.mxu1 %v23873_v15  ;;  %17387 = vmatmul.mubr.f32.gmra.mxu0 %v11592_v42  ;;  %v11631_v42 = vsub.f32 %v24136_v0, %v11630_v51 }
 0x8da   :  { %17460 = vmatpush3.msra.mxu0 %v23978_v34  ;;  %17496 = vmatpush3.msra.mxu1 %v23873_v15  ;;  %v11622_v34 = vand.u32 4294901760, %v11621_v5 }
 0x8db   :  { %17461 = vmatprep.subr.mxu0 %v23991_v61  ;;  %17497 = vmatprep.subr.mxu1 %v23892_v9 }
 0x8dc   :  { %17462 = vmatpush3.msra.mxu0 %v23991_v61  ;;  %17498 = vmatpush3.msra.mxu1 %v23892_v9  ;;  %v11632_v61 = vand.u32 4294901760, %v11631_v42 }
 0x8dd   :  { %17389 = vmatprep.mubr.f32.mxu0 %v11602_v57  ;;  %17463 = vmatprep.subr.mxu0 %v24006_v58 }
 0x8de   :  { %17499 = vmatprep.subr.mxu1 %v23910_v60  ;;  %17390 = vmatmul.mubr.f32.gmra.mxu0 %v11612_v3 }
 0x8df   :  { %17464 = vmatpush3.msra.mxu0 %v24006_v58  ;;  %17500 = vmatpush3.msra.mxu1 %v23910_v60  ;;  %v26041_v58 = vld [vmem:[#allocation37_spill] sm:$0xff] }
 0x8e0   :  { %17465 = vmatprep.subr.mxu0 %v24018_v2  ;;  %17501 = vmatprep.subr.mxu1 %v23927_v49 }
 0x8e1   :  { %17466 = vmatpush3.msra.mxu0 %v24018_v2  ;;  %17502 = vmatpush3.msra.mxu1 %v23927_v49 }
 0x8e2   :  { %17392 = vmatprep.mubr.f32.mxu0 %v11622_v34  ;;  %17430 = vmatprep.mubr.f32.mxu1 %v24072_v41 }
 0x8e3   :  { %17467 = vmatprep.subr.mxu0 %v24029_v44  ;;  %17503 = vmatprep.subr.mxu1 %v23942_v17 }
 0x8e4   :  { %17393 = vmatmul.mubr.f32.gmra.mxu0 %v11632_v61  ;;  %17431 = vmatmul.mubr.f32.gmra.mxu1 %v24075_v13 }
 0x8e5   :  { %17468 = vmatpush3.msra.mxu0 %v24029_v44  ;;  %17504 = vmatpush3.msra.mxu1 %v23942_v17 }
 0x8e6   :  { %17469 = vmatprep.subr.mxu0 %v24039_v4  ;;  %17505 = vmatprep.subr.mxu1 %v23957_v26 }
 0x8e7   :  { %17470 = vmatpush3.msra.mxu0 %v24039_v4  ;;  %17506 = vmatpush3.msra.mxu1 %v23957_v26 }
 0x8e8   :  { %17433 = vmatprep.mubr.f32.mxu1 %v24087_v19  ;;  %17471 = vmatprep.mubr.f32.mxu0 %v26041_v58 }
 0x8e9   :  { %17507 = vmatprep.subr.mxu1 %v23972_v11  ;;  %17527 = vmatprep.subr.mxu0 %v23884_v22 }
 0x8ea   :  { %17434 = vmatmul.mubr.f32.gmra.mxu1 %v24090_v28  ;;  %17472 = vmatmul.mubr.f32.vlgmr.msra.gmra.mxu0 %v24003_v43 }
 0x8eb   :  { %17508 = vmatpush3.msra.mxu1 %v23972_v11  ;;  %17528 = vmatpush3.msra.mxu0 %v23884_v22  ;;  %v26042_v22 = vand.u32 4294901760, %v26041_v58 }
 0x8ec   :  { %17509 = vmatprep.subr.mxu1 %v23987_v12  ;;  %17529 = vmatprep.subr.mxu0 %v23902_v38 }
 0x8ed   :  { %17510 = vmatpush3.msra.mxu1 %v23987_v12  ;;  %17530 = vmatpush3.msra.mxu0 %v23902_v38  ;;  %v26044_v38 = vand.u32 4294901760, %v24085_v32 }
 0x8ee   :  { %17436 = vmatprep.mubr.f32.mxu1 %v24108_v27  ;;  %17511 = vmatprep.subr.mxu1 %v23999_v63 }
 0x8ef   :  { %17531 = vmatprep.subr.mxu0 %v23887_v21  ;;  %17437 = vmatmul.mubr.f32.gmra.mxu1 %v24117_v25 }
 0x8f0   :  { %17512 = vmatpush3.msra.mxu1 %v23999_v63  ;;  %17532 = vmatpush3.msra.mxu0 %v23887_v21 }
 0x8f1   :  { %17513 = vmatprep.subr.mxu1 %v24014_v55  ;;  %17533 = vmatprep.subr.mxu0 %v23905_v1 }
 0x8f2   :  { %17514 = vmatpush3.msra.mxu1 %v24014_v55  ;;  %17534 = vmatpush3.msra.mxu0 %v23905_v1 }
 0x8f3   :  { %17515 = vmatprep.mubr.f32.mxu1 %v26042_v22  ;;  %17535 = vmatprep.subr.mxu0 %v23922_v29 }
 0x8f4   :  { %17571 = vmatprep.subr.mxu1 %v23856_v31  ;;  %17516 = vmatmul.mubr.f32.vlgmr.msra.gmra.mxu1 %v11570_v54 }
 0x8f5   :  { %17536 = vmatpush3.msra.mxu0 %v23922_v29  ;;  %17572 = vmatpush3.msra.mxu1 %v23856_v31  ;;  %v12446_v31 = vld [vmem:[#allocation10 + $0x28] sm:$0xff] }
 0x8f6   :  { %17537 = vmatprep.subr.mxu0 %v23937_v24  ;;  %17573 = vmatprep.subr.mxu1 %v23868_v45 }
 0x8f7   :  { %17538 = vmatpush3.msra.mxu0 %v23937_v24  ;;  %17574 = vmatpush3.msra.mxu1 %v23868_v45  ;;  %v12447_v45 = vld [vmem:[#allocation10 + $0x30] sm:$0xff] }
 0x8f8   :  { %17539 = vmatprep.subr.mxu0 %v23952_v48  ;;  %17575 = vmatprep.subr.mxu1 %v23841_v30  ;;  %v12457_v1 = vsel %vm5570_vm3, %v12447_v45, 0 }
 0x8f9   :  { %17540 = vmatpush3.msra.mxu0 %v23952_v48  ;;  %17576 = vmatpush3.msra.mxu1 %v23841_v30  ;;  %v12445_v30 = vld [vmem:[#allocation10 + $0x20] sm:$0xff]  ;;  %v24281_v48 = vand.u32 4294901760, %v12457_v1 }
 0x8fa   :  { %17541 = vmatprep.subr.mxu0 %v23967_v37  ;;  %17577 = vmatprep.subr.mxu1 %v23846_v40 }
 0x8fb   :  { %17542 = vmatpush3.msra.mxu0 %v23967_v37  ;;  %17578 = vmatpush3.msra.mxu1 %v23846_v40  ;;  %v12449_v40 = vld [vmem:[#allocation2 + $0x60] sm:$0xff] }
 0x8fc   :  { %17543 = vmatprep.subr.mxu0 %v23984_v53  ;;  %17579 = vmatprep.subr.mxu1 %v23851_v47 }
 0x8fd   :  { %17544 = vmatpush3.msra.mxu0 %v23984_v53  ;;  %17580 = vmatpush3.msra.mxu1 %v23851_v47  ;;  %v12451_v47 = vsel %vm5570_vm3, %v12445_v30, 0  ;;  %v26045_v53 = vld [vmem:[#allocation47_spill] sm:$0xff] }
 0x8fe   :  { %17545 = vmatprep.subr.mxu0 %v23997_v18  ;;  %17581 = vmatprep.subr.mxu1 %v23860_v50  ;;  %v24260_v21 = vand.u32 4294901760, %v12451_v47 }
 0x8ff   :  { %17474 = vmatprep.mubr.f32.mxu0 %v24081_v7  ;;  %17546 = vmatpush3.msra.mxu0 %v23997_v18 }
 0x900   :  { %17582 = vmatpush3.msra.mxu1 %v23860_v50  ;;  %17475 = vmatmul.mubr.f32.gmra.mxu0 %v24085_v32  ;;  %v24253_v50 = vand.u32 4294901760, %v12449_v40  ;;  %v24279_v24 = vsub.f32 %v12451_v47, %v24260_v21 }
 0x901   :  { %17547 = vmatprep.subr.mxu0 %v24012_v52  ;;  %17583 = vmatprep.subr.mxu1 %v23873_v15 }
 0x902   :  { %17548 = vmatpush3.msra.mxu0 %v24012_v52  ;;  %17584 = vmatpush3.msra.mxu1 %v23873_v15  ;;  %v26043_v15 = vand.u32 4294901760, %v24081_v7  ;;  %v24270_v29 = vsub.f32 %v12449_v40, %v24253_v50  ;;  %v24305_v52 = vsub.f32 %v12457_v1, %v24281_v48 }
 0x903   :  { %17549 = vmatprep.subr.mxu0 %v24024_v23  ;;  %17585 = vmatprep.subr.mxu1 %v23892_v9 }
 0x904   :  { %17477 = vmatprep.mubr.f32.mxu0 %v24101_v39  ;;  %17550 = vmatpush3.msra.mxu0 %v24024_v23  ;;  %v12550_v44 = vand.u32 4294901760, %v24305_v52 }
 0x905   :  { %17586 = vmatpush3.msra.mxu1 %v23892_v9  ;;  %17478 = vmatmul.mubr.f32.gmra.mxu0 %v24106_v35  ;;  %v12454_v9 = vsel %vm5570_vm3, %v12446_v31, 0 }
 0x906   :  { %17551 = vmatprep.subr.mxu0 %v24035_v8  ;;  %17587 = vmatprep.subr.mxu1 %v23910_v60 }
 0x907   :  { %17552 = vmatpush3.msra.mxu0 %v24035_v8  ;;  %17588 = vmatpush3.msra.mxu1 %v23910_v60  ;;  %v12448_v60 = vld [vmem:[#allocation10 + $0x38] sm:$0xff] }
 0x908   :  { %17553 = vmatprep.subr.mxu0 %v24045_v6  ;;  %17589 = vmatprep.subr.mxu1 %v23927_v49  ;;  %v12460_v37 = vsel %vm5570_vm3, %v12448_v60, 0 }
 0x909   :  { %17480 = vmatprep.mubr.f32.mxu0 %v24129_v16  ;;  %17518 = vmatprep.mubr.f32.mxu1 %v26043_v15  ;;  %v24298_v43 = vand.u32 4294901760, %v12460_v37 }
 0x90a   :  { %17554 = vmatpush3.msra.mxu0 %v24045_v6  ;;  %17590 = vmatpush3.msra.mxu1 %v23927_v49  ;;  %v24274_v49 = vand.u32 4294901760, %v12454_v9 }
 0x90b   :  { %17481 = vmatmul.mubr.f32.gmra.mxu0 %v24136_v0  ;;  %17519 = vmatmul.mubr.f32.gmra.mxu1 %v26044_v38  ;;  %v12559_v54 = vsub.f32 %v12460_v37, %v24298_v43 }
 0x90c   :  { %17555 = vmatprep.subr.mxu0 %v24055_v59  ;;  %17591 = vmatprep.subr.mxu1 %v23942_v17  ;;  %v24296_v18 = vsub.f32 %v12454_v9, %v24274_v49 }
 0x90d   :  { %17556 = vmatpush3.msra.mxu0 %v24055_v59  ;;  %17592 = vmatpush3.msra.mxu1 %v23942_v17  ;;  %v24290_v17 = vand.u32 4294901760, %v24270_v29  ;;  %v12560_v4 = vand.u32 4294901760, %v12559_v54 }
 0x90e   :  { %17557 = vmatprep.subr.mxu0 %v24062_v36  ;;  %17593 = vmatprep.subr.mxu1 %v23957_v26  ;;  %v12540_v23 = vand.u32 4294901760, %v24296_v18 }
 0x90f   :  { %17521 = vmatprep.mubr.f32.mxu1 %v11600_v14  ;;  %17558 = vmatpush3.msra.mxu0 %v24062_v36  ;;  %v12602_v2 = vsub.f32 %v24270_v29, %v24290_v17  ;;  %v12561_v59 = vsub.f32 %v12559_v54, %v12560_v4 }
 0x910   :  { %17559 = vmatprep.mubr.f32.mxu0 %v26045_v53  ;;  %17594 = vmatpush3.msra.mxu1 %v23957_v26  ;;  %v12530_v26 = vand.u32 4294901760, %v24279_v24  ;;  %v12541_v8 = vsub.f32 %v24296_v18, %v12540_v23 }
 0x911   :  { %17522 = vmatmul.mubr.f32.gmra.mxu1 %v11610_v33  ;;  %17560 = vmatmul.mubr.f32.vlgmr.msra.gmra.mxu0 %v23975_v56  ;;  %v12562_v36 = vand.u32 4294901760, %v12561_v59 }
 0x912   :  { %17595 = vmatprep.subr.mxu1 %v23972_v11  ;;  %17524 = vmatprep.mubr.f32.mxu1 %v11620_v20 }
 0x913   :  { %17596 = vmatpush3.msra.mxu1 %v23972_v11  ;;  %17562 = vmatprep.mubr.f32.mxu0 %v24072_v41  ;;  %v12531_v11 = vsub.f32 %v24279_v24, %v12530_v26 }
 0x914   :  { %17597 = vmatprep.subr.mxu1 %v23987_v12  ;;  %17615 = vmatprep.subr.mxu0 %v24253_v50 }
 0x915   :  { %17598 = vmatpush3.msra.mxu1 %v23987_v12  ;;  %17563 = vmatmul.mubr.f32.gmra.mxu0 %v24075_v13  ;;  %v12603_v12 = vand.u32 4294901760, %v12602_v2  ;;  %v12532_v6 = vand.u32 4294901760, %v12531_v11 }
 0x916   :  { %17525 = vmatmul.mubr.f32.gmra.mxu1 %v11630_v51  ;;  %17599 = vmatprep.subr.mxu1 %v23999_v63 }
 0x917   :  { %17600 = vmatpush3.msra.mxu1 %v23999_v63  ;;  %17565 = vmatprep.mubr.f32.mxu0 %v24087_v19  ;;  %v12551_v63 = vsub.f32 %v24305_v52, %v12550_v44 }
 0x918   :  { %17601 = vmatprep.subr.mxu1 %v24014_v55  ;;  %17603 = vmatprep.mubr.f32.mxu1 %v26045_v53 }
 0x919   :  { %17602 = vmatpush3.msra.mxu1 %v24014_v55  ;;  %17566 = vmatmul.mubr.f32.gmra.mxu0 %v24090_v28  ;;  %v12542_v55 = vand.u32 4294901760, %v12541_v8 }
 0x91a   :  { %17604 = vmatmul.mubr.f32.vlgmr.msra.gmra.mxu1 %v23975_v56  ;;  %17568 = vmatprep.mubr.f32.mxu0 %v24108_v27  ;;  %v12552_v56 = vand.u32 4294901760, %v12551_v63 }
 0x91b   :  { %17606 = vmatprep.mubr.f32.mxu1 %v24072_v41  ;;  %17616 = vmatpush3.msra.mxu0 %v24253_v50  ;;  %v13037_v41 = vld [vmem:[#allocation5 + $0x18] sm:$0xff] }
 0x91c   :  { %17623 = vmatprep.subr.mxu1 %v12603_v12  ;;  %17631 = vmatprep.subr.mxu0 %v24270_v29 }
 0x91d   :  { %17569 = vmatmul.mubr.f32.gmra.mxu0 %v24117_v25  ;;  %17624 = vmatpush3.msra.mxu1 %v12603_v12 }
 0x91e   :  { %17607 = vmatmul.mubr.f32.gmra.mxu1 %v24075_v13  ;;  %17617 = vmatprep.mubr.f32.mxu0 %v12532_v6  ;;  %v13046_v13 = vsel %vm3412_vm1, %v13037_v41, 0 }
 0x91f   :  { %17609 = vmatprep.mubr.f32.mxu1 %v24087_v19  ;;  %17639 = vmatprep.subr.mxu1 %v24253_v50  ;;  %v24364_v7 = vand.u32 4294901760, %v13046_v13 }
 0x921   :  { %17618 = vmatmul.mubr.f32.vlgmr.msra.gmra.mxu0 %v12542_v55  ;;  %v24367_v32 = vsub.f32 %v13046_v13, %v24364_v7 }
 0x922   :  { %17610 = vmatmul.mubr.f32.gmra.mxu1 %v24090_v28  ;;  %17620 = vmatprep.mubr.f32.mxu0 %v12552_v56 }
 0x923   :  { %17612 = vmatprep.mubr.f32.mxu1 %v24108_v27  ;;  %17632 = vmatpush3.msra.mxu0 %v24270_v29  ;;  %v13140_v19 = vand.u32 4294901760, %v24367_v32 }
 0x924   :  { %17647 = vmatprep.subr.mxu0 %v24290_v17 }
 0x925   :  { %17621 = vmatmul.mubr.f32.gmra.mxu0 %v12562_v36  ;;  %v13141_v28 = vsub.f32 %v24367_v32, %v13140_v19 }
 0x926   :  { %17613 = vmatmul.mubr.f32.gmra.mxu1 %v24117_v25  ;;  %17633 = vmatprep.mubr.f32.mxu0 %v24279_v24 }
 0x927   :  { %17625 = vmatprep.mubr.f32.mxu1 %v24260_v21  ;;  %v13142_v0 = vand.u32 4294901760, %v13141_v28 }
 0x929   :  { %17634 = vmatmul.mubr.f32.vlgmr.msra.gmra.mxu0 %v24296_v18 }
 0x92a   :  { %17626 = vmatmul.mubr.f32.vlgmr.msra.gmra.mxu1 %v24274_v49  ;;  %17636 = vmatprep.mubr.f32.mxu0 %v24305_v52 }
 0x92b   :  { %17628 = vmatprep.mubr.f32.mxu1 %v24281_v48  ;;  %17640 = vmatpush3.msra.mxu1 %v24253_v50 }
 0x92c   :  { %17648 = vmatpush3.msra.mxu0 %v24290_v17  ;;  %17655 = vmatprep.subr.mxu1 %v24253_v50 }
 0x92d   :  { %17637 = vmatmul.mubr.f32.gmra.mxu0 %v12559_v54 }
 0x92e   :  { %17629 = vmatmul.mubr.f32.gmra.mxu1 %v24298_v43  ;;  %17649 = vmatprep.mubr.f32.mxu0 %v24260_v21 }
 0x92f   :  { %17641 = vmatprep.mubr.f32.mxu1 %v12530_v26 }
 0x931   :  { %17650 = vmatmul.mubr.f32.vlgmr.msra.gmra.mxu0 %v24274_v49 }
 0x932   :  { %17642 = vmatmul.mubr.f32.vlgmr.msra.gmra.mxu1 %v12540_v23  ;;  %17652 = vmatprep.mubr.f32.mxu0 %v24281_v48 }
 0x933   :  { %17644 = vmatprep.mubr.f32.mxu1 %v12550_v44  ;;  %17656 = vmatpush3.msra.mxu1 %v24253_v50 }
 0x935   :  { %17653 = vmatmul.mubr.f32.gmra.mxu0 %v24298_v43 }
 0x936   :  { %17645 = vmatmul.mubr.f32.gmra.mxu1 %v12560_v4  ;;  %17671 = vmatprep.mubr.f32.mxu0 %v13142_v0 }
 0x937   :  { %17657 = vmatprep.mubr.f32.mxu1 %v24260_v21 }
 0x93a   :  { %17658 = vmatmul.mubr.f32.vlgmr.msra.gmra.mxu1 %v24274_v49 }
 0x93b   :  { %17660 = vmatprep.mubr.f32.mxu1 %v24281_v48 }
 0x93e   :  { %17661 = vmatmul.mubr.f32.gmra.mxu1 %v24298_v43 }
 0x93f   :  { %17691 = vmatprep.mubr.f32.mxu1 %v24364_v7 }
 0x984   :  { %v17385_v39 = vpop.f32.mrf.mxu0 }
 0x986   :  { %v11564_v35 = vpop.f32.mrf.mxu0 }
 0x98c   :  { %v17429_v14 = vpop.f32.mrf.mxu1 }
 0x98d   :  { %v11792_v1 = vadd.f32 %v17429_v14, %v17385_v39 }
 0x98e   :  { %v11785_v16 = vpop.f32.mrf.mxu1 }
 0x98f   :  { %v11786_v49 = vadd.f32 %v11785_v16, %v11564_v35 }
 0x999   :  { %v17388_v27 = vpop.f32.mrf.mxu0 }
 0x99b   :  { %v11584_v25 = vpop.f32.mrf.mxu0 }
 0x99e   :  { %v17391_v33 = vpop.f32.mrf.mxu0 }
 0x9a0   :  { %v11604_v46 = vpop.f32.mrf.mxu0 }
 0x9a4   :  { %v17432_v62 = vpop.f32.mrf.mxu1  ;;  %v17394_v10 = vpop.f32.mrf.mxu0 }
 0x9a5   :  { %v11804_v53 = vadd.f32 %v17432_v62, %v17388_v27 }
 0x9a6   :  { %v11797_v20 = vpop.f32.mrf.mxu1  ;;  %v11624_v51 = vpop.f32.mrf.mxu0 }
 0x9a7   :  { %v11798_v52 = vadd.f32 %v11797_v20, %v11584_v25 }
 0x9aa   :  { %v17435_v57 = vpop.f32.mrf.mxu1  ;;  %v17473_v3 = vpop.f32.mrf.mxu0 }
 0x9ab   :  { %v11939_v24 = vadd.f32 %v17473_v3, %v11792_v1  ;;  %v11816_v44 = vadd.f32 %v17435_v57, %v17391_v33 }
 0x9ac   :  { %v11809_v5 = vpop.f32.mrf.mxu1  ;;  %v11931_v42 = vpop.f32.mrf.mxu0 }
 0x9ad   :  { %v11932_v17 = vadd.f32 %v11931_v42, %v11786_v49  ;;  %v11810_v59 = vadd.f32 %v11809_v5, %v11604_v46 }
 0x9af   :  { %v17438_v34 = vpop.f32.mrf.mxu1 }
 0x9b0   :  { %v11828_v39 = vadd.f32 %v17438_v34, %v17394_v10 }
 0x9b1   :  { %v11821_v58 = vpop.f32.mrf.mxu1 }
 0x9b2   :  { %v11822_v62 = vadd.f32 %v11821_v58, %v11624_v51 }
 0x9b4   :  { %v17517_v30 = vpop.f32.mrf.mxu1 }
 0x9b5   :  { %v12078_v18 = vadd.f32 %v17517_v30, %v11939_v24 }
 0x9b6   :  { %v12069_v47 = vpop.f32.mrf.mxu1 }
 0x9b7   :  { %v12070_v2 = vadd.f32 %v12069_v47, %v11932_v17 }
 0x9c0   :  { %v17476_v61 = vpop.f32.mrf.mxu0 }
 0x9c1   :  { %v11953_v23 = vadd.f32 %v17476_v61, %v11804_v53  ;;  %v13038_v53 = vld [vmem:[#allocation5 + $0x38] sm:$0xff] }
 0x9c2   :  { %v11945_v22 = vpop.f32.mrf.mxu0 }
 0x9c3   :  { %v11946_v8 = vadd.f32 %v11945_v22, %v11798_v52 }
 0x9c5   :  { %v17479_v40 = vpop.f32.mrf.mxu0 }
 0x9c6   :  { %v11967_v36 = vadd.f32 %v17479_v40, %v11816_v44 }
 0x9c7   :  { %v11959_v31 = vpop.f32.mrf.mxu0 }
 0x9c8   :  { %v11960_v27 = vadd.f32 %v11959_v31, %v11810_v59 }
 0x9cb   :  { %v17482_v50 = vpop.f32.mrf.mxu0  ;;  %v17520_v45 = vpop.f32.mrf.mxu1 }
 0x9cc   :  { %v12094_v4 = vadd.f32 %v17520_v45, %v11953_v23  ;;  %v11981_v46 = vadd.f32 %v17482_v50, %v11828_v39 }
 0x9cd   :  { %v12085_v15 = vpop.f32.mrf.mxu1  ;;  %v11973_v21 = vpop.f32.mrf.mxu0 }
 0x9ce   :  { %v12086_v41 = vadd.f32 %v12085_v15, %v11946_v8  ;;  %v11974_v22 = vadd.f32 %v11973_v21, %v11822_v62 }
 0x9d1   :  { %v17523_v9 = vpop.f32.mrf.mxu1  ;;  %v17561_v38 = vpop.f32.mrf.mxu0 }
 0x9d2   :  { %v12251_v54 = vadd.f32 %v17561_v38, %v12078_v18  ;;  %v12110_v25 = vadd.f32 %v17523_v9, %v11967_v36 }
 0x9d3   :  { %v12101_v60 = vpop.f32.mrf.mxu1  ;;  %v12244_v29 = vpop.f32.mrf.mxu0 }
 0x9d4   :  { %v12245_v6 = vadd.f32 %v12244_v29, %v12070_v2  ;;  %v12102_v57 = vadd.f32 %v12101_v60, %v11960_v27  ;;  %v13049_v2 = vsel %vm3412_vm1, %v13038_v53, 0 }
 0x9d5   :  { %v17564_v48 = vpop.f32.mrf.mxu0 }
 0x9d6   :  { %v17526_v37 = vpop.f32.mrf.mxu1  ;;  %v12263_v13 = vadd.f32 %v17564_v48, %v12094_v4  ;;  %v24383_v4 = vand.u32 4294901760, %v13049_v2 }
 0x9d7   :  { %v12256_v43 = vpop.f32.mrf.mxu0  ;;  %v12126_v10 = vadd.f32 %v17526_v37, %v11981_v46 }
 0x9d8   :  { %v12117_v26 = vpop.f32.mrf.mxu1  ;;  %v12257_v14 = vadd.f32 %v12256_v43, %v12086_v41  ;;  %v24390_v62 = vsub.f32 %v13049_v2, %v24383_v4 }
 0x9d9   :  { %v17567_v11 = vpop.f32.mrf.mxu0  ;;  %v12118_v31 = vadd.f32 %v12117_v26, %v11974_v22 }
 0x9da   :  { %v17605_v12 = vpop.f32.mrf.mxu1  ;;  %v12275_v3 = vadd.f32 %v17567_v11, %v12110_v25  ;;  %v13042_v25 = vld [vmem:[#allocation5 + $0xb8] sm:$0xff] }
 0x9db   :  { %v12380_v63 = vadd.f32 %v17605_v12, %v12251_v54  ;;  %v12268_v55 = vpop.f32.mrf.mxu0  ;;  %v13039_v54 = vld [vmem:[#allocation5 + $0x58] sm:$0xff] }
 0x9dc   :  { %v12373_v56 = vpop.f32.mrf.mxu1  ;;  %v12269_v34 = vadd.f32 %v12268_v55, %v12102_v57 }
 0x9dd   :  { %12420 = vst.msk [vmem:[#allocation13 + $0x148] sm:$0xff] %vm3383_vm2, %v12380_v63  ;;  %v12374_v28 = vadd.f32 %v12373_v56, %v12245_v6  ;;  %v17570_v0 = vpop.f32.mrf.mxu0  ;;  %v13040_v6 = vld [vmem:[#allocation5 + $0x78] sm:$0xff]  ;;  %v13052_v56 = vsel %vm3412_vm1, %v13039_v54, 0 }
 0x9de   :  { %v17608_v35 = vpop.f32.mrf.mxu1  ;;  %v12287_v45 = vadd.f32 %v17570_v0, %v12126_v10  ;;  %v13041_v0 = vld [vmem:[#allocation5 + $0x98] sm:$0xff]  ;;  %v24387_v27 = vand.u32 4294901760, %v13052_v56 }
 0x9df   :  { %12419 = vst.msk [vmem:[#allocation13 + $0x140] sm:$0xff] %vm3383_vm2, %v12374_v28  ;;  %v12392_v33 = vadd.f32 %v17608_v35, %v12263_v13  ;;  %v12280_v16 = vpop.f32.mrf.mxu0  ;;  %v13055_v28 = vsel %vm3412_vm1, %v13040_v6, 0  ;;  %v13058_v57 = vsel %vm3412_vm1, %v13041_v0, 0 }
 0x9e0   :  { %v12385_v20 = vpop.f32.mrf.mxu1  ;;  %v12281_v15 = vadd.f32 %v12280_v16, %v12118_v31  ;;  %v24392_v46 = vand.u32 4294901760, %v13055_v28  ;;  %v13150_v31 = vand.u32 4294901760, %v24390_v62 }
 0x9e1   :  { %12422 = vst.msk [vmem:[#allocation13 + $0x158] sm:$0xff] %vm3383_vm2, %v12392_v33  ;;  %v12386_v5 = vadd.f32 %v12385_v20, %v12257_v14  ;;  %v17619_v42 = vpop.f32.mrf.mxu0 }
 0x9e2   :  { %v17611_v61 = vpop.f32.mrf.mxu1  ;;  %v13151_v53 = vsub.f32 %v24390_v62, %v13150_v31 }
 0x9e3   :  { %12421 = vst.msk [vmem:[#allocation13 + $0x150] sm:$0xff] %vm3383_vm2, %v12386_v5  ;;  %v12404_v30 = vadd.f32 %v17611_v61, %v12275_v3  ;;  %v12534_v40 = vpop.f32.mrf.mxu0  ;;  %v13061_v61 = vsel %vm3412_vm1, %v13042_v25, 0 }
 0x9e4   :  { %v12397_v47 = vpop.f32.mrf.mxu1 }
 0x9e5   :  { %12424 = vst.msk [vmem:[#allocation13 + $0x168] sm:$0xff] %vm3383_vm2, %v12404_v30  ;;  %v12398_v51 = vadd.f32 %v12397_v47, %v12269_v34  ;;  %v17622_v58 = vpop.f32.mrf.mxu0  ;;  %v24397_v34 = vsub.f32 %v13052_v56, %v24387_v27 }
 0x9e6   :  { %v17614_v50 = vpop.f32.mrf.mxu1 }
 0x9e7   :  { %12423 = vst.msk [vmem:[#allocation13 + $0x160] sm:$0xff] %vm3383_vm2, %v12398_v51  ;;  %v12416_v9 = vadd.f32 %v17614_v50, %v12287_v45  ;;  %v12554_v38 = vpop.f32.mrf.mxu0  ;;  %v13043_v45 = vld [vmem:[#allocation5 + $0xd8] sm:$0xff]  ;;  %v24405_v50 = vand.u32 4294901760, %v13058_v57 }
 0x9e8   :  { %v12409_v21 = vpop.f32.mrf.mxu1 }
 0x9e9   :  { %12426 = vst.msk [vmem:[#allocation13 + $0x178] sm:$0xff] %vm3383_vm2, %v12416_v9  ;;  %v12410_v1 = vadd.f32 %v12409_v21, %v12281_v15  ;;  %v17635_v60 = vpop.f32.mrf.mxu0  ;;  %v24407_v15 = vand.u32 4294901760, %v13061_v61 }
 0x9ea   :  { %v17627_v29 = vpop.f32.mrf.mxu1 }
 0x9eb   :  { %12425 = vst.msk [vmem:[#allocation13 + $0x170] sm:$0xff] %vm3383_vm2, %v12410_v1  ;;  %v12732_v49 = vpop.f32.mrf.mxu0  ;;  %v12647_v17 = vadd.f32 %v17627_v29, %v17619_v42  ;;  %v13044_v1 = vld [vmem:[#allocation5 + $0xf8] sm:$0xff]  ;;  %v13160_v29 = vand.u32 4294901760, %v24397_v34 }
 0x9ec   :  { %v12640_v24 = vpop.f32.mrf.mxu1 }
 0x9ed   :  { %v17638_v48 = vpop.f32.mrf.mxu0  ;;  %v12641_v26 = vadd.f32 %v12640_v24, %v12534_v40  ;;  %v12740_v44 = vadd.f32 %v17635_v60, %v12647_v17 }
 0x9ee   :  { %v17630_v37 = vpop.f32.mrf.mxu1 }
 0x9ef   :  { %v12746_v18 = vpop.f32.mrf.mxu0  ;;  %v12659_v11 = vadd.f32 %v17630_v37, %v17622_v58  ;;  %v12733_v55 = vadd.f32 %v12732_v49, %v12641_v26  ;;  %v24403_v58 = vsub.f32 %v13055_v28, %v24392_v46  ;;  %v13064_v49 = vsel %vm3412_vm1, %v13043_v45, 0 }
 0x9f0   :  { %v12652_v43 = vpop.f32.mrf.mxu1  ;;  %v13067_v26 = vsel %vm3412_vm1, %v13044_v1, 0  ;;  %v24436_v54 = vand.u32 4294901760, %v13064_v49  ;;  %v12435_v1 = vld [vmem:[#allocation11 + $0x78] sm:$0xff] }
 0x9f1   :  { %v17651_v52 = vpop.f32.mrf.mxu0  ;;  %v12653_v63 = vadd.f32 %v12652_v43, %v12554_v38  ;;  %v12754_v41 = vadd.f32 %v17638_v48, %v12659_v11  ;;  %v13170_v17 = vand.u32 4294901760, %v24403_v58  ;;  %v24426_v43 = vsub.f32 %v13061_v61, %v24407_v15  ;;  %12443 = vst.msk [vmem:[#allocation13 + $0x1b8] sm:$0xff] %vm3383_vm2, %v12435_v1 }
 0x9f2   :  { %v17643_v23 = vpop.f32.mrf.mxu1  ;;  %v13161_v11 = vsub.f32 %v24397_v34, %v13160_v29  ;;  %v24449_v6 = vand.u32 4294901760, %v13067_v26  ;;  %v24465_v28 = vsub.f32 %v13064_v49, %v24436_v54 }
 0x9f3   :  { %v12925_v8 = vpop.f32.mrf.mxu0  ;;  %v12836_v59 = vadd.f32 %v17643_v23, %v12740_v44  ;;  %v12747_v14 = vadd.f32 %v12746_v18, %v12653_v63  ;;  %v24423_v18 = vsub.f32 %v13058_v57, %v24405_v50  ;;  %v13152_v63 = vand.u32 4294901760, %v13151_v53 }
 0x9f4   :  { %v12827_v12 = vpop.f32.mrf.mxu1  ;;  %v13190_v56 = vand.u32 4294901760, %v24426_v43  ;;  %v13162_v0 = vand.u32 4294901760, %v13161_v11 }
 0x9f5   :  { %v12828_v13 = vadd.f32 %v12827_v12, %v12733_v55  ;;  %v17654_v35 = vpop.f32.mrf.mxu0  ;;  %v12932_v16 = vadd.f32 %v17651_v52, %v12836_v59  ;;  %v13171_v55 = vsub.f32 %v24403_v58, %v13170_v17  ;;  %v13180_v59 = vand.u32 4294901760, %v24423_v18 }
 0x9f6   :  { %v17646_v36 = vpop.f32.mrf.mxu1 }
 0x9f7   :  { %v12852_v33 = vadd.f32 %v17646_v36, %v12754_v41  ;;  %v12926_v5 = vadd.f32 %v12925_v8, %v12828_v13  ;;  %v12937_v10 = vpop.f32.mrf.mxu0 }
 0x9f8   :  { %v12843_v39 = vpop.f32.mrf.mxu1 }
 0x9f9   :  { %v12844_v3 = vadd.f32 %v12843_v39, %v12747_v14  ;;  %v12944_v40 = vadd.f32 %v17654_v35, %v12852_v33  ;;  %v24473_v14 = vsub.f32 %v13067_v26, %v24449_v6  ;;  %v13172_v33 = vand.u32 4294901760, %v13171_v55 }
 0x9fa   :  { %v17659_v20 = vpop.f32.mrf.mxu1 }
 0x9fb   :  { %v13022_v42 = vadd.f32 %v17659_v20, %v12932_v16  ;;  %v12938_v38 = vadd.f32 %v12937_v10, %v12844_v3  ;;  %v13181_v16 = vsub.f32 %v24423_v18, %v13180_v59  ;;  %v13191_v3 = vsub.f32 %v24426_v43, %v13190_v56 }
 0x9fc   :  { %v13015_v22 = vpop.f32.mrf.mxu1  ;;  %v13210_v61 = vand.u32 4294901760, %v24473_v14 }
 0x9fd   :  { %v24399_v30 = vand.u32 4294901760, %v13022_v42  ;;  %v13016_v47 = vadd.f32 %v13015_v22, %v12926_v5  ;;  %v13200_v5 = vand.u32 4294901760, %v24465_v28  ;;  %v13182_v22 = vand.u32 4294901760, %v13181_v16 }
 0x9fe   :  { %v17662_v51 = vpop.f32.mrf.mxu1  ;;  %v13211_v45 = vsub.f32 %v24473_v14, %v13210_v61 }
 0x9ff   :  { %v24409_v9 = vand.u32 4294901760, %v13016_v47  ;;  %v13034_v21 = vadd.f32 %v17662_v51, %v12944_v40  ;;  %v24414_v24 = vsub.f32 %v13022_v42, %v24399_v30  ;;  %v13192_v40 = vand.u32 4294901760, %v13191_v3 }
 0xa00   :  { %v13027_v60 = vpop.f32.mrf.mxu1 }
 0xa01   :  { %v24416_v48 = vand.u32 4294901760, %v13034_v21  ;;  %v13028_v37 = vadd.f32 %v13027_v60, %v12938_v38  ;;  %v24430_v52 = vsub.f32 %v13016_v47, %v24409_v9  ;;  %v24447_v8 = vand.u32 4294901760, %v24414_v24 }
 0xa02   :  { %v13201_v47 = vsub.f32 %v24465_v28, %v13200_v5  ;;  %v13212_v38 = vand.u32 4294901760, %v13211_v45 }
 0xa03   :  { %v13244_v2 = vsub.f32 %v13034_v21, %v24416_v48  ;;  %v24433_v23 = vand.u32 4294901760, %v13028_v37  ;;  %17663 = vmatprep.subr.mxu0 %v24416_v48  ;;  %v24462_v13 = vand.u32 4294901760, %v24430_v52  ;;  %v13260_v25 = vsub.f32 %v24414_v24, %v24447_v8  ;;  %v12434_v21 = vld [vmem:[#allocation11 + $0x70] sm:$0xff] }
 0xa04   :  { %17664 = vmatpush3.msra.mxu0 %v24416_v48  ;;  %v13202_v51 = vand.u32 4294901760, %v13201_v47  ;;  %12442 = vst.msk [vmem:[#allocation13 + $0x1b0] sm:$0xff] %vm3383_vm2, %v12434_v21 }
 0xa05   :  { %v13251_v44 = vsub.f32 %v13028_v37, %v24433_v23  ;;  %17665 = vmatprep.subr.mxu0 %v24433_v23  ;;  %v24444_v12 = vand.u32 4294901760, %v13244_v2  ;;  %v13267_v57 = vsub.f32 %v24430_v52, %v24462_v13  ;;  %v13261_v42 = vand.u32 4294901760, %v13260_v25 }
 0xa06   :  { %17666 = vmatpush3.msra.mxu0 %v24433_v23 }
 0xa07   :  { %17667 = vmatprep.subr.mxu0 %v24399_v30  ;;  %v13246_v36 = vsub.f32 %v13244_v2, %v24444_v12  ;;  %v24459_v41 = vand.u32 4294901760, %v13251_v44  ;;  %v13268_v10 = vand.u32 4294901760, %v13267_v57 }
 0xa08   :  { %17668 = vmatpush3.msra.mxu0 %v24399_v30 }
 0xa09   :  { %17669 = vmatprep.subr.mxu0 %v24409_v9  ;;  %v13247_v39 = vand.u32 4294901760, %v13246_v36  ;;  %v13253_v35 = vsub.f32 %v13251_v44, %v24459_v41 }
 0xa0a   :  { %17670 = vmatpush3.msra.mxu0 %v24409_v9 }
 0xa0b   :  { %17672 = vmatmul.mubr.f32.vlgmr.msra.gmra.mxu0 %v13152_v63  ;;  %17683 = vmatprep.subr.mxu1 %v13247_v39  ;;  %v13254_v20 = vand.u32 4294901760, %v13253_v35 }
 0xa0c   :  { %17684 = vmatpush3.msra.mxu1 %v13247_v39  ;;  %17674 = vmatprep.mubr.f32.mxu0 %v13162_v0 }
 0xa0d   :  { %17685 = vmatprep.subr.mxu1 %v13254_v20  ;;  %17703 = vmatprep.subr.mxu0 %v13244_v2 }
 0xa0e   :  { %17686 = vmatpush3.msra.mxu1 %v13254_v20  ;;  %17704 = vmatpush3.msra.mxu0 %v13244_v2 }
 0xa0f   :  { %17675 = vmatmul.mubr.f32.gmra.mxu0 %v13172_v33  ;;  %17687 = vmatprep.subr.mxu1 %v13261_v42 }
 0xa10   :  { %17688 = vmatpush3.msra.mxu1 %v13261_v42  ;;  %17705 = vmatprep.subr.mxu0 %v13251_v44 }
 0xa11   :  { %17689 = vmatprep.subr.mxu1 %v13268_v10  ;;  %17706 = vmatpush3.msra.mxu0 %v13251_v44 }
 0xa12   :  { %17677 = vmatprep.mubr.f32.mxu0 %v13182_v22  ;;  %17690 = vmatpush3.msra.mxu1 %v13268_v10 }
 0xa13   :  { %17707 = vmatprep.subr.mxu0 %v24414_v24  ;;  %17678 = vmatmul.mubr.f32.gmra.mxu0 %v13192_v40 }
 0xa14   :  { %17692 = vmatmul.mubr.f32.vlgmr.msra.gmra.mxu1 %v24383_v4  ;;  %17708 = vmatpush3.msra.mxu0 %v24414_v24 }
 0xa15   :  { %17723 = vmatprep.subr.mxu1 %v24416_v48  ;;  %17709 = vmatprep.subr.mxu0 %v24430_v52 }
 0xa16   :  { %17724 = vmatpush3.msra.mxu1 %v24416_v48  ;;  %17710 = vmatpush3.msra.mxu0 %v24430_v52 }
 0xa17   :  { %17725 = vmatprep.subr.mxu1 %v24433_v23  ;;  %17680 = vmatprep.mubr.f32.mxu0 %v13202_v51 }
 0xa18   :  { %17694 = vmatprep.mubr.f32.mxu1 %v24387_v27  ;;  %17726 = vmatpush3.msra.mxu1 %v24433_v23 }
 0xa19   :  { %17681 = vmatmul.mubr.f32.gmra.mxu0 %v13212_v38  ;;  %17695 = vmatmul.mubr.f32.gmra.mxu1 %v24392_v46 }
 0xa1a   :  { %17727 = vmatprep.subr.mxu1 %v24399_v30  ;;  %17697 = vmatprep.mubr.f32.mxu1 %v24405_v50 }
 0xa1b   :  { %17728 = vmatpush3.msra.mxu1 %v24399_v30  ;;  %17711 = vmatprep.mubr.f32.mxu0 %v24367_v32  ;;  %v5550_v32 = vld [vmem:[#allocation11 + $0x8] sm:$0xff] }
 0xa1c   :  { %17729 = vmatprep.subr.mxu1 %v24409_v9  ;;  %17743 = vmatprep.subr.mxu0 %v24444_v12  ;;  %5558 = vst.msk [vmem:[#allocation13 + $0x88] sm:$0xff] %vm3383_vm2, %v5550_v32 }
 0xa1d   :  { %17730 = vmatpush3.msra.mxu1 %v24409_v9  ;;  %17712 = vmatmul.mubr.f32.vlgmr.msra.gmra.mxu0 %v24390_v62  ;;  %v5554_v62 = vld [vmem:[#allocation11 + $0x28] sm:$0xff] }
 0xa1e   :  { %17698 = vmatmul.mubr.f32.gmra.mxu1 %v24407_v15  ;;  %17744 = vmatpush3.msra.mxu0 %v24444_v12  ;;  %5562 = vst.msk [vmem:[#allocation13 + $0xa8] sm:$0xff] %vm3383_vm2, %v5554_v62 }
 0xa1f   :  { %17763 = vmatprep.subr.mxu1 %v24416_v48  ;;  %17745 = vmatprep.subr.mxu0 %v24459_v41 }
 0xa20   :  { %17746 = vmatpush3.msra.mxu0 %v24459_v41  ;;  %17700 = vmatprep.mubr.f32.mxu1 %v24436_v54 }
 0xa21   :  { %17747 = vmatprep.subr.mxu0 %v24447_v8  ;;  %17714 = vmatprep.mubr.f32.mxu0 %v24397_v34  ;;  %v5556_v34 = vld [vmem:[#allocation11 + $0x38] sm:$0xff] }
 0xa22   :  { %17701 = vmatmul.mubr.f32.gmra.mxu1 %v24449_v6  ;;  %17748 = vmatpush3.msra.mxu0 %v24447_v8  ;;  %5564 = vst.msk [vmem:[#allocation13 + $0xb8] sm:$0xff] %vm3383_vm2, %v5556_v34 }
 0xa23   :  { %17749 = vmatprep.subr.mxu0 %v24462_v13  ;;  %17731 = vmatprep.mubr.f32.mxu1 %v13140_v19  ;;  %v5551_v19 = vld [vmem:[#allocation11 + $0x10] sm:$0xff] }
 0xa24   :  { %17750 = vmatpush3.msra.mxu0 %v24462_v13  ;;  %5559 = vst.msk [vmem:[#allocation13 + $0x90] sm:$0xff] %vm3383_vm2, %v5551_v19 }
 0xa25   :  { %17715 = vmatmul.mubr.f32.gmra.mxu0 %v24403_v58  ;;  %v12430_v58 = vld [vmem:[#allocation11 + $0x50] sm:$0xff] }
 0xa26   :  { %17732 = vmatmul.mubr.f32.vlgmr.msra.gmra.mxu1 %v13150_v31  ;;  %17717 = vmatprep.mubr.f32.mxu0 %v24423_v18  ;;  %v12429_v31 = vld [vmem:[#allocation11 + $0x48] sm:$0xff]  ;;  %12438 = vst.msk [vmem:[#allocation13 + $0x190] sm:$0xff] %vm3383_vm2, %v12430_v58 }
 0xa27   :  { %17764 = vmatpush3.msra.mxu1 %v24416_v48  ;;  %17734 = vmatprep.mubr.f32.mxu1 %v13160_v29  ;;  %12437 = vst.msk [vmem:[#allocation13 + $0x188] sm:$0xff] %vm3383_vm2, %v12429_v31 }
 0xa28   :  { %17765 = vmatprep.subr.mxu1 %v24433_v23 }
 0xa29   :  { %17766 = vmatpush3.msra.mxu1 %v24433_v23  ;;  %17718 = vmatmul.mubr.f32.gmra.mxu0 %v24426_v43 }
 0xa2a   :  { %17767 = vmatprep.subr.mxu1 %v24399_v30  ;;  %17735 = vmatmul.mubr.f32.gmra.mxu1 %v13170_v17 }
 0xa2b   :  { %17768 = vmatpush3.msra.mxu1 %v24399_v30  ;;  %17737 = vmatprep.mubr.f32.mxu1 %v13180_v59  ;;  %v12428_v30 = vld [vmem:[#allocation11 + $0x40] sm:$0xff] }
 0xa2c   :  { %17769 = vmatprep.subr.mxu1 %v24409_v9  ;;  %17720 = vmatprep.mubr.f32.mxu0 %v24465_v28  ;;  %12436 = vst.msk [vmem:[#allocation13 + $0x180] sm:$0xff] %vm3383_vm2, %v12428_v30 }
 0xa2d   :  { %17770 = vmatpush3.msra.mxu1 %v24409_v9  ;;  %17721 = vmatmul.mubr.f32.gmra.mxu0 %v24473_v14  ;;  %v12433_v9 = vld [vmem:[#allocation11 + $0x68] sm:$0xff] }
 0xa2e   :  { %17738 = vmatmul.mubr.f32.gmra.mxu1 %v13190_v56  ;;  %17751 = vmatprep.mubr.f32.mxu0 %v24364_v7  ;;  %12441 = vst.msk [vmem:[#allocation13 + $0x1a8] sm:$0xff] %vm3383_vm2, %v12433_v9 }
 0xa2f   :  { %17740 = vmatprep.mubr.f32.mxu1 %v13200_v5 }
 0xa31   :  { %17752 = vmatmul.mubr.f32.vlgmr.msra.gmra.mxu0 %v24383_v4 }
 0xa32   :  { %17741 = vmatmul.mubr.f32.gmra.mxu1 %v13210_v61  ;;  %17754 = vmatprep.mubr.f32.mxu0 %v24387_v27 }
 0xa33   :  { %17771 = vmatprep.mubr.f32.mxu1 %v24364_v7  ;;  %v5549_v7 = vld [vmem:[#allocation11] sm:$0xff] }
 0xa34   :  { %5557 = vst.msk [vmem:[#allocation13 + $0x80] sm:$0xff] %vm3383_vm2, %v5549_v7 }
 0xa35   :  { %17755 = vmatmul.mubr.f32.gmra.mxu0 %v24392_v46 }
 0xa36   :  { %17772 = vmatmul.mubr.f32.vlgmr.msra.gmra.mxu1 %v24383_v4  ;;  %17757 = vmatprep.mubr.f32.mxu0 %v24405_v50  ;;  %v5552_v4 = vld [vmem:[#allocation11 + $0x18] sm:$0xff] }
 0xa37   :  { %17774 = vmatprep.mubr.f32.mxu1 %v24387_v27  ;;  %v5553_v27 = vld [vmem:[#allocation11 + $0x20] sm:$0xff]  ;;  %5560 = vst.msk [vmem:[#allocation13 + $0x98] sm:$0xff] %vm3383_vm2, %v5552_v4 }
 0xa38   :  { %5561 = vst.msk [vmem:[#allocation13 + $0xa0] sm:$0xff] %vm3383_vm2, %v5553_v27 }
 0xa39   :  { %17758 = vmatmul.mubr.f32.gmra.mxu0 %v24407_v15 }
 0xa3a   :  { %17775 = vmatmul.mubr.f32.gmra.mxu1 %v24392_v46  ;;  %17760 = vmatprep.mubr.f32.mxu0 %v24436_v54  ;;  %v5555_v46 = vld [vmem:[#allocation11 + $0x30] sm:$0xff] }
 0xa3b   :  { %17777 = vmatprep.mubr.f32.mxu1 %v24405_v50  ;;  %5563 = vst.msk [vmem:[#allocation13 + $0xb0] sm:$0xff] %vm3383_vm2, %v5555_v46  ;;  %v12431_v50 = vld [vmem:[#allocation11 + $0x58] sm:$0xff] }
 0xa3c   :  { %12439 = vst.msk [vmem:[#allocation13 + $0x198] sm:$0xff] %vm3383_vm2, %v12431_v50 }
 0xa3d   :  { %17761 = vmatmul.mubr.f32.gmra.mxu0 %v24449_v6 }
 0xa3e   :  { %17778 = vmatmul.mubr.f32.gmra.mxu1 %v24407_v15  ;;  %v12432_v15 = vld [vmem:[#allocation11 + $0x60] sm:$0xff] }
 0xa3f   :  { %17780 = vmatprep.mubr.f32.mxu1 %v24436_v54  ;;  %12440 = vst.msk [vmem:[#allocation13 + $0x1a0] sm:$0xff] %vm3383_vm2, %v12432_v15 }
 0xa42   :  { %17781 = vmatmul.mubr.f32.gmra.mxu1 %v24449_v6 }
 0xacb   :  { %v17673_v60 = vpop.f32.mrf.mxu0 }
 0xacd   :  { %v13144_v29 = vpop.f32.mrf.mxu0 }
 0xacf   :  { %v17676_v49 = vpop.f32.mrf.mxu0 }
 0xad1   :  { %v13164_v24 = vpop.f32.mrf.mxu0 }
 0xad3   :  { %v17679_v48 = vpop.f32.mrf.mxu0 }
 0xad4   :  { %v17693_v37 = vpop.f32.mrf.mxu1 }
 0xad5   :  { %v13184_v53 = vpop.f32.mrf.mxu0  ;;  %v13312_v0 = vadd.f32 %v17693_v37, %v17673_v60 }
 0xad6   :  { %v13305_v17 = vpop.f32.mrf.mxu1 }
 0xad7   :  { %v13306_v25 = vadd.f32 %v13305_v17, %v13144_v29 }
 0xad9   :  { %v17696_v18 = vpop.f32.mrf.mxu1  ;;  %v17682_v43 = vpop.f32.mrf.mxu0 }
 0xada   :  { %v13324_v20 = vadd.f32 %v17696_v18, %v17676_v49 }
 0xadb   :  { %v13317_v26 = vpop.f32.mrf.mxu1  ;;  %v13204_v52 = vpop.f32.mrf.mxu0 }
 0xadc   :  { %v13318_v61 = vadd.f32 %v13317_v26, %v13164_v24 }
 0xadd   :  { %v17713_v2 = vpop.f32.mrf.mxu0 }
 0xade   :  { %v17699_v23 = vpop.f32.mrf.mxu1  ;;  %v13435_v14 = vadd.f32 %v17713_v2, %v13312_v0 }
 0xadf   :  { %v13427_v11 = vpop.f32.mrf.mxu0  ;;  %v13336_v45 = vadd.f32 %v17699_v23, %v17679_v48 }
 0xae0   :  { %v13329_v54 = vpop.f32.mrf.mxu1  ;;  %v13428_v57 = vadd.f32 %v13427_v11, %v13306_v25 }
 0xae1   :  { %v13330_v27 = vadd.f32 %v13329_v54, %v13184_v53 }
 0xae2   :  { %v17702_v44 = vpop.f32.mrf.mxu1 }
 0xae3   :  { %v13348_v50 = vadd.f32 %v17702_v44, %v17682_v43 }
 0xae4   :  { %v13341_v12 = vpop.f32.mrf.mxu1 }
 0xae5   :  { %v17716_v8 = vpop.f32.mrf.mxu0  ;;  %v13342_v49 = vadd.f32 %v13341_v12, %v13204_v52 }
 0xae6   :  { %v17733_v6 = vpop.f32.mrf.mxu1  ;;  %v13449_v22 = vadd.f32 %v17716_v8, %v13324_v20 }
 0xae7   :  { %v13441_v63 = vpop.f32.mrf.mxu0  ;;  %v13562_v3 = vadd.f32 %v17733_v6, %v13435_v14 }
 0xae8   :  { %v13553_v55 = vpop.f32.mrf.mxu1  ;;  %v13442_v38 = vadd.f32 %v13441_v63, %v13318_v61 }
 0xae9   :  { %v17719_v59 = vpop.f32.mrf.mxu0  ;;  %v13554_v10 = vadd.f32 %v13553_v55, %v13428_v57 }
 0xaea   :  { %v17736_v56 = vpop.f32.mrf.mxu1  ;;  %v13463_v46 = vadd.f32 %v17719_v59, %v13336_v45 }
 0xaeb   :  { %v13455_v36 = vpop.f32.mrf.mxu0  ;;  %v13578_v7 = vadd.f32 %v17736_v56, %v13449_v22 }
 0xaec   :  { %v13569_v41 = vpop.f32.mrf.mxu1  ;;  %v13456_v9 = vadd.f32 %v13455_v36, %v13330_v27 }
 0xaed   :  { %v17722_v13 = vpop.f32.mrf.mxu0  ;;  %v13570_v34 = vadd.f32 %v13569_v41, %v13442_v38 }
 0xaee   :  { %v17739_v28 = vpop.f32.mrf.mxu1  ;;  %v13477_v48 = vadd.f32 %v17722_v13, %v13348_v50 }
 0xaef   :  { %v13469_v39 = vpop.f32.mrf.mxu0  ;;  %v13594_v21 = vadd.f32 %v17739_v28, %v13463_v46 }
 0xaf0   :  { %v13585_v35 = vpop.f32.mrf.mxu1  ;;  %v13470_v2 = vadd.f32 %v13469_v39, %v13342_v49 }
 0xaf1   :  { %v17753_v33 = vpop.f32.mrf.mxu0  ;;  %v13586_v37 = vadd.f32 %v13585_v35, %v13456_v9 }
 0xaf2   :  { %v17742_v16 = vpop.f32.mrf.mxu1  ;;  %v13699_v40 = vadd.f32 %v17753_v33, %v13562_v3 }
 0xaf3   :  { %v13692_v5 = vpop.f32.mrf.mxu0  ;;  %v13610_v43 = vadd.f32 %v17742_v16, %v13477_v48 }
 0xaf4   :  { %v13601_v42 = vpop.f32.mrf.mxu1  ;;  %v13693_v32 = vadd.f32 %v13692_v5, %v13554_v10 }
 0xaf5   :  { %v17756_v47 = vpop.f32.mrf.mxu0  ;;  %v13602_v8 = vadd.f32 %v13601_v42, %v13470_v2 }
 0xaf6   :  { %v17773_v51 = vpop.f32.mrf.mxu1  ;;  %v13711_v30 = vadd.f32 %v17756_v47, %v13578_v7 }
 0xaf7   :  { %v13816_v19 = vadd.f32 %v17773_v51, %v13699_v40  ;;  %v13704_v4 = vpop.f32.mrf.mxu0 }
 0xaf8   :  { %v13809_v62 = vpop.f32.mrf.mxu1  ;;  %v13705_v1 = vadd.f32 %v13704_v4, %v13570_v34 }
 0xaf9   :  { %13856 = vst.msk [vmem:[#allocation13 + $0x1c8] sm:$0xff] %vm3383_vm2, %v13816_v19  ;;  %v13810_v31 = vadd.f32 %v13809_v62, %v13693_v32  ;;  %v17759_v58 = vpop.f32.mrf.mxu0 }
 0xafa   :  { %v17776_v15 = vpop.f32.mrf.mxu1  ;;  %v13723_v53 = vadd.f32 %v17759_v58, %v13594_v21 }
 0xafb   :  { %13855 = vst.msk [vmem:[#allocation13 + $0x1c0] sm:$0xff] %vm3383_vm2, %v13810_v31  ;;  %v13828_v60 = vadd.f32 %v17776_v15, %v13711_v30  ;;  %v13716_v29 = vpop.f32.mrf.mxu0 }
 0xafc   :  { %v13821_v24 = vpop.f32.mrf.mxu1  ;;  %v13717_v23 = vadd.f32 %v13716_v29, %v13586_v37 }
 0xafd   :  { %13858 = vst.msk [vmem:[#allocation13 + $0x1d8] sm:$0xff] %vm3383_vm2, %v13828_v60  ;;  %v13822_v17 = vadd.f32 %v13821_v24, %v13705_v1  ;;  %v17762_v18 = vpop.f32.mrf.mxu0 }
 0xafe   :  { %v17779_v26 = vpop.f32.mrf.mxu1  ;;  %v13735_v52 = vadd.f32 %v17762_v18, %v13610_v43 }
 0xaff   :  { %13857 = vst.msk [vmem:[#allocation13 + $0x1d0] sm:$0xff] %vm3383_vm2, %v13822_v17  ;;  %v13840_v54 = vadd.f32 %v17779_v26, %v13723_v53  ;;  %v13728_v44 = vpop.f32.mrf.mxu0 }
 0xb00   :  { %v13833_v11 = vpop.f32.mrf.mxu1  ;;  %v13729_v63 = vadd.f32 %v13728_v44, %v13602_v8 }
 0xb01   :  { %13860 = vst.msk [vmem:[#allocation13 + $0x1e8] sm:$0xff] %vm3383_vm2, %v13840_v54  ;;  %v13834_v12 = vadd.f32 %v13833_v11, %v13717_v23 }
 0xb02   :  { %v17782_v6 = vpop.f32.mrf.mxu1 }
 0xb03   :  { %13859 = vst.msk [vmem:[#allocation13 + $0x1e0] sm:$0xff] %vm3383_vm2, %v13834_v12  ;;  %v13852_v55 = vadd.f32 %v17782_v6, %v13735_v52 }
 0xb04   :  { %v13845_v59 = vpop.f32.mrf.mxu1 }
 0xb05   :  { %13862 = vst.msk [vmem:[#allocation13 + $0x1f8] sm:$0xff] %vm3383_vm2, %v13852_v55  ;;  %v13846_v56 = vadd.f32 %v13845_v59, %v13729_v63 }
 0xb07   :  { %13861 = vst.msk [vmem:[#allocation13 + $0x1f0] sm:$0xff] %vm3383_vm2, %v13846_v56 }
 0xb08   :  { %17925 = shalt.err (!%p17922_p6)
}
 0xb09   :  { %13874 = dma.vmem_to_hbm [thread:$0]  %s13869_s5, 8192, %s24603_s6, [#allocation4], %s17949_s9, %s17949_s9, %s17950_s10  }
 0xb0a   :  { %17942 = dma.done.wait [#allocation4], 8192  }
 0xb0b   :  { %17943 = vsyncadd [#allocation4], 4294959104 }
 0xb0c   :  { %13878 = vsyncpa [#allocation3], 1 }
 0xb0d   :  { %13879 = vsyncpa [#allocation6], 1 }
 0xb0e   :  { %13880 = vsyncpa [#allocation9], 1 }
 0xb0f   :  { %13881 = vsyncpa [#allocation12], 1 }
 0xb10   :  { %13882 = vsyncpa [#allocation4], 1 }

</bundles_post_ra>
